<compile_context>
chip_gen: v6e
topology: v6e:2x2x1
jax: 0.10.0
libtpu: 0.0.40
codegen_flags: <defaults>
</compile_context>

<pallas_src>
import jax
import jax.numpy as jnp
from jax import lax
from jax.experimental import pallas as pl
from jax.experimental.pallas import tpu as pltpu

HEIGHT = 8       # small stand-in for the module's height=50 (must be even)
WIDTH = 16       # small stand-in for the module's width=200 (must be even)
N_CLASSES = 19
COUT = 64                        # conv2 output channels
H2, W2 = HEIGHT // 2, WIDTH // 2
T = W2                           # sequence length after the literal torch.reshape
CPR = COUT // W2                 # channels per reshaped row (shape-specialized)
N_PAD = 128                      # lane-dense padded class dimension

assert HEIGHT % 2 == 0 and WIDTH % 2 == 0
assert COUT % W2 == 0, "shape-specialized torch.reshape emulation needs (W//2) | 64"


def _vmem_specs(n):
    return [pl.BlockSpec(memory_space=pltpu.MemorySpace.VMEM) for _ in range(n)]


# --------------------------- fused forward kernel ---------------------------

def _bilstm(x, wih_ref, whh_ref, b_ref, hidden):
    """Fused bidirectional LSTM, PyTorch gate order (i,f,g,o), zero init state.

    Weight layout (built at init): gate-major, direction-interleaved columns
    col = g*2H + d*H + u.  h/c state is [h_fwd | h_bwd] of width 2H, so every
    gate slice below is a 128-lane-aligned slice (2H is 256 for rnn1, 128 for rnn2).
    """
    seq = x.shape[0]
    two_h = 2 * hidden
    # One wide input projection for both directions / all timesteps (bf16 MXU, f32 acc).
    xg = jnp.dot(x.astype(jnp.bfloat16), wih_ref[...],
                 preferred_element_type=jnp.float32) + b_ref[...]          # (T, 8H)
    col = lax.broadcasted_iota(jnp.int32, (1, 8 * hidden), 1)
    fwd_mask = (col % two_h) < hidden                                      # hoisted

    h = jnp.zeros((1, two_h), jnp.float32)
    c = jnp.zeros((1, two_h), jnp.float32)
    outs_f, outs_b = [], []
    for s in range(seq):                       # fully unrolled (T is small & static)
        # fwd columns read timestep s, bwd columns read timestep T-1-s (no flips).
        xrow = jnp.where(fwd_mask, xg[s:s + 1, :], xg[seq - 1 - s:seq - s, :])
        gates = xrow + jnp.dot(h.astype(jnp.bfloat16), whh_ref[...],
                               preferred_element_type=jnp.float32)         # (1, 8H)
        i_g = jax.nn.sigmoid(gates[:, 0 * two_h:1 * two_h])
        f_g = jax.nn.sigmoid(gates[:, 1 * two_h:2 * two_h])
        g_g = jnp.tanh(gates[:, 2 * two_h:3 * two_h])
        o_g = jax.nn.sigmoid(gates[:, 3 * two_h:4 * two_h])
        c = f_g * c + i_g * g_g
        h = o_g * jnp.tanh(c)
        outs_f.append(h[:, :hidden])
        outs_b.append(h[:, hidden:])
    out_f = jnp.concatenate(outs_f, axis=0)            # (T, H), time ascending
    out_b = jnp.concatenate(outs_b[::-1], axis=0)      # (T, H), time ascending
    # TODO(synk): directions summed instead of concatenated (see header note).
    return out_f + out_b


def ocr_fused_kernel(p00, p01, p10, p11,
                     w9t_ref, cb_ref,
                     wd_ref, bd_ref,
                     wih1_ref, whh1_ref, b1_ref,
                     wih2_ref, whh2_ref, b2_ref,
                     wo_ref, bo_ref,
                     o_ref):
    f32 = jnp.float32

    # ---- conv 3x3 (pad=1) + ReLU + 2x2 maxpool, channel-on-sublane layout ----
    # p[pr][pc][i, j] = padded_image[2i + pr, 2j + pc]
    par = ((p00[...], p01[...]), (p10[...], p11[...]))
    # 16 possible flattened (H2, W2) windows, built once from static slices + concats.
    flat = {}
    for pr in range(2):
        for pc in range(2):
            img = par[pr][pc]
            for r0 in range(2):
                for c0 in range(2):
                    rows = [img[r0 + h:r0 + h + 1, c0:c0 + W2] for h in range(H2)]
                    flat[(pr, r0, pc, c0)] = jnp.concatenate(rows, axis=1)  # (1, H2*W2)

    pooled = None
    for qa in range(2):                      # pooling quadrant row offset
        for qb in range(2):                  # pooling quadrant col offset
            taps = []
            for dh in range(3):
                for dw in range(3):
                    rr, ww = qa + dh, qb + dw
                    taps.append(flat[(rr & 1, rr >> 1, ww & 1, ww >> 1)])
            s_q = jnp.concatenate(taps, axis=0)                       # (9, H2*W2)
            conv_q = jnp.dot(w9t_ref[...], s_q,
                             preferred_element_type=f32)              # (COUT, H2*W2)
            pooled = conv_q if pooled is None else jnp.maximum(pooled, conv_q)
    # bias added once after the quadrant max; ReLU/pool commute with the max.
    pooled = jnp.maximum(pooled + cb_ref[...], 0.0)                   # (COUT, H2*W2)

    # ---- literal torch.reshape(new_shape): rows = groups of CPR channels ----
    # dense_in[r, cc*H2*W2 + hw] = pooled[CPR*r + cc, hw]; realized with constant
    # 0/1 selection matmuls + a lane concat (no in-kernel reshapes/transposes).
    r_ids = lax.broadcasted_iota(jnp.int32, (W2, COUT), 0)
    c_ids = lax.broadcasted_iota(jnp.int32, (W2, COUT), 1)
    parts = []
    for cc in range(CPR):
        sel = (c_ids == CPR * r_ids + cc).astype(f32)                 # (W2, COUT)
        parts.append(jnp.dot(sel, pooled, preferred_element_type=f32))  # (W2, H2*W2)
    dense_in = jnp.concatenate(parts, axis=1)                         # (W2, H2*COUT)

    # ---- dense1 (+ dropout1 identity) ----
    feat = jnp.dot(dense_in.astype(jnp.bfloat16), wd_ref[...],
                   preferred_element_type=f32) + bd_ref[...]          # (T, 64)

    # ---- fused bidirectional LSTMs (+ dropout2 identity) ----
    feat = _bilstm(feat, wih1_ref, whh1_ref, b1_ref, 128)             # (T, 128)
    feat = _bilstm(feat, wih2_ref, whh2_ref, b2_ref, 64)              # (T, 64)

    # ---- output linear + softmax over the (padded, lane-dense) class dim ----
    logits = jnp.dot(feat.astype(jnp.bfloat16), wo_ref[...],
                     preferred_element_type=f32) + bo_ref[...]        # (T, N_PAD)
    z = logits - jnp.max(logits, axis=1, keepdims=True)
    e = jnp.exp(z)                       # padded logits are -1e30 -> exp == 0
    o_ref[...] = e * pl.reciprocal(jnp.sum(e, axis=1, keepdims=True), approx=True)


# ------------------------------ forward wrapper ------------------------------

def ocr_forward(params, x):
    # TODO(synk): conv1/ReLU/max_pool1 branch is computed and discarded in the
    # original forward (overwritten by conv2(x)); the dead branch is skipped.
    x2d = x[0, 0]                                                     # (H, W)
    xpad = jnp.pad(x2d, ((1, 1), (1, 1)))                             # (H+2, W+2)
    # parity-split padded image: only image-sized prep in XLA (no 9x im2col).
    parity = [xpad[a::2, b::2] for a in range(2) for b in range(2)]   # 4 x (H/2+1, W/2+1)

    out_pad = pl.pallas_call(
        ocr_fused_kernel,
        out_shape=jax.ShapeDtypeStruct((T, N_PAD), jnp.float32),
        in_specs=_vmem_specs(16),
        out_specs=pl.BlockSpec(memory_space=pltpu.MemorySpace.VMEM),
        compiler_params=pltpu.CompilerParams(vmem_limit_bytes=16 * 1024 * 1024),
    )(*parity,
      params["conv_w9t"], params["conv_b"],
      params["dense1_w"], params["dense1_b"],
      params["rnn1_wih"], params["rnn1_whh"], params["rnn1_b"],
      params["rnn2_wih"], params["rnn2_whh"], params["rnn2_b"],
      params["out_w"], params["out_b"])
    return out_pad[:, :N_CLASSES]


# ----------------------------- parameter init -----------------------------

def combine_bidir(dirs, in_size, hidden):
    """Fuse fwd/bwd PyTorch LSTM params into the kernel's combined layout.

    Column index: g*2H + d*H + u (gate-major, direction-interleaved).
    Recurrent weight is block-diagonal over directions, rows = [h_fwd | h_bwd].
    """
    w_ih = jnp.zeros((in_size, 8 * hidden), jnp.float32)
    w_hh = jnp.zeros((2 * hidden, 8 * hidden), jnp.float32)
    bias = jnp.zeros((8 * hidden,), jnp.float32)
    for d, (wih_d, whh_d, bih_d, bhh_d) in enumerate(dirs):
        for g in range(4):
            cols = slice(g * 2 * hidden + d * hidden, g * 2 * hidden + (d + 1) * hidden)
            rows = slice(g * hidden, (g + 1) * hidden)
            w_ih = w_ih.at[:, cols].set(wih_d[rows, :].T)
            w_hh = w_hh.at[d * hidden:(d + 1) * hidden, cols].set(whh_d[rows, :].T)
            bias = bias.at[cols].set(bih_d[rows] + bhh_d[rows])
    return (w_ih.astype(jnp.bfloat16), w_hh.astype(jnp.bfloat16),
            bias.reshape(1, 8 * hidden))


def init_params(key):
    ks = list(jax.random.split(key, 22))

    def u(shape, fan_in):
        bound = float(fan_in) ** -0.5
        return jax.random.uniform(ks.pop(0), shape, jnp.float32, -bound, bound)

    # TODO(synk): conv2 declared Conv2d(32, 64) but forward applies it to the
    # 1-channel input; in_channels set to 1 to match the literal dataflow.
    conv_w = u((COUT, 1, 3, 3), 9)
    conv_b = u((COUT,), 9)

    dense_in_f = H2 * COUT
    d_w = u((64, dense_in_f), dense_in_f)
    d_b = u((64,), dense_in_f)

    def lstm_dir(input_size, hidden):
        return (u((4 * hidden, input_size), hidden),   # weight_ih
                u((4 * hidden, hidden), hidden),       # weight_hh
                u((4 * hidden,), hidden),              # bias_ih
                u((4 * hidden,), hidden))              # bias_hh

    rnn1 = [lstm_dir(64, 128), lstm_dir(64, 128)]      # [fwd, bwd]
    rnn2 = [lstm_dir(128, 64), lstm_dir(128, 64)]

    o_w = u((N_CLASSES, 64), 64)
    o_b = u((N_CLASSES,), 64)

    # one-time layout transforms: transposed / fused / padded weights (bf16 for MXU).
    wih1, whh1, b1 = combine_bidir(rnn1, 64, 128)
    wih2, whh2, b2 = combine_bidir(rnn2, 128, 64)
    wo = jnp.zeros((64, N_PAD), jnp.float32).at[:, :N_CLASSES].set(o_w.T)
    bo = jnp.full((1, N_PAD), -1e30, jnp.float32).at[0, :N_CLASSES].set(o_b)

    return {
        "conv_w9t": conv_w.reshape(COUT, 9),              # (64, 9)  f32
        "conv_b": conv_b.reshape(COUT, 1),                # (64, 1)  f32
        "dense1_w": d_w.T.astype(jnp.bfloat16),           # (H2*64, 64) bf16
        "dense1_b": d_b.reshape(1, 64),                   # f32
        "rnn1_wih": wih1, "rnn1_whh": whh1, "rnn1_b": b1,
        "rnn2_wih": wih2, "rnn2_whh": whh2, "rnn2_b": b2,
        "out_w": wo.astype(jnp.bfloat16),                 # (64, 128) bf16 (padded)
        "out_b": bo,                                      # (1, 128)  f32 (padded -1e30)
    }


if __name__ == "__main__":
    key = jax.random.PRNGKey(0)
    pkey, xkey = jax.random.split(key)
    params = init_params(pkey)
    x = jax.random.normal(xkey, (1, 1, HEIGHT, WIDTH), jnp.float32)

    out = jax.jit(ocr_forward)(params, x)
    out = jax.block_until_ready(out)

    assert out.shape == (WIDTH // 2, N_CLASSES), out.shape
    assert bool(jnp.all(jnp.isfinite(out)))
    # rows are probability distributions; tolerance covers the EUP approx reciprocal.
    assert bool(jnp.allclose(jnp.sum(out, axis=1), 1.0, atol=2e-2))
    print("KERNEL_OK")
</pallas_src>

<mosaic_0001>
module attributes {stable_mosaic.version = 11 : i64} {
  func.func @ocr_fused_kernel(%arg0: memref<5x9xf32, #tpu.memory_space<vmem>>, %arg1: memref<5x9xf32, #tpu.memory_space<vmem>>, %arg2: memref<5x9xf32, #tpu.memory_space<vmem>>, %arg3: memref<5x9xf32, #tpu.memory_space<vmem>>, %arg4: memref<64x9xf32, #tpu.memory_space<vmem>>, %arg5: memref<64x1xf32, #tpu.memory_space<vmem>>, %arg6: memref<256x64xbf16, #tpu.memory_space<vmem>>, %arg7: memref<1x64xf32, #tpu.memory_space<vmem>>, %arg8: memref<64x1024xbf16, #tpu.memory_space<vmem>>, %arg9: memref<256x1024xbf16, #tpu.memory_space<vmem>>, %arg10: memref<1x1024xf32, #tpu.memory_space<vmem>>, %arg11: memref<128x512xbf16, #tpu.memory_space<vmem>>, %arg12: memref<128x512xbf16, #tpu.memory_space<vmem>>, %arg13: memref<1x512xf32, #tpu.memory_space<vmem>>, %arg14: memref<64x128xbf16, #tpu.memory_space<vmem>>, %arg15: memref<1x128xf32, #tpu.memory_space<vmem>>, %arg16: memref<8x128xf32, #tpu.memory_space<vmem>>) attributes {dimension_semantics = [], scalar_prefetch = 0 : i64, scratch_operands = 0 : i64, tpu.core_type = #tpu.core_type<tc>} {
    %c0 = arith.constant 0 : index
    %c0_0 = arith.constant 0 : index
    %0 = vector.load %arg0[%c0, %c0_0] : memref<5x9xf32, #tpu.memory_space<vmem>>, vector<5x9xf32>
    %c0_1 = arith.constant 0 : index
    %c0_2 = arith.constant 0 : index
    %1 = vector.load %arg1[%c0_1, %c0_2] : memref<5x9xf32, #tpu.memory_space<vmem>>, vector<5x9xf32>
    %c0_3 = arith.constant 0 : index
    %c0_4 = arith.constant 0 : index
    %2 = vector.load %arg2[%c0_3, %c0_4] : memref<5x9xf32, #tpu.memory_space<vmem>>, vector<5x9xf32>
    %c0_5 = arith.constant 0 : index
    %c0_6 = arith.constant 0 : index
    %3 = vector.load %arg3[%c0_5, %c0_6] : memref<5x9xf32, #tpu.memory_space<vmem>>, vector<5x9xf32>
    %4 = vector.extract_strided_slice %0 {offsets = [0, 0], sizes = [1, 8], strides = [1, 1]} : vector<5x9xf32> to vector<1x8xf32>
    %5 = vector.extract_strided_slice %0 {offsets = [1, 0], sizes = [1, 8], strides = [1, 1]} : vector<5x9xf32> to vector<1x8xf32>
    %6 = vector.extract_strided_slice %0 {offsets = [2, 0], sizes = [1, 8], strides = [1, 1]} : vector<5x9xf32> to vector<1x8xf32>
    %7 = vector.extract_strided_slice %0 {offsets = [3, 0], sizes = [1, 8], strides = [1, 1]} : vector<5x9xf32> to vector<1x8xf32>
    %8 = tpu.concatenate %4, %5, %6, %7 in 1 : vector<1x8xf32>, vector<1x8xf32>, vector<1x8xf32>, vector<1x8xf32> -> vector<1x32xf32>
    %9 = vector.extract_strided_slice %0 {offsets = [0, 1], sizes = [1, 8], strides = [1, 1]} : vector<5x9xf32> to vector<1x8xf32>
    %10 = vector.extract_strided_slice %0 {offsets = [1, 1], sizes = [1, 8], strides = [1, 1]} : vector<5x9xf32> to vector<1x8xf32>
    %11 = vector.extract_strided_slice %0 {offsets = [2, 1], sizes = [1, 8], strides = [1, 1]} : vector<5x9xf32> to vector<1x8xf32>
    %12 = vector.extract_strided_slice %0 {offsets = [3, 1], sizes = [1, 8], strides = [1, 1]} : vector<5x9xf32> to vector<1x8xf32>
    %13 = tpu.concatenate %9, %10, %11, %12 in 1 : vector<1x8xf32>, vector<1x8xf32>, vector<1x8xf32>, vector<1x8xf32> -> vector<1x32xf32>
    %14 = vector.extract_strided_slice %0 {offsets = [1, 0], sizes = [1, 8], strides = [1, 1]} : vector<5x9xf32> to vector<1x8xf32>
    %15 = vector.extract_strided_slice %0 {offsets = [2, 0], sizes = [1, 8], strides = [1, 1]} : vector<5x9xf32> to vector<1x8xf32>
    %16 = vector.extract_strided_slice %0 {offsets = [3, 0], sizes = [1, 8], strides = [1, 1]} : vector<5x9xf32> to vector<1x8xf32>
    %17 = vector.extract_strided_slice %0 {offsets = [4, 0], sizes = [1, 8], strides = [1, 1]} : vector<5x9xf32> to vector<1x8xf32>
    %18 = tpu.concatenate %14, %15, %16, %17 in 1 : vector<1x8xf32>, vector<1x8xf32>, vector<1x8xf32>, vector<1x8xf32> -> vector<1x32xf32>
    %19 = vector.extract_strided_slice %0 {offsets = [1, 1], sizes = [1, 8], strides = [1, 1]} : vector<5x9xf32> to vector<1x8xf32>
    %20 = vector.extract_strided_slice %0 {offsets = [2, 1], sizes = [1, 8], strides = [1, 1]} : vector<5x9xf32> to vector<1x8xf32>
    %21 = vector.extract_strided_slice %0 {offsets = [3, 1], sizes = [1, 8], strides = [1, 1]} : vector<5x9xf32> to vector<1x8xf32>
    %22 = vector.extract_strided_slice %0 {offsets = [4, 1], sizes = [1, 8], strides = [1, 1]} : vector<5x9xf32> to vector<1x8xf32>
    %23 = tpu.concatenate %19, %20, %21, %22 in 1 : vector<1x8xf32>, vector<1x8xf32>, vector<1x8xf32>, vector<1x8xf32> -> vector<1x32xf32>
    %24 = vector.extract_strided_slice %1 {offsets = [0, 0], sizes = [1, 8], strides = [1, 1]} : vector<5x9xf32> to vector<1x8xf32>
    %25 = vector.extract_strided_slice %1 {offsets = [1, 0], sizes = [1, 8], strides = [1, 1]} : vector<5x9xf32> to vector<1x8xf32>
    %26 = vector.extract_strided_slice %1 {offsets = [2, 0], sizes = [1, 8], strides = [1, 1]} : vector<5x9xf32> to vector<1x8xf32>
    %27 = vector.extract_strided_slice %1 {offsets = [3, 0], sizes = [1, 8], strides = [1, 1]} : vector<5x9xf32> to vector<1x8xf32>
    %28 = tpu.concatenate %24, %25, %26, %27 in 1 : vector<1x8xf32>, vector<1x8xf32>, vector<1x8xf32>, vector<1x8xf32> -> vector<1x32xf32>
    %29 = vector.extract_strided_slice %1 {offsets = [0, 1], sizes = [1, 8], strides = [1, 1]} : vector<5x9xf32> to vector<1x8xf32>
    %30 = vector.extract_strided_slice %1 {offsets = [1, 1], sizes = [1, 8], strides = [1, 1]} : vector<5x9xf32> to vector<1x8xf32>
    %31 = vector.extract_strided_slice %1 {offsets = [2, 1], sizes = [1, 8], strides = [1, 1]} : vector<5x9xf32> to vector<1x8xf32>
    %32 = vector.extract_strided_slice %1 {offsets = [3, 1], sizes = [1, 8], strides = [1, 1]} : vector<5x9xf32> to vector<1x8xf32>
    %33 = tpu.concatenate %29, %30, %31, %32 in 1 : vector<1x8xf32>, vector<1x8xf32>, vector<1x8xf32>, vector<1x8xf32> -> vector<1x32xf32>
    %34 = vector.extract_strided_slice %1 {offsets = [1, 0], sizes = [1, 8], strides = [1, 1]} : vector<5x9xf32> to vector<1x8xf32>
    %35 = vector.extract_strided_slice %1 {offsets = [2, 0], sizes = [1, 8], strides = [1, 1]} : vector<5x9xf32> to vector<1x8xf32>
    %36 = vector.extract_strided_slice %1 {offsets = [3, 0], sizes = [1, 8], strides = [1, 1]} : vector<5x9xf32> to vector<1x8xf32>
    %37 = vector.extract_strided_slice %1 {offsets = [4, 0], sizes = [1, 8], strides = [1, 1]} : vector<5x9xf32> to vector<1x8xf32>
    %38 = tpu.concatenate %34, %35, %36, %37 in 1 : vector<1x8xf32>, vector<1x8xf32>, vector<1x8xf32>, vector<1x8xf32> -> vector<1x32xf32>
    %39 = vector.extract_strided_slice %1 {offsets = [1, 1], sizes = [1, 8], strides = [1, 1]} : vector<5x9xf32> to vector<1x8xf32>
    %40 = vector.extract_strided_slice %1 {offsets = [2, 1], sizes = [1, 8], strides = [1, 1]} : vector<5x9xf32> to vector<1x8xf32>
    %41 = vector.extract_strided_slice %1 {offsets = [3, 1], sizes = [1, 8], strides = [1, 1]} : vector<5x9xf32> to vector<1x8xf32>
    %42 = vector.extract_strided_slice %1 {offsets = [4, 1], sizes = [1, 8], strides = [1, 1]} : vector<5x9xf32> to vector<1x8xf32>
    %43 = tpu.concatenate %39, %40, %41, %42 in 1 : vector<1x8xf32>, vector<1x8xf32>, vector<1x8xf32>, vector<1x8xf32> -> vector<1x32xf32>
    %44 = vector.extract_strided_slice %2 {offsets = [0, 0], sizes = [1, 8], strides = [1, 1]} : vector<5x9xf32> to vector<1x8xf32>
    %45 = vector.extract_strided_slice %2 {offsets = [1, 0], sizes = [1, 8], strides = [1, 1]} : vector<5x9xf32> to vector<1x8xf32>
    %46 = vector.extract_strided_slice %2 {offsets = [2, 0], sizes = [1, 8], strides = [1, 1]} : vector<5x9xf32> to vector<1x8xf32>
    %47 = vector.extract_strided_slice %2 {offsets = [3, 0], sizes = [1, 8], strides = [1, 1]} : vector<5x9xf32> to vector<1x8xf32>
    %48 = tpu.concatenate %44, %45, %46, %47 in 1 : vector<1x8xf32>, vector<1x8xf32>, vector<1x8xf32>, vector<1x8xf32> -> vector<1x32xf32>
    %49 = vector.extract_strided_slice %2 {offsets = [0, 1], sizes = [1, 8], strides = [1, 1]} : vector<5x9xf32> to vector<1x8xf32>
    %50 = vector.extract_strided_slice %2 {offsets = [1, 1], sizes = [1, 8], strides = [1, 1]} : vector<5x9xf32> to vector<1x8xf32>
    %51 = vector.extract_strided_slice %2 {offsets = [2, 1], sizes = [1, 8], strides = [1, 1]} : vector<5x9xf32> to vector<1x8xf32>
    %52 = vector.extract_strided_slice %2 {offsets = [3, 1], sizes = [1, 8], strides = [1, 1]} : vector<5x9xf32> to vector<1x8xf32>
    %53 = tpu.concatenate %49, %50, %51, %52 in 1 : vector<1x8xf32>, vector<1x8xf32>, vector<1x8xf32>, vector<1x8xf32> -> vector<1x32xf32>
    %54 = vector.extract_strided_slice %2 {offsets = [1, 0], sizes = [1, 8], strides = [1, 1]} : vector<5x9xf32> to vector<1x8xf32>
    %55 = vector.extract_strided_slice %2 {offsets = [2, 0], sizes = [1, 8], strides = [1, 1]} : vector<5x9xf32> to vector<1x8xf32>
    %56 = vector.extract_strided_slice %2 {offsets = [3, 0], sizes = [1, 8], strides = [1, 1]} : vector<5x9xf32> to vector<1x8xf32>
    %57 = vector.extract_strided_slice %2 {offsets = [4, 0], sizes = [1, 8], strides = [1, 1]} : vector<5x9xf32> to vector<1x8xf32>
    %58 = tpu.concatenate %54, %55, %56, %57 in 1 : vector<1x8xf32>, vector<1x8xf32>, vector<1x8xf32>, vector<1x8xf32> -> vector<1x32xf32>
    %59 = vector.extract_strided_slice %2 {offsets = [1, 1], sizes = [1, 8], strides = [1, 1]} : vector<5x9xf32> to vector<1x8xf32>
    %60 = vector.extract_strided_slice %2 {offsets = [2, 1], sizes = [1, 8], strides = [1, 1]} : vector<5x9xf32> to vector<1x8xf32>
    %61 = vector.extract_strided_slice %2 {offsets = [3, 1], sizes = [1, 8], strides = [1, 1]} : vector<5x9xf32> to vector<1x8xf32>
    %62 = vector.extract_strided_slice %2 {offsets = [4, 1], sizes = [1, 8], strides = [1, 1]} : vector<5x9xf32> to vector<1x8xf32>
    %63 = tpu.concatenate %59, %60, %61, %62 in 1 : vector<1x8xf32>, vector<1x8xf32>, vector<1x8xf32>, vector<1x8xf32> -> vector<1x32xf32>
    %64 = vector.extract_strided_slice %3 {offsets = [0, 0], sizes = [1, 8], strides = [1, 1]} : vector<5x9xf32> to vector<1x8xf32>
    %65 = vector.extract_strided_slice %3 {offsets = [1, 0], sizes = [1, 8], strides = [1, 1]} : vector<5x9xf32> to vector<1x8xf32>
    %66 = vector.extract_strided_slice %3 {offsets = [2, 0], sizes = [1, 8], strides = [1, 1]} : vector<5x9xf32> to vector<1x8xf32>
    %67 = vector.extract_strided_slice %3 {offsets = [3, 0], sizes = [1, 8], strides = [1, 1]} : vector<5x9xf32> to vector<1x8xf32>
    %68 = tpu.concatenate %64, %65, %66, %67 in 1 : vector<1x8xf32>, vector<1x8xf32>, vector<1x8xf32>, vector<1x8xf32> -> vector<1x32xf32>
    %69 = vector.extract_strided_slice %3 {offsets = [0, 1], sizes = [1, 8], strides = [1, 1]} : vector<5x9xf32> to vector<1x8xf32>
    %70 = vector.extract_strided_slice %3 {offsets = [1, 1], sizes = [1, 8], strides = [1, 1]} : vector<5x9xf32> to vector<1x8xf32>
    %71 = vector.extract_strided_slice %3 {offsets = [2, 1], sizes = [1, 8], strides = [1, 1]} : vector<5x9xf32> to vector<1x8xf32>
    %72 = vector.extract_strided_slice %3 {offsets = [3, 1], sizes = [1, 8], strides = [1, 1]} : vector<5x9xf32> to vector<1x8xf32>
    %73 = tpu.concatenate %69, %70, %71, %72 in 1 : vector<1x8xf32>, vector<1x8xf32>, vector<1x8xf32>, vector<1x8xf32> -> vector<1x32xf32>
    %74 = vector.extract_strided_slice %3 {offsets = [1, 0], sizes = [1, 8], strides = [1, 1]} : vector<5x9xf32> to vector<1x8xf32>
    %75 = vector.extract_strided_slice %3 {offsets = [2, 0], sizes = [1, 8], strides = [1, 1]} : vector<5x9xf32> to vector<1x8xf32>
    %76 = vector.extract_strided_slice %3 {offsets = [3, 0], sizes = [1, 8], strides = [1, 1]} : vector<5x9xf32> to vector<1x8xf32>
    %77 = vector.extract_strided_slice %3 {offsets = [4, 0], sizes = [1, 8], strides = [1, 1]} : vector<5x9xf32> to vector<1x8xf32>
    %78 = tpu.concatenate %74, %75, %76, %77 in 1 : vector<1x8xf32>, vector<1x8xf32>, vector<1x8xf32>, vector<1x8xf32> -> vector<1x32xf32>
    %79 = vector.extract_strided_slice %3 {offsets = [1, 1], sizes = [1, 8], strides = [1, 1]} : vector<5x9xf32> to vector<1x8xf32>
    %80 = vector.extract_strided_slice %3 {offsets = [2, 1], sizes = [1, 8], strides = [1, 1]} : vector<5x9xf32> to vector<1x8xf32>
    %81 = vector.extract_strided_slice %3 {offsets = [3, 1], sizes = [1, 8], strides = [1, 1]} : vector<5x9xf32> to vector<1x8xf32>
    %82 = vector.extract_strided_slice %3 {offsets = [4, 1], sizes = [1, 8], strides = [1, 1]} : vector<5x9xf32> to vector<1x8xf32>
    %83 = tpu.concatenate %79, %80, %81, %82 in 1 : vector<1x8xf32>, vector<1x8xf32>, vector<1x8xf32>, vector<1x8xf32> -> vector<1x32xf32>
    %84 = tpu.concatenate %8, %28, %13, %48, %68, %53, %18, %38, %23 in 0 : vector<1x32xf32>, vector<1x32xf32>, vector<1x32xf32>, vector<1x32xf32>, vector<1x32xf32>, vector<1x32xf32>, vector<1x32xf32>, vector<1x32xf32>, vector<1x32xf32> -> vector<9x32xf32>
    %c0_7 = arith.constant 0 : index
    %c0_8 = arith.constant 0 : index
    %85 = vector.load %arg4[%c0_7, %c0_8] : memref<64x9xf32, #tpu.memory_space<vmem>>, vector<64x9xf32>
    %cst = arith.constant dense<0.000000e+00> : vector<64x32xf32>
    %86 = tpu.matmul %85, %84, %cst {dimension_numbers = #tpu.dot_dimension_numbers<[1], [0], [0], [1], [0, 0, 1, 1], [], []>} : vector<64x9xf32>, vector<9x32xf32>, vector<64x32xf32> -> vector<64x32xf32>
    %87 = tpu.concatenate %28, %13, %33, %68, %53, %73, %38, %23, %43 in 0 : vector<1x32xf32>, vector<1x32xf32>, vector<1x32xf32>, vector<1x32xf32>, vector<1x32xf32>, vector<1x32xf32>, vector<1x32xf32>, vector<1x32xf32>, vector<1x32xf32> -> vector<9x32xf32>
    %c0_9 = arith.constant 0 : index
    %c0_10 = arith.constant 0 : index
    %88 = vector.load %arg4[%c0_9, %c0_10] : memref<64x9xf32, #tpu.memory_space<vmem>>, vector<64x9xf32>
    %cst_11 = arith.constant dense<0.000000e+00> : vector<64x32xf32>
    %89 = tpu.matmul %88, %87, %cst_11 {dimension_numbers = #tpu.dot_dimension_numbers<[1], [0], [0], [1], [0, 0, 1, 1], [], []>} : vector<64x9xf32>, vector<9x32xf32>, vector<64x32xf32> -> vector<64x32xf32>
    %90 = arith.maximumf %86, %89 : vector<64x32xf32>
    %91 = tpu.concatenate %48, %68, %53, %18, %38, %23, %58, %78, %63 in 0 : vector<1x32xf32>, vector<1x32xf32>, vector<1x32xf32>, vector<1x32xf32>, vector<1x32xf32>, vector<1x32xf32>, vector<1x32xf32>, vector<1x32xf32>, vector<1x32xf32> -> vector<9x32xf32>
    %c0_12 = arith.constant 0 : index
    %c0_13 = arith.constant 0 : index
    %92 = vector.load %arg4[%c0_12, %c0_13] : memref<64x9xf32, #tpu.memory_space<vmem>>, vector<64x9xf32>
    %cst_14 = arith.constant dense<0.000000e+00> : vector<64x32xf32>
    %93 = tpu.matmul %92, %91, %cst_14 {dimension_numbers = #tpu.dot_dimension_numbers<[1], [0], [0], [1], [0, 0, 1, 1], [], []>} : vector<64x9xf32>, vector<9x32xf32>, vector<64x32xf32> -> vector<64x32xf32>
    %94 = arith.maximumf %90, %93 : vector<64x32xf32>
    %95 = tpu.concatenate %68, %53, %73, %38, %23, %43, %78, %63, %83 in 0 : vector<1x32xf32>, vector<1x32xf32>, vector<1x32xf32>, vector<1x32xf32>, vector<1x32xf32>, vector<1x32xf32>, vector<1x32xf32>, vector<1x32xf32>, vector<1x32xf32> -> vector<9x32xf32>
    %c0_15 = arith.constant 0 : index
    %c0_16 = arith.constant 0 : index
    %96 = vector.load %arg4[%c0_15, %c0_16] : memref<64x9xf32, #tpu.memory_space<vmem>>, vector<64x9xf32>
    %cst_17 = arith.constant dense<0.000000e+00> : vector<64x32xf32>
    %97 = tpu.matmul %96, %95, %cst_17 {dimension_numbers = #tpu.dot_dimension_numbers<[1], [0], [0], [1], [0, 0, 1, 1], [], []>} : vector<64x9xf32>, vector<9x32xf32>, vector<64x32xf32> -> vector<64x32xf32>
    %98 = arith.maximumf %94, %97 : vector<64x32xf32>
    %c0_18 = arith.constant 0 : index
    %c0_19 = arith.constant 0 : index
    %99 = vector.load %arg5[%c0_18, %c0_19] : memref<64x1xf32, #tpu.memory_space<vmem>>, vector<64x1xf32>
    %100 = vector.broadcast %99 : vector<64x1xf32> to vector<64x32xf32>
    %101 = arith.addf %98, %100 : vector<64x32xf32>
    %cst_20 = arith.constant 0.000000e+00 : f32
    %102 = vector.broadcast %cst_20 : f32 to vector<64x32xf32>
    %103 = arith.maximumf %101, %102 : vector<64x32xf32>
    %104 = tpu.iota {dimensions = array<i32: 0>} : vector<8x64xi32>
    %105 = tpu.iota {dimensions = array<i32: 1>} : vector<8x64xi32>
    %c8_i32 = arith.constant 8 : i32
    %106 = vector.broadcast %c8_i32 : i32 to vector<8x64xi32>
    %107 = arith.muli %106, %104 : vector<8x64xi32>
    %c0_i32 = arith.constant 0 : i32
    %108 = vector.broadcast %c0_i32 : i32 to vector<8x64xi32>
    %109 = arith.addi %107, %108 : vector<8x64xi32>
    %110 = arith.cmpi eq, %105, %109 : vector<8x64xi32>
    %111 = arith.extui %110 : vector<8x64xi1> to vector<8x64xi32>
    %112 = arith.sitofp %111 : vector<8x64xi32> to vector<8x64xf32>
    %cst_21 = arith.constant dense<0.000000e+00> : vector<8x32xf32>
    %113 = tpu.matmul %112, %103, %cst_21 {dimension_numbers = #tpu.dot_dimension_numbers<[1], [0], [0], [1], [0, 0, 1, 1], [], []>} : vector<8x64xf32>, vector<64x32xf32>, vector<8x32xf32> -> vector<8x32xf32>
    %c8_i32_22 = arith.constant 8 : i32
    %114 = vector.broadcast %c8_i32_22 : i32 to vector<8x64xi32>
    %115 = arith.muli %114, %104 : vector<8x64xi32>
    %c1_i32 = arith.constant 1 : i32
    %116 = vector.broadcast %c1_i32 : i32 to vector<8x64xi32>
    %117 = arith.addi %115, %116 : vector<8x64xi32>
    %118 = arith.cmpi eq, %105, %117 : vector<8x64xi32>
    %119 = arith.extui %118 : vector<8x64xi1> to vector<8x64xi32>
    %120 = arith.sitofp %119 : vector<8x64xi32> to vector<8x64xf32>
    %cst_23 = arith.constant dense<0.000000e+00> : vector<8x32xf32>
    %121 = tpu.matmul %120, %103, %cst_23 {dimension_numbers = #tpu.dot_dimension_numbers<[1], [0], [0], [1], [0, 0, 1, 1], [], []>} : vector<8x64xf32>, vector<64x32xf32>, vector<8x32xf32> -> vector<8x32xf32>
    %c8_i32_24 = arith.constant 8 : i32
    %122 = vector.broadcast %c8_i32_24 : i32 to vector<8x64xi32>
    %123 = arith.muli %122, %104 : vector<8x64xi32>
    %c2_i32 = arith.constant 2 : i32
    %124 = vector.broadcast %c2_i32 : i32 to vector<8x64xi32>
    %125 = arith.addi %123, %124 : vector<8x64xi32>
    %126 = arith.cmpi eq, %105, %125 : vector<8x64xi32>
    %127 = arith.extui %126 : vector<8x64xi1> to vector<8x64xi32>
    %128 = arith.sitofp %127 : vector<8x64xi32> to vector<8x64xf32>
    %cst_25 = arith.constant dense<0.000000e+00> : vector<8x32xf32>
    %129 = tpu.matmul %128, %103, %cst_25 {dimension_numbers = #tpu.dot_dimension_numbers<[1], [0], [0], [1], [0, 0, 1, 1], [], []>} : vector<8x64xf32>, vector<64x32xf32>, vector<8x32xf32> -> vector<8x32xf32>
    %c8_i32_26 = arith.constant 8 : i32
    %130 = vector.broadcast %c8_i32_26 : i32 to vector<8x64xi32>
    %131 = arith.muli %130, %104 : vector<8x64xi32>
    %c3_i32 = arith.constant 3 : i32
    %132 = vector.broadcast %c3_i32 : i32 to vector<8x64xi32>
    %133 = arith.addi %131, %132 : vector<8x64xi32>
    %134 = arith.cmpi eq, %105, %133 : vector<8x64xi32>
    %135 = arith.extui %134 : vector<8x64xi1> to vector<8x64xi32>
    %136 = arith.sitofp %135 : vector<8x64xi32> to vector<8x64xf32>
    %cst_27 = arith.constant dense<0.000000e+00> : vector<8x32xf32>
    %137 = tpu.matmul %136, %103, %cst_27 {dimension_numbers = #tpu.dot_dimension_numbers<[1], [0], [0], [1], [0, 0, 1, 1], [], []>} : vector<8x64xf32>, vector<64x32xf32>, vector<8x32xf32> -> vector<8x32xf32>
    %c8_i32_28 = arith.constant 8 : i32
    %138 = vector.broadcast %c8_i32_28 : i32 to vector<8x64xi32>
    %139 = arith.muli %138, %104 : vector<8x64xi32>
    %c4_i32 = arith.constant 4 : i32
    %140 = vector.broadcast %c4_i32 : i32 to vector<8x64xi32>
    %141 = arith.addi %139, %140 : vector<8x64xi32>
    %142 = arith.cmpi eq, %105, %141 : vector<8x64xi32>
    %143 = arith.extui %142 : vector<8x64xi1> to vector<8x64xi32>
    %144 = arith.sitofp %143 : vector<8x64xi32> to vector<8x64xf32>
    %cst_29 = arith.constant dense<0.000000e+00> : vector<8x32xf32>
    %145 = tpu.matmul %144, %103, %cst_29 {dimension_numbers = #tpu.dot_dimension_numbers<[1], [0], [0], [1], [0, 0, 1, 1], [], []>} : vector<8x64xf32>, vector<64x32xf32>, vector<8x32xf32> -> vector<8x32xf32>
    %c8_i32_30 = arith.constant 8 : i32
    %146 = vector.broadcast %c8_i32_30 : i32 to vector<8x64xi32>
    %147 = arith.muli %146, %104 : vector<8x64xi32>
    %c5_i32 = arith.constant 5 : i32
    %148 = vector.broadcast %c5_i32 : i32 to vector<8x64xi32>
    %149 = arith.addi %147, %148 : vector<8x64xi32>
    %150 = arith.cmpi eq, %105, %149 : vector<8x64xi32>
    %151 = arith.extui %150 : vector<8x64xi1> to vector<8x64xi32>
    %152 = arith.sitofp %151 : vector<8x64xi32> to vector<8x64xf32>
    %cst_31 = arith.constant dense<0.000000e+00> : vector<8x32xf32>
    %153 = tpu.matmul %152, %103, %cst_31 {dimension_numbers = #tpu.dot_dimension_numbers<[1], [0], [0], [1], [0, 0, 1, 1], [], []>} : vector<8x64xf32>, vector<64x32xf32>, vector<8x32xf32> -> vector<8x32xf32>
    %c8_i32_32 = arith.constant 8 : i32
    %154 = vector.broadcast %c8_i32_32 : i32 to vector<8x64xi32>
    %155 = arith.muli %154, %104 : vector<8x64xi32>
    %c6_i32 = arith.constant 6 : i32
    %156 = vector.broadcast %c6_i32 : i32 to vector<8x64xi32>
    %157 = arith.addi %155, %156 : vector<8x64xi32>
    %158 = arith.cmpi eq, %105, %157 : vector<8x64xi32>
    %159 = arith.extui %158 : vector<8x64xi1> to vector<8x64xi32>
    %160 = arith.sitofp %159 : vector<8x64xi32> to vector<8x64xf32>
    %cst_33 = arith.constant dense<0.000000e+00> : vector<8x32xf32>
    %161 = tpu.matmul %160, %103, %cst_33 {dimension_numbers = #tpu.dot_dimension_numbers<[1], [0], [0], [1], [0, 0, 1, 1], [], []>} : vector<8x64xf32>, vector<64x32xf32>, vector<8x32xf32> -> vector<8x32xf32>
    %c8_i32_34 = arith.constant 8 : i32
    %162 = vector.broadcast %c8_i32_34 : i32 to vector<8x64xi32>
    %163 = arith.muli %162, %104 : vector<8x64xi32>
    %c7_i32 = arith.constant 7 : i32
    %164 = vector.broadcast %c7_i32 : i32 to vector<8x64xi32>
    %165 = arith.addi %163, %164 : vector<8x64xi32>
    %166 = arith.cmpi eq, %105, %165 : vector<8x64xi32>
    %167 = arith.extui %166 : vector<8x64xi1> to vector<8x64xi32>
    %168 = arith.sitofp %167 : vector<8x64xi32> to vector<8x64xf32>
    %cst_35 = arith.constant dense<0.000000e+00> : vector<8x32xf32>
    %169 = tpu.matmul %168, %103, %cst_35 {dimension_numbers = #tpu.dot_dimension_numbers<[1], [0], [0], [1], [0, 0, 1, 1], [], []>} : vector<8x64xf32>, vector<64x32xf32>, vector<8x32xf32> -> vector<8x32xf32>
    %170 = tpu.concatenate %113, %121, %129, %137, %145, %153, %161, %169 in 1 : vector<8x32xf32>, vector<8x32xf32>, vector<8x32xf32>, vector<8x32xf32>, vector<8x32xf32>, vector<8x32xf32>, vector<8x32xf32>, vector<8x32xf32> -> vector<8x256xf32>
    %171 = arith.truncf %170 : vector<8x256xf32> to vector<8x256xbf16>
    %c0_36 = arith.constant 0 : index
    %c0_37 = arith.constant 0 : index
    %172 = vector.load %arg6[%c0_36, %c0_37] : memref<256x64xbf16, #tpu.memory_space<vmem>>, vector<256x64xbf16>
    %cst_38 = arith.constant dense<0.000000e+00> : vector<8x64xf32>
    %173 = tpu.matmul %171, %172, %cst_38 {dimension_numbers = #tpu.dot_dimension_numbers<[1], [0], [0], [1], [0, 0, 1, 1], [], []>} : vector<8x256xbf16>, vector<256x64xbf16>, vector<8x64xf32> -> vector<8x64xf32>
    %c0_39 = arith.constant 0 : index
    %c0_40 = arith.constant 0 : index
    %174 = vector.load %arg7[%c0_39, %c0_40] : memref<1x64xf32, #tpu.memory_space<vmem>>, vector<1x64xf32>
    %175 = vector.broadcast %174 : vector<1x64xf32> to vector<8x64xf32>
    %176 = arith.addf %173, %175 : vector<8x64xf32>
    %177 = arith.truncf %176 : vector<8x64xf32> to vector<8x64xbf16>
    %c0_41 = arith.constant 0 : index
    %c0_42 = arith.constant 0 : index
    %178 = vector.load %arg8[%c0_41, %c0_42] : memref<64x1024xbf16, #tpu.memory_space<vmem>>, vector<64x1024xbf16>
    %cst_43 = arith.constant dense<0.000000e+00> : vector<8x1024xf32>
    %179 = tpu.matmul %177, %178, %cst_43 {dimension_numbers = #tpu.dot_dimension_numbers<[1], [0], [0], [1], [0, 0, 1, 1], [], []>} : vector<8x64xbf16>, vector<64x1024xbf16>, vector<8x1024xf32> -> vector<8x1024xf32>
    %c0_44 = arith.constant 0 : index
    %c0_45 = arith.constant 0 : index
    %180 = vector.load %arg10[%c0_44, %c0_45] : memref<1x1024xf32, #tpu.memory_space<vmem>>, vector<1x1024xf32>
    %181 = vector.broadcast %180 : vector<1x1024xf32> to vector<8x1024xf32>
    %182 = arith.addf %179, %181 : vector<8x1024xf32>
    %183 = tpu.iota {dimensions = array<i32: 1>} : vector<1x1024xi32>
    %c256_i32 = arith.constant 256 : i32
    %c0_i32_46 = arith.constant 0 : i32
    %184 = arith.cmpi eq, %c256_i32, %c0_i32_46 : i32
    %c1_i32_47 = arith.constant 1 : i32
    %185 = arith.select %184, %c1_i32_47, %c256_i32 : i32
    %186 = vector.broadcast %185 : i32 to vector<1x1024xi32>
    %187 = arith.remsi %183, %186 : vector<1x1024xi32>
    %c0_i32_48 = arith.constant 0 : i32
    %188 = vector.broadcast %c0_i32_48 : i32 to vector<1x1024xi32>
    %189 = arith.cmpi ne, %187, %188 : vector<1x1024xi32>
    %c0_i32_49 = arith.constant 0 : i32
    %190 = vector.broadcast %c0_i32_49 : i32 to vector<1x1024xi32>
    %191 = arith.cmpi slt, %187, %190 : vector<1x1024xi32>
    %c0_i32_50 = arith.constant 0 : i32
    %192 = arith.cmpi slt, %185, %c0_i32_50 : i32
    %193 = vector.broadcast %192 : i1 to vector<1x1024xi1>
    %194 = vector.broadcast %193 : vector<1x1024xi1> to vector<1x1024xi1>
    %195 = arith.xori %191, %194 : vector<1x1024xi1>
    %196 = arith.andi %195, %189 : vector<1x1024xi1>
    %197 = vector.broadcast %185 : i32 to vector<1x1024xi32>
    %198 = arith.addi %187, %197 : vector<1x1024xi32>
    %199 = arith.select %196, %198, %187 : vector<1x1024xi1>, vector<1x1024xi32>
    %c128_i32 = arith.constant 128 : i32
    %200 = vector.broadcast %c128_i32 : i32 to vector<1x1024xi32>
    %201 = arith.cmpi slt, %199, %200 : vector<1x1024xi32>
    %cst_51 = arith.constant 0.000000e+00 : f32
    %202 = vector.broadcast %cst_51 : f32 to vector<1x256xf32>
    %cst_52 = arith.constant 0.000000e+00 : f32
    %203 = vector.broadcast %cst_52 : f32 to vector<1x256xf32>
    %204 = vector.extract_strided_slice %182 {offsets = [0, 0], sizes = [1, 1024], strides = [1, 1]} : vector<8x1024xf32> to vector<1x1024xf32>
    %205 = vector.extract_strided_slice %182 {offsets = [7, 0], sizes = [1, 1024], strides = [1, 1]} : vector<8x1024xf32> to vector<1x1024xf32>
    %206 = arith.select %201, %204, %205 : vector<1x1024xi1>, vector<1x1024xf32>
    %207 = arith.truncf %202 : vector<1x256xf32> to vector<1x256xbf16>
    %c0_53 = arith.constant 0 : index
    %c0_54 = arith.constant 0 : index
    %208 = vector.load %arg9[%c0_53, %c0_54] : memref<256x1024xbf16, #tpu.memory_space<vmem>>, vector<256x1024xbf16>
    %cst_55 = arith.constant dense<0.000000e+00> : vector<1x1024xf32>
    %209 = tpu.matmul %207, %208, %cst_55 {dimension_numbers = #tpu.dot_dimension_numbers<[1], [0], [0], [1], [0, 0, 1, 1], [], []>} : vector<1x256xbf16>, vector<256x1024xbf16>, vector<1x1024xf32> -> vector<1x1024xf32>
    %210 = arith.addf %206, %209 : vector<1x1024xf32>
    %211 = vector.extract_strided_slice %210 {offsets = [0, 0], sizes = [1, 256], strides = [1, 1]} : vector<1x1024xf32> to vector<1x256xf32>
    %212 = arith.negf %211 : vector<1x256xf32>
    %213 = math.exp %212 : vector<1x256xf32>
    %cst_56 = arith.constant 1.000000e+00 : f32
    %214 = vector.broadcast %cst_56 : f32 to vector<1x256xf32>
    %215 = arith.addf %214, %213 : vector<1x256xf32>
    %216 = arith.divf %214, %215 : vector<1x256xf32>
    %217 = vector.extract_strided_slice %210 {offsets = [0, 256], sizes = [1, 256], strides = [1, 1]} : vector<1x1024xf32> to vector<1x256xf32>
    %218 = arith.negf %217 : vector<1x256xf32>
    %219 = math.exp %218 : vector<1x256xf32>
    %cst_57 = arith.constant 1.000000e+00 : f32
    %220 = vector.broadcast %cst_57 : f32 to vector<1x256xf32>
    %221 = arith.addf %220, %219 : vector<1x256xf32>
    %222 = arith.divf %220, %221 : vector<1x256xf32>
    %223 = vector.extract_strided_slice %210 {offsets = [0, 512], sizes = [1, 256], strides = [1, 1]} : vector<1x1024xf32> to vector<1x256xf32>
    %224 = math.tanh %223 : vector<1x256xf32>
    %225 = vector.extract_strided_slice %210 {offsets = [0, 768], sizes = [1, 256], strides = [1, 1]} : vector<1x1024xf32> to vector<1x256xf32>
    %226 = arith.negf %225 : vector<1x256xf32>
    %227 = math.exp %226 : vector<1x256xf32>
    %cst_58 = arith.constant 1.000000e+00 : f32
    %228 = vector.broadcast %cst_58 : f32 to vector<1x256xf32>
    %229 = arith.addf %228, %227 : vector<1x256xf32>
    %230 = arith.divf %228, %229 : vector<1x256xf32>
    %231 = arith.mulf %222, %203 : vector<1x256xf32>
    %232 = arith.mulf %216, %224 : vector<1x256xf32>
    %233 = arith.addf %231, %232 : vector<1x256xf32>
    %234 = math.tanh %233 : vector<1x256xf32>
    %235 = arith.mulf %230, %234 : vector<1x256xf32>
    %236 = vector.extract_strided_slice %235 {offsets = [0, 0], sizes = [1, 128], strides = [1, 1]} : vector<1x256xf32> to vector<1x128xf32>
    %237 = vector.extract_strided_slice %235 {offsets = [0, 128], sizes = [1, 128], strides = [1, 1]} : vector<1x256xf32> to vector<1x128xf32>
    %238 = vector.extract_strided_slice %182 {offsets = [1, 0], sizes = [1, 1024], strides = [1, 1]} : vector<8x1024xf32> to vector<1x1024xf32>
    %239 = vector.extract_strided_slice %182 {offsets = [6, 0], sizes = [1, 1024], strides = [1, 1]} : vector<8x1024xf32> to vector<1x1024xf32>
    %240 = arith.select %201, %238, %239 : vector<1x1024xi1>, vector<1x1024xf32>
    %241 = arith.truncf %235 : vector<1x256xf32> to vector<1x256xbf16>
    %c0_59 = arith.constant 0 : index
    %c0_60 = arith.constant 0 : index
    %242 = vector.load %arg9[%c0_59, %c0_60] : memref<256x1024xbf16, #tpu.memory_space<vmem>>, vector<256x1024xbf16>
    %cst_61 = arith.constant dense<0.000000e+00> : vector<1x1024xf32>
    %243 = tpu.matmul %241, %242, %cst_61 {dimension_numbers = #tpu.dot_dimension_numbers<[1], [0], [0], [1], [0, 0, 1, 1], [], []>} : vector<1x256xbf16>, vector<256x1024xbf16>, vector<1x1024xf32> -> vector<1x1024xf32>
    %244 = arith.addf %240, %243 : vector<1x1024xf32>
    %245 = vector.extract_strided_slice %244 {offsets = [0, 0], sizes = [1, 256], strides = [1, 1]} : vector<1x1024xf32> to vector<1x256xf32>
    %246 = arith.negf %245 : vector<1x256xf32>
    %247 = math.exp %246 : vector<1x256xf32>
    %cst_62 = arith.constant 1.000000e+00 : f32
    %248 = vector.broadcast %cst_62 : f32 to vector<1x256xf32>
    %249 = arith.addf %248, %247 : vector<1x256xf32>
    %250 = arith.divf %248, %249 : vector<1x256xf32>
    %251 = vector.extract_strided_slice %244 {offsets = [0, 256], sizes = [1, 256], strides = [1, 1]} : vector<1x1024xf32> to vector<1x256xf32>
    %252 = arith.negf %251 : vector<1x256xf32>
    %253 = math.exp %252 : vector<1x256xf32>
    %cst_63 = arith.constant 1.000000e+00 : f32
    %254 = vector.broadcast %cst_63 : f32 to vector<1x256xf32>
    %255 = arith.addf %254, %253 : vector<1x256xf32>
    %256 = arith.divf %254, %255 : vector<1x256xf32>
    %257 = vector.extract_strided_slice %244 {offsets = [0, 512], sizes = [1, 256], strides = [1, 1]} : vector<1x1024xf32> to vector<1x256xf32>
    %258 = math.tanh %257 : vector<1x256xf32>
    %259 = vector.extract_strided_slice %244 {offsets = [0, 768], sizes = [1, 256], strides = [1, 1]} : vector<1x1024xf32> to vector<1x256xf32>
    %260 = arith.negf %259 : vector<1x256xf32>
    %261 = math.exp %260 : vector<1x256xf32>
    %cst_64 = arith.constant 1.000000e+00 : f32
    %262 = vector.broadcast %cst_64 : f32 to vector<1x256xf32>
    %263 = arith.addf %262, %261 : vector<1x256xf32>
    %264 = arith.divf %262, %263 : vector<1x256xf32>
    %265 = arith.mulf %256, %233 : vector<1x256xf32>
    %266 = arith.mulf %250, %258 : vector<1x256xf32>
    %267 = arith.addf %265, %266 : vector<1x256xf32>
    %268 = math.tanh %267 : vector<1x256xf32>
    %269 = arith.mulf %264, %268 : vector<1x256xf32>
    %270 = vector.extract_strided_slice %269 {offsets = [0, 0], sizes = [1, 128], strides = [1, 1]} : vector<1x256xf32> to vector<1x128xf32>
    %271 = vector.extract_strided_slice %269 {offsets = [0, 128], sizes = [1, 128], strides = [1, 1]} : vector<1x256xf32> to vector<1x128xf32>
    %272 = vector.extract_strided_slice %182 {offsets = [2, 0], sizes = [1, 1024], strides = [1, 1]} : vector<8x1024xf32> to vector<1x1024xf32>
    %273 = vector.extract_strided_slice %182 {offsets = [5, 0], sizes = [1, 1024], strides = [1, 1]} : vector<8x1024xf32> to vector<1x1024xf32>
    %274 = arith.select %201, %272, %273 : vector<1x1024xi1>, vector<1x1024xf32>
    %275 = arith.truncf %269 : vector<1x256xf32> to vector<1x256xbf16>
    %c0_65 = arith.constant 0 : index
    %c0_66 = arith.constant 0 : index
    %276 = vector.load %arg9[%c0_65, %c0_66] : memref<256x1024xbf16, #tpu.memory_space<vmem>>, vector<256x1024xbf16>
    %cst_67 = arith.constant dense<0.000000e+00> : vector<1x1024xf32>
    %277 = tpu.matmul %275, %276, %cst_67 {dimension_numbers = #tpu.dot_dimension_numbers<[1], [0], [0], [1], [0, 0, 1, 1], [], []>} : vector<1x256xbf16>, vector<256x1024xbf16>, vector<1x1024xf32> -> vector<1x1024xf32>
    %278 = arith.addf %274, %277 : vector<1x1024xf32>
    %279 = vector.extract_strided_slice %278 {offsets = [0, 0], sizes = [1, 256], strides = [1, 1]} : vector<1x1024xf32> to vector<1x256xf32>
    %280 = arith.negf %279 : vector<1x256xf32>
    %281 = math.exp %280 : vector<1x256xf32>
    %cst_68 = arith.constant 1.000000e+00 : f32
    %282 = vector.broadcast %cst_68 : f32 to vector<1x256xf32>
    %283 = arith.addf %282, %281 : vector<1x256xf32>
    %284 = arith.divf %282, %283 : vector<1x256xf32>
    %285 = vector.extract_strided_slice %278 {offsets = [0, 256], sizes = [1, 256], strides = [1, 1]} : vector<1x1024xf32> to vector<1x256xf32>
    %286 = arith.negf %285 : vector<1x256xf32>
    %287 = math.exp %286 : vector<1x256xf32>
    %cst_69 = arith.constant 1.000000e+00 : f32
    %288 = vector.broadcast %cst_69 : f32 to vector<1x256xf32>
    %289 = arith.addf %288, %287 : vector<1x256xf32>
    %290 = arith.divf %288, %289 : vector<1x256xf32>
    %291 = vector.extract_strided_slice %278 {offsets = [0, 512], sizes = [1, 256], strides = [1, 1]} : vector<1x1024xf32> to vector<1x256xf32>
    %292 = math.tanh %291 : vector<1x256xf32>
    %293 = vector.extract_strided_slice %278 {offsets = [0, 768], sizes = [1, 256], strides = [1, 1]} : vector<1x1024xf32> to vector<1x256xf32>
    %294 = arith.negf %293 : vector<1x256xf32>
    %295 = math.exp %294 : vector<1x256xf32>
    %cst_70 = arith.constant 1.000000e+00 : f32
    %296 = vector.broadcast %cst_70 : f32 to vector<1x256xf32>
    %297 = arith.addf %296, %295 : vector<1x256xf32>
    %298 = arith.divf %296, %297 : vector<1x256xf32>
    %299 = arith.mulf %290, %267 : vector<1x256xf32>
    %300 = arith.mulf %284, %292 : vector<1x256xf32>
    %301 = arith.addf %299, %300 : vector<1x256xf32>
    %302 = math.tanh %301 : vector<1x256xf32>
    %303 = arith.mulf %298, %302 : vector<1x256xf32>
    %304 = vector.extract_strided_slice %303 {offsets = [0, 0], sizes = [1, 128], strides = [1, 1]} : vector<1x256xf32> to vector<1x128xf32>
    %305 = vector.extract_strided_slice %303 {offsets = [0, 128], sizes = [1, 128], strides = [1, 1]} : vector<1x256xf32> to vector<1x128xf32>
    %306 = vector.extract_strided_slice %182 {offsets = [3, 0], sizes = [1, 1024], strides = [1, 1]} : vector<8x1024xf32> to vector<1x1024xf32>
    %307 = vector.extract_strided_slice %182 {offsets = [4, 0], sizes = [1, 1024], strides = [1, 1]} : vector<8x1024xf32> to vector<1x1024xf32>
    %308 = arith.select %201, %306, %307 : vector<1x1024xi1>, vector<1x1024xf32>
    %309 = arith.truncf %303 : vector<1x256xf32> to vector<1x256xbf16>
    %c0_71 = arith.constant 0 : index
    %c0_72 = arith.constant 0 : index
    %310 = vector.load %arg9[%c0_71, %c0_72] : memref<256x1024xbf16, #tpu.memory_space<vmem>>, vector<256x1024xbf16>
    %cst_73 = arith.constant dense<0.000000e+00> : vector<1x1024xf32>
    %311 = tpu.matmul %309, %310, %cst_73 {dimension_numbers = #tpu.dot_dimension_numbers<[1], [0], [0], [1], [0, 0, 1, 1], [], []>} : vector<1x256xbf16>, vector<256x1024xbf16>, vector<1x1024xf32> -> vector<1x1024xf32>
    %312 = arith.addf %308, %311 : vector<1x1024xf32>
    %313 = vector.extract_strided_slice %312 {offsets = [0, 0], sizes = [1, 256], strides = [1, 1]} : vector<1x1024xf32> to vector<1x256xf32>
    %314 = arith.negf %313 : vector<1x256xf32>
    %315 = math.exp %314 : vector<1x256xf32>
    %cst_74 = arith.constant 1.000000e+00 : f32
    %316 = vector.broadcast %cst_74 : f32 to vector<1x256xf32>
    %317 = arith.addf %316, %315 : vector<1x256xf32>
    %318 = arith.divf %316, %317 : vector<1x256xf32>
    %319 = vector.extract_strided_slice %312 {offsets = [0, 256], sizes = [1, 256], strides = [1, 1]} : vector<1x1024xf32> to vector<1x256xf32>
    %320 = arith.negf %319 : vector<1x256xf32>
    %321 = math.exp %320 : vector<1x256xf32>
    %cst_75 = arith.constant 1.000000e+00 : f32
    %322 = vector.broadcast %cst_75 : f32 to vector<1x256xf32>
    %323 = arith.addf %322, %321 : vector<1x256xf32>
    %324 = arith.divf %322, %323 : vector<1x256xf32>
    %325 = vector.extract_strided_slice %312 {offsets = [0, 512], sizes = [1, 256], strides = [1, 1]} : vector<1x1024xf32> to vector<1x256xf32>
    %326 = math.tanh %325 : vector<1x256xf32>
    %327 = vector.extract_strided_slice %312 {offsets = [0, 768], sizes = [1, 256], strides = [1, 1]} : vector<1x1024xf32> to vector<1x256xf32>
    %328 = arith.negf %327 : vector<1x256xf32>
    %329 = math.exp %328 : vector<1x256xf32>
    %cst_76 = arith.constant 1.000000e+00 : f32
    %330 = vector.broadcast %cst_76 : f32 to vector<1x256xf32>
    %331 = arith.addf %330, %329 : vector<1x256xf32>
    %332 = arith.divf %330, %331 : vector<1x256xf32>
    %333 = arith.mulf %324, %301 : vector<1x256xf32>
    %334 = arith.mulf %318, %326 : vector<1x256xf32>
    %335 = arith.addf %333, %334 : vector<1x256xf32>
    %336 = math.tanh %335 : vector<1x256xf32>
    %337 = arith.mulf %332, %336 : vector<1x256xf32>
    %338 = vector.extract_strided_slice %337 {offsets = [0, 0], sizes = [1, 128], strides = [1, 1]} : vector<1x256xf32> to vector<1x128xf32>
    %339 = vector.extract_strided_slice %337 {offsets = [0, 128], sizes = [1, 128], strides = [1, 1]} : vector<1x256xf32> to vector<1x128xf32>
    %340 = vector.extract_strided_slice %182 {offsets = [4, 0], sizes = [1, 1024], strides = [1, 1]} : vector<8x1024xf32> to vector<1x1024xf32>
    %341 = vector.extract_strided_slice %182 {offsets = [3, 0], sizes = [1, 1024], strides = [1, 1]} : vector<8x1024xf32> to vector<1x1024xf32>
    %342 = arith.select %201, %340, %341 : vector<1x1024xi1>, vector<1x1024xf32>
    %343 = arith.truncf %337 : vector<1x256xf32> to vector<1x256xbf16>
    %c0_77 = arith.constant 0 : index
    %c0_78 = arith.constant 0 : index
    %344 = vector.load %arg9[%c0_77, %c0_78] : memref<256x1024xbf16, #tpu.memory_space<vmem>>, vector<256x1024xbf16>
    %cst_79 = arith.constant dense<0.000000e+00> : vector<1x1024xf32>
    %345 = tpu.matmul %343, %344, %cst_79 {dimension_numbers = #tpu.dot_dimension_numbers<[1], [0], [0], [1], [0, 0, 1, 1], [], []>} : vector<1x256xbf16>, vector<256x1024xbf16>, vector<1x1024xf32> -> vector<1x1024xf32>
    %346 = arith.addf %342, %345 : vector<1x1024xf32>
    %347 = vector.extract_strided_slice %346 {offsets = [0, 0], sizes = [1, 256], strides = [1, 1]} : vector<1x1024xf32> to vector<1x256xf32>
    %348 = arith.negf %347 : vector<1x256xf32>
    %349 = math.exp %348 : vector<1x256xf32>
    %cst_80 = arith.constant 1.000000e+00 : f32
    %350 = vector.broadcast %cst_80 : f32 to vector<1x256xf32>
    %351 = arith.addf %350, %349 : vector<1x256xf32>
    %352 = arith.divf %350, %351 : vector<1x256xf32>
    %353 = vector.extract_strided_slice %346 {offsets = [0, 256], sizes = [1, 256], strides = [1, 1]} : vector<1x1024xf32> to vector<1x256xf32>
    %354 = arith.negf %353 : vector<1x256xf32>
    %355 = math.exp %354 : vector<1x256xf32>
    %cst_81 = arith.constant 1.000000e+00 : f32
    %356 = vector.broadcast %cst_81 : f32 to vector<1x256xf32>
    %357 = arith.addf %356, %355 : vector<1x256xf32>
    %358 = arith.divf %356, %357 : vector<1x256xf32>
    %359 = vector.extract_strided_slice %346 {offsets = [0, 512], sizes = [1, 256], strides = [1, 1]} : vector<1x1024xf32> to vector<1x256xf32>
    %360 = math.tanh %359 : vector<1x256xf32>
    %361 = vector.extract_strided_slice %346 {offsets = [0, 768], sizes = [1, 256], strides = [1, 1]} : vector<1x1024xf32> to vector<1x256xf32>
    %362 = arith.negf %361 : vector<1x256xf32>
    %363 = math.exp %362 : vector<1x256xf32>
    %cst_82 = arith.constant 1.000000e+00 : f32
    %364 = vector.broadcast %cst_82 : f32 to vector<1x256xf32>
    %365 = arith.addf %364, %363 : vector<1x256xf32>
    %366 = arith.divf %364, %365 : vector<1x256xf32>
    %367 = arith.mulf %358, %335 : vector<1x256xf32>
    %368 = arith.mulf %352, %360 : vector<1x256xf32>
    %369 = arith.addf %367, %368 : vector<1x256xf32>
    %370 = math.tanh %369 : vector<1x256xf32>
    %371 = arith.mulf %366, %370 : vector<1x256xf32>
    %372 = vector.extract_strided_slice %371 {offsets = [0, 0], sizes = [1, 128], strides = [1, 1]} : vector<1x256xf32> to vector<1x128xf32>
    %373 = vector.extract_strided_slice %371 {offsets = [0, 128], sizes = [1, 128], strides = [1, 1]} : vector<1x256xf32> to vector<1x128xf32>
    %374 = vector.extract_strided_slice %182 {offsets = [5, 0], sizes = [1, 1024], strides = [1, 1]} : vector<8x1024xf32> to vector<1x1024xf32>
    %375 = vector.extract_strided_slice %182 {offsets = [2, 0], sizes = [1, 1024], strides = [1, 1]} : vector<8x1024xf32> to vector<1x1024xf32>
    %376 = arith.select %201, %374, %375 : vector<1x1024xi1>, vector<1x1024xf32>
    %377 = arith.truncf %371 : vector<1x256xf32> to vector<1x256xbf16>
    %c0_83 = arith.constant 0 : index
    %c0_84 = arith.constant 0 : index
    %378 = vector.load %arg9[%c0_83, %c0_84] : memref<256x1024xbf16, #tpu.memory_space<vmem>>, vector<256x1024xbf16>
    %cst_85 = arith.constant dense<0.000000e+00> : vector<1x1024xf32>
    %379 = tpu.matmul %377, %378, %cst_85 {dimension_numbers = #tpu.dot_dimension_numbers<[1], [0], [0], [1], [0, 0, 1, 1], [], []>} : vector<1x256xbf16>, vector<256x1024xbf16>, vector<1x1024xf32> -> vector<1x1024xf32>
    %380 = arith.addf %376, %379 : vector<1x1024xf32>
    %381 = vector.extract_strided_slice %380 {offsets = [0, 0], sizes = [1, 256], strides = [1, 1]} : vector<1x1024xf32> to vector<1x256xf32>
    %382 = arith.negf %381 : vector<1x256xf32>
    %383 = math.exp %382 : vector<1x256xf32>
    %cst_86 = arith.constant 1.000000e+00 : f32
    %384 = vector.broadcast %cst_86 : f32 to vector<1x256xf32>
    %385 = arith.addf %384, %383 : vector<1x256xf32>
    %386 = arith.divf %384, %385 : vector<1x256xf32>
    %387 = vector.extract_strided_slice %380 {offsets = [0, 256], sizes = [1, 256], strides = [1, 1]} : vector<1x1024xf32> to vector<1x256xf32>
    %388 = arith.negf %387 : vector<1x256xf32>
    %389 = math.exp %388 : vector<1x256xf32>
    %cst_87 = arith.constant 1.000000e+00 : f32
    %390 = vector.broadcast %cst_87 : f32 to vector<1x256xf32>
    %391 = arith.addf %390, %389 : vector<1x256xf32>
    %392 = arith.divf %390, %391 : vector<1x256xf32>
    %393 = vector.extract_strided_slice %380 {offsets = [0, 512], sizes = [1, 256], strides = [1, 1]} : vector<1x1024xf32> to vector<1x256xf32>
    %394 = math.tanh %393 : vector<1x256xf32>
    %395 = vector.extract_strided_slice %380 {offsets = [0, 768], sizes = [1, 256], strides = [1, 1]} : vector<1x1024xf32> to vector<1x256xf32>
    %396 = arith.negf %395 : vector<1x256xf32>
    %397 = math.exp %396 : vector<1x256xf32>
    %cst_88 = arith.constant 1.000000e+00 : f32
    %398 = vector.broadcast %cst_88 : f32 to vector<1x256xf32>
    %399 = arith.addf %398, %397 : vector<1x256xf32>
    %400 = arith.divf %398, %399 : vector<1x256xf32>
    %401 = arith.mulf %392, %369 : vector<1x256xf32>
    %402 = arith.mulf %386, %394 : vector<1x256xf32>
    %403 = arith.addf %401, %402 : vector<1x256xf32>
    %404 = math.tanh %403 : vector<1x256xf32>
    %405 = arith.mulf %400, %404 : vector<1x256xf32>
    %406 = vector.extract_strided_slice %405 {offsets = [0, 0], sizes = [1, 128], strides = [1, 1]} : vector<1x256xf32> to vector<1x128xf32>
    %407 = vector.extract_strided_slice %405 {offsets = [0, 128], sizes = [1, 128], strides = [1, 1]} : vector<1x256xf32> to vector<1x128xf32>
    %408 = vector.extract_strided_slice %182 {offsets = [6, 0], sizes = [1, 1024], strides = [1, 1]} : vector<8x1024xf32> to vector<1x1024xf32>
    %409 = vector.extract_strided_slice %182 {offsets = [1, 0], sizes = [1, 1024], strides = [1, 1]} : vector<8x1024xf32> to vector<1x1024xf32>
    %410 = arith.select %201, %408, %409 : vector<1x1024xi1>, vector<1x1024xf32>
    %411 = arith.truncf %405 : vector<1x256xf32> to vector<1x256xbf16>
    %c0_89 = arith.constant 0 : index
    %c0_90 = arith.constant 0 : index
    %412 = vector.load %arg9[%c0_89, %c0_90] : memref<256x1024xbf16, #tpu.memory_space<vmem>>, vector<256x1024xbf16>
    %cst_91 = arith.constant dense<0.000000e+00> : vector<1x1024xf32>
    %413 = tpu.matmul %411, %412, %cst_91 {dimension_numbers = #tpu.dot_dimension_numbers<[1], [0], [0], [1], [0, 0, 1, 1], [], []>} : vector<1x256xbf16>, vector<256x1024xbf16>, vector<1x1024xf32> -> vector<1x1024xf32>
    %414 = arith.addf %410, %413 : vector<1x1024xf32>
    %415 = vector.extract_strided_slice %414 {offsets = [0, 0], sizes = [1, 256], strides = [1, 1]} : vector<1x1024xf32> to vector<1x256xf32>
    %416 = arith.negf %415 : vector<1x256xf32>
    %417 = math.exp %416 : vector<1x256xf32>
    %cst_92 = arith.constant 1.000000e+00 : f32
    %418 = vector.broadcast %cst_92 : f32 to vector<1x256xf32>
    %419 = arith.addf %418, %417 : vector<1x256xf32>
    %420 = arith.divf %418, %419 : vector<1x256xf32>
    %421 = vector.extract_strided_slice %414 {offsets = [0, 256], sizes = [1, 256], strides = [1, 1]} : vector<1x1024xf32> to vector<1x256xf32>
    %422 = arith.negf %421 : vector<1x256xf32>
    %423 = math.exp %422 : vector<1x256xf32>
    %cst_93 = arith.constant 1.000000e+00 : f32
    %424 = vector.broadcast %cst_93 : f32 to vector<1x256xf32>
    %425 = arith.addf %424, %423 : vector<1x256xf32>
    %426 = arith.divf %424, %425 : vector<1x256xf32>
    %427 = vector.extract_strided_slice %414 {offsets = [0, 512], sizes = [1, 256], strides = [1, 1]} : vector<1x1024xf32> to vector<1x256xf32>
    %428 = math.tanh %427 : vector<1x256xf32>
    %429 = vector.extract_strided_slice %414 {offsets = [0, 768], sizes = [1, 256], strides = [1, 1]} : vector<1x1024xf32> to vector<1x256xf32>
    %430 = arith.negf %429 : vector<1x256xf32>
    %431 = math.exp %430 : vector<1x256xf32>
    %cst_94 = arith.constant 1.000000e+00 : f32
    %432 = vector.broadcast %cst_94 : f32 to vector<1x256xf32>
    %433 = arith.addf %432, %431 : vector<1x256xf32>
    %434 = arith.divf %432, %433 : vector<1x256xf32>
    %435 = arith.mulf %426, %403 : vector<1x256xf32>
    %436 = arith.mulf %420, %428 : vector<1x256xf32>
    %437 = arith.addf %435, %436 : vector<1x256xf32>
    %438 = math.tanh %437 : vector<1x256xf32>
    %439 = arith.mulf %434, %438 : vector<1x256xf32>
    %440 = vector.extract_strided_slice %439 {offsets = [0, 0], sizes = [1, 128], strides = [1, 1]} : vector<1x256xf32> to vector<1x128xf32>
    %441 = vector.extract_strided_slice %439 {offsets = [0, 128], sizes = [1, 128], strides = [1, 1]} : vector<1x256xf32> to vector<1x128xf32>
    %442 = vector.extract_strided_slice %182 {offsets = [7, 0], sizes = [1, 1024], strides = [1, 1]} : vector<8x1024xf32> to vector<1x1024xf32>
    %443 = vector.extract_strided_slice %182 {offsets = [0, 0], sizes = [1, 1024], strides = [1, 1]} : vector<8x1024xf32> to vector<1x1024xf32>
    %444 = arith.select %201, %442, %443 : vector<1x1024xi1>, vector<1x1024xf32>
    %445 = arith.truncf %439 : vector<1x256xf32> to vector<1x256xbf16>
    %c0_95 = arith.constant 0 : index
    %c0_96 = arith.constant 0 : index
    %446 = vector.load %arg9[%c0_95, %c0_96] : memref<256x1024xbf16, #tpu.memory_space<vmem>>, vector<256x1024xbf16>
    %cst_97 = arith.constant dense<0.000000e+00> : vector<1x1024xf32>
    %447 = tpu.matmul %445, %446, %cst_97 {dimension_numbers = #tpu.dot_dimension_numbers<[1], [0], [0], [1], [0, 0, 1, 1], [], []>} : vector<1x256xbf16>, vector<256x1024xbf16>, vector<1x1024xf32> -> vector<1x1024xf32>
    %448 = arith.addf %444, %447 : vector<1x1024xf32>
    %449 = vector.extract_strided_slice %448 {offsets = [0, 0], sizes = [1, 256], strides = [1, 1]} : vector<1x1024xf32> to vector<1x256xf32>
    %450 = arith.negf %449 : vector<1x256xf32>
    %451 = math.exp %450 : vector<1x256xf32>
    %cst_98 = arith.constant 1.000000e+00 : f32
    %452 = vector.broadcast %cst_98 : f32 to vector<1x256xf32>
    %453 = arith.addf %452, %451 : vector<1x256xf32>
    %454 = arith.divf %452, %453 : vector<1x256xf32>
    %455 = vector.extract_strided_slice %448 {offsets = [0, 256], sizes = [1, 256], strides = [1, 1]} : vector<1x1024xf32> to vector<1x256xf32>
    %456 = arith.negf %455 : vector<1x256xf32>
    %457 = math.exp %456 : vector<1x256xf32>
    %cst_99 = arith.constant 1.000000e+00 : f32
    %458 = vector.broadcast %cst_99 : f32 to vector<1x256xf32>
    %459 = arith.addf %458, %457 : vector<1x256xf32>
    %460 = arith.divf %458, %459 : vector<1x256xf32>
    %461 = vector.extract_strided_slice %448 {offsets = [0, 512], sizes = [1, 256], strides = [1, 1]} : vector<1x1024xf32> to vector<1x256xf32>
    %462 = math.tanh %461 : vector<1x256xf32>
    %463 = vector.extract_strided_slice %448 {offsets = [0, 768], sizes = [1, 256], strides = [1, 1]} : vector<1x1024xf32> to vector<1x256xf32>
    %464 = arith.negf %463 : vector<1x256xf32>
    %465 = math.exp %464 : vector<1x256xf32>
    %cst_100 = arith.constant 1.000000e+00 : f32
    %466 = vector.broadcast %cst_100 : f32 to vector<1x256xf32>
    %467 = arith.addf %466, %465 : vector<1x256xf32>
    %468 = arith.divf %466, %467 : vector<1x256xf32>
    %469 = arith.mulf %460, %437 : vector<1x256xf32>
    %470 = arith.mulf %454, %462 : vector<1x256xf32>
    %471 = arith.addf %469, %470 : vector<1x256xf32>
    %472 = math.tanh %471 : vector<1x256xf32>
    %473 = arith.mulf %468, %472 : vector<1x256xf32>
    %474 = vector.extract_strided_slice %473 {offsets = [0, 0], sizes = [1, 128], strides = [1, 1]} : vector<1x256xf32> to vector<1x128xf32>
    %475 = vector.extract_strided_slice %473 {offsets = [0, 128], sizes = [1, 128], strides = [1, 1]} : vector<1x256xf32> to vector<1x128xf32>
    %476 = tpu.concatenate %236, %270, %304, %338, %372, %406, %440, %474 in 0 : vector<1x128xf32>, vector<1x128xf32>, vector<1x128xf32>, vector<1x128xf32>, vector<1x128xf32>, vector<1x128xf32>, vector<1x128xf32>, vector<1x128xf32> -> vector<8x128xf32>
    %477 = tpu.concatenate %475, %441, %407, %373, %339, %305, %271, %237 in 0 : vector<1x128xf32>, vector<1x128xf32>, vector<1x128xf32>, vector<1x128xf32>, vector<1x128xf32>, vector<1x128xf32>, vector<1x128xf32>, vector<1x128xf32> -> vector<8x128xf32>
    %478 = arith.addf %476, %477 : vector<8x128xf32>
    %479 = arith.truncf %478 : vector<8x128xf32> to vector<8x128xbf16>
    %c0_101 = arith.constant 0 : index
    %c0_102 = arith.constant 0 : index
    %480 = vector.load %arg11[%c0_101, %c0_102] : memref<128x512xbf16, #tpu.memory_space<vmem>>, vector<128x512xbf16>
    %cst_103 = arith.constant dense<0.000000e+00> : vector<8x512xf32>
    %481 = tpu.matmul %479, %480, %cst_103 {dimension_numbers = #tpu.dot_dimension_numbers<[1], [0], [0], [1], [0, 0, 1, 1], [], []>} : vector<8x128xbf16>, vector<128x512xbf16>, vector<8x512xf32> -> vector<8x512xf32>
    %c0_104 = arith.constant 0 : index
    %c0_105 = arith.constant 0 : index
    %482 = vector.load %arg13[%c0_104, %c0_105] : memref<1x512xf32, #tpu.memory_space<vmem>>, vector<1x512xf32>
    %483 = vector.broadcast %482 : vector<1x512xf32> to vector<8x512xf32>
    %484 = arith.addf %481, %483 : vector<8x512xf32>
    %485 = tpu.iota {dimensions = array<i32: 1>} : vector<1x512xi32>
    %c128_i32_106 = arith.constant 128 : i32
    %c0_i32_107 = arith.constant 0 : i32
    %486 = arith.cmpi eq, %c128_i32_106, %c0_i32_107 : i32
    %c1_i32_108 = arith.constant 1 : i32
    %487 = arith.select %486, %c1_i32_108, %c128_i32_106 : i32
    %488 = vector.broadcast %487 : i32 to vector<1x512xi32>
    %489 = arith.remsi %485, %488 : vector<1x512xi32>
    %c0_i32_109 = arith.constant 0 : i32
    %490 = vector.broadcast %c0_i32_109 : i32 to vector<1x512xi32>
    %491 = arith.cmpi ne, %489, %490 : vector<1x512xi32>
    %c0_i32_110 = arith.constant 0 : i32
    %492 = vector.broadcast %c0_i32_110 : i32 to vector<1x512xi32>
    %493 = arith.cmpi slt, %489, %492 : vector<1x512xi32>
    %c0_i32_111 = arith.constant 0 : i32
    %494 = arith.cmpi slt, %487, %c0_i32_111 : i32
    %495 = vector.broadcast %494 : i1 to vector<1x512xi1>
    %496 = vector.broadcast %495 : vector<1x512xi1> to vector<1x512xi1>
    %497 = arith.xori %493, %496 : vector<1x512xi1>
    %498 = arith.andi %497, %491 : vector<1x512xi1>
    %499 = vector.broadcast %487 : i32 to vector<1x512xi32>
    %500 = arith.addi %489, %499 : vector<1x512xi32>
    %501 = arith.select %498, %500, %489 : vector<1x512xi1>, vector<1x512xi32>
    %c64_i32 = arith.constant 64 : i32
    %502 = vector.broadcast %c64_i32 : i32 to vector<1x512xi32>
    %503 = arith.cmpi slt, %501, %502 : vector<1x512xi32>
    %cst_112 = arith.constant 0.000000e+00 : f32
    %504 = vector.broadcast %cst_112 : f32 to vector<1x128xf32>
    %cst_113 = arith.constant 0.000000e+00 : f32
    %505 = vector.broadcast %cst_113 : f32 to vector<1x128xf32>
    %506 = vector.extract_strided_slice %484 {offsets = [0, 0], sizes = [1, 512], strides = [1, 1]} : vector<8x512xf32> to vector<1x512xf32>
    %507 = vector.extract_strided_slice %484 {offsets = [7, 0], sizes = [1, 512], strides = [1, 1]} : vector<8x512xf32> to vector<1x512xf32>
    %508 = arith.select %503, %506, %507 : vector<1x512xi1>, vector<1x512xf32>
    %509 = arith.truncf %504 : vector<1x128xf32> to vector<1x128xbf16>
    %c0_114 = arith.constant 0 : index
    %c0_115 = arith.constant 0 : index
    %510 = vector.load %arg12[%c0_114, %c0_115] : memref<128x512xbf16, #tpu.memory_space<vmem>>, vector<128x512xbf16>
    %cst_116 = arith.constant dense<0.000000e+00> : vector<1x512xf32>
    %511 = tpu.matmul %509, %510, %cst_116 {dimension_numbers = #tpu.dot_dimension_numbers<[1], [0], [0], [1], [0, 0, 1, 1], [], []>} : vector<1x128xbf16>, vector<128x512xbf16>, vector<1x512xf32> -> vector<1x512xf32>
    %512 = arith.addf %508, %511 : vector<1x512xf32>
    %513 = vector.extract_strided_slice %512 {offsets = [0, 0], sizes = [1, 128], strides = [1, 1]} : vector<1x512xf32> to vector<1x128xf32>
    %514 = arith.negf %513 : vector<1x128xf32>
    %515 = math.exp %514 : vector<1x128xf32>
    %cst_117 = arith.constant 1.000000e+00 : f32
    %516 = vector.broadcast %cst_117 : f32 to vector<1x128xf32>
    %517 = arith.addf %516, %515 : vector<1x128xf32>
    %518 = arith.divf %516, %517 : vector<1x128xf32>
    %519 = vector.extract_strided_slice %512 {offsets = [0, 128], sizes = [1, 128], strides = [1, 1]} : vector<1x512xf32> to vector<1x128xf32>
    %520 = arith.negf %519 : vector<1x128xf32>
    %521 = math.exp %520 : vector<1x128xf32>
    %cst_118 = arith.constant 1.000000e+00 : f32
    %522 = vector.broadcast %cst_118 : f32 to vector<1x128xf32>
    %523 = arith.addf %522, %521 : vector<1x128xf32>
    %524 = arith.divf %522, %523 : vector<1x128xf32>
    %525 = vector.extract_strided_slice %512 {offsets = [0, 256], sizes = [1, 128], strides = [1, 1]} : vector<1x512xf32> to vector<1x128xf32>
    %526 = math.tanh %525 : vector<1x128xf32>
    %527 = vector.extract_strided_slice %512 {offsets = [0, 384], sizes = [1, 128], strides = [1, 1]} : vector<1x512xf32> to vector<1x128xf32>
    %528 = arith.negf %527 : vector<1x128xf32>
    %529 = math.exp %528 : vector<1x128xf32>
    %cst_119 = arith.constant 1.000000e+00 : f32
    %530 = vector.broadcast %cst_119 : f32 to vector<1x128xf32>
    %531 = arith.addf %530, %529 : vector<1x128xf32>
    %532 = arith.divf %530, %531 : vector<1x128xf32>
    %533 = arith.mulf %524, %505 : vector<1x128xf32>
    %534 = arith.mulf %518, %526 : vector<1x128xf32>
    %535 = arith.addf %533, %534 : vector<1x128xf32>
    %536 = math.tanh %535 : vector<1x128xf32>
    %537 = arith.mulf %532, %536 : vector<1x128xf32>
    %538 = vector.extract_strided_slice %537 {offsets = [0, 0], sizes = [1, 64], strides = [1, 1]} : vector<1x128xf32> to vector<1x64xf32>
    %539 = vector.extract_strided_slice %537 {offsets = [0, 64], sizes = [1, 64], strides = [1, 1]} : vector<1x128xf32> to vector<1x64xf32>
    %540 = vector.extract_strided_slice %484 {offsets = [1, 0], sizes = [1, 512], strides = [1, 1]} : vector<8x512xf32> to vector<1x512xf32>
    %541 = vector.extract_strided_slice %484 {offsets = [6, 0], sizes = [1, 512], strides = [1, 1]} : vector<8x512xf32> to vector<1x512xf32>
    %542 = arith.select %503, %540, %541 : vector<1x512xi1>, vector<1x512xf32>
    %543 = arith.truncf %537 : vector<1x128xf32> to vector<1x128xbf16>
    %c0_120 = arith.constant 0 : index
    %c0_121 = arith.constant 0 : index
    %544 = vector.load %arg12[%c0_120, %c0_121] : memref<128x512xbf16, #tpu.memory_space<vmem>>, vector<128x512xbf16>
    %cst_122 = arith.constant dense<0.000000e+00> : vector<1x512xf32>
    %545 = tpu.matmul %543, %544, %cst_122 {dimension_numbers = #tpu.dot_dimension_numbers<[1], [0], [0], [1], [0, 0, 1, 1], [], []>} : vector<1x128xbf16>, vector<128x512xbf16>, vector<1x512xf32> -> vector<1x512xf32>
    %546 = arith.addf %542, %545 : vector<1x512xf32>
    %547 = vector.extract_strided_slice %546 {offsets = [0, 0], sizes = [1, 128], strides = [1, 1]} : vector<1x512xf32> to vector<1x128xf32>
    %548 = arith.negf %547 : vector<1x128xf32>
    %549 = math.exp %548 : vector<1x128xf32>
    %cst_123 = arith.constant 1.000000e+00 : f32
    %550 = vector.broadcast %cst_123 : f32 to vector<1x128xf32>
    %551 = arith.addf %550, %549 : vector<1x128xf32>
    %552 = arith.divf %550, %551 : vector<1x128xf32>
    %553 = vector.extract_strided_slice %546 {offsets = [0, 128], sizes = [1, 128], strides = [1, 1]} : vector<1x512xf32> to vector<1x128xf32>
    %554 = arith.negf %553 : vector<1x128xf32>
    %555 = math.exp %554 : vector<1x128xf32>
    %cst_124 = arith.constant 1.000000e+00 : f32
    %556 = vector.broadcast %cst_124 : f32 to vector<1x128xf32>
    %557 = arith.addf %556, %555 : vector<1x128xf32>
    %558 = arith.divf %556, %557 : vector<1x128xf32>
    %559 = vector.extract_strided_slice %546 {offsets = [0, 256], sizes = [1, 128], strides = [1, 1]} : vector<1x512xf32> to vector<1x128xf32>
    %560 = math.tanh %559 : vector<1x128xf32>
    %561 = vector.extract_strided_slice %546 {offsets = [0, 384], sizes = [1, 128], strides = [1, 1]} : vector<1x512xf32> to vector<1x128xf32>
    %562 = arith.negf %561 : vector<1x128xf32>
    %563 = math.exp %562 : vector<1x128xf32>
    %cst_125 = arith.constant 1.000000e+00 : f32
    %564 = vector.broadcast %cst_125 : f32 to vector<1x128xf32>
    %565 = arith.addf %564, %563 : vector<1x128xf32>
    %566 = arith.divf %564, %565 : vector<1x128xf32>
    %567 = arith.mulf %558, %535 : vector<1x128xf32>
    %568 = arith.mulf %552, %560 : vector<1x128xf32>
    %569 = arith.addf %567, %568 : vector<1x128xf32>
    %570 = math.tanh %569 : vector<1x128xf32>
    %571 = arith.mulf %566, %570 : vector<1x128xf32>
    %572 = vector.extract_strided_slice %571 {offsets = [0, 0], sizes = [1, 64], strides = [1, 1]} : vector<1x128xf32> to vector<1x64xf32>
    %573 = vector.extract_strided_slice %571 {offsets = [0, 64], sizes = [1, 64], strides = [1, 1]} : vector<1x128xf32> to vector<1x64xf32>
    %574 = vector.extract_strided_slice %484 {offsets = [2, 0], sizes = [1, 512], strides = [1, 1]} : vector<8x512xf32> to vector<1x512xf32>
    %575 = vector.extract_strided_slice %484 {offsets = [5, 0], sizes = [1, 512], strides = [1, 1]} : vector<8x512xf32> to vector<1x512xf32>
    %576 = arith.select %503, %574, %575 : vector<1x512xi1>, vector<1x512xf32>
    %577 = arith.truncf %571 : vector<1x128xf32> to vector<1x128xbf16>
    %c0_126 = arith.constant 0 : index
    %c0_127 = arith.constant 0 : index
    %578 = vector.load %arg12[%c0_126, %c0_127] : memref<128x512xbf16, #tpu.memory_space<vmem>>, vector<128x512xbf16>
    %cst_128 = arith.constant dense<0.000000e+00> : vector<1x512xf32>
    %579 = tpu.matmul %577, %578, %cst_128 {dimension_numbers = #tpu.dot_dimension_numbers<[1], [0], [0], [1], [0, 0, 1, 1], [], []>} : vector<1x128xbf16>, vector<128x512xbf16>, vector<1x512xf32> -> vector<1x512xf32>
    %580 = arith.addf %576, %579 : vector<1x512xf32>
    %581 = vector.extract_strided_slice %580 {offsets = [0, 0], sizes = [1, 128], strides = [1, 1]} : vector<1x512xf32> to vector<1x128xf32>
    %582 = arith.negf %581 : vector<1x128xf32>
    %583 = math.exp %582 : vector<1x128xf32>
    %cst_129 = arith.constant 1.000000e+00 : f32
    %584 = vector.broadcast %cst_129 : f32 to vector<1x128xf32>
    %585 = arith.addf %584, %583 : vector<1x128xf32>
    %586 = arith.divf %584, %585 : vector<1x128xf32>
    %587 = vector.extract_strided_slice %580 {offsets = [0, 128], sizes = [1, 128], strides = [1, 1]} : vector<1x512xf32> to vector<1x128xf32>
    %588 = arith.negf %587 : vector<1x128xf32>
    %589 = math.exp %588 : vector<1x128xf32>
    %cst_130 = arith.constant 1.000000e+00 : f32
    %590 = vector.broadcast %cst_130 : f32 to vector<1x128xf32>
    %591 = arith.addf %590, %589 : vector<1x128xf32>
    %592 = arith.divf %590, %591 : vector<1x128xf32>
    %593 = vector.extract_strided_slice %580 {offsets = [0, 256], sizes = [1, 128], strides = [1, 1]} : vector<1x512xf32> to vector<1x128xf32>
    %594 = math.tanh %593 : vector<1x128xf32>
    %595 = vector.extract_strided_slice %580 {offsets = [0, 384], sizes = [1, 128], strides = [1, 1]} : vector<1x512xf32> to vector<1x128xf32>
    %596 = arith.negf %595 : vector<1x128xf32>
    %597 = math.exp %596 : vector<1x128xf32>
    %cst_131 = arith.constant 1.000000e+00 : f32
    %598 = vector.broadcast %cst_131 : f32 to vector<1x128xf32>
    %599 = arith.addf %598, %597 : vector<1x128xf32>
    %600 = arith.divf %598, %599 : vector<1x128xf32>
    %601 = arith.mulf %592, %569 : vector<1x128xf32>
    %602 = arith.mulf %586, %594 : vector<1x128xf32>
    %603 = arith.addf %601, %602 : vector<1x128xf32>
    %604 = math.tanh %603 : vector<1x128xf32>
    %605 = arith.mulf %600, %604 : vector<1x128xf32>
    %606 = vector.extract_strided_slice %605 {offsets = [0, 0], sizes = [1, 64], strides = [1, 1]} : vector<1x128xf32> to vector<1x64xf32>
    %607 = vector.extract_strided_slice %605 {offsets = [0, 64], sizes = [1, 64], strides = [1, 1]} : vector<1x128xf32> to vector<1x64xf32>
    %608 = vector.extract_strided_slice %484 {offsets = [3, 0], sizes = [1, 512], strides = [1, 1]} : vector<8x512xf32> to vector<1x512xf32>
    %609 = vector.extract_strided_slice %484 {offsets = [4, 0], sizes = [1, 512], strides = [1, 1]} : vector<8x512xf32> to vector<1x512xf32>
    %610 = arith.select %503, %608, %609 : vector<1x512xi1>, vector<1x512xf32>
    %611 = arith.truncf %605 : vector<1x128xf32> to vector<1x128xbf16>
    %c0_132 = arith.constant 0 : index
    %c0_133 = arith.constant 0 : index
    %612 = vector.load %arg12[%c0_132, %c0_133] : memref<128x512xbf16, #tpu.memory_space<vmem>>, vector<128x512xbf16>
    %cst_134 = arith.constant dense<0.000000e+00> : vector<1x512xf32>
    %613 = tpu.matmul %611, %612, %cst_134 {dimension_numbers = #tpu.dot_dimension_numbers<[1], [0], [0], [1], [0, 0, 1, 1], [], []>} : vector<1x128xbf16>, vector<128x512xbf16>, vector<1x512xf32> -> vector<1x512xf32>
    %614 = arith.addf %610, %613 : vector<1x512xf32>
    %615 = vector.extract_strided_slice %614 {offsets = [0, 0], sizes = [1, 128], strides = [1, 1]} : vector<1x512xf32> to vector<1x128xf32>
    %616 = arith.negf %615 : vector<1x128xf32>
    %617 = math.exp %616 : vector<1x128xf32>
    %cst_135 = arith.constant 1.000000e+00 : f32
    %618 = vector.broadcast %cst_135 : f32 to vector<1x128xf32>
    %619 = arith.addf %618, %617 : vector<1x128xf32>
    %620 = arith.divf %618, %619 : vector<1x128xf32>
    %621 = vector.extract_strided_slice %614 {offsets = [0, 128], sizes = [1, 128], strides = [1, 1]} : vector<1x512xf32> to vector<1x128xf32>
    %622 = arith.negf %621 : vector<1x128xf32>
    %623 = math.exp %622 : vector<1x128xf32>
    %cst_136 = arith.constant 1.000000e+00 : f32
    %624 = vector.broadcast %cst_136 : f32 to vector<1x128xf32>
    %625 = arith.addf %624, %623 : vector<1x128xf32>
    %626 = arith.divf %624, %625 : vector<1x128xf32>
    %627 = vector.extract_strided_slice %614 {offsets = [0, 256], sizes = [1, 128], strides = [1, 1]} : vector<1x512xf32> to vector<1x128xf32>
    %628 = math.tanh %627 : vector<1x128xf32>
    %629 = vector.extract_strided_slice %614 {offsets = [0, 384], sizes = [1, 128], strides = [1, 1]} : vector<1x512xf32> to vector<1x128xf32>
    %630 = arith.negf %629 : vector<1x128xf32>
    %631 = math.exp %630 : vector<1x128xf32>
    %cst_137 = arith.constant 1.000000e+00 : f32
    %632 = vector.broadcast %cst_137 : f32 to vector<1x128xf32>
    %633 = arith.addf %632, %631 : vector<1x128xf32>
    %634 = arith.divf %632, %633 : vector<1x128xf32>
    %635 = arith.mulf %626, %603 : vector<1x128xf32>
    %636 = arith.mulf %620, %628 : vector<1x128xf32>
    %637 = arith.addf %635, %636 : vector<1x128xf32>
    %638 = math.tanh %637 : vector<1x128xf32>
    %639 = arith.mulf %634, %638 : vector<1x128xf32>
    %640 = vector.extract_strided_slice %639 {offsets = [0, 0], sizes = [1, 64], strides = [1, 1]} : vector<1x128xf32> to vector<1x64xf32>
    %641 = vector.extract_strided_slice %639 {offsets = [0, 64], sizes = [1, 64], strides = [1, 1]} : vector<1x128xf32> to vector<1x64xf32>
    %642 = vector.extract_strided_slice %484 {offsets = [4, 0], sizes = [1, 512], strides = [1, 1]} : vector<8x512xf32> to vector<1x512xf32>
    %643 = vector.extract_strided_slice %484 {offsets = [3, 0], sizes = [1, 512], strides = [1, 1]} : vector<8x512xf32> to vector<1x512xf32>
    %644 = arith.select %503, %642, %643 : vector<1x512xi1>, vector<1x512xf32>
    %645 = arith.truncf %639 : vector<1x128xf32> to vector<1x128xbf16>
    %c0_138 = arith.constant 0 : index
    %c0_139 = arith.constant 0 : index
    %646 = vector.load %arg12[%c0_138, %c0_139] : memref<128x512xbf16, #tpu.memory_space<vmem>>, vector<128x512xbf16>
    %cst_140 = arith.constant dense<0.000000e+00> : vector<1x512xf32>
    %647 = tpu.matmul %645, %646, %cst_140 {dimension_numbers = #tpu.dot_dimension_numbers<[1], [0], [0], [1], [0, 0, 1, 1], [], []>} : vector<1x128xbf16>, vector<128x512xbf16>, vector<1x512xf32> -> vector<1x512xf32>
    %648 = arith.addf %644, %647 : vector<1x512xf32>
    %649 = vector.extract_strided_slice %648 {offsets = [0, 0], sizes = [1, 128], strides = [1, 1]} : vector<1x512xf32> to vector<1x128xf32>
    %650 = arith.negf %649 : vector<1x128xf32>
    %651 = math.exp %650 : vector<1x128xf32>
    %cst_141 = arith.constant 1.000000e+00 : f32
    %652 = vector.broadcast %cst_141 : f32 to vector<1x128xf32>
    %653 = arith.addf %652, %651 : vector<1x128xf32>
    %654 = arith.divf %652, %653 : vector<1x128xf32>
    %655 = vector.extract_strided_slice %648 {offsets = [0, 128], sizes = [1, 128], strides = [1, 1]} : vector<1x512xf32> to vector<1x128xf32>
    %656 = arith.negf %655 : vector<1x128xf32>
    %657 = math.exp %656 : vector<1x128xf32>
    %cst_142 = arith.constant 1.000000e+00 : f32
    %658 = vector.broadcast %cst_142 : f32 to vector<1x128xf32>
    %659 = arith.addf %658, %657 : vector<1x128xf32>
    %660 = arith.divf %658, %659 : vector<1x128xf32>
    %661 = vector.extract_strided_slice %648 {offsets = [0, 256], sizes = [1, 128], strides = [1, 1]} : vector<1x512xf32> to vector<1x128xf32>
    %662 = math.tanh %661 : vector<1x128xf32>
    %663 = vector.extract_strided_slice %648 {offsets = [0, 384], sizes = [1, 128], strides = [1, 1]} : vector<1x512xf32> to vector<1x128xf32>
    %664 = arith.negf %663 : vector<1x128xf32>
    %665 = math.exp %664 : vector<1x128xf32>
    %cst_143 = arith.constant 1.000000e+00 : f32
    %666 = vector.broadcast %cst_143 : f32 to vector<1x128xf32>
    %667 = arith.addf %666, %665 : vector<1x128xf32>
    %668 = arith.divf %666, %667 : vector<1x128xf32>
    %669 = arith.mulf %660, %637 : vector<1x128xf32>
    %670 = arith.mulf %654, %662 : vector<1x128xf32>
    %671 = arith.addf %669, %670 : vector<1x128xf32>
    %672 = math.tanh %671 : vector<1x128xf32>
    %673 = arith.mulf %668, %672 : vector<1x128xf32>
    %674 = vector.extract_strided_slice %673 {offsets = [0, 0], sizes = [1, 64], strides = [1, 1]} : vector<1x128xf32> to vector<1x64xf32>
    %675 = vector.extract_strided_slice %673 {offsets = [0, 64], sizes = [1, 64], strides = [1, 1]} : vector<1x128xf32> to vector<1x64xf32>
    %676 = vector.extract_strided_slice %484 {offsets = [5, 0], sizes = [1, 512], strides = [1, 1]} : vector<8x512xf32> to vector<1x512xf32>
    %677 = vector.extract_strided_slice %484 {offsets = [2, 0], sizes = [1, 512], strides = [1, 1]} : vector<8x512xf32> to vector<1x512xf32>
    %678 = arith.select %503, %676, %677 : vector<1x512xi1>, vector<1x512xf32>
    %679 = arith.truncf %673 : vector<1x128xf32> to vector<1x128xbf16>
    %c0_144 = arith.constant 0 : index
    %c0_145 = arith.constant 0 : index
    %680 = vector.load %arg12[%c0_144, %c0_145] : memref<128x512xbf16, #tpu.memory_space<vmem>>, vector<128x512xbf16>
    %cst_146 = arith.constant dense<0.000000e+00> : vector<1x512xf32>
    %681 = tpu.matmul %679, %680, %cst_146 {dimension_numbers = #tpu.dot_dimension_numbers<[1], [0], [0], [1], [0, 0, 1, 1], [], []>} : vector<1x128xbf16>, vector<128x512xbf16>, vector<1x512xf32> -> vector<1x512xf32>
    %682 = arith.addf %678, %681 : vector<1x512xf32>
    %683 = vector.extract_strided_slice %682 {offsets = [0, 0], sizes = [1, 128], strides = [1, 1]} : vector<1x512xf32> to vector<1x128xf32>
    %684 = arith.negf %683 : vector<1x128xf32>
    %685 = math.exp %684 : vector<1x128xf32>
    %cst_147 = arith.constant 1.000000e+00 : f32
    %686 = vector.broadcast %cst_147 : f32 to vector<1x128xf32>
    %687 = arith.addf %686, %685 : vector<1x128xf32>
    %688 = arith.divf %686, %687 : vector<1x128xf32>
    %689 = vector.extract_strided_slice %682 {offsets = [0, 128], sizes = [1, 128], strides = [1, 1]} : vector<1x512xf32> to vector<1x128xf32>
    %690 = arith.negf %689 : vector<1x128xf32>
    %691 = math.exp %690 : vector<1x128xf32>
    %cst_148 = arith.constant 1.000000e+00 : f32
    %692 = vector.broadcast %cst_148 : f32 to vector<1x128xf32>
    %693 = arith.addf %692, %691 : vector<1x128xf32>
    %694 = arith.divf %692, %693 : vector<1x128xf32>
    %695 = vector.extract_strided_slice %682 {offsets = [0, 256], sizes = [1, 128], strides = [1, 1]} : vector<1x512xf32> to vector<1x128xf32>
    %696 = math.tanh %695 : vector<1x128xf32>
    %697 = vector.extract_strided_slice %682 {offsets = [0, 384], sizes = [1, 128], strides = [1, 1]} : vector<1x512xf32> to vector<1x128xf32>
    %698 = arith.negf %697 : vector<1x128xf32>
    %699 = math.exp %698 : vector<1x128xf32>
    %cst_149 = arith.constant 1.000000e+00 : f32
    %700 = vector.broadcast %cst_149 : f32 to vector<1x128xf32>
    %701 = arith.addf %700, %699 : vector<1x128xf32>
    %702 = arith.divf %700, %701 : vector<1x128xf32>
    %703 = arith.mulf %694, %671 : vector<1x128xf32>
    %704 = arith.mulf %688, %696 : vector<1x128xf32>
    %705 = arith.addf %703, %704 : vector<1x128xf32>
    %706 = math.tanh %705 : vector<1x128xf32>
    %707 = arith.mulf %702, %706 : vector<1x128xf32>
    %708 = vector.extract_strided_slice %707 {offsets = [0, 0], sizes = [1, 64], strides = [1, 1]} : vector<1x128xf32> to vector<1x64xf32>
    %709 = vector.extract_strided_slice %707 {offsets = [0, 64], sizes = [1, 64], strides = [1, 1]} : vector<1x128xf32> to vector<1x64xf32>
    %710 = vector.extract_strided_slice %484 {offsets = [6, 0], sizes = [1, 512], strides = [1, 1]} : vector<8x512xf32> to vector<1x512xf32>
    %711 = vector.extract_strided_slice %484 {offsets = [1, 0], sizes = [1, 512], strides = [1, 1]} : vector<8x512xf32> to vector<1x512xf32>
    %712 = arith.select %503, %710, %711 : vector<1x512xi1>, vector<1x512xf32>
    %713 = arith.truncf %707 : vector<1x128xf32> to vector<1x128xbf16>
    %c0_150 = arith.constant 0 : index
    %c0_151 = arith.constant 0 : index
    %714 = vector.load %arg12[%c0_150, %c0_151] : memref<128x512xbf16, #tpu.memory_space<vmem>>, vector<128x512xbf16>
    %cst_152 = arith.constant dense<0.000000e+00> : vector<1x512xf32>
    %715 = tpu.matmul %713, %714, %cst_152 {dimension_numbers = #tpu.dot_dimension_numbers<[1], [0], [0], [1], [0, 0, 1, 1], [], []>} : vector<1x128xbf16>, vector<128x512xbf16>, vector<1x512xf32> -> vector<1x512xf32>
    %716 = arith.addf %712, %715 : vector<1x512xf32>
    %717 = vector.extract_strided_slice %716 {offsets = [0, 0], sizes = [1, 128], strides = [1, 1]} : vector<1x512xf32> to vector<1x128xf32>
    %718 = arith.negf %717 : vector<1x128xf32>
    %719 = math.exp %718 : vector<1x128xf32>
    %cst_153 = arith.constant 1.000000e+00 : f32
    %720 = vector.broadcast %cst_153 : f32 to vector<1x128xf32>
    %721 = arith.addf %720, %719 : vector<1x128xf32>
    %722 = arith.divf %720, %721 : vector<1x128xf32>
    %723 = vector.extract_strided_slice %716 {offsets = [0, 128], sizes = [1, 128], strides = [1, 1]} : vector<1x512xf32> to vector<1x128xf32>
    %724 = arith.negf %723 : vector<1x128xf32>
    %725 = math.exp %724 : vector<1x128xf32>
    %cst_154 = arith.constant 1.000000e+00 : f32
    %726 = vector.broadcast %cst_154 : f32 to vector<1x128xf32>
    %727 = arith.addf %726, %725 : vector<1x128xf32>
    %728 = arith.divf %726, %727 : vector<1x128xf32>
    %729 = vector.extract_strided_slice %716 {offsets = [0, 256], sizes = [1, 128], strides = [1, 1]} : vector<1x512xf32> to vector<1x128xf32>
    %730 = math.tanh %729 : vector<1x128xf32>
    %731 = vector.extract_strided_slice %716 {offsets = [0, 384], sizes = [1, 128], strides = [1, 1]} : vector<1x512xf32> to vector<1x128xf32>
    %732 = arith.negf %731 : vector<1x128xf32>
    %733 = math.exp %732 : vector<1x128xf32>
    %cst_155 = arith.constant 1.000000e+00 : f32
    %734 = vector.broadcast %cst_155 : f32 to vector<1x128xf32>
    %735 = arith.addf %734, %733 : vector<1x128xf32>
    %736 = arith.divf %734, %735 : vector<1x128xf32>
    %737 = arith.mulf %728, %705 : vector<1x128xf32>
    %738 = arith.mulf %722, %730 : vector<1x128xf32>
    %739 = arith.addf %737, %738 : vector<1x128xf32>
    %740 = math.tanh %739 : vector<1x128xf32>
    %741 = arith.mulf %736, %740 : vector<1x128xf32>
    %742 = vector.extract_strided_slice %741 {offsets = [0, 0], sizes = [1, 64], strides = [1, 1]} : vector<1x128xf32> to vector<1x64xf32>
    %743 = vector.extract_strided_slice %741 {offsets = [0, 64], sizes = [1, 64], strides = [1, 1]} : vector<1x128xf32> to vector<1x64xf32>
    %744 = vector.extract_strided_slice %484 {offsets = [7, 0], sizes = [1, 512], strides = [1, 1]} : vector<8x512xf32> to vector<1x512xf32>
    %745 = vector.extract_strided_slice %484 {offsets = [0, 0], sizes = [1, 512], strides = [1, 1]} : vector<8x512xf32> to vector<1x512xf32>
    %746 = arith.select %503, %744, %745 : vector<1x512xi1>, vector<1x512xf32>
    %747 = arith.truncf %741 : vector<1x128xf32> to vector<1x128xbf16>
    %c0_156 = arith.constant 0 : index
    %c0_157 = arith.constant 0 : index
    %748 = vector.load %arg12[%c0_156, %c0_157] : memref<128x512xbf16, #tpu.memory_space<vmem>>, vector<128x512xbf16>
    %cst_158 = arith.constant dense<0.000000e+00> : vector<1x512xf32>
    %749 = tpu.matmul %747, %748, %cst_158 {dimension_numbers = #tpu.dot_dimension_numbers<[1], [0], [0], [1], [0, 0, 1, 1], [], []>} : vector<1x128xbf16>, vector<128x512xbf16>, vector<1x512xf32> -> vector<1x512xf32>
    %750 = arith.addf %746, %749 : vector<1x512xf32>
    %751 = vector.extract_strided_slice %750 {offsets = [0, 0], sizes = [1, 128], strides = [1, 1]} : vector<1x512xf32> to vector<1x128xf32>
    %752 = arith.negf %751 : vector<1x128xf32>
    %753 = math.exp %752 : vector<1x128xf32>
    %cst_159 = arith.constant 1.000000e+00 : f32
    %754 = vector.broadcast %cst_159 : f32 to vector<1x128xf32>
    %755 = arith.addf %754, %753 : vector<1x128xf32>
    %756 = arith.divf %754, %755 : vector<1x128xf32>
    %757 = vector.extract_strided_slice %750 {offsets = [0, 128], sizes = [1, 128], strides = [1, 1]} : vector<1x512xf32> to vector<1x128xf32>
    %758 = arith.negf %757 : vector<1x128xf32>
    %759 = math.exp %758 : vector<1x128xf32>
    %cst_160 = arith.constant 1.000000e+00 : f32
    %760 = vector.broadcast %cst_160 : f32 to vector<1x128xf32>
    %761 = arith.addf %760, %759 : vector<1x128xf32>
    %762 = arith.divf %760, %761 : vector<1x128xf32>
    %763 = vector.extract_strided_slice %750 {offsets = [0, 256], sizes = [1, 128], strides = [1, 1]} : vector<1x512xf32> to vector<1x128xf32>
    %764 = math.tanh %763 : vector<1x128xf32>
    %765 = vector.extract_strided_slice %750 {offsets = [0, 384], sizes = [1, 128], strides = [1, 1]} : vector<1x512xf32> to vector<1x128xf32>
    %766 = arith.negf %765 : vector<1x128xf32>
    %767 = math.exp %766 : vector<1x128xf32>
    %cst_161 = arith.constant 1.000000e+00 : f32
    %768 = vector.broadcast %cst_161 : f32 to vector<1x128xf32>
    %769 = arith.addf %768, %767 : vector<1x128xf32>
    %770 = arith.divf %768, %769 : vector<1x128xf32>
    %771 = arith.mulf %762, %739 : vector<1x128xf32>
    %772 = arith.mulf %756, %764 : vector<1x128xf32>
    %773 = arith.addf %771, %772 : vector<1x128xf32>
    %774 = math.tanh %773 : vector<1x128xf32>
    %775 = arith.mulf %770, %774 : vector<1x128xf32>
    %776 = vector.extract_strided_slice %775 {offsets = [0, 0], sizes = [1, 64], strides = [1, 1]} : vector<1x128xf32> to vector<1x64xf32>
    %777 = vector.extract_strided_slice %775 {offsets = [0, 64], sizes = [1, 64], strides = [1, 1]} : vector<1x128xf32> to vector<1x64xf32>
    %778 = tpu.concatenate %538, %572, %606, %640, %674, %708, %742, %776 in 0 : vector<1x64xf32>, vector<1x64xf32>, vector<1x64xf32>, vector<1x64xf32>, vector<1x64xf32>, vector<1x64xf32>, vector<1x64xf32>, vector<1x64xf32> -> vector<8x64xf32>
    %779 = tpu.concatenate %777, %743, %709, %675, %641, %607, %573, %539 in 0 : vector<1x64xf32>, vector<1x64xf32>, vector<1x64xf32>, vector<1x64xf32>, vector<1x64xf32>, vector<1x64xf32>, vector<1x64xf32>, vector<1x64xf32> -> vector<8x64xf32>
    %780 = arith.addf %778, %779 : vector<8x64xf32>
    %781 = arith.truncf %780 : vector<8x64xf32> to vector<8x64xbf16>
    %c0_162 = arith.constant 0 : index
    %c0_163 = arith.constant 0 : index
    %782 = vector.load %arg14[%c0_162, %c0_163] : memref<64x128xbf16, #tpu.memory_space<vmem>>, vector<64x128xbf16>
    %cst_164 = arith.constant dense<0.000000e+00> : vector<8x128xf32>
    %783 = tpu.matmul %781, %782, %cst_164 {dimension_numbers = #tpu.dot_dimension_numbers<[1], [0], [0], [1], [0, 0, 1, 1], [], []>} : vector<8x64xbf16>, vector<64x128xbf16>, vector<8x128xf32> -> vector<8x128xf32>
    %c0_165 = arith.constant 0 : index
    %c0_166 = arith.constant 0 : index
    %784 = vector.load %arg15[%c0_165, %c0_166] : memref<1x128xf32, #tpu.memory_space<vmem>>, vector<1x128xf32>
    %785 = vector.broadcast %784 : vector<1x128xf32> to vector<8x128xf32>
    %786 = arith.addf %783, %785 : vector<8x128xf32>
    %cst_167 = arith.constant dense<0xFF800000> : vector<8xf32>
    %787 = vector.multi_reduction <maximumf>, %786, %cst_167 [1] : vector<8x128xf32> to vector<8xf32>
    %788 = vector.shape_cast %787 : vector<8xf32> to vector<8x1xf32>
    %789 = vector.broadcast %788 : vector<8x1xf32> to vector<8x128xf32>
    %790 = arith.subf %786, %789 : vector<8x128xf32>
    %791 = math.exp %790 : vector<8x128xf32>
    %cst_168 = arith.constant dense<0.000000e+00> : vector<8xf32>
    %792 = vector.multi_reduction <add>, %791, %cst_168 [1] : vector<8x128xf32> to vector<8xf32>
    %793 = vector.shape_cast %792 : vector<8xf32> to vector<8x1xf32>
    %794 = tpu.reciprocal %793 {approx = true} : vector<8x1xf32> -> vector<8x1xf32>
    %795 = vector.broadcast %794 : vector<8x1xf32> to vector<8x128xf32>
    %796 = arith.mulf %791, %795 : vector<8x128xf32>
    %c0_169 = arith.constant 0 : index
    %c0_170 = arith.constant 0 : index
    %797 = vector.load %arg16[%c0_169, %c0_170] : memref<8x128xf32, #tpu.memory_space<vmem>>, vector<8x128xf32>
    tpu.vector_store %arg16[%c0_169, %c0_170], %796 {strides = array<i32>} : memref<8x128xf32, #tpu.memory_space<vmem>>, vector<8x128xf32>,
    return
  }
}

</mosaic_0001>

<bundles_post_ra>
// kernel: ocr_forward.1
= control target key start
LH: loop header
LB: loop body
LE: loop exit
PB: predicated region body
PF: predicated region fallthrough
CT: control target
= control target key end

     0   :  { %s11349_s0 = inlined_call_operand.vmem [shape: f32[5,9], index: 0, kind: input, shape index: {}]   ;;  %s11350_s1 = inlined_call_operand.vmem [shape: f32[5,9], index: 1, kind: input, shape index: {}]   ;;  %s11351_s2 = inlined_call_operand.vmem [shape: f32[5,9], index: 2, kind: input, shape index: {}]   ;;  %s11352_s3 = inlined_call_operand.vmem [shape: f32[5,9], index: 3, kind: input, shape index: {}]   ;;  %s11353_s4 = inlined_call_operand.vmem [shape: f32[64,9], index: 4, kind: input, shape index: {}]   ;;  %s11354_s5 = inlined_call_operand.vmem [shape: f32[64,1], index: 5, kind: input, shape index: {}]   ;;  %s11355_s6 = inlined_call_operand.vmem [shape: bf16[256,64], index: 6, kind: input, shape index: {}]   ;;  %s11356_s7 = inlined_call_operand.vmem [shape: f32[1,64], index: 7, kind: input, shape index: {}]   ;;  %s11357_s8 = inlined_call_operand.vmem [shape: bf16[64,1024], index: 8, kind: input, shape index: {}]   ;;  %s11358_s9 = inlined_call_operand.hbm [shape: bf16[256,1024], index: 9, kind: input, shape index: {}]   ;;  %s11359_s10 = inlined_call_operand.vmem [shape: f32[1,1024], index: 10, kind: input, shape index: {}]   ;;  %s11360_s11 = inlined_call_operand.hbm [shape: bf16[128,512], index: 11, kind: input, shape index: {}]   ;;  %s11361_s12 = inlined_call_operand.hbm [shape: bf16[128,512], index: 12, kind: input, shape index: {}]   ;;  %s11362_s13 = inlined_call_operand.vmem [shape: f32[1,512], index: 13, kind: input, shape index: {}]   ;;  %s11363_s14 = inlined_call_operand.vmem [shape: bf16[64,128], index: 14, kind: input, shape index: {}]   ;;  %s11364_s15 = inlined_call_operand.vmem [shape: f32[1,128], index: 15, kind: input, shape index: {}]   ;;  %s11365_s16 = inlined_call_operand.hbm [shape: f32[8,128], index: 16, kind: output, shape index: {}]  }
   0x1   :  { %11685 = sst [smem:[#allocation145_spill]] %s11349_s0 }
   0x2   :  { %21 = vsyncpa [#allocation3], 0 }
   0x3   :  { %22 = vsyncpa [#allocation6], 0 }
   0x4   :  { %23 = vsyncpa [#allocation4], 0  ;;  %s8327_s21 = smov [#allocation5]  }
   0x5   :  { %s61_s22 = sshll.u32 %s8327_s21, 4  ;;  %s62_s22 = int_to_ptr.vmem [resolvable:$true] %s61_s22 }
   0x6   :  { %s8249_s23 = scalar_lea.vmem %s62_s22, 4096  ;;  %p8254_p1 = scmp.lt.s32.totalorder %s62_s22, %s62_s22 }
   0x7   :  { %p8250_p0 = scmp.ne.s32.totalorder %s62_s22, %s8249_s23  ;;  %p8255_p2 = scmp.lt.s32.totalorder %s8249_s23, %s8249_s23 }
   0x9   :  { %p8256_p3 = por %p8255_p2, %p8254_p1 }
   0xb   :  { %p8257_p4 = pnand %p8256_p3, %p8250_p0 }
   0xd   :  { %8260 = shalt.err (!%p8257_p4)
}
   0xe   :  { %s8328_s24 = smov 256   ;;  %s8329_s25 = smov 16  }
   0xf   :  { %67 = dma.hbm_to_vmem [thread:$0]  %s11360_s11, 4096, %s62_s22, [#allocation6], %s8328_s24, %s8328_s24, %s8329_s25  }
  0x10   :  { %s8330_s28 = smov [#allocation2]  }
  0x11   :  { %s47_s29 = sshll.u32 %s8330_s28, 4  ;;  %s48_s29 = int_to_ptr.vmem [resolvable:$true] %s47_s29 }
  0x12   :  { %s8269_s30 = scalar_lea.vmem %s48_s29, 16384  ;;  %p8274_p6 = scmp.lt.s32.totalorder %s48_s29, %s48_s29 }
  0x13   :  { %p8270_p5 = scmp.ne.s32.totalorder %s48_s29, %s8269_s30  ;;  %p8275_p7 = scmp.lt.s32.totalorder %s8269_s30, %s8269_s30 }
  0x15   :  { %p8276_p8 = por %p8275_p7, %p8274_p6 }
  0x17   :  { %p8277_p9 = pnand %p8276_p8, %p8270_p5 }
  0x19   :  { %8280 = shalt.err (!%p8277_p9)
}
  0x1a   :  { %s8331_s0 = smov 512   ;;  %s8332_s17 = smov 32  }
  0x1b   :  { %53 = dma.hbm_to_vmem [thread:$0]  %s11358_s9, 16384, %s48_s29, [#allocation3], %s8331_s0, %s8331_s0, %s8332_s17  }
  0x1c   :  { %s8333_s20 = smov [#allocation7]  }
  0x1d   :  { %s73_s21 = sshll.u32 %s8333_s20, 4  ;;  %s74_s21 = int_to_ptr.vmem [resolvable:$true] %s73_s21 }
  0x1e   :  { %s8289_s11 = scalar_lea.vmem %s74_s21, 4096  ;;  %p8294_p11 = scmp.lt.s32.totalorder %s74_s21, %s74_s21 }
  0x1f   :  { %p8290_p10 = scmp.ne.s32.totalorder %s74_s21, %s8289_s11  ;;  %p8295_p12 = scmp.lt.s32.totalorder %s8289_s11, %s8289_s11 }
  0x21   :  { %p8296_p13 = por %p8295_p12, %p8294_p11 }
  0x23   :  { %p8297_p0 = pnand %p8296_p13, %p8290_p10 }
  0x25   :  { %8300 = shalt.err (!%p8297_p0)
}
  0x26   :  { %79 = dma.hbm_to_vmem [thread:$0]  %s11361_s12, 4096, %s74_s21, [#allocation6], %s8328_s24, %s8328_s24, %s8329_s25  }
  0x27   :  { %8321 = dma.done.wait [#allocation3], 16384  }
  0x28   :  { %8322 = vsyncadd [#allocation3], 4294950912 }
  0x29   :  { %8323 = dma.done.wait [#allocation6], 8192  }
  0x2a   :  { %8324 = vsyncadd [#allocation6], 4294959104  ;;  %s11686_s27 = sld [smem:[#allocation145_spill]]  ;;  %v8451_v1 = vld [vmem:[%s11350_s1] sm:$0x1f]  ;;  %s8334_s30 = smov 127  }
  0x2b   :  { %v135_v3 = vrot.slane %v8451_v1, 1  ;;  %s8335_s12 = smov 7   ;;  %v139_v4 = vrot.slane %v8451_v1, 2  ;;  %s8336_s24 = smov 8   ;;  %v8463_v6 = vld [vmem:[%s11351_s2] sm:$0x1f] }
  0x2c   :  { %v143_v7 = vrot.slane %v8451_v1, 3  ;;  %v166_v8 = vrot.slane %v8463_v6, 1  ;;  %s8337_s18 = smov 15   ;;  %s8338_s19 = smov 24   ;;  %v8472_v9 = vld [vmem:[%s11352_s3] sm:$0x1f] }
  0x2d   :  { %v170_v11 = vrot.slane %v8463_v6, 2  ;;  %s8339_s2 = smov 23   ;;  %v197_v12 = vrot.slane %v8472_v9, 1  ;;  %v174_v13 = vrot.slane %v8463_v6, 3  ;;  %v201_v14 = vrot.slane %v8472_v9, 2  ;;  %v8489_v16 = vld [vmem:[%s11353_s4] sm:$0xff] }
  0x2e   :  { %v205_v15 = vrot.slane %v8472_v9, 3  ;;  %vm270_vm0 = vcmask 72704   ;;  %v8497_v17 = vld [vmem:[%s11353_s4 + $0x20] sm:$0xff]  ;;  %v821_v18 = vld [vmem:[%s11354_s5 + $0x30] sm:$0xff]  ;;  %v822_v19 = vld [vmem:[%s11354_s5 + $0x38] sm:$0xff]  ;;  %v11368_v20 = vmov 0  }
  0x2f   :  { %7441 = vmatprep.mubr.msk.f32.mxu0 %vm270_vm0, %v8489_v16  ;;  %7447 = vmatprep.mubr.msk.f32.mxu1 %vm270_vm0, %v8497_v17  ;;  %v820_v21 = vld [vmem:[%s11354_s5 + $0x28] sm:$0xff]  ;;  %v819_v22 = vld [vmem:[%s11354_s5 + $0x20] sm:$0xff]  ;;  %v818_v23 = vld [vmem:[%s11354_s5 + $0x18] sm:$0xff]  ;;  %vm113_vm1 = vcmask 64512   ;;  %vm115_vm2 = vcmask 130048   ;;  %vm117_vm3 = vcmask 195584  }
  0x30   :  { %v8446_v0 = vld [vmem:[%s11686_s27] sm:$0x1f]  ;;  %7689 = vset.pattern.permute.xlu1 %v11368_v20  ;;  %7688 = vset.pattern.permute.xlu0 %v11368_v20  ;;  %v817_v24 = vld [vmem:[%s11354_s5 + $0x10] sm:$0xff]  ;;  %v816_v25 = vld [vmem:[%s11354_s5 + $0x8] sm:$0xff]  ;;  %vm248_vm4 = vcmask 1040384   ;;  %vm250_vm5 = vcmask 1041408  }
  0x31   :  { %119 = vrot.lane.b32.xlu0 %v8446_v0, %s8334_s30  ;;  %v101_v2 = vrot.slane %v8446_v0, 1  ;;  %v105_v5 = vrot.slane %v8446_v0, 2  ;;  %v109_v10 = vrot.slane %v8446_v0, 3  ;;  %v815_v26 = vld [vmem:[%s11354_s5] sm:$0xff]  ;;  %vm252_vm6 = vcmask 1042432   ;;  %s8343_s29 = smov 96  }
  0x32   :  { %vm254_vm7 = vcmask 1043456   ;;  %vm256_vm8 = vcmask 1044480   ;;  %vm258_vm9 = vcmask 1045504   ;;  %vm260_vm10 = vcmask 1046528  }
  0x33   :  { %122 = vrot.lane.b32.xlu1 %v101_v2, %s8335_s12  ;;  %vm8342_vm11 = vmmov 0   ;;  %vm887_vm14 = vcmask 523264  }
  0x35   :  { %136 = vrot.lane.b32.xlu0 %v135_v3, %s8336_s24 }
  0x37   :  { %140 = vrot.lane.b32.xlu1 %v139_v4, %s8329_s25 }
  0x39   :  { %102 = vrot.lane.b32.xlu0 %v101_v2, %s8336_s24 }
  0x3b   :  { %125 = vrot.lane.b32.xlu1 %v105_v5, %s8337_s18 }
  0x3d   :  { %144 = vrot.lane.b32.xlu0 %v143_v7, %s8338_s19 }
  0x3f   :  { %167 = vrot.lane.b32.xlu1 %v166_v8, %s8336_s24 }
  0x41   :  { %106 = vrot.lane.b32.xlu0 %v105_v5, %s8329_s25 }
  0x43   :  { %128 = vrot.lane.b32.xlu1 %v109_v10, %s8339_s2 }
  0x45   :  { %171 = vrot.lane.b32.xlu0 %v170_v11, %s8329_s25 }
  0x47   :  { %198 = vrot.lane.b32.xlu1 %v197_v12, %s8336_s24 }
  0x49   :  { %110 = vrot.lane.b32.xlu0 %v109_v10, %s8338_s19 }
  0x4b   :  { %175 = vrot.lane.b32.xlu1 %v174_v13, %s8338_s19 }
  0x4d   :  { %181 = vrot.lane.b32.xlu0 %v8463_v6, %s8334_s30 }
  0x4f   :  { %184 = vrot.lane.b32.xlu1 %v166_v8, %s8335_s12 }
  0x51   :  { %202 = vrot.lane.b32.xlu0 %v201_v14, %s8329_s25 }
  0x53   :  { %187 = vrot.lane.b32.xlu1 %v170_v11, %s8337_s18 }
  0x55   :  { %206 = vrot.lane.b32.xlu0 %v205_v15, %s8338_s19 }
  0x57   :  { %190 = vrot.lane.b32.xlu1 %v174_v13, %s8339_s2 }
  0x59   :  { %150 = vrot.lane.b32.xlu0 %v8451_v1, %s8334_s30 }
  0x5b   :  { %153 = vrot.lane.b32.xlu1 %v135_v3, %s8335_s12 }
  0x5d   :  { %156 = vrot.lane.b32.xlu0 %v139_v4, %s8337_s18 }
  0x5f   :  { %159 = vrot.lane.b32.xlu1 %v143_v7, %s8339_s2 }
  0x61   :  { %212 = vrot.lane.b32.xlu0 %v8472_v9, %s8334_s30  ;;  %s8344_s30 = smov 64  }
  0x63   :  { %215 = vrot.lane.b32.xlu1 %v197_v12, %s8335_s12 }
  0x65   :  { %218 = vrot.lane.b32.xlu0 %v201_v14, %s8337_s18 }
  0x67   :  { %221 = vrot.lane.b32.xlu1 %v205_v15, %s8339_s2 }
  0x69   :  { %860 = vperm.xlu0 %7688, %v822_v19  }
  0x6b   :  { %855 = vperm.xlu1 %7689, %v821_v18  }
  0x6d   :  { %845 = vperm.xlu0 %7688, %v819_v22  }
  0x6f   :  { %850 = vperm.xlu1 %7689, %v820_v21  }
  0x71   :  { %835 = vperm.xlu0 %7688, %v817_v24  }
  0x73   :  { %840 = vperm.xlu1 %7689, %v818_v23  }
  0x75   :  { %825 = vperm.xlu0 %7688, %v815_v26  }
  0x77   :  { %830 = vperm.xlu1 %7689, %v816_v25  }
  0xa3   :  { %v120_v27 = vpop.permute.xlu0 %119 }
  0xa5   :  { %v123_v28 = vpop.permute.xlu1 %122 }
  0xa6   :  { %v131_v36 = vsel %vm113_vm1, %v120_v27, %v123_v28 }
  0xa7   :  { %v137_v29 = vpop.permute.xlu0 %136 }
  0xa8   :  { %v147_v45 = vsel %vm113_vm1, %v8451_v1, %v137_v29 }
  0xa9   :  { %v141_v30 = vpop.permute.xlu1 %140 }
  0xaa   :  { %v148_v47 = vsel %vm115_vm2, %v147_v45, %v141_v30 }
  0xab   :  { %v103_v31 = vpop.permute.xlu0 %102 }
  0xac   :  { %v114_v49 = vsel %vm113_vm1, %v8446_v0, %v103_v31 }
  0xad   :  { %v126_v32 = vpop.permute.xlu1 %125 }
  0xae   :  { %v132_v37 = vsel %vm115_vm2, %v131_v36, %v126_v32  ;;  %v8593_v32 = vld [vmem:[%s11353_s4 + $0x8] sm:$0xff] }
  0xaf   :  { %v145_v33 = vpop.permute.xlu0 %144 }
  0xb0   :  { %v8551_v50 = vsel %vm117_vm3, %v148_v47, %v145_v33 }
  0xb1   :  { %v168_v34 = vpop.permute.xlu1 %167  ;;  %v228_v57 = vrot.slane %v8551_v50, 7  ;;  %v547_v19 = vrot.slane %v8551_v50, 5  ;;  %v245_v22 = vrot.slane %v8551_v50, 2 }
  0xb2   :  { %v178_v51 = vsel %vm113_vm1, %v8463_v6, %v168_v34 }
  0xb3   :  { %v107_v35 = vpop.permute.xlu0 %106 }
  0xb4   :  { %v116_v52 = vsel %vm115_vm2, %v114_v49, %v107_v35  ;;  %v8623_v49 = vld [vmem:[%s11353_s4 + $0x10] sm:$0xff] }
  0xb5   :  { %v129_v38 = vpop.permute.xlu1 %128 }
  0xb6   :  { %v8538_v39 = vsel %vm117_vm3, %v132_v37, %v129_v38  ;;  %v8603_v38 = vld [vmem:[%s11353_s4 + $0x28] sm:$0xff] }
  0xb7   :  { %v172_v40 = vpop.permute.xlu0 %171  ;;  %v247_v41 = vrot.slane %v8538_v39, 1  ;;  %v231_v0 = vrot.slane %v8538_v39, 6  ;;  %v549_v27 = vrot.slane %v8538_v39, 4 }
  0xb8   :  { %v179_v53 = vsel %vm115_vm2, %v178_v51, %v172_v40  ;;  %v402_v40 = vrot.slane %v8538_v39, 7  ;;  %v8630_v51 = vld [vmem:[%s11353_s4 + $0x38] sm:$0xff] }
  0xb9   :  { %7437 = vmatprep.subr.msk.mxu0 %vm248_vm4, %v247_v41  ;;  %7665 = vmatprep.subr.msk.mxu1 %vm248_vm4, %v247_v41  ;;  %v199_v42 = vpop.permute.xlu1 %198 }
  0xba   :  { %7438 = vmatpush3.msk.msra.mxu0 %vm248_vm4, %v247_v41  ;;  %7667 = vmatpush3.msk.msra.mxu1 %vm248_vm4, %v247_v41  ;;  %v209_v59 = vsel %vm113_vm1, %v8472_v9, %v199_v42 }
  0xbb   :  { %v111_v43 = vpop.permute.xlu0 %110 }
  0xbc   :  { %v118_v55 = vsel %vm117_vm3, %v116_v52, %v111_v43  ;;  %v8610_v43 = vld [vmem:[%s11353_s4 + $0x30] sm:$0xff]  ;;  %v8635_v52 = vld [vmem:[%s11353_s4 + $0x18] sm:$0xff] }
  0xbd   :  { %v176_v44 = vpop.permute.xlu1 %175  ;;  %v249_v60 = vsel %vm248_vm4, %v118_v55, %v228_v57  ;;  %v243_v13 = vrot.slane %v118_v55, 3  ;;  %v545_v14 = vrot.slane %v118_v55, 6 }
  0xbe   :  { %v180_v56 = vsel %vm117_vm3, %v179_v53, %v176_v44  ;;  %v251_v7 = vsel %vm250_vm5, %v249_v60, %v231_v0  ;;  %v419_v53 = vsel %vm248_vm4, %v8551_v50, %v402_v40 }
  0xbf   :  { %v182_v46 = vpop.permute.xlu0 %181  ;;  %v234_v61 = vrot.slane %v180_v56, 5  ;;  %v551_v29 = vrot.slane %v180_v56, 3 }
  0xc1   :  { %v185_v48 = vpop.permute.xlu1 %184  ;;  %v253_v9 = vsel %vm252_vm6, %v251_v7, %v234_v61 }
  0xc2   :  { %v193_v1 = vsel %vm113_vm1, %v182_v46, %v185_v48 }
  0xc3   :  { %v203_v54 = vpop.permute.xlu0 %202 }
  0xc4   :  { %v210_v62 = vsel %vm115_vm2, %v209_v59, %v203_v54 }
  0xc5   :  { %v188_v58 = vpop.permute.xlu1 %187 }
  0xc6   :  { %v194_v3 = vsel %vm115_vm2, %v193_v1, %v188_v58 }
  0xc7   :  { %v207_v63 = vpop.permute.xlu0 %206 }
  0xc8   :  { %v8567_v2 = vsel %vm117_vm3, %v210_v62, %v207_v63 }
  0xc9   :  { %v237_v4 = vrot.slane %v8567_v2, 4  ;;  %v541_v5 = vrot.slane %v8567_v2, 7  ;;  %v191_v6 = vpop.permute.xlu1 %190  ;;  %v553_v36 = vrot.slane %v8567_v2, 2  ;;  %v407_v57 = vrot.slane %v8567_v2, 5 }
  0xca   :  { %v8574_v8 = vsel %vm117_vm3, %v194_v3, %v191_v6  ;;  %v414_v6 = vrot.slane %v8551_v50, 3 }
  0xcb   :  { %v240_v10 = vrot.slane %v8574_v8, 3  ;;  %v543_v11 = vrot.slane %v8574_v8, 6  ;;  %v151_v12 = vpop.permute.xlu0 %150  ;;  %v255_v15 = vsel %vm254_vm7, %v253_v9, %v237_v4  ;;  %v556_v18 = vsel %vm248_vm4, %v180_v56, %v541_v5 }
  0xcc   :  { %v555_v35 = vrot.slane %v8574_v8, 1  ;;  %v678_v59 = vrot.slane %v8574_v8, 7  ;;  %v409_v63 = vrot.slane %v8574_v8, 4  ;;  %v682_v4 = vrot.slane %v8551_v50, 6 }
  0xcd   :  { %v154_v21 = vpop.permute.xlu1 %153  ;;  %v257_v23 = vsel %vm256_vm8, %v255_v15, %v240_v10  ;;  %v557_v24 = vsel %vm250_vm5, %v556_v18, %v543_v11  ;;  %v684_v9 = vrot.slane %v8538_v39, 5  ;;  %v416_v11 = vrot.slane %v8538_v39, 2 }
  0xce   :  { %v162_v25 = vsel %vm113_vm1, %v151_v12, %v154_v21  ;;  %v259_v26 = vsel %vm258_vm9, %v257_v23, %v243_v13  ;;  %v558_v28 = vsel %vm252_vm6, %v557_v24, %v545_v14  ;;  %v693_v5 = vsel %vm248_vm4, %v8567_v2, %v678_v59 }
  0xcf   :  { %v157_v30 = vpop.permute.xlu0 %156  ;;  %v261_v31 = vsel %vm260_vm10, %v259_v26, %v245_v22  ;;  %v559_v33 = vsel %vm254_vm7, %v558_v28, %v547_v19  ;;  %v688_v18 = vrot.slane %v8567_v2, 3  ;;  %v690_v39 = vrot.slane %v8574_v8, 2 }
  0xd0   :  { %v163_v34 = vsel %vm115_vm2, %v162_v25, %v157_v30  ;;  %7439 = vmatprep.subr.mxu0 %v261_v31  ;;  %7666 = vmatprep.subr.mxu1 %v261_v31  ;;  %v560_v37 = vsel %vm256_vm8, %v559_v33, %v549_v27 }
  0xd1   :  { %7440 = vmatpush3.msra.mxu0 %v261_v31  ;;  %7668 = vmatpush3.msra.mxu1 %v261_v31  ;;  %v160_v41 = vpop.permute.xlu1 %159  ;;  %v561_v42 = vsel %vm258_vm9, %v560_v37, %v551_v29 }
  0xd2   :  { %v164_v44 = vsel %vm117_vm3, %v163_v34, %v160_v41  ;;  %7469 = vmatprep.subr.msk.mxu0 %vm248_vm4, %v555_v35  ;;  %7442 = vmatmul.mubr.msk.f32.vlgmr.msra.gmra.mxu0 %vm270_vm0, %v8593_v32  ;;  %v562_v45 = vsel %vm260_vm10, %v561_v42, %v553_v36 }
  0xd3   :  { %v405_v46 = vrot.slane %v164_v44, 6  ;;  %v418_v47 = vrot.slane %v164_v44, 1  ;;  %v213_v48 = vpop.permute.xlu0 %212  ;;  %7470 = vmatpush3.msk.msra.mxu0 %vm248_vm4, %v555_v35  ;;  %7448 = vmatmul.mubr.msk.f32.vlgmr.msra.gmra.mxu1 %vm270_vm0, %v8603_v38  ;;  %v686_v13 = vrot.slane %v164_v44, 4 }
  0xd4   :  { %7471 = vmatprep.subr.mxu0 %v562_v45  ;;  %7450 = vmatprep.mubr.msk.f32.mxu1 %vm270_vm0, %v8610_v43 }
  0xd5   :  { %7453 = vmatprep.subr.msk.mxu1 %vm248_vm4, %v418_v47  ;;  %7472 = vmatpush3.msra.mxu0 %v562_v45  ;;  %v216_v54 = vpop.permute.xlu1 %215  ;;  %v420_v55 = vsel %vm250_vm5, %v419_v53, %v405_v46 }
  0xd6   :  { %v224_v56 = vsel %vm113_vm1, %v213_v48, %v216_v54  ;;  %7454 = vmatpush3.msk.msra.mxu1 %vm248_vm4, %v418_v47  ;;  %7444 = vmatprep.mubr.msk.f32.mxu0 %vm270_vm0, %v8623_v49  ;;  %v421_v62 = vsel %vm252_vm6, %v420_v55, %v407_v57 }
  0xd7   :  { %v219_v58 = vpop.permute.xlu0 %218  ;;  %7451 = vmatmul.mubr.msk.f32.gmra.mxu1 %vm270_vm0, %v8630_v51  ;;  %7445 = vmatmul.mubr.msk.f32.gmra.mxu0 %vm270_vm0, %v8635_v52  ;;  %v422_v7 = vsel %vm254_vm7, %v421_v62, %v409_v63 }
  0xd8   :  { %v225_v60 = vsel %vm115_vm2, %v224_v56, %v219_v58  ;;  %7457 = vmatprep.mubr.msk.f32.mxu1 %vm270_vm0, %v8489_v16  ;;  %7473 = vmatprep.mubr.msk.f32.mxu0 %vm270_vm0, %v8489_v16 }
  0xd9   :  { %v222_v61 = vpop.permute.xlu1 %221 }
  0xda   :  { %v226_v0 = vsel %vm117_vm3, %v225_v60, %v222_v61 }
  0xdb   :  { %v412_v1 = vrot.slane %v226_v0, 3  ;;  %v680_v3 = vrot.slane %v226_v0, 6  ;;  %7474 = vmatmul.mubr.msk.f32.vlgmr.msra.gmra.mxu0 %vm270_vm0, %v8593_v32  ;;  %v692_v21 = vrot.slane %v226_v0, 1 }
  0xdc   :  { %7476 = vmatprep.mubr.msk.f32.mxu0 %vm270_vm0, %v8623_v49 }
  0xdd   :  { %v694_v10 = vsel %vm250_vm5, %v693_v5, %v680_v3  ;;  %v423_v12 = vsel %vm256_vm8, %v422_v7, %v412_v1 }
  0xde   :  { %v424_v14 = vsel %vm258_vm9, %v423_v12, %v414_v6  ;;  %v695_v15 = vsel %vm252_vm6, %v694_v10, %v682_v4  ;;  %v879_v4 = vlaneseq }
  0xdf   :  { %v425_v50 = vsel %vm260_vm10, %v424_v14, %v416_v11  ;;  %v696_v19 = vsel %vm254_vm7, %v695_v15, %v684_v9  ;;  %7477 = vmatmul.mubr.msk.f32.gmra.mxu0 %vm270_vm0, %v8635_v52 }
  0xe0   :  { %7455 = vmatprep.subr.mxu1 %v425_v50  ;;  %v697_v22 = vsel %vm256_vm8, %v696_v19, %v686_v13  ;;  %7479 = vmatprep.mubr.msk.f32.mxu0 %vm270_vm0, %v8497_v17 }
  0xe1   :  { %7456 = vmatpush3.msra.mxu1 %v425_v50  ;;  %v698_v23 = vsel %vm258_vm9, %v697_v22, %v688_v18 }
  0xe2   :  { %7458 = vmatmul.mubr.msk.f32.vlgmr.msra.gmra.mxu1 %vm270_vm0, %v8593_v32  ;;  %7485 = vmatprep.subr.msk.mxu1 %vm248_vm4, %v692_v21  ;;  %v699_v2 = vsel %vm260_vm10, %v698_v23, %v690_v39 }
  0xe3   :  { %7486 = vmatpush3.msk.msra.mxu1 %vm248_vm4, %v692_v21  ;;  %7460 = vmatprep.mubr.msk.f32.mxu1 %vm270_vm0, %v8623_v49  ;;  %v8742_v21 = vshrl.u32 %v879_v4, 7 }
  0xe4   :  { %7487 = vmatprep.subr.mxu1 %v699_v2  ;;  %7480 = vmatmul.mubr.msk.f32.gmra.mxu0 %vm270_vm0, %v8603_v38 }
  0xe5   :  { %7488 = vmatpush3.msra.mxu1 %v699_v2  ;;  %7482 = vmatprep.mubr.msk.f32.mxu0 %vm270_vm0, %v8610_v43  ;;  %11687 = vst [vmem:[#allocation12_spill] sm:$0xff] %v8742_v21 }
  0xe6   :  { %7461 = vmatmul.mubr.msk.f32.gmra.mxu1 %vm270_vm0, %v8635_v52  ;;  %v856_v47 = vpop.permute.xlu1 %855 }
  0xe7   :  { %7463 = vmatprep.mubr.msk.f32.mxu1 %vm270_vm0, %v8497_v17 }
  0xe8   :  { %7483 = vmatmul.mubr.msk.f32.gmra.mxu0 %vm270_vm0, %v8630_v51 }
  0xea   :  { %7464 = vmatmul.mubr.msk.f32.gmra.mxu1 %vm270_vm0, %v8603_v38  ;;  %v851_v57 = vpop.permute.xlu1 %850 }
  0xeb   :  { %7466 = vmatprep.mubr.msk.f32.mxu1 %vm270_vm0, %v8610_v43 }
  0xee   :  { %7467 = vmatmul.mubr.msk.f32.gmra.mxu1 %vm270_vm0, %v8630_v51  ;;  %v841_v19 = vpop.permute.xlu1 %840 }
  0xef   :  { %7489 = vmatprep.mubr.msk.f32.mxu1 %vm270_vm0, %v8489_v16  ;;  %v11366_v16 = vmov 0.0  }
  0xf0   :  { %7501 = vmatprep.subr.mxu0 %v11366_v16  ;;  %7520 = vmatprep.subr.mxu1 %v11366_v16 }
  0xf1   :  { %7517 = vmatprep.mubr.msk.f32.mxu0 %vm8342_vm11, %v11366_v16 }
  0xf2   :  { %7490 = vmatmul.mubr.msk.f32.vlgmr.msra.gmra.mxu1 %vm270_vm0, %v8593_v32 }
  0xf3   :  { %7492 = vmatprep.mubr.msk.f32.mxu1 %vm270_vm0, %v8623_v49  ;;  %v861_v49 = vpop.permute.xlu0 %860 }
  0xf6   :  { %7493 = vmatmul.mubr.msk.f32.gmra.mxu1 %vm270_vm0, %v8635_v52 }
  0xf7   :  { %7495 = vmatprep.mubr.msk.f32.mxu1 %vm270_vm0, %v8497_v17  ;;  %v846_v1 = vpop.permute.xlu0 %845 }
  0xfa   :  { %7496 = vmatmul.mubr.msk.f32.gmra.mxu1 %vm270_vm0, %v8603_v38 }
  0xfb   :  { %7498 = vmatprep.mubr.msk.f32.mxu1 %vm270_vm0, %v8610_v43 }
  0xfe   :  { %7499 = vmatmul.mubr.msk.f32.gmra.mxu1 %vm270_vm0, %v8630_v51 }
  0xff   :  { %7536 = vmatprep.mubr.msk.f32.mxu1 %vm8342_vm11, %v11366_v16 }
 0x192   :  { %v8729_v17 = vpop.f32.mrf.mxu0 }
 0x193   :  { %v7449_v8 = vpop.f32.mrf.mxu1 }
 0x194   :  { %v8731_v24 = vpop.f32.mrf.mxu0 }
 0x195   :  { %v383_v25 = vpop.f32.mrf.mxu1 }
 0x197   :  { %v7446_v26 = vpop.f32.mrf.mxu0  ;;  %v7452_v27 = vpop.f32.mrf.mxu1 }
 0x199   :  { %v373_v28 = vpop.f32.mrf.mxu0  ;;  %v393_v29 = vpop.f32.mrf.mxu1 }
 0x19b   :  { %v7475_v30 = vpop.f32.mrf.mxu0 }
 0x19d   :  { %v631_v33 = vpop.f32.mrf.mxu0 }
 0x19f   :  { %v7478_v36 = vpop.f32.mrf.mxu0 }
 0x1a1   :  { %v641_v38 = vpop.f32.mrf.mxu0 }
 0x1a2   :  { %v7459_v31 = vpop.f32.mrf.mxu1 }
 0x1a3   :  { %v534_v10 = vmax.f32 %v8729_v17, %v7459_v31 }
 0x1a4   :  { %v8733_v32 = vpop.f32.mrf.mxu1  ;;  %v7481_v42 = vpop.f32.mrf.mxu0 }
 0x1a5   :  { %v533_v50 = vmax.f32 %v8731_v24, %v8733_v32  ;;  %v8753_v24 = vmul.u32 8, %v8742_v21  ;;  %v831_v32 = vpop.permute.xlu1 %830  ;;  %v2363_v21 = vld [vmem:[#allocation2 + $0x368] sm:$0xff] }
 0x1a6   :  { %v7462_v34 = vpop.f32.mrf.mxu1  ;;  %v651_v45 = vpop.f32.mrf.mxu0 }
 0x1a7   :  { %v536_v61 = vmax.f32 %v7446_v26, %v7462_v34 }
 0x1a8   :  { %v504_v35 = vpop.f32.mrf.mxu1  ;;  %v7484_v51 = vpop.f32.mrf.mxu0 }
 0x1a9   :  { %v535_v0 = vmax.f32 %v373_v28, %v504_v35  ;;  %v673_v12 = vmax.f32 %v536_v61, %v7478_v36  ;;  %v670_v28 = vmax.f32 %v533_v50, %v631_v33  ;;  %v7705_v61 = vld [vmem:[%s11355_s6 + $0x78] sm:$0xff]  }
 0x1aa   :  { %v7465_v37 = vpop.f32.mrf.mxu1  ;;  %v661_v59 = vpop.f32.mrf.mxu0  ;;  %v7714_v50 = vld [vmem:[%s11355_s6 + $0x18] sm:$0xff]  }
 0x1ab   :  { %v538_v53 = vmax.f32 %v7449_v8, %v7465_v37  ;;  %v672_v18 = vmax.f32 %v535_v0, %v641_v38  ;;  %v836_v8 = vpop.permute.xlu0 %835  ;;  %v7708_v0 = vld [vmem:[%s11355_s6 + $0x30] sm:$0xff]  }
 0x1ac   :  { %v514_v40 = vpop.f32.mrf.mxu1 }
 0x1ad   :  { %v537_v56 = vmax.f32 %v383_v25, %v514_v40  ;;  %v675_v62 = vmax.f32 %v538_v53, %v7481_v42  ;;  %v671_v25 = vmax.f32 %v534_v10, %v7475_v30  ;;  %v8773_v40 = vand.u32 127, %v879_v4 }
 0x1ae   :  { %v7468_v41 = vpop.f32.mrf.mxu1  ;;  %v1269_v53 = vadd.s32 5, %v8753_v24 }
 0x1af   :  { %v540_v54 = vmax.f32 %v7452_v27, %v7468_v41  ;;  %v674_v5 = vmax.f32 %v537_v56, %v651_v45  ;;  %v826_v33 = vpop.permute.xlu0 %825  ;;  %11688 = vst [vmem:[#allocation13_spill] sm:$0xff] %v8773_v40  ;;  %v961_v41 = vadd.s32 1, %v8753_v24  ;;  %vm884_vm12 = vcmp.eq.s32.totalorder %v8773_v40, %v8753_v24 }
 0x1b0   :  { %v524_v43 = vpop.f32.mrf.mxu1  ;;  %vm1270_vm1 = vcmp.eq.s32.totalorder %v8773_v40, %v1269_v53 }
 0x1b1   :  { %v539_v58 = vmax.f32 %v393_v29, %v524_v43  ;;  %v677_v63 = vmax.f32 %v540_v54, %v7484_v51  ;;  %vm962_vm13 = vcmp.eq.s32.totalorder %v8773_v40, %v961_v41  ;;  %v1192_v54 = vadd.s32 4, %v8753_v24 }
 0x1b2   :  { %v8735_v44 = vpop.f32.mrf.mxu1 }
 0x1b3   :  { %v676_v6 = vmax.f32 %v539_v58, %v661_v59  ;;  %v808_v29 = vmax.f32 %v671_v25, %v8735_v44  ;;  %vm1193_vm2 = vcmp.eq.s32.totalorder %v8773_v40, %v1192_v54  ;;  %v1423_v58 = vadd.s32 7, %v8753_v24  ;;  %v7717_v25 = vld [vmem:[%s11355_s6 + $0x48] sm:$0xff]  }
 0x1b4   :  { %v8737_v46 = vpop.f32.mrf.mxu1  ;;  %v6967_v56 = vsel %vm1193_vm2, 1.0, %v11366_v16 }
 0x1b5   :  { %v807_v34 = vmax.f32 %v670_v28, %v8737_v46  ;;  %v864_v37 = vadd.f32 %v831_v32, %v808_v29  ;;  %v6959_v46 = vsel %vm884_vm12, 1.0, %v11366_v16  ;;  %vm1424_vm12 = vcmp.eq.s32.totalorder %v8773_v40, %v1423_v58  ;;  %v1738_v28 = vld [vmem:[%s11357_s8 + $0xe0] sm:$0xff]  ;;  %v1736_v29 = vld [vmem:[%s11357_s8 + $0xd0] sm:$0xff] }
 0x1b6   :  { %v7494_v48 = vpop.f32.mrf.mxu1  ;;  %v1740_v32 = vld [vmem:[%s11357_s8 + $0xf0] sm:$0xff] }
 0x1b7   :  { %v810_v39 = vmax.f32 %v673_v12, %v7494_v48  ;;  %v863_v42 = vadd.f32 %v826_v33, %v807_v34  ;;  %v8784_v44 = vmax.f32 %v864_v37, 0.0  ;;  %v1038_v48 = vadd.s32 2, %v8753_v24  ;;  %v7710_v12 = vld [vmem:[%s11355_s6 + $0x28] sm:$0xff]   ;;  %v1726_v34 = vld [vmem:[%s11357_s8 + $0x80] sm:$0xff] }
 0x1b8   :  { %v778_v52 = vpop.f32.mrf.mxu1  ;;  %v7021_v33 = vcombine.high %v1736_v29, %v1740_v32 }
 0x1b9   :  { %v809_v17 = vmax.f32 %v672_v18, %v778_v52  ;;  %v866_v31 = vadd.f32 %v841_v19, %v810_v39  ;;  %v8793_v45 = vmax.f32 %v863_v42, 0.0  ;;  %vm1039_vm15 = vcmp.eq.s32.totalorder %v8773_v40, %v1038_v48  ;;  %v7715_v18 = vld [vmem:[%s11355_s6 + $0x50] sm:$0xff]  }
 0x1ba   :  { %v7497_v55 = vpop.f32.mrf.mxu1  ;;  %v6963_v51 = vsel %vm1039_vm15, 1.0, %v11366_v16  ;;  %v7716_v39 = vld [vmem:[%s11355_s6 + $0x10] sm:$0xff]   ;;  %vm1527_vm15 = vcmask 785408  }
 0x1bb   :  { %v812_v7 = vmax.f32 %v675_v62, %v7497_v55  ;;  %v865_v35 = vadd.f32 %v836_v8, %v809_v17  ;;  %v8769_v38 = vmax.f32 %v866_v31, 0.0  ;;  %v6969_v55 = vsel %vm1270_vm1, 1.0, %v11366_v16  ;;  %v7706_v62 = vld [vmem:[%s11355_s6 + $0x38] sm:$0xff]   ;;  %v7718_v17 = vld [vmem:[%s11355_s6 + $0x8] sm:$0xff]  }
 0x1bc   :  { %v788_v60 = vpop.f32.mrf.mxu1 }
 0x1bd   :  { %v811_v13 = vmax.f32 %v674_v5, %v788_v60  ;;  %v868_v22 = vadd.f32 %v851_v57, %v812_v7  ;;  %v8778_v43 = vmax.f32 %v865_v35, 0.0  ;;  %v1346_v57 = vadd.s32 6, %v8753_v24  ;;  %v1730_v35 = vld [vmem:[%s11357_s8 + $0xa0] sm:$0xff] }
 0x1be   :  { %v7500_v3 = vpop.f32.mrf.mxu1  ;;  %v6973_v60 = vsel %vm1424_vm12, 1.0, %v11366_v16  ;;  %v7009_v37 = vcombine.high %v1726_v34, %v1730_v35 }
 0x1bf   :  { %v814_v9 = vmax.f32 %v677_v63, %v7500_v3  ;;  %v867_v26 = vadd.f32 %v846_v1, %v811_v13  ;;  %v8756_v30 = vmax.f32 %v868_v22, 0.0  ;;  %vm1347_vm3 = vcmp.eq.s32.totalorder %v8773_v40, %v1346_v57  ;;  %v7707_v63 = vld [vmem:[%s11355_s6 + $0x70] sm:$0xff]   ;;  %v7711_v13 = vld [vmem:[%s11355_s6 + $0x60] sm:$0xff]  }
 0x1c0   :  { %v798_v11 = vpop.f32.mrf.mxu1  ;;  %v6971_v59 = vsel %vm1347_vm3, 1.0, %v11366_v16 }
 0x1c1   :  { %v870_v14 = vadd.f32 %v861_v49, %v814_v9  ;;  %v813_v15 = vmax.f32 %v676_v6, %v798_v11  ;;  %v8763_v36 = vmax.f32 %v867_v26, 0.0  ;;  %v1115_v49 = vadd.s32 3, %v8753_v24  ;;  %v7709_v11 = vld [vmem:[%s11355_s6 + $0x68] sm:$0xff]   ;;  %v7719_v26 = vld [vmem:[%s11355_s6 + $0x40] sm:$0xff]  }
 0x1c2   :  { %v1734_v24 = vld [vmem:[%s11357_s8 + $0xc0] sm:$0xff] }
 0x1c3   :  { %v8744_v23 = vmax.f32 %v870_v14, 0.0  ;;  %v869_v2 = vadd.f32 %v856_v47, %v813_v15  ;;  %v6961_v47 = vsel %vm962_vm13, 1.0, %v11366_v16  ;;  %vm1116_vm0 = vcmp.eq.s32.totalorder %v8773_v40, %v1115_v49  ;;  %v7712_v14 = vld [vmem:[%s11355_s6 + $0x20] sm:$0xff]   ;;  %v7713_v15 = vld [vmem:[%s11355_s6 + $0x58] sm:$0xff]   ;;  %v2359_v40 = vld [vmem:[#allocation2 + $0x348] sm:$0xff] }
 0x1c4   :  { %v6965_v52 = vsel %vm1116_vm0, 1.0, %v11366_v16  ;;  %v7016_v31 = vcombine.low %v1734_v24, %v1738_v28  ;;  %vm1524_vm13 = vcmask 261120  }
 0x1c5   :  { %v8746_v27 = vmax.f32 %v869_v2, 0.0  ;;  %7502 = vmatpush3.msra.mxu0 %v8744_v23  ;;  %7521 = vmatpush3.msra.mxu1 %v8744_v23 }
 0x1c6   :  { %7503 = vmatprep.subr.mxu0 %v11366_v16  ;;  %7522 = vmatprep.subr.mxu1 %v11366_v16 }
 0x1c7   :  { %7504 = vmatpush3.msra.mxu0 %v8746_v27  ;;  %7523 = vmatpush3.msra.mxu1 %v8746_v27 }
 0x1c8   :  { %7505 = vmatprep.subr.mxu0 %v11366_v16  ;;  %7524 = vmatprep.subr.mxu1 %v11366_v16 }
 0x1c9   :  { %7506 = vmatpush3.msra.mxu0 %v8756_v30  ;;  %7525 = vmatpush3.msra.mxu1 %v8756_v30 }
 0x1ca   :  { %7507 = vmatprep.subr.mxu0 %v11366_v16  ;;  %7526 = vmatprep.subr.mxu1 %v11366_v16 }
 0x1cb   :  { %7508 = vmatpush3.msra.mxu0 %v8763_v36  ;;  %7527 = vmatpush3.msra.mxu1 %v8763_v36 }
 0x1cc   :  { %7509 = vmatprep.subr.mxu0 %v11366_v16  ;;  %7528 = vmatprep.subr.mxu1 %v11366_v16 }
 0x1cd   :  { %7510 = vmatpush3.msra.mxu0 %v8769_v38  ;;  %7529 = vmatpush3.msra.mxu1 %v8769_v38 }
 0x1ce   :  { %7511 = vmatprep.subr.mxu0 %v11366_v16  ;;  %7530 = vmatprep.subr.mxu1 %v11366_v16 }
 0x1cf   :  { %7512 = vmatpush3.msra.mxu0 %v8778_v43  ;;  %7531 = vmatpush3.msra.mxu1 %v8778_v43 }
 0x1d0   :  { %7513 = vmatprep.subr.mxu0 %v11366_v16  ;;  %7532 = vmatprep.subr.mxu1 %v11366_v16 }
 0x1d1   :  { %7514 = vmatpush3.msra.mxu0 %v8784_v44  ;;  %7533 = vmatpush3.msra.mxu1 %v8784_v44 }
 0x1d2   :  { %7515 = vmatprep.subr.mxu0 %v11366_v16  ;;  %7534 = vmatprep.subr.mxu1 %v11366_v16 }
 0x1d3   :  { %7516 = vmatpush3.msra.mxu0 %v8793_v45  ;;  %7535 = vmatpush3.msra.mxu1 %v8793_v45 }
 0x1d4   :  { %7539 = vmatprep.subr.mxu0 %v11366_v16  ;;  %7558 = vmatprep.subr.mxu1 %v11366_v16 }
 0x1d5   :  { %7518 = vmatmul.mubr.msk.f32.vlgmr.msra.gmra.mxu0 %vm887_vm14, %v6959_v46  ;;  %7537 = vmatmul.mubr.msk.f32.vlgmr.msra.gmra.mxu1 %vm887_vm14, %v6961_v47 }
 0x1d6   :  { %7540 = vmatpush3.msra.mxu0 %v8744_v23  ;;  %7559 = vmatpush3.msra.mxu1 %v8744_v23 }
 0x1d7   :  { %7541 = vmatprep.subr.mxu0 %v11366_v16  ;;  %7560 = vmatprep.subr.mxu1 %v11366_v16 }
 0x1d8   :  { %7542 = vmatpush3.msra.mxu0 %v8746_v27  ;;  %7561 = vmatpush3.msra.mxu1 %v8746_v27 }
 0x1d9   :  { %7543 = vmatprep.subr.mxu0 %v11366_v16  ;;  %7562 = vmatprep.subr.mxu1 %v11366_v16 }
 0x1da   :  { %7544 = vmatpush3.msra.mxu0 %v8756_v30  ;;  %7563 = vmatpush3.msra.mxu1 %v8756_v30 }
 0x1db   :  { %7545 = vmatprep.subr.mxu0 %v11366_v16  ;;  %7564 = vmatprep.subr.mxu1 %v11366_v16 }
 0x1dc   :  { %7546 = vmatpush3.msra.mxu0 %v8763_v36  ;;  %7565 = vmatpush3.msra.mxu1 %v8763_v36 }
 0x1dd   :  { %7547 = vmatprep.subr.mxu0 %v11366_v16  ;;  %7566 = vmatprep.subr.mxu1 %v11366_v16 }
 0x1de   :  { %7548 = vmatpush3.msra.mxu0 %v8769_v38  ;;  %7567 = vmatpush3.msra.mxu1 %v8769_v38 }
 0x1df   :  { %7549 = vmatprep.subr.mxu0 %v11366_v16  ;;  %7568 = vmatprep.subr.mxu1 %v11366_v16 }
 0x1e0   :  { %7550 = vmatpush3.msra.mxu0 %v8778_v43  ;;  %7569 = vmatpush3.msra.mxu1 %v8778_v43 }
 0x1e1   :  { %7551 = vmatprep.subr.mxu0 %v11366_v16  ;;  %7570 = vmatprep.subr.mxu1 %v11366_v16 }
 0x1e2   :  { %7552 = vmatpush3.msra.mxu0 %v8784_v44  ;;  %7571 = vmatpush3.msra.mxu1 %v8784_v44 }
 0x1e3   :  { %7553 = vmatprep.subr.mxu0 %v11366_v16  ;;  %7572 = vmatprep.subr.mxu1 %v11366_v16 }
 0x1e4   :  { %7554 = vmatpush3.msra.mxu0 %v8793_v45  ;;  %7573 = vmatpush3.msra.mxu1 %v8793_v45 }
 0x1e5   :  { %7555 = vmatprep.mubr.msk.f32.mxu0 %vm8342_vm11, %v11366_v16  ;;  %7574 = vmatprep.mubr.msk.f32.mxu1 %vm8342_vm11, %v11366_v16 }
 0x1e6   :  { %7577 = vmatprep.subr.mxu0 %v11366_v16  ;;  %7596 = vmatprep.subr.mxu1 %v11366_v16 }
 0x1e7   :  { %7556 = vmatmul.mubr.msk.f32.vlgmr.msra.gmra.mxu0 %vm887_vm14, %v6963_v51  ;;  %7575 = vmatmul.mubr.msk.f32.vlgmr.msra.gmra.mxu1 %vm887_vm14, %v6965_v52 }
 0x1e8   :  { %7578 = vmatpush3.msra.mxu0 %v8744_v23  ;;  %7597 = vmatpush3.msra.mxu1 %v8744_v23 }
 0x1e9   :  { %7579 = vmatprep.subr.mxu0 %v11366_v16  ;;  %7598 = vmatprep.subr.mxu1 %v11366_v16 }
 0x1ea   :  { %7580 = vmatpush3.msra.mxu0 %v8746_v27  ;;  %7599 = vmatpush3.msra.mxu1 %v8746_v27 }
 0x1eb   :  { %7581 = vmatprep.subr.mxu0 %v11366_v16  ;;  %7600 = vmatprep.subr.mxu1 %v11366_v16 }
 0x1ec   :  { %7582 = vmatpush3.msra.mxu0 %v8756_v30  ;;  %7601 = vmatpush3.msra.mxu1 %v8756_v30 }
 0x1ed   :  { %7583 = vmatprep.subr.mxu0 %v11366_v16  ;;  %7602 = vmatprep.subr.mxu1 %v11366_v16 }
 0x1ee   :  { %7584 = vmatpush3.msra.mxu0 %v8763_v36  ;;  %7603 = vmatpush3.msra.mxu1 %v8763_v36 }
 0x1ef   :  { %7585 = vmatprep.subr.mxu0 %v11366_v16  ;;  %7604 = vmatprep.subr.mxu1 %v11366_v16 }
 0x1f0   :  { %7586 = vmatpush3.msra.mxu0 %v8769_v38  ;;  %7605 = vmatpush3.msra.mxu1 %v8769_v38 }
 0x1f1   :  { %7587 = vmatprep.subr.mxu0 %v11366_v16  ;;  %7606 = vmatprep.subr.mxu1 %v11366_v16 }
 0x1f2   :  { %7588 = vmatpush3.msra.mxu0 %v8778_v43  ;;  %7607 = vmatpush3.msra.mxu1 %v8778_v43 }
 0x1f3   :  { %7589 = vmatprep.subr.mxu0 %v11366_v16  ;;  %7608 = vmatprep.subr.mxu1 %v11366_v16 }
 0x1f4   :  { %7590 = vmatpush3.msra.mxu0 %v8784_v44  ;;  %7609 = vmatpush3.msra.mxu1 %v8784_v44 }
 0x1f5   :  { %7591 = vmatprep.subr.mxu0 %v11366_v16  ;;  %7610 = vmatprep.subr.mxu1 %v11366_v16 }
 0x1f6   :  { %7592 = vmatpush3.msra.mxu0 %v8793_v45  ;;  %7611 = vmatpush3.msra.mxu1 %v8793_v45 }
 0x1f7   :  { %7612 = vmatprep.mubr.msk.f32.mxu1 %vm8342_vm11, %v11366_v16  ;;  %7593 = vmatprep.mubr.msk.f32.mxu0 %vm8342_vm11, %v11366_v16 }
 0x1f8   :  { %7613 = vmatmul.mubr.msk.f32.vlgmr.msra.gmra.mxu1 %vm887_vm14, %v6969_v55  ;;  %7615 = vmatprep.subr.mxu0 %v11366_v16 }
 0x1f9   :  { %7634 = vmatprep.subr.mxu1 %v11366_v16  ;;  %7594 = vmatmul.mubr.msk.f32.vlgmr.msra.gmra.mxu0 %vm887_vm14, %v6967_v56 }
 0x1fa   :  { %7616 = vmatpush3.msra.mxu0 %v8744_v23  ;;  %7635 = vmatpush3.msra.mxu1 %v8744_v23 }
 0x1fb   :  { %7617 = vmatprep.subr.mxu0 %v11366_v16  ;;  %7636 = vmatprep.subr.mxu1 %v11366_v16 }
 0x1fc   :  { %7618 = vmatpush3.msra.mxu0 %v8746_v27  ;;  %7637 = vmatpush3.msra.mxu1 %v8746_v27  ;;  %v7720_v27 = vld [vmem:[%s11355_s6] sm:$0xff]  }
 0x1fd   :  { %7619 = vmatprep.subr.mxu0 %v11366_v16  ;;  %7638 = vmatprep.subr.mxu1 %v11366_v16 }
 0x1fe   :  { %7620 = vmatpush3.msra.mxu0 %v8756_v30  ;;  %7639 = vmatpush3.msra.mxu1 %v8756_v30  ;;  %v7017_v30 = vcombine.high %v1734_v24, %v1738_v28 }
 0x1ff   :  { %7621 = vmatprep.subr.mxu0 %v11366_v16  ;;  %7640 = vmatprep.subr.mxu1 %v11366_v16 }
 0x200   :  { %7622 = vmatpush3.msra.mxu0 %v8763_v36  ;;  %7641 = vmatpush3.msra.mxu1 %v8763_v36  ;;  %v7020_v36 = vcombine.low %v1736_v29, %v1740_v32 }
 0x201   :  { %7623 = vmatprep.subr.mxu0 %v11366_v16  ;;  %7642 = vmatprep.subr.mxu1 %v11366_v16 }
 0x202   :  { %7624 = vmatpush3.msra.mxu0 %v8769_v38  ;;  %7643 = vmatpush3.msra.mxu1 %v8769_v38 }
 0x203   :  { %7625 = vmatprep.subr.mxu0 %v11366_v16  ;;  %7644 = vmatprep.subr.mxu1 %v11366_v16 }
 0x204   :  { %7626 = vmatpush3.msra.mxu0 %v8778_v43  ;;  %7645 = vmatpush3.msra.mxu1 %v8778_v43 }
 0x205   :  { %7627 = vmatprep.subr.mxu0 %v11366_v16  ;;  %7646 = vmatprep.subr.mxu1 %v11366_v16 }
 0x206   :  { %7628 = vmatpush3.msra.mxu0 %v8784_v44  ;;  %7647 = vmatpush3.msra.mxu1 %v8784_v44  ;;  %v7008_v44 = vcombine.low %v1726_v34, %v1730_v35  ;;  %v1727_v35 = vld [vmem:[%s11357_s8 + $0x88] sm:$0xff] }
 0x207   :  { %7629 = vmatprep.subr.mxu0 %v11366_v16  ;;  %7648 = vmatprep.subr.mxu1 %v11366_v16 }
 0x208   :  { %7630 = vmatpush3.msra.mxu0 %v8793_v45  ;;  %7631 = vmatprep.mubr.msk.f32.mxu0 %vm8342_vm11, %v11366_v16 }
 0x209   :  { %7649 = vmatpush3.msra.mxu1 %v8793_v45  ;;  %7650 = vmatprep.mubr.msk.f32.mxu1 %vm8342_vm11, %v11366_v16  ;;  %v2304_v16 = vld [vmem:[#allocation2 + $0x190] sm:$0xff] }
 0x20a   :  { %7632 = vmatmul.mubr.msk.f32.vlgmr.msra.gmra.mxu0 %vm887_vm14, %v6971_v59  ;;  %7651 = vmatmul.mubr.msk.f32.vlgmr.msra.gmra.mxu1 %vm887_vm14, %v6973_v60 }
 0x20b   :  { %1979 = vmatprep.mubr.bf16.mxu1 %v11368_v20  ;;  %7410 = vmatprep.subr.bf16.mxu0 %v7705_v61  ;;  %v1728_v61 = vld [vmem:[%s11357_s8 + $0x90] sm:$0xff] }
 0x20c   :  { %7411 = vmatpush3.bf16.msra.mxu0 %v7706_v62  ;;  %1955 = vmatprep.subr.bf16.mxu1 %v7017_v30  ;;  %v1732_v62 = vld [vmem:[%s11357_s8 + $0xb0] sm:$0xff]  ;;  %v6975_v30 = vld [vmem:[%s11356_s7] ss:$0 sm:$0xff] }
 0x20d   :  { %7412 = vmatprep.subr.bf16.mxu0 %v7707_v63  ;;  %1956 = vmatpush1.bf16.msra.mxu1 %v7016_v31 }
 0x20e   :  { %1957 = vmatprep.subr.bf16.mxu1 %v7009_v37  ;;  %v2302_v37 = vld [vmem:[#allocation2 + $0x180] sm:$0xff] }
 0x210   :  { %7413 = vmatpush3.bf16.msra.mxu0 %v7708_v0 }
 0x211   :  { %7414 = vmatprep.subr.bf16.mxu0 %v7709_v11  ;;  %1958 = vmatpush1.bf16.msra.mxu1 %v7008_v44  ;;  %v1724_v11 = vld [vmem:[%s11357_s8 + $0x70] sm:$0xff] }
 0x214   :  { %7415 = vmatpush3.bf16.msra.mxu0 %v7710_v12 }
 0x215   :  { %7416 = vmatprep.subr.bf16.mxu0 %v7711_v13 }
 0x218   :  { %7417 = vmatpush3.bf16.msra.mxu0 %v7712_v14 }
 0x219   :  { %7418 = vmatprep.subr.bf16.mxu0 %v7713_v15  ;;  %v1710_v15 = vld [vmem:[%s11357_s8] sm:$0xff] }
 0x21c   :  { %7419 = vmatpush3.bf16.msra.mxu0 %v7714_v50  ;;  %v1714_v50 = vld [vmem:[%s11357_s8 + $0x20] sm:$0xff] }
 0x21d   :  { %7420 = vmatprep.subr.bf16.mxu0 %v7715_v18  ;;  %v1712_v18 = vld [vmem:[%s11357_s8 + $0x10] sm:$0xff] }
 0x220   :  { %7421 = vmatpush3.bf16.msra.mxu0 %v7716_v39  ;;  %v1716_v39 = vld [vmem:[%s11357_s8 + $0x30] sm:$0xff] }
 0x221   :  { %7422 = vmatprep.subr.bf16.mxu0 %v7717_v25  ;;  %v1739_v25 = vld [vmem:[%s11357_s8 + $0xe8] sm:$0xff] }
 0x224   :  { %7423 = vmatpush3.bf16.msra.mxu0 %v7718_v17  ;;  %v2310_v17 = vld [vmem:[#allocation2 + $0x1c0] sm:$0xff] }
 0x225   :  { %7424 = vmatprep.subr.bf16.mxu0 %v7719_v26 }
 0x228   :  { %7425 = vmatpush3.bf16.msra.mxu0 %v7720_v27  ;;  %v2314_v27 = vld [vmem:[#allocation2 + $0x1e0] sm:$0xff] }
 0x229   :  { %2037 = vmatprep.subr.bf16.mxu0 %v7021_v33  ;;  %v9048_v28 = vcombine.high %v2310_v17, %v2314_v27  ;;  %v9050_v29 = vcombine.low %v2310_v17, %v2314_v27  ;;  %v1731_v33 = vld [vmem:[%s11357_s8 + $0xa8] sm:$0xff]  ;;  %v1713_v17 = vld [vmem:[%s11357_s8 + $0x18] sm:$0xff]  ;;  %v2254_v27 = vld [vmem:[#allocation2] sm:$0xff] }
 0x22a   :  { %v7011_v44 = vcombine.high %v1727_v35, %v1731_v33 }
 0x22b   :  { %11689 = vst [vmem:[#allocation14_spill] sm:$0xff] %v9048_v28  ;;  %11690 = vst [vmem:[#allocation15_spill] sm:$0xff] %v9050_v29 }
 0x295   :  { %v8950_v1 = vpop.f32.mrf.mxu0  ;;  %v1034_v3 = vpop.f32.mrf.mxu1 }
 0x297   :  { %v7519_v4 = vpop.f32.mrf.mxu0  ;;  %v7538_v5 = vpop.f32.mrf.mxu1 }
 0x298   :  { %v7013_v5 = vcombine.high %v1728_v61, %v1732_v62 }
 0x2a7   :  { %v1111_v6 = vpop.f32.mrf.mxu0  ;;  %v1188_v7 = vpop.f32.mrf.mxu1 }
 0x2a9   :  { %v7557_v9 = vpop.f32.mrf.mxu0  ;;  %v7576_v10 = vpop.f32.mrf.mxu1 }
 0x2aa   :  { %v1720_v9 = vld [vmem:[%s11357_s8 + $0x50] sm:$0xff] }
 0x2ab   :  { %v7004_v13 = vcombine.low %v1720_v9, %v1724_v11  ;;  %v7005_v14 = vcombine.high %v1720_v9, %v1724_v11  ;;  %v1729_v9 = vld [vmem:[%s11357_s8 + $0x98] sm:$0xff]  ;;  %v2270_v11 = vld [vmem:[#allocation2 + $0x80] sm:$0xff] }
 0x2b8   :  { %v1342_v19 = vpop.f32.mrf.mxu1 }
 0x2b9   :  { %v7690_v22 = vpack.i.bf16 %v1034_v3, %v1342_v19  ;;  %v1265_v23 = vpop.f32.mrf.mxu0  ;;  %v6993_v19 = vcombine.high %v1710_v15, %v1714_v50 }
 0x2ba   :  { %v7614_v2 = vpop.f32.mrf.mxu1 }
 0x2bb   :  { %7691 = vrot.lane.b32.xlu1 %v7690_v22, %s8332_s17  ;;  %v7595_v8 = vpop.f32.mrf.mxu0  ;;  %v6992_v22 = vcombine.low %v1710_v15, %v1714_v50  ;;  %v6997_v2 = vcombine.high %v1712_v18, %v1716_v39 }
 0x2bc   :  { %v1735_v8 = vld [vmem:[%s11357_s8 + $0xc8] sm:$0xff] }
 0x2bd   :  { %v7019_v26 = vcombine.high %v1735_v8, %v1739_v25  ;;  %v7018_v24 = vcombine.low %v1735_v8, %v1739_v25 }
 0x2ca   :  { %v1419_v38 = vpop.f32.mrf.mxu0  ;;  %v1496_v41 = vpop.f32.mrf.mxu1 }
 0x2cb   :  { %v7695_v42 = vpack.i.bf16 %v1111_v6, %v1419_v38  ;;  %v7700_v43 = vpack.i.bf16 %v1188_v7, %v1496_v41  ;;  %v1718_v6 = vld [vmem:[%s11357_s8 + $0x40] sm:$0xff] }
 0x2cc   :  { %v7633_v45 = vpop.f32.mrf.mxu0  ;;  %v7652_v46 = vpop.f32.mrf.mxu1  ;;  %v1722_v7 = vld [vmem:[%s11357_s8 + $0x60] sm:$0xff] }
 0x2cd   :  { %7701 = vrot.lane.b32.xlu1 %v7700_v43, %s8343_s29  ;;  %7696 = vrot.lane.b32.xlu0 %v7695_v42, %s8344_s30  ;;  %v7001_v10 = vcombine.high %v1718_v6, %v1722_v7  ;;  %v7000_v12 = vcombine.low %v1718_v6, %v1722_v7  ;;  %v2306_v38 = vld [vmem:[#allocation2 + $0x1a0] sm:$0xff]  ;;  %v1719_v46 = vld [vmem:[%s11357_s8 + $0x48] sm:$0xff] }
 0x2ce   :  { %v9064_v45 = vcombine.high %v2302_v37, %v2306_v38 }
 0x2cf   :  { %1959 = vmatprep.subr.bf16.mxu1 %v7001_v10  ;;  %v1733_v10 = vld [vmem:[%s11357_s8 + $0xb8] sm:$0xff] }
 0x2d0   :  { %1960 = vmatpush1.bf16.msra.mxu1 %v7000_v12  ;;  %11691 = vst [vmem:[#allocation16_spill] sm:$0xff] %v9064_v45  ;;  %v2274_v12 = vld [vmem:[#allocation2 + $0xa0] sm:$0xff]  ;;  %v7015_v15 = vcombine.high %v1729_v9, %v1733_v10 }
 0x2d1   :  { %1961 = vmatprep.subr.bf16.mxu1 %v6993_v19  ;;  %v9118_v50 = vcombine.high %v2270_v11, %v2274_v12  ;;  %v1725_v19 = vld [vmem:[%s11357_s8 + $0x78] sm:$0xff] }
 0x2d3   :  { %11699 = vst [vmem:[#allocation24_spill] sm:$0xff] %v9118_v50 }
 0x2d4   :  { %1962 = vmatpush1.bf16.msra.mxu1 %v6992_v22  ;;  %v2266_v22 = vld [vmem:[#allocation2 + $0x60] sm:$0xff] }
 0x2d5   :  { %1996 = vmatprep.subr.bf16.mxu1 %v7019_v26  ;;  %v1717_v26 = vld [vmem:[%s11357_s8 + $0x38] sm:$0xff] }
 0x32d   :  { %v7692_v47 = vpop.permute.xlu1 %7691 }
 0x32e   :  { %v7694_v48 = vunpack.i.h.bf16 %v7692_v47  ;;  %v7693_v49 = vunpack.i.l.bf16 %v7692_v47  ;;  %v1723_v47 = vld [vmem:[%s11357_s8 + $0x68] sm:$0xff] }
 0x330   :  { %v1525_v57 = vsel %vm1524_vm13, %v8950_v1, %v7694_v48  ;;  %v1529_v58 = vsel %vm1524_vm13, %v1265_v23, %v7693_v49  ;;  %v7012_v1 = vcombine.low %v1728_v61, %v1732_v62  ;;  %v6996_v23 = vcombine.low %v1712_v18, %v1716_v39  ;;  %v2294_v48 = vld [vmem:[#allocation2 + $0x140] sm:$0xff]  ;;  %v1721_v18 = vld [vmem:[%s11357_s8 + $0x58] sm:$0xff] }
 0x331   :  { %v2298_v49 = vld [vmem:[#allocation2 + $0x160] sm:$0xff]  ;;  %v7007_v8 = vcombine.high %v1721_v18, %v1725_v19 }
 0x332   :  { %v2262_v39 = vld [vmem:[#allocation2 + $0x40] sm:$0xff] }
 0x333   :  { %v9132_v25 = vcombine.high %v2262_v39, %v2266_v22 }
 0x335   :  { %11701 = vst [vmem:[#allocation26_spill] sm:$0xff] %v9132_v25 }
 0x33f   :  { %v7702_v51 = vpop.permute.xlu1 %7701  ;;  %v7697_v52 = vpop.permute.xlu0 %7696 }
 0x340   :  { %v7704_v53 = vunpack.i.h.bf16 %v7702_v51  ;;  %v7703_v54 = vunpack.i.l.bf16 %v7702_v51  ;;  %v7699_v55 = vunpack.i.h.bf16 %v7697_v52  ;;  %v7698_v56 = vunpack.i.l.bf16 %v7697_v52 }
 0x341   :  { %v7010_v51 = vcombine.low %v1727_v35, %v1731_v33  ;;  %v9077_v52 = vcombine.low %v2302_v37, %v2306_v38  ;;  %v2374_v35 = vld [vmem:[#allocation2 + $0x3c0] sm:$0xff]  ;;  %v2311_v33 = vld [vmem:[#allocation2 + $0x1c8] sm:$0xff]  ;;  %v6998_v38 = vcombine.low %v1713_v17, %v1717_v26 }
 0x342   :  { %v1526_v59 = vsel %vm887_vm14, %v1525_v57, %v7699_v55  ;;  %v1530_v60 = vsel %vm887_vm14, %v1529_v58, %v7698_v56  ;;  %v1711_v55 = vld [vmem:[%s11357_s8 + $0x8] sm:$0xff]  ;;  %v2286_v57 = vld [vmem:[#allocation2 + $0x100] sm:$0xff] }
 0x343   :  { %v1531_v63 = vsel %vm1527_vm15, %v1530_v60, %v7703_v54  ;;  %v1528_v0 = vsel %vm1527_vm15, %v1526_v59, %v7704_v53  ;;  %11692 = vst [vmem:[#allocation17_spill] sm:$0xff] %v9077_v52  ;;  %v7003_v53 = vcombine.high %v1719_v46, %v1723_v47  ;;  %v9080_v54 = vcombine.high %v2294_v48, %v2298_v49  ;;  %v1715_v56 = vld [vmem:[%s11357_s8 + $0x28] sm:$0xff]  ;;  %v2290_v58 = vld [vmem:[#allocation2 + $0x120] sm:$0xff] }
 0x344   :  { %v1533_v3 = vpack.c.bf16 %v1531_v63, %v1531_v63  ;;  %v1532_v4 = vpack.c.bf16 %v1528_v0, %v1528_v0  ;;  %v7002_v59 = vcombine.low %v1719_v46, %v1723_v47  ;;  %v9091_v60 = vcombine.low %v2294_v48, %v2298_v49  ;;  %v1737_v63 = vld [vmem:[%s11357_s8 + $0xd8] sm:$0xff]  ;;  %v2315_v37 = vld [vmem:[#allocation2 + $0x1e8] sm:$0xff]  ;;  %v2366_v46 = vld [vmem:[#allocation2 + $0x380] sm:$0xff] }
 0x345   :  { %11693 = vst [vmem:[#allocation18_spill] sm:$0xff] %v9080_v54  ;;  %v6995_v61 = vcombine.high %v1711_v55, %v1715_v56  ;;  %v9094_v62 = vcombine.high %v2286_v57, %v2290_v58  ;;  %v1741_v0 = vld [vmem:[%s11357_s8 + $0xf8] sm:$0xff]  ;;  %v2370_v47 = vld [vmem:[#allocation2 + $0x3a0] sm:$0xff]  ;;  %v2303_v48 = vld [vmem:[#allocation2 + $0x188] sm:$0xff] }
 0x346   :  { %1701 = vmatprep.mubr.bf16.mxu0 %v1533_v3  ;;  %11694 = vst [vmem:[#allocation19_spill] sm:$0xff] %v9091_v60  ;;  %v2278_v3 = vld [vmem:[#allocation2 + $0xc0] sm:$0xff]  ;;  %v7023_v6 = vcombine.high %v1737_v63, %v1741_v0  ;;  %v2307_v49 = vld [vmem:[#allocation2 + $0x1a8] sm:$0xff] }
 0x347   :  { %1702 = vmatmul.mubr.bf16.vlgmr.msra.gmra.mxu0 %v1532_v4  ;;  %11695 = vst [vmem:[#allocation20_spill] sm:$0xff] %v9094_v62  ;;  %v2282_v4 = vld [vmem:[#allocation2 + $0xe0] sm:$0xff] }
 0x348   :  { %2038 = vmatpush1.bf16.msra.mxu0 %v7020_v36  ;;  %2061 = vmatprep.mubr.bf16.mxu0 %v11368_v20  ;;  %v9106_v7 = vcombine.high %v2278_v3, %v2282_v4 }
 0x349   :  { %2039 = vmatprep.subr.bf16.mxu0 %v7013_v5  ;;  %v6994_v5 = vcombine.low %v1711_v55, %v1715_v56  ;;  %v9162_v55 = vcombine.high %v2366_v46, %v2370_v47  ;;  %v9164_v56 = vcombine.high %v2303_v48, %v2307_v49 }
 0x34a   :  { %11697 = vst [vmem:[#allocation22_spill] sm:$0xff] %v9106_v7 }
 0x34b   :  { %11709 = vst [vmem:[#allocation34_spill] sm:$0xff] %v9162_v55  ;;  %11710 = vst [vmem:[#allocation35_spill] sm:$0xff] %v9164_v56 }
 0x34c   :  { %2040 = vmatpush1.bf16.msra.mxu0 %v7012_v1  ;;  %v9103_v1 = vcombine.low %v2286_v57, %v2290_v58  ;;  %v2358_v57 = vld [vmem:[#allocation2 + $0x340] sm:$0xff] }
 0x34d   :  { %2041 = vmatprep.subr.bf16.mxu0 %v7005_v14  ;;  %v9115_v14 = vcombine.low %v2278_v3, %v2282_v4  ;;  %v2362_v58 = vld [vmem:[#allocation2 + $0x360] sm:$0xff] }
 0x34e   :  { %11696 = vst [vmem:[#allocation21_spill] sm:$0xff] %v9103_v1  ;;  %v9176_v3 = vcombine.high %v2358_v57, %v2362_v58 }
 0x34f   :  { %11698 = vst [vmem:[#allocation23_spill] sm:$0xff] %v9115_v14 }
 0x350   :  { %2042 = vmatpush1.bf16.msra.mxu0 %v7004_v13  ;;  %v7022_v13 = vcombine.low %v1737_v63, %v1741_v0  ;;  %v9170_v63 = vcombine.low %v2366_v46, %v2370_v47  ;;  %v9172_v0 = vcombine.low %v2303_v48, %v2307_v49  ;;  %11713 = vst [vmem:[#allocation38_spill] sm:$0xff] %v9176_v3  ;;  %v2263_v46 = vld [vmem:[#allocation2 + $0x48] sm:$0xff] }
 0x351   :  { %2043 = vmatprep.subr.bf16.mxu0 %v6997_v2  ;;  %v9129_v2 = vcombine.low %v2270_v11, %v2274_v12  ;;  %v2267_v47 = vld [vmem:[#allocation2 + $0x68] sm:$0xff] }
 0x352   :  { %11711 = vst [vmem:[#allocation36_spill] sm:$0xff] %v9170_v63  ;;  %11712 = vst [vmem:[#allocation37_spill] sm:$0xff] %v9172_v0 }
 0x353   :  { %11700 = vst [vmem:[#allocation25_spill] sm:$0xff] %v9129_v2 }
 0x354   :  { %2044 = vmatpush1.bf16.msra.mxu0 %v6996_v23  ;;  %v7014_v23 = vcombine.low %v1729_v9, %v1733_v10  ;;  %v2287_v9 = vld [vmem:[#allocation2 + $0x108] sm:$0xff]  ;;  %v9183_v10 = vcombine.low %v2358_v57, %v2362_v58  ;;  %v9227_v58 = vcombine.high %v2263_v46, %v2267_v47 }
 0x355   :  { %3022 = vmatprep.subr.bf16.mxu0 %v9048_v28 }
 0x356   :  { %11715 = vst [vmem:[#allocation40_spill] sm:$0xff] %v9183_v10  ;;  %11730 = vst [vmem:[#allocation55_spill] sm:$0xff] %v9227_v58 }
 0x407   :  { %v7426_v31 = vpop.f32.mrf.mxu0 }
 0x409   :  { %v7427_v32 = vpop.f32.mrf.mxu0 }
 0x40a   :  { %v7428_v34 = vadd.f32 %v7427_v32, %v7426_v31  ;;  %v7006_v31 = vcombine.low %v1721_v18, %v1725_v19  ;;  %v6999_v32 = vcombine.high %v1713_v17, %v1717_v26  ;;  %v2346_v18 = vld [vmem:[#allocation2 + $0x2e0] sm:$0xff]  ;;  %v2279_v19 = vld [vmem:[#allocation2 + $0xc8] sm:$0xff] }
 0x40b   :  { %v7429_v36 = vpop.f32.mrf.mxu0  ;;  %v2334_v26 = vld [vmem:[#allocation2 + $0x280] sm:$0xff] }
 0x40c   :  { %v1704_v41 = vadd.f32 %v7428_v34, %v6975_v30  ;;  %v9142_v30 = vcombine.low %v2262_v39, %v2266_v22  ;;  %v2378_v36 = vld [vmem:[#allocation2 + $0x3e0] sm:$0xff]  ;;  %v2283_v39 = vld [vmem:[#allocation2 + $0xe8] sm:$0xff] }
 0x40d   :  { %v7430_v42 = vpop.f32.mrf.mxu0  ;;  %v9203_v17 = vcombine.high %v2279_v19, %v2283_v39 }
 0x40e   :  { %v9062_v43 = vpack.c.bf16 %v1704_v41, %v1704_v41  ;;  %11702 = vst [vmem:[#allocation27_spill] sm:$0xff] %v9142_v30  ;;  %v9151_v42 = vcombine.high %v2374_v35, %v2378_v36 }
 0x40f   :  { %11722 = vst [vmem:[#allocation47_spill] sm:$0xff] %v9203_v17 }
 0x410   :  { %7024 = vmatmul.mubr.msk.bf16.vlgmr.msra.gmra.mxu1 %vm887_vm14, %v9062_v43  ;;  %7026 = vmatmul.mubr.msk.bf16.vlgmr.msra.gmra.mxu0 %vm887_vm14, %v9062_v43  ;;  %11705 = vst [vmem:[#allocation30_spill] sm:$0xff] %v9151_v42 }
 0x411   :  { %1997 = vmatpush1.bf16.msra.mxu1 %v7018_v24  ;;  %3023 = vmatpush1.bf16.msra.mxu0 %v9050_v29  ;;  %v2258_v24 = vld [vmem:[#allocation2 + $0x20] sm:$0xff] }
 0x412   :  { %1998 = vmatprep.subr.bf16.mxu1 %v7011_v44  ;;  %3024 = vmatprep.subr.bf16.mxu0 %v9064_v45  ;;  %v9145_v34 = vcombine.high %v2254_v27, %v2258_v24  ;;  %v9148_v41 = vcombine.low %v2254_v27, %v2258_v24  ;;  %v9153_v44 = vcombine.high %v2311_v33, %v2315_v37  ;;  %v2338_v27 = vld [vmem:[#allocation2 + $0x2a0] sm:$0xff]  ;;  %v2271_v24 = vld [vmem:[#allocation2 + $0x88] sm:$0xff] }
 0x413   :  { %2020 = vmatprep.mubr.bf16.mxu1 %v11368_v20  ;;  %3054 = vmatprep.mubr.bf16.mxu0 %v11368_v20  ;;  %v9219_v48 = vcombine.low %v2334_v26, %v2338_v27 }
 0x414   :  { %11703 = vst [vmem:[#allocation28_spill] sm:$0xff] %v9145_v34  ;;  %11704 = vst [vmem:[#allocation29_spill] sm:$0xff] %v9148_v41 }
 0x415   :  { %1999 = vmatpush1.bf16.msra.mxu1 %v7010_v51  ;;  %3025 = vmatpush1.bf16.msra.mxu0 %v9077_v52  ;;  %11706 = vst [vmem:[#allocation31_spill] sm:$0xff] %v9153_v44  ;;  %v9156_v51 = vcombine.low %v2374_v35, %v2378_v36  ;;  %v9209_v35 = vcombine.low %v2279_v19, %v2283_v39  ;;  %11727 = vst [vmem:[#allocation52_spill] sm:$0xff] %v9219_v48  ;;  %v2375_v19 = vld [vmem:[#allocation2 + $0x3c8] sm:$0xff] }
 0x416   :  { %2000 = vmatprep.subr.bf16.mxu1 %v7003_v53  ;;  %3026 = vmatprep.subr.bf16.mxu0 %v9080_v54  ;;  %v9158_v53 = vcombine.low %v2311_v33, %v2315_v37  ;;  %v9213_v36 = vcombine.high %v2334_v26, %v2338_v27  ;;  %v2326_v37 = vld [vmem:[#allocation2 + $0x240] sm:$0xff]  ;;  %v2379_v39 = vld [vmem:[#allocation2 + $0x3e8] sm:$0xff]  ;;  %v2312_v26 = vld [vmem:[#allocation2 + $0x1d0] sm:$0xff] }
 0x417   :  { %11707 = vst [vmem:[#allocation32_spill] sm:$0xff] %v9156_v51  ;;  %11724 = vst [vmem:[#allocation49_spill] sm:$0xff] %v9209_v35  ;;  %v2316_v27 = vld [vmem:[#allocation2 + $0x1f0] sm:$0xff] }
 0x418   :  { %11708 = vst [vmem:[#allocation33_spill] sm:$0xff] %v9158_v53  ;;  %11725 = vst [vmem:[#allocation50_spill] sm:$0xff] %v9213_v36 }
 0x419   :  { %2001 = vmatpush1.bf16.msra.mxu1 %v7002_v59  ;;  %3027 = vmatpush1.bf16.msra.mxu0 %v9091_v60  ;;  %v2295_v59 = vld [vmem:[#allocation2 + $0x148] sm:$0xff] }
 0x41a   :  { %2002 = vmatprep.subr.bf16.mxu1 %v6995_v61  ;;  %3028 = vmatprep.subr.bf16.mxu0 %v9094_v62  ;;  %v2299_v61 = vld [vmem:[#allocation2 + $0x168] sm:$0xff] }
 0x41b   :  { %v9178_v4 = vcombine.high %v2295_v59, %v2299_v61  ;;  %v9185_v11 = vcombine.low %v2295_v59, %v2299_v61  ;;  %v2318_v59 = vld [vmem:[#allocation2 + $0x200] sm:$0xff] }
 0x41c   :  { %v2322_v61 = vld [vmem:[#allocation2 + $0x220] sm:$0xff] }
 0x41d   :  { %2003 = vmatpush1.bf16.msra.mxu1 %v6994_v5  ;;  %3029 = vmatpush1.bf16.msra.mxu0 %v9103_v1  ;;  %11714 = vst [vmem:[#allocation39_spill] sm:$0xff] %v9178_v4  ;;  %v2350_v5 = vld [vmem:[#allocation2 + $0x300] sm:$0xff]  ;;  %11716 = vst [vmem:[#allocation41_spill] sm:$0xff] %v9185_v11 }
 0x41e   :  { %2078 = vmatprep.subr.bf16.mxu1 %v7023_v6  ;;  %3030 = vmatprep.subr.bf16.mxu0 %v9106_v7  ;;  %v2354_v6 = vld [vmem:[#allocation2 + $0x320] sm:$0xff] }
 0x41f   :  { %v9189_v12 = vcombine.high %v2350_v5, %v2354_v6  ;;  %v9195_v22 = vcombine.low %v2350_v5, %v2354_v6  ;;  %v2255_v5 = vld [vmem:[#allocation2 + $0x8] sm:$0xff] }
 0x420   :  { %7025 = vmatmul.mubr.msk.bf16.vlgmr.msra.gmra.mxu1 %vm887_vm14, %v9062_v43  ;;  %v2259_v6 = vld [vmem:[#allocation2 + $0x28] sm:$0xff] }
 0x421   :  { %2079 = vmatpush1.bf16.msra.mxu1 %v7022_v13  ;;  %3031 = vmatpush1.bf16.msra.mxu0 %v9115_v14  ;;  %11717 = vst [vmem:[#allocation42_spill] sm:$0xff] %v9189_v12  ;;  %11719 = vst [vmem:[#allocation44_spill] sm:$0xff] %v9195_v22 }
 0x422   :  { %2080 = vmatprep.subr.bf16.mxu1 %v7015_v15  ;;  %3032 = vmatprep.subr.bf16.mxu0 %v9118_v50  ;;  %v2342_v15 = vld [vmem:[#allocation2 + $0x2c0] sm:$0xff] }
 0x423   :  { %2102 = vmatprep.mubr.bf16.mxu1 %v11368_v20 }
 0x425   :  { %2081 = vmatpush1.bf16.msra.mxu1 %v7014_v23  ;;  %3033 = vmatpush1.bf16.msra.mxu0 %v9129_v2 }
 0x426   :  { %2082 = vmatprep.subr.bf16.mxu1 %v7007_v8  ;;  %3034 = vmatprep.subr.bf16.mxu0 %v9132_v25  ;;  %v9201_v8 = vcombine.high %v2342_v15, %v2346_v18 }
 0x428   :  { %11721 = vst [vmem:[#allocation46_spill] sm:$0xff] %v9201_v8 }
 0x429   :  { %2083 = vmatpush1.bf16.msra.mxu1 %v7006_v31  ;;  %3035 = vmatpush1.bf16.msra.mxu0 %v9142_v30  ;;  %v2275_v31 = vld [vmem:[#allocation2 + $0xa8] sm:$0xff] }
 0x42a   :  { %2084 = vmatprep.subr.bf16.mxu1 %v6999_v32  ;;  %3036 = vmatprep.subr.bf16.mxu0 %v9145_v34  ;;  %v9207_v32 = vcombine.low %v2342_v15, %v2346_v18  ;;  %v9215_v33 = vcombine.high %v2271_v24, %v2275_v31  ;;  %v9221_v49 = vcombine.low %v2271_v24, %v2275_v31 }
 0x42b   :  { %v9237_v15 = vcombine.high %v2318_v59, %v2322_v61  ;;  %v9239_v18 = vcombine.high %v2255_v5, %v2259_v6  ;;  %v9243_v24 = vcombine.low %v2318_v59, %v2322_v61  ;;  %v9245_v31 = vcombine.low %v2255_v5, %v2259_v6 }
 0x42c   :  { %11723 = vst [vmem:[#allocation48_spill] sm:$0xff] %v9207_v32  ;;  %11726 = vst [vmem:[#allocation51_spill] sm:$0xff] %v9215_v33  ;;  %v9255_v59 = vcombine.low %v2375_v19, %v2379_v39  ;;  %v9257_v61 = vcombine.low %v2312_v26, %v2316_v27 }
 0x42d   :  { %2085 = vmatpush1.bf16.msra.mxu1 %v6998_v38  ;;  %3037 = vmatpush1.bf16.msra.mxu0 %v9148_v41  ;;  %v2330_v38 = vld [vmem:[#allocation2 + $0x260] sm:$0xff]  ;;  %11728 = vst [vmem:[#allocation53_spill] sm:$0xff] %v9221_v49  ;;  %11733 = vst [vmem:[#allocation58_spill] sm:$0xff] %v9237_v15 }
 0x42e   :  { %3038 = vmatprep.subr.bf16.mxu0 %v9151_v42  ;;  %3063 = vmatprep.subr.bf16.mxu1 %v9153_v44  ;;  %v9225_v57 = vcombine.high %v2326_v37, %v2330_v38  ;;  %11734 = vst [vmem:[#allocation59_spill] sm:$0xff] %v9239_v18  ;;  %11735 = vst [vmem:[#allocation60_spill] sm:$0xff] %v9243_v24 }
 0x42f   :  { %11736 = vst [vmem:[#allocation61_spill] sm:$0xff] %v9245_v31  ;;  %11739 = vst [vmem:[#allocation64_spill] sm:$0xff] %v9255_v59 }
 0x430   :  { %7027 = vmatmul.mubr.msk.bf16.vlgmr.msra.gmra.mxu1 %vm887_vm14, %v9062_v43  ;;  %v2291_v43 = vld [vmem:[#allocation2 + $0x128] sm:$0xff]  ;;  %11729 = vst [vmem:[#allocation54_spill] sm:$0xff] %v9225_v57  ;;  %11740 = vst [vmem:[#allocation65_spill] sm:$0xff] %v9257_v61 }
 0x431   :  { %3039 = vmatpush2.bf16.msra.mxu0 %v9156_v51  ;;  %3064 = vmatpush1.bf16.msra.mxu1 %v9158_v53  ;;  %v9191_v13 = vcombine.high %v2287_v9, %v2291_v43  ;;  %v9197_v23 = vcombine.low %v2287_v9, %v2291_v43  ;;  %v9231_v9 = vcombine.low %v2326_v37, %v2330_v38 }
 0x432   :  { %3040 = vmatprep.subr.bf16.mxu0 %v9162_v55  ;;  %3065 = vmatprep.subr.bf16.mxu1 %v9164_v56  ;;  %v9233_v43 = vcombine.low %v2263_v46, %v2267_v47  ;;  %v9249_v37 = vcombine.high %v2375_v19, %v2379_v39  ;;  %v9251_v38 = vcombine.high %v2312_v26, %v2316_v27  ;;  %v2367_v46 = vld [vmem:[#allocation2 + $0x388] sm:$0xff] }
 0x433   :  { %3095 = vmatprep.mubr.bf16.mxu1 %v11368_v20  ;;  %11718 = vst [vmem:[#allocation43_spill] sm:$0xff] %v9191_v13  ;;  %11720 = vst [vmem:[#allocation45_spill] sm:$0xff] %v9197_v23  ;;  %v2371_v47 = vld [vmem:[#allocation2 + $0x3a8] sm:$0xff]  ;;  %v2308_v20 = vld [vmem:[#allocation2 + $0x1b0] sm:$0xff]  ;;  %v9274_v26 = vcombine.high %v2359_v40, %v2363_v21 }
 0x434   :  { %11731 = vst [vmem:[#allocation56_spill] sm:$0xff] %v9231_v9  ;;  %11732 = vst [vmem:[#allocation57_spill] sm:$0xff] %v9233_v43  ;;  %v9261_v5 = vcombine.high %v2367_v46, %v2371_v47  ;;  %v9263_v6 = vcombine.high %v2304_v16, %v2308_v20  ;;  %v9268_v19 = vcombine.low %v2367_v46, %v2371_v47 }
 0x435   :  { %3041 = vmatpush2.bf16.msra.mxu0 %v9170_v63  ;;  %3066 = vmatpush1.bf16.msra.mxu1 %v9172_v0  ;;  %11737 = vst [vmem:[#allocation62_spill] sm:$0xff] %v9249_v37  ;;  %11738 = vst [vmem:[#allocation63_spill] sm:$0xff] %v9251_v38  ;;  %v9270_v39 = vcombine.low %v2304_v16, %v2308_v20  ;;  %v9281_v20 = vcombine.low %v2359_v40, %v2363_v21 }
 0x436   :  { %3042 = vmatprep.subr.bf16.mxu0 %v9176_v3  ;;  %3067 = vmatprep.subr.bf16.mxu1 %v9178_v4  ;;  %11741 = vst [vmem:[#allocation66_spill] sm:$0xff] %v9261_v5  ;;  %11742 = vst [vmem:[#allocation67_spill] sm:$0xff] %v9263_v6 }
 0x437   :  { %11744 = vst [vmem:[#allocation68_spill] sm:$0xff] %v9268_v19  ;;  %11745 = vst [vmem:[#allocation69_spill] sm:$0xff] %v9270_v39 }
 0x438   :  { %11746 = vst [vmem:[#allocation70_spill] sm:$0xff] %v9274_v26  ;;  %11748 = vst [vmem:[#allocation72_spill] sm:$0xff] %v9281_v20 }
 0x439   :  { %3043 = vmatpush2.bf16.msra.mxu0 %v9183_v10  ;;  %3068 = vmatpush1.bf16.msra.mxu1 %v9185_v11 }
 0x43a   :  { %3044 = vmatprep.subr.bf16.mxu0 %v9189_v12  ;;  %3069 = vmatprep.subr.bf16.mxu1 %v9191_v13 }
 0x43d   :  { %3045 = vmatpush2.bf16.msra.mxu0 %v9195_v22  ;;  %3070 = vmatpush1.bf16.msra.mxu1 %v9197_v23 }
 0x43e   :  { %3046 = vmatprep.subr.bf16.mxu0 %v9201_v8  ;;  %3071 = vmatprep.subr.bf16.mxu1 %v9203_v17 }
 0x441   :  { %3047 = vmatpush2.bf16.msra.mxu0 %v9207_v32  ;;  %3072 = vmatpush1.bf16.msra.mxu1 %v9209_v35 }
 0x442   :  { %3048 = vmatprep.subr.bf16.mxu0 %v9213_v36  ;;  %3073 = vmatprep.subr.bf16.mxu1 %v9215_v33 }
 0x445   :  { %3049 = vmatpush2.bf16.msra.mxu0 %v9219_v48  ;;  %3074 = vmatpush1.bf16.msra.mxu1 %v9221_v49 }
 0x446   :  { %3050 = vmatprep.subr.bf16.mxu0 %v9225_v57  ;;  %3075 = vmatprep.subr.bf16.mxu1 %v9227_v58 }
 0x449   :  { %3051 = vmatpush2.bf16.msra.mxu0 %v9231_v9  ;;  %3076 = vmatpush1.bf16.msra.mxu1 %v9233_v43  ;;  %v11743_v9 = vmov 0  }
 0x44a   :  { %3052 = vmatprep.subr.bf16.mxu0 %v9237_v15  ;;  %3077 = vmatprep.subr.bf16.mxu1 %v9239_v18  ;;  %v2296_v15 = vld [vmem:[#allocation2 + $0x150] sm:$0xff] }
 0x44b   :  { %v2300_v18 = vld [vmem:[#allocation2 + $0x170] sm:$0xff] }
 0x44c   :  { %v9276_v27 = vcombine.high %v2296_v15, %v2300_v18  ;;  %v9283_v16 = vcombine.low %v2296_v15, %v2300_v18 }
 0x44d   :  { %3053 = vmatpush2.bf16.msra.mxu0 %v9243_v24  ;;  %3078 = vmatpush1.bf16.msra.mxu1 %v9245_v31  ;;  %v2288_v24 = vld [vmem:[#allocation2 + $0x110] sm:$0xff] }
 0x44e   :  { %3079 = vmatprep.subr.bf16.mxu1 %v9249_v37  ;;  %3104 = vmatprep.subr.bf16.mxu0 %v9251_v38  ;;  %11747 = vst [vmem:[#allocation71_spill] sm:$0xff] %v9276_v27  ;;  %v2351_v38 = vld [vmem:[#allocation2 + $0x308] sm:$0xff]  ;;  %v2292_v31 = vld [vmem:[#allocation2 + $0x130] sm:$0xff]  ;;  %11749 = vst [vmem:[#allocation73_spill] sm:$0xff] %v9283_v16 }
 0x44f   :  { %v2355_v37 = vld [vmem:[#allocation2 + $0x328] sm:$0xff]  ;;  %v9289_v47 = vcombine.high %v2288_v24, %v2292_v31  ;;  %v9295_v40 = vcombine.low %v2288_v24, %v2292_v31 }
 0x450   :  { %3055 = vmatmul.mubr.bf16.vlgmr.msra.gmra.mxu0 %v11743_v9  ;;  %v9287_v46 = vcombine.high %v2351_v38, %v2355_v37  ;;  %v9293_v21 = vcombine.low %v2351_v38, %v2355_v37 }
 0x451   :  { %3080 = vmatpush2.bf16.msra.mxu1 %v9255_v59  ;;  %3105 = vmatpush1.bf16.msra.mxu0 %v9257_v61  ;;  %11751 = vst [vmem:[#allocation75_spill] sm:$0xff] %v9289_v47  ;;  %v2347_v61 = vld [vmem:[#allocation2 + $0x2e8] sm:$0xff]  ;;  %v2284_v59 = vld [vmem:[#allocation2 + $0xf0] sm:$0xff]  ;;  %11753 = vst [vmem:[#allocation77_spill] sm:$0xff] %v9295_v40 }
 0x452   :  { %3081 = vmatprep.subr.bf16.mxu1 %v9261_v5  ;;  %3106 = vmatprep.subr.bf16.mxu0 %v9263_v6  ;;  %11750 = vst [vmem:[#allocation74_spill] sm:$0xff] %v9287_v46  ;;  %v2343_v6 = vld [vmem:[#allocation2 + $0x2c8] sm:$0xff]  ;;  %v2280_v5 = vld [vmem:[#allocation2 + $0xd0] sm:$0xff]  ;;  %11752 = vst [vmem:[#allocation76_spill] sm:$0xff] %v9293_v21 }
 0x453   :  { %3136 = vmatprep.mubr.bf16.mxu0 %v11743_v9  ;;  %v9299_v15 = vcombine.high %v2343_v6, %v2347_v61  ;;  %v9301_v18 = vcombine.high %v2280_v5, %v2284_v59  ;;  %v9305_v37 = vcombine.low %v2343_v6, %v2347_v61  ;;  %v9307_v24 = vcombine.low %v2280_v5, %v2284_v59 }
 0x455   :  { %3082 = vmatpush2.bf16.msra.mxu1 %v9268_v19  ;;  %3107 = vmatpush1.bf16.msra.mxu0 %v9270_v39  ;;  %11754 = vst [vmem:[#allocation78_spill] sm:$0xff] %v9299_v15  ;;  %11755 = vst [vmem:[#allocation79_spill] sm:$0xff] %v9301_v18  ;;  %v2339_v39 = vld [vmem:[#allocation2 + $0x2a8] sm:$0xff]  ;;  %v2276_v19 = vld [vmem:[#allocation2 + $0xb0] sm:$0xff] }
 0x456   :  { %3083 = vmatprep.subr.bf16.mxu1 %v9274_v26  ;;  %3108 = vmatprep.subr.bf16.mxu0 %v9276_v27  ;;  %v2335_v27 = vld [vmem:[#allocation2 + $0x288] sm:$0xff]  ;;  %v2272_v26 = vld [vmem:[#allocation2 + $0x90] sm:$0xff]  ;;  %11756 = vst [vmem:[#allocation80_spill] sm:$0xff] %v9305_v37  ;;  %11757 = vst [vmem:[#allocation81_spill] sm:$0xff] %v9307_v24 }
 0x457   :  { %v9311_v31 = vcombine.high %v2335_v27, %v2339_v39  ;;  %v9313_v38 = vcombine.high %v2272_v26, %v2276_v19  ;;  %v9317_v61 = vcombine.low %v2335_v27, %v2339_v39  ;;  %v9319_v59 = vcombine.low %v2272_v26, %v2276_v19 }
 0x459   :  { %3084 = vmatpush2.bf16.msra.mxu1 %v9281_v20  ;;  %3109 = vmatpush1.bf16.msra.mxu0 %v9283_v16  ;;  %11758 = vst [vmem:[#allocation82_spill] sm:$0xff] %v9311_v31  ;;  %11759 = vst [vmem:[#allocation83_spill] sm:$0xff] %v9313_v38  ;;  %v2331_v16 = vld [vmem:[#allocation2 + $0x268] sm:$0xff]  ;;  %v2268_v20 = vld [vmem:[#allocation2 + $0x70] sm:$0xff] }
 0x45a   :  { %3085 = vmatprep.subr.bf16.mxu1 %v9287_v46  ;;  %3110 = vmatprep.subr.bf16.mxu0 %v9289_v47  ;;  %v2327_v47 = vld [vmem:[#allocation2 + $0x248] sm:$0xff]  ;;  %v2264_v46 = vld [vmem:[#allocation2 + $0x50] sm:$0xff]  ;;  %11760 = vst [vmem:[#allocation84_spill] sm:$0xff] %v9317_v61  ;;  %11761 = vst [vmem:[#allocation85_spill] sm:$0xff] %v9319_v59 }
 0x45b   :  { %v9323_v5 = vcombine.high %v2327_v47, %v2331_v16  ;;  %v9325_v6 = vcombine.high %v2264_v46, %v2268_v20  ;;  %v9329_v39 = vcombine.low %v2327_v47, %v2331_v16  ;;  %v9331_v19 = vcombine.low %v2264_v46, %v2268_v20 }
 0x45d   :  { %3086 = vmatpush2.bf16.msra.mxu1 %v9293_v21  ;;  %3111 = vmatpush1.bf16.msra.mxu0 %v9295_v40  ;;  %11762 = vst [vmem:[#allocation86_spill] sm:$0xff] %v9323_v5  ;;  %11763 = vst [vmem:[#allocation87_spill] sm:$0xff] %v9325_v6  ;;  %v2323_v40 = vld [vmem:[#allocation2 + $0x228] sm:$0xff]  ;;  %v2260_v21 = vld [vmem:[#allocation2 + $0x30] sm:$0xff] }
 0x45e   :  { %3087 = vmatprep.subr.bf16.mxu1 %v9299_v15  ;;  %3112 = vmatprep.subr.bf16.mxu0 %v9301_v18  ;;  %v2319_v18 = vld [vmem:[#allocation2 + $0x208] sm:$0xff]  ;;  %v2256_v15 = vld [vmem:[#allocation2 + $0x10] sm:$0xff]  ;;  %11764 = vst [vmem:[#allocation88_spill] sm:$0xff] %v9329_v39  ;;  %11765 = vst [vmem:[#allocation89_spill] sm:$0xff] %v9331_v19 }
 0x45f   :  { %v9335_v26 = vcombine.high %v2319_v18, %v2323_v40  ;;  %v9337_v27 = vcombine.high %v2256_v15, %v2260_v21  ;;  %v9341_v16 = vcombine.low %v2319_v18, %v2323_v40  ;;  %v9343_v20 = vcombine.low %v2256_v15, %v2260_v21 }
 0x461   :  { %3088 = vmatpush2.bf16.msra.mxu1 %v9305_v37  ;;  %3113 = vmatpush1.bf16.msra.mxu0 %v9307_v24  ;;  %11766 = vst [vmem:[#allocation90_spill] sm:$0xff] %v9335_v26  ;;  %11767 = vst [vmem:[#allocation91_spill] sm:$0xff] %v9337_v27  ;;  %v2380_v24 = vld [vmem:[#allocation2 + $0x3f0] sm:$0xff]  ;;  %v2317_v37 = vld [vmem:[#allocation2 + $0x1f8] sm:$0xff] }
 0x462   :  { %3089 = vmatprep.subr.bf16.mxu1 %v9311_v31  ;;  %3114 = vmatprep.subr.bf16.mxu0 %v9313_v38  ;;  %v2376_v38 = vld [vmem:[#allocation2 + $0x3d0] sm:$0xff]  ;;  %v2313_v31 = vld [vmem:[#allocation2 + $0x1d8] sm:$0xff]  ;;  %11768 = vst [vmem:[#allocation92_spill] sm:$0xff] %v9341_v16  ;;  %11769 = vst [vmem:[#allocation93_spill] sm:$0xff] %v9343_v20 }
 0x463   :  { %v9347_v46 = vcombine.high %v2376_v38, %v2380_v24  ;;  %v9349_v47 = vcombine.high %v2313_v31, %v2317_v37  ;;  %v9353_v40 = vcombine.low %v2376_v38, %v2380_v24  ;;  %v9355_v21 = vcombine.low %v2313_v31, %v2317_v37 }
 0x465   :  { %3090 = vmatpush2.bf16.msra.mxu1 %v9317_v61  ;;  %3115 = vmatpush1.bf16.msra.mxu0 %v9319_v59  ;;  %11770 = vst [vmem:[#allocation94_spill] sm:$0xff] %v9347_v46  ;;  %11771 = vst [vmem:[#allocation95_spill] sm:$0xff] %v9349_v47  ;;  %v2372_v59 = vld [vmem:[#allocation2 + $0x3b0] sm:$0xff]  ;;  %v2309_v61 = vld [vmem:[#allocation2 + $0x1b8] sm:$0xff] }
 0x466   :  { %3091 = vmatprep.subr.bf16.mxu1 %v9323_v5  ;;  %3116 = vmatprep.subr.bf16.mxu0 %v9325_v6  ;;  %v2368_v6 = vld [vmem:[#allocation2 + $0x390] sm:$0xff]  ;;  %v2305_v5 = vld [vmem:[#allocation2 + $0x198] sm:$0xff]  ;;  %11772 = vst [vmem:[#allocation96_spill] sm:$0xff] %v9353_v40  ;;  %11773 = vst [vmem:[#allocation97_spill] sm:$0xff] %v9355_v21 }
 0x467   :  { %v9359_v15 = vcombine.high %v2368_v6, %v2372_v59  ;;  %v9361_v18 = vcombine.high %v2305_v5, %v2309_v61  ;;  %v9366_v37 = vcombine.low %v2368_v6, %v2372_v59  ;;  %v9368_v24 = vcombine.low %v2305_v5, %v2309_v61 }
 0x469   :  { %3092 = vmatpush2.bf16.msra.mxu1 %v9329_v39  ;;  %3117 = vmatpush1.bf16.msra.mxu0 %v9331_v19  ;;  %11774 = vst [vmem:[#allocation98_spill] sm:$0xff] %v9359_v15  ;;  %11775 = vst [vmem:[#allocation99_spill] sm:$0xff] %v9361_v18  ;;  %v2364_v19 = vld [vmem:[#allocation2 + $0x370] sm:$0xff]  ;;  %v2301_v39 = vld [vmem:[#allocation2 + $0x178] sm:$0xff] }
 0x46a   :  { %3093 = vmatprep.subr.bf16.mxu1 %v9335_v26  ;;  %3118 = vmatprep.subr.bf16.mxu0 %v9337_v27  ;;  %v2360_v27 = vld [vmem:[#allocation2 + $0x350] sm:$0xff]  ;;  %v2297_v26 = vld [vmem:[#allocation2 + $0x158] sm:$0xff]  ;;  %11776 = vst [vmem:[#allocation100_spill] sm:$0xff] %v9366_v37  ;;  %11777 = vst [vmem:[#allocation101_spill] sm:$0xff] %v9368_v24 }
 0x46b   :  { %v9372_v31 = vcombine.high %v2360_v27, %v2364_v19  ;;  %v9374_v38 = vcombine.high %v2297_v26, %v2301_v39  ;;  %v9379_v61 = vcombine.low %v2360_v27, %v2364_v19  ;;  %v9381_v59 = vcombine.low %v2297_v26, %v2301_v39 }
 0x46d   :  { %3094 = vmatpush2.bf16.msra.mxu1 %v9341_v16  ;;  %3119 = vmatpush1.bf16.msra.mxu0 %v9343_v20  ;;  %11778 = vst [vmem:[#allocation102_spill] sm:$0xff] %v9372_v31  ;;  %11779 = vst [vmem:[#allocation103_spill] sm:$0xff] %v9374_v38  ;;  %v2356_v20 = vld [vmem:[#allocation2 + $0x330] sm:$0xff]  ;;  %v2293_v16 = vld [vmem:[#allocation2 + $0x138] sm:$0xff] }
 0x46e   :  { %3120 = vmatprep.subr.bf16.mxu0 %v9347_v46  ;;  %3145 = vmatprep.subr.bf16.mxu1 %v9349_v47  ;;  %v2352_v46 = vld [vmem:[#allocation2 + $0x310] sm:$0xff]  ;;  %v2289_v47 = vld [vmem:[#allocation2 + $0x118] sm:$0xff]  ;;  %11780 = vst [vmem:[#allocation104_spill] sm:$0xff] %v9379_v61  ;;  %11781 = vst [vmem:[#allocation105_spill] sm:$0xff] %v9381_v59 }
 0x46f   :  { %v9385_v5 = vcombine.high %v2352_v46, %v2356_v20  ;;  %v9387_v6 = vcombine.high %v2289_v47, %v2293_v16  ;;  %v9391_v19 = vcombine.low %v2352_v46, %v2356_v20  ;;  %v9393_v39 = vcombine.low %v2289_v47, %v2293_v16 }
 0x470   :  { %3096 = vmatmul.mubr.bf16.vlgmr.msra.gmra.mxu1 %v11743_v9 }
 0x471   :  { %3121 = vmatpush2.bf16.msra.mxu0 %v9353_v40  ;;  %3146 = vmatpush1.bf16.msra.mxu1 %v9355_v21  ;;  %11782 = vst [vmem:[#allocation106_spill] sm:$0xff] %v9385_v5  ;;  %11783 = vst [vmem:[#allocation107_spill] sm:$0xff] %v9387_v6  ;;  %v2348_v40 = vld [vmem:[#allocation2 + $0x2f0] sm:$0xff]  ;;  %v2285_v21 = vld [vmem:[#allocation2 + $0xf8] sm:$0xff] }
 0x472   :  { %3122 = vmatprep.subr.bf16.mxu0 %v9359_v15  ;;  %3147 = vmatprep.subr.bf16.mxu1 %v9361_v18  ;;  %v2344_v15 = vld [vmem:[#allocation2 + $0x2d0] sm:$0xff]  ;;  %v2281_v18 = vld [vmem:[#allocation2 + $0xd8] sm:$0xff]  ;;  %11784 = vst [vmem:[#allocation108_spill] sm:$0xff] %v9391_v19  ;;  %11785 = vst [vmem:[#allocation109_spill] sm:$0xff] %v9393_v39 }
 0x473   :  { %3177 = vmatprep.mubr.bf16.mxu1 %v11743_v9  ;;  %v9397_v26 = vcombine.high %v2344_v15, %v2348_v40  ;;  %v9399_v27 = vcombine.high %v2281_v18, %v2285_v21  ;;  %v9403_v20 = vcombine.low %v2344_v15, %v2348_v40  ;;  %v9405_v16 = vcombine.low %v2281_v18, %v2285_v21 }
 0x475   :  { %3123 = vmatpush2.bf16.msra.mxu0 %v9366_v37  ;;  %3148 = vmatpush1.bf16.msra.mxu1 %v9368_v24  ;;  %11786 = vst [vmem:[#allocation110_spill] sm:$0xff] %v9397_v26  ;;  %11787 = vst [vmem:[#allocation111_spill] sm:$0xff] %v9399_v27  ;;  %v2340_v37 = vld [vmem:[#allocation2 + $0x2b0] sm:$0xff]  ;;  %v2277_v24 = vld [vmem:[#allocation2 + $0xb8] sm:$0xff] }
 0x476   :  { %3124 = vmatprep.subr.bf16.mxu0 %v9372_v31  ;;  %3149 = vmatprep.subr.bf16.mxu1 %v9374_v38  ;;  %v2336_v31 = vld [vmem:[#allocation2 + $0x290] sm:$0xff]  ;;  %v2273_v38 = vld [vmem:[#allocation2 + $0x98] sm:$0xff]  ;;  %11788 = vst [vmem:[#allocation112_spill] sm:$0xff] %v9403_v20  ;;  %11789 = vst [vmem:[#allocation113_spill] sm:$0xff] %v9405_v16 }
 0x477   :  { %v9409_v46 = vcombine.high %v2336_v31, %v2340_v37  ;;  %v9411_v47 = vcombine.high %v2273_v38, %v2277_v24  ;;  %v9415_v40 = vcombine.low %v2336_v31, %v2340_v37  ;;  %v9417_v21 = vcombine.low %v2273_v38, %v2277_v24 }
 0x479   :  { %3125 = vmatpush2.bf16.msra.mxu0 %v9379_v61  ;;  %3150 = vmatpush1.bf16.msra.mxu1 %v9381_v59  ;;  %11790 = vst [vmem:[#allocation114_spill] sm:$0xff] %v9409_v46  ;;  %11791 = vst [vmem:[#allocation115_spill] sm:$0xff] %v9411_v47  ;;  %v2332_v61 = vld [vmem:[#allocation2 + $0x270] sm:$0xff]  ;;  %v2269_v59 = vld [vmem:[#allocation2 + $0x78] sm:$0xff] }
 0x47a   :  { %3126 = vmatprep.subr.bf16.mxu0 %v9385_v5  ;;  %3151 = vmatprep.subr.bf16.mxu1 %v9387_v6  ;;  %v2328_v5 = vld [vmem:[#allocation2 + $0x250] sm:$0xff]  ;;  %v2265_v6 = vld [vmem:[#allocation2 + $0x58] sm:$0xff]  ;;  %11792 = vst [vmem:[#allocation116_spill] sm:$0xff] %v9415_v40  ;;  %11793 = vst [vmem:[#allocation117_spill] sm:$0xff] %v9417_v21 }
 0x47b   :  { %v9421_v15 = vcombine.high %v2328_v5, %v2332_v61  ;;  %v9423_v18 = vcombine.high %v2265_v6, %v2269_v59  ;;  %v9427_v37 = vcombine.low %v2328_v5, %v2332_v61  ;;  %v9429_v24 = vcombine.low %v2265_v6, %v2269_v59  ;;  %v2369_v5 = vld [vmem:[#allocation2 + $0x398] sm:$0xff] }
 0x47c   :  { %v2373_v6 = vld [vmem:[#allocation2 + $0x3b8] sm:$0xff] }
 0x47d   :  { %3127 = vmatpush2.bf16.msra.mxu0 %v9391_v19  ;;  %3152 = vmatpush1.bf16.msra.mxu1 %v9393_v39  ;;  %11794 = vst [vmem:[#allocation118_spill] sm:$0xff] %v9421_v15  ;;  %11795 = vst [vmem:[#allocation119_spill] sm:$0xff] %v9423_v18  ;;  %v2324_v19 = vld [vmem:[#allocation2 + $0x230] sm:$0xff]  ;;  %v2261_v39 = vld [vmem:[#allocation2 + $0x38] sm:$0xff] }
 0x47e   :  { %3128 = vmatprep.subr.bf16.mxu0 %v9397_v26  ;;  %3153 = vmatprep.subr.bf16.mxu1 %v9399_v27  ;;  %v2320_v26 = vld [vmem:[#allocation2 + $0x210] sm:$0xff]  ;;  %v2257_v27 = vld [vmem:[#allocation2 + $0x18] sm:$0xff]  ;;  %11796 = vst [vmem:[#allocation120_spill] sm:$0xff] %v9427_v37  ;;  %11797 = vst [vmem:[#allocation121_spill] sm:$0xff] %v9429_v24 }
 0x47f   :  { %v9433_v31 = vcombine.high %v2320_v26, %v2324_v19  ;;  %v9435_v38 = vcombine.high %v2257_v27, %v2261_v39  ;;  %v9441_v61 = vcombine.low %v2257_v27, %v2261_v39  ;;  %v2361_v39 = vld [vmem:[#allocation2 + $0x358] sm:$0xff]  ;;  %v9457_v27 = vcombine.low %v2369_v5, %v2373_v6 }
 0x481   :  { %3129 = vmatpush2.bf16.msra.mxu0 %v9403_v20  ;;  %3154 = vmatpush1.bf16.msra.mxu1 %v9405_v16  ;;  %11798 = vst [vmem:[#allocation122_spill] sm:$0xff] %v9433_v31  ;;  %11799 = vst [vmem:[#allocation123_spill] sm:$0xff] %v9435_v38  ;;  %v2381_v20 = vld [vmem:[#allocation2 + $0x3f8] sm:$0xff] }
 0x482   :  { %3130 = vmatprep.subr.bf16.mxu0 %v9409_v46  ;;  %3155 = vmatprep.subr.bf16.mxu1 %v9411_v47  ;;  %v2377_v46 = vld [vmem:[#allocation2 + $0x3d8] sm:$0xff]  ;;  %11801 = vst [vmem:[#allocation125_spill] sm:$0xff] %v9441_v61  ;;  %11805 = vst [vmem:[#allocation129_spill] sm:$0xff] %v9457_v27 }
 0x483   :  { %v9445_v59 = vcombine.high %v2377_v46, %v2381_v20 }
 0x485   :  { %3131 = vmatpush2.bf16.msra.mxu0 %v9415_v40  ;;  %3156 = vmatpush1.bf16.msra.mxu1 %v9417_v21  ;;  %v9439_v40 = vcombine.low %v2320_v26, %v2324_v19  ;;  %11802 = vst [vmem:[#allocation126_spill] sm:$0xff] %v9445_v59  ;;  %v9452_v19 = vcombine.high %v2369_v5, %v2373_v6  ;;  %v2365_v26 = vld [vmem:[#allocation2 + $0x378] sm:$0xff] }
 0x486   :  { %3132 = vmatprep.subr.bf16.mxu0 %v9421_v15  ;;  %3157 = vmatprep.subr.bf16.mxu1 %v9423_v18  ;;  %v9449_v15 = vcombine.low %v2377_v46, %v2381_v20  ;;  %v9461_v20 = vcombine.high %v2361_v39, %v2365_v26  ;;  %v2353_v46 = vld [vmem:[#allocation2 + $0x318] sm:$0xff] }
 0x487   :  { %11800 = vst [vmem:[#allocation124_spill] sm:$0xff] %v9439_v40  ;;  %11804 = vst [vmem:[#allocation128_spill] sm:$0xff] %v9452_v19  ;;  %v2345_v6 = vld [vmem:[#allocation2 + $0x2d8] sm:$0xff] }
 0x488   :  { %11803 = vst [vmem:[#allocation127_spill] sm:$0xff] %v9449_v15  ;;  %11806 = vst [vmem:[#allocation130_spill] sm:$0xff] %v9461_v20 }
 0x489   :  { %3133 = vmatpush2.bf16.msra.mxu0 %v9427_v37  ;;  %3158 = vmatpush1.bf16.msra.mxu1 %v9429_v24 }
 0x48a   :  { %3134 = vmatprep.subr.bf16.mxu0 %v9433_v31  ;;  %3159 = vmatprep.subr.bf16.mxu1 %v9435_v38 }
 0x48d   :  { %3135 = vmatpush2.bf16.msra.mxu0 %v9439_v40  ;;  %3160 = vmatpush1.bf16.msra.mxu1 %v9441_v61  ;;  %v2357_v40 = vld [vmem:[#allocation2 + $0x338] sm:$0xff] }
 0x48e   :  { %3161 = vmatprep.subr.bf16.mxu1 %v9445_v59  ;;  %3268 = vmatprep.subr.bf16.mxu0 %v9048_v28  ;;  %v9465_v28 = vcombine.low %v2361_v39, %v2365_v26  ;;  %v9469_v5 = vcombine.high %v2353_v46, %v2357_v40  ;;  %v9473_v31 = vcombine.low %v2353_v46, %v2357_v40  ;;  %v2337_v26 = vld [vmem:[#allocation2 + $0x298] sm:$0xff] }
 0x48f   :  { %v2329_v46 = vld [vmem:[#allocation2 + $0x258] sm:$0xff] }
 0x490   :  { %3137 = vmatmul.mubr.bf16.vlgmr.msra.gmra.mxu0 %v11743_v9  ;;  %11807 = vst [vmem:[#allocation131_spill] sm:$0xff] %v9465_v28  ;;  %11808 = vst [vmem:[#allocation132_spill] sm:$0xff] %v9469_v5 }
 0x491   :  { %3162 = vmatpush2.bf16.msra.mxu1 %v9449_v15  ;;  %3269 = vmatpush1.bf16.msra.mxu0 %v9050_v29  ;;  %v2349_v29 = vld [vmem:[#allocation2 + $0x2f8] sm:$0xff]  ;;  %11809 = vst [vmem:[#allocation133_spill] sm:$0xff] %v9473_v31 }
 0x492   :  { %3163 = vmatprep.subr.bf16.mxu1 %v9452_v19  ;;  %3270 = vmatprep.subr.bf16.mxu0 %v9064_v45  ;;  %v9477_v39 = vcombine.high %v2345_v6, %v2349_v29  ;;  %v9481_v45 = vcombine.low %v2345_v6, %v2349_v29  ;;  %v2321_v6 = vld [vmem:[#allocation2 + $0x218] sm:$0xff] }
 0x494   :  { %11810 = vst [vmem:[#allocation134_spill] sm:$0xff] %v9477_v39  ;;  %11811 = vst [vmem:[#allocation135_spill] sm:$0xff] %v9481_v45 }
 0x495   :  { %3164 = vmatpush2.bf16.msra.mxu1 %v9457_v27  ;;  %3271 = vmatpush1.bf16.msra.mxu0 %v9077_v52  ;;  %v2341_v52 = vld [vmem:[#allocation2 + $0x2b8] sm:$0xff] }
 0x496   :  { %3165 = vmatprep.subr.bf16.mxu1 %v9461_v20  ;;  %3272 = vmatprep.subr.bf16.mxu0 %v9080_v54  ;;  %v9485_v40 = vcombine.high %v2337_v26, %v2341_v52  ;;  %v9489_v54 = vcombine.low %v2337_v26, %v2341_v52 }
 0x498   :  { %11812 = vst [vmem:[#allocation136_spill] sm:$0xff] %v9485_v40  ;;  %11813 = vst [vmem:[#allocation137_spill] sm:$0xff] %v9489_v54 }
 0x499   :  { %3166 = vmatpush2.bf16.msra.mxu1 %v9465_v28  ;;  %3273 = vmatpush1.bf16.msra.mxu0 %v9091_v60  ;;  %v2333_v60 = vld [vmem:[#allocation2 + $0x278] sm:$0xff] }
 0x49a   :  { %3167 = vmatprep.subr.bf16.mxu1 %v9469_v5  ;;  %3274 = vmatprep.subr.bf16.mxu0 %v9094_v62  ;;  %v9493_v29 = vcombine.high %v2329_v46, %v2333_v60  ;;  %v9497_v62 = vcombine.low %v2329_v46, %v2333_v60  ;;  %v11818_v60 = vld [vmem:[#allocation56_spill] sm:$0xff]  ;;  %v11820_v46 = vld [vmem:[#allocation58_spill] sm:$0xff] }
 0x49c   :  { %11814 = vst [vmem:[#allocation138_spill] sm:$0xff] %v9493_v29  ;;  %11815 = vst [vmem:[#allocation139_spill] sm:$0xff] %v9497_v62 }
 0x49d   :  { %3168 = vmatpush2.bf16.msra.mxu1 %v9473_v31  ;;  %3275 = vmatpush1.bf16.msra.mxu0 %v9103_v1  ;;  %v2325_v1 = vld [vmem:[#allocation2 + $0x238] sm:$0xff] }
 0x49e   :  { %3169 = vmatprep.subr.bf16.mxu1 %v9477_v39  ;;  %3276 = vmatprep.subr.bf16.mxu0 %v9106_v7  ;;  %v9501_v52 = vcombine.high %v2321_v6, %v2325_v1  ;;  %v9505_v26 = vcombine.low %v2321_v6, %v2325_v1  ;;  %v11819_v1 = vld [vmem:[#allocation59_spill] sm:$0xff]  ;;  %v11821_v6 = vld [vmem:[#allocation61_spill] sm:$0xff] }
 0x4a0   :  { %11816 = vst [vmem:[#allocation140_spill] sm:$0xff] %v9501_v52  ;;  %11817 = vst [vmem:[#allocation141_spill] sm:$0xff] %v9505_v26 }
 0x4a1   :  { %3170 = vmatpush2.bf16.msra.mxu1 %v9481_v45  ;;  %3277 = vmatpush1.bf16.msra.mxu0 %v9115_v14 }
 0x4a2   :  { %3171 = vmatprep.subr.bf16.mxu1 %v9485_v40  ;;  %3278 = vmatprep.subr.bf16.mxu0 %v9118_v50 }
 0x4a5   :  { %3172 = vmatpush2.bf16.msra.mxu1 %v9489_v54  ;;  %3279 = vmatpush1.bf16.msra.mxu0 %v9129_v2 }
 0x4a6   :  { %3173 = vmatprep.subr.bf16.mxu1 %v9493_v29  ;;  %3280 = vmatprep.subr.bf16.mxu0 %v9132_v25 }
 0x4a9   :  { %3174 = vmatpush2.bf16.msra.mxu1 %v9497_v62  ;;  %3281 = vmatpush1.bf16.msra.mxu0 %v9142_v30  ;;  %v11841_v30 = vld [vmem:[#allocation12_spill] sm:$0xff] }
 0x4aa   :  { %3175 = vmatprep.subr.bf16.mxu1 %v9501_v52  ;;  %3282 = vmatprep.subr.bf16.mxu0 %v9145_v34 }
 0x4ad   :  { %3176 = vmatpush2.bf16.msra.mxu1 %v9505_v26  ;;  %3283 = vmatpush1.bf16.msra.mxu0 %v9148_v41 }
 0x4ae   :  { %3309 = vmatprep.subr.bf16.mxu1 %v9153_v44  ;;  %3284 = vmatprep.subr.bf16.mxu0 %v9151_v42 }
 0x4b0   :  { %3178 = vmatmul.mubr.bf16.vlgmr.msra.gmra.mxu1 %v11743_v9  ;;  %v11822_v9 = vld [vmem:[#allocation60_spill] sm:$0xff] }
 0x4b1   :  { %3310 = vmatpush1.bf16.msra.mxu1 %v9158_v53  ;;  %3285 = vmatpush2.bf16.msra.mxu0 %v9156_v51  ;;  %v11829_v51 = vld [vmem:[#allocation72_spill] sm:$0xff] }
 0x4b2   :  { %3311 = vmatprep.subr.bf16.mxu1 %v9164_v56  ;;  %3286 = vmatprep.subr.bf16.mxu0 %v9162_v55  ;;  %v11828_v55 = vld [vmem:[#allocation70_spill] sm:$0xff] }
 0x4b5   :  { %3312 = vmatpush1.bf16.msra.mxu1 %v9172_v0  ;;  %3287 = vmatpush2.bf16.msra.mxu0 %v9170_v63 }
 0x4b6   :  { %3313 = vmatprep.subr.bf16.mxu1 %v9178_v4  ;;  %3288 = vmatprep.subr.bf16.mxu0 %v9176_v3  ;;  %v11827_v3 = vld [vmem:[#allocation68_spill] sm:$0xff] }
 0x4b9   :  { %3314 = vmatpush1.bf16.msra.mxu1 %v9185_v11  ;;  %3289 = vmatpush2.bf16.msra.mxu0 %v9183_v10 }
 0x4ba   :  { %3315 = vmatprep.subr.bf16.mxu1 %v9191_v13  ;;  %3290 = vmatprep.subr.bf16.mxu0 %v9189_v12 }
 0x4bd   :  { %3316 = vmatpush1.bf16.msra.mxu1 %v9197_v23  ;;  %3291 = vmatpush2.bf16.msra.mxu0 %v9195_v22 }
 0x4be   :  { %3317 = vmatprep.subr.bf16.mxu1 %v9203_v17  ;;  %3292 = vmatprep.subr.bf16.mxu0 %v9201_v8 }
 0x4c1   :  { %3318 = vmatpush1.bf16.msra.mxu1 %v9209_v35  ;;  %3293 = vmatpush2.bf16.msra.mxu0 %v9207_v32  ;;  %v11824_v32 = vld [vmem:[#allocation63_spill] sm:$0xff] }
 0x4c2   :  { %3319 = vmatprep.subr.bf16.mxu1 %v9215_v33  ;;  %3294 = vmatprep.subr.bf16.mxu0 %v9213_v36  ;;  %v11823_v36 = vld [vmem:[#allocation62_spill] sm:$0xff] }
 0x4c5   :  { %3320 = vmatpush1.bf16.msra.mxu1 %v9221_v49  ;;  %3295 = vmatpush2.bf16.msra.mxu0 %v9219_v48 }
 0x4c6   :  { %3321 = vmatprep.subr.bf16.mxu1 %v9227_v58  ;;  %3296 = vmatprep.subr.bf16.mxu0 %v9225_v57  ;;  %v11825_v57 = vld [vmem:[#allocation64_spill] sm:$0xff]  ;;  %v11561_v58 = vsub.s32 3, %v11841_v30 }
 0x4c9   :  { %3322 = vmatpush1.bf16.msra.mxu1 %v9233_v43  ;;  %3297 = vmatpush2.bf16.msra.mxu0 %v11818_v60  ;;  %v11826_v60 = vld [vmem:[#allocation66_spill] sm:$0xff] }
 0x4ca   :  { %3323 = vmatprep.subr.bf16.mxu1 %v11819_v1  ;;  %3298 = vmatprep.subr.bf16.mxu0 %v11820_v46 }
 0x4cd   :  { %3324 = vmatpush1.bf16.msra.mxu1 %v11821_v6  ;;  %3299 = vmatpush2.bf16.msra.mxu0 %v11822_v9  ;;  %v11833_v6 = vld [vmem:[#allocation80_spill] sm:$0xff] }
 0x4ce   :  { %3325 = vmatprep.subr.bf16.mxu1 %v11823_v36  ;;  %3350 = vmatprep.subr.bf16.mxu0 %v11824_v32  ;;  %v11830_v32 = vld [vmem:[#allocation74_spill] sm:$0xff]  ;;  %v11831_v36 = vld [vmem:[#allocation76_spill] sm:$0xff] }
 0x4d0   :  { %v1981_v48 = vpop.f32.mrf.mxu1  ;;  %v9547_v8 = vpop.f32.mrf.mxu0 }
 0x4d1   :  { %3326 = vmatpush2.bf16.msra.mxu1 %v11825_v57  ;;  %v11832_v57 = vld [vmem:[#allocation78_spill] sm:$0xff] }
 0x4d2   :  { %v1983_v22 = vpop.f32.mrf.mxu1  ;;  %v9550_v12 = vpop.f32.mrf.mxu0  ;;  %3327 = vmatprep.subr.bf16.mxu1 %v11826_v60 }
 0x4d4   :  { %v1985_v10 = vpop.f32.mrf.mxu1  ;;  %v2067_v46 = vpop.f32.mrf.mxu0 }
 0x4d5   :  { %3328 = vmatpush2.bf16.msra.mxu1 %v11827_v3  ;;  %v11834_v10 = vld [vmem:[#allocation82_spill] sm:$0xff]  ;;  %v11835_v3 = vld [vmem:[#allocation84_spill] sm:$0xff] }
 0x4d6   :  { %v1986_v63 = vpop.f32.mrf.mxu1  ;;  %v2068_v9 = vpop.f32.mrf.mxu0  ;;  %3329 = vmatprep.subr.bf16.mxu1 %v11828_v55  ;;  %v11837_v55 = vld [vmem:[#allocation88_spill] sm:$0xff] }
 0x4d7   :  { %v11836_v9 = vld [vmem:[#allocation86_spill] sm:$0xff] }
 0x4d9   :  { %3330 = vmatpush2.bf16.msra.mxu1 %v11829_v51  ;;  %v11838_v51 = vld [vmem:[#allocation90_spill] sm:$0xff] }
 0x4da   :  { %3331 = vmatprep.subr.bf16.mxu1 %v11830_v32  ;;  %v11839_v32 = vld [vmem:[#allocation92_spill] sm:$0xff] }
 0x4dd   :  { %3332 = vmatpush2.bf16.msra.mxu1 %v11831_v36  ;;  %v11840_v36 = vld [vmem:[#allocation95_spill] sm:$0xff] }
 0x4de   :  { %3333 = vmatprep.subr.bf16.mxu1 %v11832_v57 }
 0x4e0   :  { %v2022_v42 = vpop.f32.mrf.mxu1 }
 0x4e1   :  { %3334 = vmatpush2.bf16.msra.mxu1 %v11833_v6 }
 0x4e2   :  { %v2024_v60 = vpop.f32.mrf.mxu1  ;;  %3335 = vmatprep.subr.bf16.mxu1 %v11834_v10 }
 0x4e4   :  { %v2026_v46 = vpop.f32.mrf.mxu1 }
 0x4e5   :  { %3336 = vmatpush2.bf16.msra.mxu1 %v11835_v3 }
 0x4e6   :  { %v2027_v63 = vpop.f32.mrf.mxu1  ;;  %3337 = vmatprep.subr.bf16.mxu1 %v11836_v9 }
 0x4e9   :  { %3338 = vmatpush2.bf16.msra.mxu1 %v11837_v55 }
 0x4ea   :  { %3339 = vmatprep.subr.bf16.mxu1 %v11838_v51  ;;  %v11557_v51 = vsub.s32 0, %v11841_v30 }
 0x4ed   :  { %3340 = vmatpush2.bf16.msra.mxu1 %v11839_v32  ;;  %v11560_v32 = vsub.s32 1, %v11841_v30 }
 0x4ee   :  { %3391 = vmatprep.subr.bf16.mxu1 %v11840_v36  ;;  %v1742_v36 = vld [vmem:[%s11359_s10] sm:$0xff] }
 0x4f0   :  { %v9567_v57 = vpop.f32.mrf.mxu1 }
 0x4f2   :  { %v9569_v6 = vpop.f32.mrf.mxu1 }
 0x4f4   :  { %v2108_v41 = vpop.f32.mrf.mxu1 }
 0x4f5   :  { %v11566_v41 = vsub.s32 2, %v11841_v30 }
 0x4f6   :  { %v2109_v10 = vpop.f32.mrf.mxu1 }
 0x4f7   :  { %v1751_v10 = vrot.slane %v1742_v36, %v11560_v32 }
 0x4f9   :  { %v9588_v25 = vadd.f32 %v1983_v22, %v1751_v10 }
 0x4fb   :  { %11842 = vst [vmem:[#allocation142_spill] sm:$0xff] %v9588_v25  ;;  %v11570_v50 = vrot.slane %v9588_v25, 7 }
 0x510   :  { %v3056_v46 = vpop.f32.mrf.mxu0 }
 0x512   :  { %v3058_v1 = vpop.f32.mrf.mxu0 }
 0x514   :  { %v3060_v3 = vpop.f32.mrf.mxu0 }
 0x515   :  { %v1747_v3 = vrot.slane %v1742_v36, %v11557_v51 }
 0x516   :  { %v3061_v63 = vpop.f32.mrf.mxu0 }
 0x517   :  { %v9586_v63 = vadd.f32 %v1981_v48, %v1747_v3  ;;  %v3187_v48 = vadd.f32 %v3058_v1, %v11570_v50  ;;  %v11860_v50 = vld [vmem:[#allocation111_spill] sm:$0xff] }
 0x519   :  { %v3186_v33 = vadd.f32 %v3056_v46, %v9586_v63  ;;  %v7157_v46 = vmul.f32 -1.442695, %v3187_v48  ;;  %v1770_v48 = vsub.s32 6, %v11841_v30 }
 0x51b   :  { %v7156_v14 = vmul.f32 -1.442695, %v3186_v33 }
 0x51d   :  { %7821 = vpow2.f32 %v7156_v14 }
 0x530   :  { %v3097_v34 = vpop.f32.mrf.mxu1 }
 0x532   :  { %v3099_v9 = vpop.f32.mrf.mxu1 }
 0x534   :  { %v3101_v43 = vpop.f32.mrf.mxu1 }
 0x535   :  { %v1755_v43 = vrot.slane %v1742_v36, %v11566_v41  ;;  %v7822_v41 = vpop.eup %7821 }
 0x536   :  { %v3102_v55 = vpop.f32.mrf.mxu1 }
 0x537   :  { %v1759_v55 = vrot.slane %v1742_v36, %v11561_v58  ;;  %v9592_v2 = vadd.f32 %v2022_v42, %v1755_v43 }
 0x539   :  { %v9590_v49 = vadd.f32 %v2024_v60, %v1759_v55  ;;  %v3188_v32 = vadd.f32 %v3097_v34, %v9592_v2  ;;  %v1766_v34 = vsub.s32 5, %v11841_v30  ;;  %v1762_v55 = vsub.s32 4, %v11841_v30 }
 0x53b   :  { %v11567_v58 = vrot.slane %v9590_v49, 7  ;;  %v7158_v42 = vmul.f32 -1.442695, %v3188_v32  ;;  %v1767_v33 = vrot.slane %v1742_v36, %v1766_v34  ;;  %v1763_v43 = vrot.slane %v1742_v36, %v1762_v55 }
 0x53c   :  { %v1771_v55 = vrot.slane %v1742_v36, %v1770_v48 }
 0x53d   :  { %v3189_v22 = vadd.f32 %v3099_v9, %v11567_v58  ;;  %7823 = vpow2.f32 %v7158_v42  ;;  %v9605_v1 = vadd.f32 %v9550_v12, %v1767_v33  ;;  %v1774_v9 = vsub.s32 7, %v11841_v30  ;;  %v11861_v30 = vld [vmem:[#allocation81_spill] sm:$0xff] }
 0x53e   :  { %7825 = vpow2.f32 %v7157_v46  ;;  %v9609_v14 = vadd.f32 %v9547_v8, %v1763_v43 }
 0x53f   :  { %v7159_v10 = vmul.f32 -1.442695, %v3189_v22  ;;  %v3200_v22 = vadd.f32 1.0, %v7822_v41 }
 0x541   :  { %7827 = vpow2.f32 %v7159_v10  ;;  %v1775_v10 = vrot.slane %v1742_v36, %v1774_v9 }
 0x542   :  { %7829 = vrcp.f32 %v3200_v22 }
 0x543   :  { %v9617_v8 = vadd.f32 %v9569_v6, %v1775_v10 }
 0x54a   :  { %v7824_v32 = vpop.eup %7823 }
 0x54b   :  { %v3212_v34 = vadd.f32 1.0, %v7824_v32 }
 0x550   :  { %v3138_v51 = vpop.f32.mrf.mxu0 }
 0x551   :  { %v3190_v42 = vadd.f32 %v3138_v51, %v9609_v14  ;;  %v9620_v51 = vadd.f32 %v9567_v57, %v1771_v55 }
 0x552   :  { %v3140_v35 = vpop.f32.mrf.mxu0 }
 0x553   :  { %7831 = vtanh.f32 %v3190_v42 }
 0x554   :  { %v3142_v60 = vpop.f32.mrf.mxu0  ;;  %7833 = vrcp.f32 %v3212_v34 }
 0x555   :  { %v7826_v60 = vpop.eup %7825 }
 0x556   :  { %v3143_v3 = vpop.f32.mrf.mxu0  ;;  %v7828_v46 = vpop.eup %7827  ;;  %v3201_v33 = vadd.f32 1.0, %v7826_v60 }
 0x557   :  { %v11568_v3 = vrot.slane %v9605_v1, 7  ;;  %v3213_v58 = vadd.f32 1.0, %v7828_v46  ;;  %v7830_v60 = vpop.eup %7829 }
 0x559   :  { %v3191_v12 = vadd.f32 %v3140_v35, %v11568_v3  ;;  %v11569_v35 = vrot.slane %v9617_v8, 7 }
 0x55b   :  { %7835 = vtanh.f32 %v3191_v12 }
 0x55c   :  { %7837 = vrcp.f32 %v3201_v33 }
 0x55d   :  { %7839 = vrcp.f32 %v3213_v58 }
 0x560   :  { %v7832_v57 = vpop.eup %7831 }
 0x561   :  { %v7834_v42 = vpop.eup %7833  ;;  %v3234_v10 = vmul.f32 %v7832_v57, %v7830_v60 }
 0x562   :  { %v3232_v12 = vmul.f32 0.0, %v7834_v42 }
 0x568   :  { %v7836_v46 = vpop.eup %7835 }
 0x569   :  { %v7838_v58 = vpop.eup %7837 }
 0x56a   :  { %v7840_v34 = vpop.eup %7839  ;;  %v3235_v55 = vmul.f32 %v7838_v58, %v7836_v46 }
 0x56b   :  { %v3233_v33 = vmul.f32 0.0, %v7840_v34  ;;  %v11846_v34 = vld [vmem:[#allocation97_spill] sm:$0xff] }
 0x56d   :  { %v9628_v3 = vadd.f32 %v3235_v55, %v3233_v33  ;;  %v11848_v55 = vld [vmem:[#allocation99_spill] sm:$0xff]  ;;  %v11849_v33 = vld [vmem:[#allocation69_spill] sm:$0xff] }
 0x570   :  { %v3179_v41 = vpop.f32.mrf.mxu1 }
 0x571   :  { %v3192_v43 = vadd.f32 %v3179_v41, %v9620_v51  ;;  %v9626_v41 = vadd.f32 %v3234_v10, %v3232_v12  ;;  %v11845_v10 = vld [vmem:[#allocation65_spill] sm:$0xff]  ;;  %v11847_v12 = vld [vmem:[#allocation67_spill] sm:$0xff] }
 0x572   :  { %v3181_v36 = vpop.f32.mrf.mxu1 }
 0x573   :  { %v7160_v9 = vmul.f32 -1.442695, %v3192_v43  ;;  %v3193_v32 = vadd.f32 %v3181_v36, %v11569_v35  ;;  %v11859_v35 = vld [vmem:[#allocation79_spill] sm:$0xff] }
 0x574   :  { %v3183_v48 = vpop.f32.mrf.mxu1 }
 0x575   :  { %7841 = vpow2.f32 %v7160_v9  ;;  %v7161_v6 = vmul.f32 -1.442695, %v3193_v32 }
 0x576   :  { %v3184_v22 = vpop.f32.mrf.mxu1 }
 0x577   :  { %7843 = vpow2.f32 %v7161_v6 }
 0x578   :  { %7845 = vtanh.f32 %v9626_v41 }
 0x582   :  { %v7842_v43 = vpop.eup %7841 }
 0x583   :  { %v3226_v36 = vadd.f32 1.0, %v7842_v43  ;;  %v11850_v43 = vld [vmem:[#allocation101_spill] sm:$0xff] }
 0x584   :  { %v7844_v9 = vpop.eup %7843 }
 0x585   :  { %7847 = vrcp.f32 %v3226_v36  ;;  %v3227_v32 = vadd.f32 1.0, %v7844_v9  ;;  %v7846_v48 = vpop.eup %7845  ;;  %v11851_v36 = vld [vmem:[#allocation71_spill] sm:$0xff] }
 0x586   :  { %7849 = vtanh.f32 %v9628_v3  ;;  %v11852_v9 = vld [vmem:[#allocation103_spill] sm:$0xff] }
 0x587   :  { %7851 = vrcp.f32 %v3227_v32  ;;  %v11853_v32 = vld [vmem:[#allocation73_spill] sm:$0xff] }
 0x592   :  { %v7848_v6 = vpop.eup %7847 }
 0x593   :  { %v7850_v22 = vpop.eup %7849  ;;  %v9632_v57 = vmul.f32 %v7848_v6, %v7846_v48  ;;  %v11854_v48 = vld [vmem:[#allocation105_spill] sm:$0xff]  ;;  %v11855_v6 = vld [vmem:[#allocation75_spill] sm:$0xff] }
 0x594   :  { %v7852_v60 = vpop.eup %7851 }
 0x595   :  { %11843 = vst [vmem:[#allocation143_spill] sm:$0xff] %v9632_v57  ;;  %v9634_v42 = vmul.f32 %v7852_v60, %v7850_v22  ;;  %v9640_v58 = vpack.c.bf16 %v9632_v57, %v9632_v57  ;;  %v11856_v22 = vld [vmem:[#allocation107_spill] sm:$0xff]  ;;  %v11857_v60 = vld [vmem:[#allocation77_spill] sm:$0xff] }
 0x596   :  { %v11863_v57 = vld [vmem:[#allocation85_spill] sm:$0xff] }
 0x597   :  { %11844 = vst [vmem:[#allocation144_spill] sm:$0xff] %v9634_v42  ;;  %v3267_v46 = vpack.c.bf16 %v9634_v42, %v9634_v42  ;;  %v11862_v42 = vld [vmem:[#allocation83_spill] sm:$0xff] }
 0x599   :  { %3300 = vmatprep.mubr.bf16.mxu0 %v3267_v46  ;;  %3341 = vmatprep.mubr.bf16.mxu1 %v3267_v46 }
 0x59a   :  { %3301 = vmatmul.mubr.bf16.vlgmr.msra.gmra.mxu0 %v9640_v58  ;;  %3342 = vmatmul.mubr.bf16.vlgmr.msra.gmra.mxu1 %v9640_v58 }
 0x59b   :  { %3351 = vmatpush1.bf16.msra.mxu0 %v11845_v10  ;;  %3392 = vmatpush1.bf16.msra.mxu1 %v11846_v34 }
 0x59c   :  { %3382 = vmatprep.mubr.bf16.mxu0 %v3267_v46  ;;  %3423 = vmatprep.mubr.bf16.mxu1 %v3267_v46  ;;  %v11858_v46 = vld [vmem:[#allocation109_spill] sm:$0xff] }
 0x59d   :  { %3352 = vmatprep.subr.bf16.mxu0 %v11847_v12  ;;  %3393 = vmatprep.subr.bf16.mxu1 %v11848_v55 }
 0x59f   :  { %3353 = vmatpush1.bf16.msra.mxu0 %v11849_v33  ;;  %3394 = vmatpush1.bf16.msra.mxu1 %v11850_v43 }
 0x5a0   :  { %3354 = vmatprep.subr.bf16.mxu0 %v11851_v36  ;;  %3395 = vmatprep.subr.bf16.mxu1 %v11852_v9 }
 0x5a3   :  { %3355 = vmatpush1.bf16.msra.mxu0 %v11853_v32  ;;  %3396 = vmatpush1.bf16.msra.mxu1 %v11854_v48 }
 0x5a4   :  { %3356 = vmatprep.subr.bf16.mxu0 %v11855_v6  ;;  %3397 = vmatprep.subr.bf16.mxu1 %v11856_v22  ;;  %v11864_v22 = vld [vmem:[#allocation87_spill] sm:$0xff] }
 0x5a7   :  { %3357 = vmatpush1.bf16.msra.mxu0 %v11857_v60  ;;  %3398 = vmatpush1.bf16.msra.mxu1 %v11858_v46  ;;  %v11865_v46 = vld [vmem:[#allocation89_spill] sm:$0xff] }
 0x5a8   :  { %3358 = vmatprep.subr.bf16.mxu0 %v11859_v35  ;;  %3399 = vmatprep.subr.bf16.mxu1 %v11860_v50  ;;  %v11866_v50 = vld [vmem:[#allocation91_spill] sm:$0xff] }
 0x5ab   :  { %3359 = vmatpush1.bf16.msra.mxu0 %v11861_v30  ;;  %3400 = vmatpush1.bf16.msra.mxu1 %v9405_v16  ;;  %v11867_v16 = vld [vmem:[#allocation93_spill] sm:$0xff] }
 0x5ac   :  { %3360 = vmatprep.subr.bf16.mxu0 %v11862_v42  ;;  %3401 = vmatprep.subr.bf16.mxu1 %v9411_v47  ;;  %v11868_v47 = vld [vmem:[#allocation94_spill] sm:$0xff] }
 0x5af   :  { %3361 = vmatpush1.bf16.msra.mxu0 %v11863_v57  ;;  %3402 = vmatpush1.bf16.msra.mxu1 %v9417_v21  ;;  %v11869_v21 = vld [vmem:[#allocation96_spill] sm:$0xff] }
 0x5b0   :  { %3362 = vmatprep.subr.bf16.mxu0 %v11864_v22  ;;  %3403 = vmatprep.subr.bf16.mxu1 %v9423_v18  ;;  %v11870_v18 = vld [vmem:[#allocation98_spill] sm:$0xff] }
 0x5b3   :  { %3363 = vmatpush1.bf16.msra.mxu0 %v11865_v46  ;;  %3404 = vmatpush1.bf16.msra.mxu1 %v9429_v24  ;;  %v11871_v24 = vld [vmem:[#allocation100_spill] sm:$0xff] }
 0x5b4   :  { %3364 = vmatprep.subr.bf16.mxu0 %v11866_v50  ;;  %3405 = vmatprep.subr.bf16.mxu1 %v9435_v38  ;;  %v11872_v38 = vld [vmem:[#allocation102_spill] sm:$0xff] }
 0x5b7   :  { %3365 = vmatpush1.bf16.msra.mxu0 %v11867_v16  ;;  %3406 = vmatpush1.bf16.msra.mxu1 %v9441_v61  ;;  %v11873_v61 = vld [vmem:[#allocation104_spill] sm:$0xff] }
 0x5b8   :  { %3366 = vmatprep.subr.bf16.mxu0 %v11868_v47  ;;  %3407 = vmatprep.subr.bf16.mxu1 %v9445_v59  ;;  %v11874_v59 = vld [vmem:[#allocation106_spill] sm:$0xff] }
 0x5bb   :  { %3367 = vmatpush2.bf16.msra.mxu0 %v11869_v21  ;;  %3408 = vmatpush2.bf16.msra.mxu1 %v9449_v15  ;;  %v11875_v15 = vld [vmem:[#allocation108_spill] sm:$0xff] }
 0x5bc   :  { %3368 = vmatprep.subr.bf16.mxu0 %v11870_v18  ;;  %3409 = vmatprep.subr.bf16.mxu1 %v9452_v19  ;;  %v11876_v19 = vld [vmem:[#allocation110_spill] sm:$0xff] }
 0x5bf   :  { %3369 = vmatpush2.bf16.msra.mxu0 %v11871_v24  ;;  %3410 = vmatpush2.bf16.msra.mxu1 %v9457_v27  ;;  %v11877_v27 = vld [vmem:[#allocation112_spill] sm:$0xff] }
 0x5c0   :  { %3370 = vmatprep.subr.bf16.mxu0 %v11872_v38  ;;  %3411 = vmatprep.subr.bf16.mxu1 %v9461_v20  ;;  %v11878_v20 = vld [vmem:[#allocation114_spill] sm:$0xff] }
 0x5c3   :  { %3371 = vmatpush2.bf16.msra.mxu0 %v11873_v61  ;;  %3412 = vmatpush2.bf16.msra.mxu1 %v9465_v28  ;;  %v11879_v28 = vld [vmem:[#allocation116_spill] sm:$0xff] }
 0x5c4   :  { %3372 = vmatprep.subr.bf16.mxu0 %v11874_v59  ;;  %3413 = vmatprep.subr.bf16.mxu1 %v9469_v5  ;;  %v11880_v5 = vld [vmem:[#allocation118_spill] sm:$0xff] }
 0x5c7   :  { %3373 = vmatpush2.bf16.msra.mxu0 %v11875_v15  ;;  %3414 = vmatpush2.bf16.msra.mxu1 %v9473_v31 }
 0x5c8   :  { %3374 = vmatprep.subr.bf16.mxu0 %v11876_v19  ;;  %3415 = vmatprep.subr.bf16.mxu1 %v9477_v39  ;;  %v11881_v39 = vld [vmem:[#allocation122_spill] sm:$0xff] }
 0x5cb   :  { %3375 = vmatpush2.bf16.msra.mxu0 %v11877_v27  ;;  %3416 = vmatpush2.bf16.msra.mxu1 %v9481_v45  ;;  %v11882_v45 = vld [vmem:[#allocation124_spill] sm:$0xff] }
 0x5cc   :  { %3376 = vmatprep.subr.bf16.mxu0 %v11878_v20  ;;  %3417 = vmatprep.subr.bf16.mxu1 %v9485_v40  ;;  %v11883_v40 = vld [vmem:[#allocation14_spill] sm:$0xff] }
 0x5cf   :  { %3377 = vmatpush2.bf16.msra.mxu0 %v11879_v28  ;;  %3418 = vmatpush2.bf16.msra.mxu1 %v9489_v54 }
 0x5d0   :  { %3378 = vmatprep.subr.bf16.mxu0 %v11880_v5  ;;  %3419 = vmatprep.subr.bf16.mxu1 %v9493_v29  ;;  %v11884_v29 = vld [vmem:[#allocation15_spill] sm:$0xff] }
 0x5d3   :  { %3379 = vmatpush2.bf16.msra.mxu0 %v9427_v37  ;;  %3420 = vmatpush2.bf16.msra.mxu1 %v9497_v62  ;;  %v11885_v62 = vld [vmem:[#allocation16_spill] sm:$0xff] }
 0x5d4   :  { %3380 = vmatprep.subr.bf16.mxu0 %v11881_v39  ;;  %3421 = vmatprep.subr.bf16.mxu1 %v9501_v52  ;;  %v11886_v52 = vld [vmem:[#allocation17_spill] sm:$0xff] }
 0x5d7   :  { %3381 = vmatpush2.bf16.msra.mxu0 %v11882_v45  ;;  %3422 = vmatpush2.bf16.msra.mxu1 %v9505_v26  ;;  %v11887_v26 = vld [vmem:[#allocation18_spill] sm:$0xff]  ;;  %v11639_v45 = vrot.slane %v9590_v49, 5 }
 0x5d8   :  { %3552 = vmatprep.subr.bf16.mxu0 %v11883_v40  ;;  %3593 = vmatprep.subr.bf16.mxu1 %v9153_v44  ;;  %v11888_v44 = vld [vmem:[#allocation19_spill] sm:$0xff] }
 0x5da   :  { %3383 = vmatmul.mubr.bf16.vlgmr.msra.gmra.mxu0 %v9640_v58  ;;  %3424 = vmatmul.mubr.bf16.vlgmr.msra.gmra.mxu1 %v9640_v58  ;;  %v11889_v58 = vld [vmem:[#allocation20_spill] sm:$0xff] }
 0x5db   :  { %3553 = vmatpush1.bf16.msra.mxu0 %v11884_v29  ;;  %3594 = vmatpush1.bf16.msra.mxu1 %v9158_v53  ;;  %v11890_v53 = vld [vmem:[#allocation21_spill] sm:$0xff] }
 0x5dc   :  { %3554 = vmatprep.subr.bf16.mxu0 %v11885_v62  ;;  %3595 = vmatprep.subr.bf16.mxu1 %v9164_v56 }
 0x5df   :  { %3555 = vmatpush1.bf16.msra.mxu0 %v11886_v52  ;;  %3596 = vmatpush1.bf16.msra.mxu1 %v9172_v0  ;;  %v11891_v0 = vld [vmem:[#allocation23_spill] sm:$0xff] }
 0x5e0   :  { %3556 = vmatprep.subr.bf16.mxu0 %v11887_v26  ;;  %3597 = vmatprep.subr.bf16.mxu1 %v9178_v4  ;;  %v11892_v26 = vld [vmem:[#allocation49_spill] sm:$0xff]  ;;  %v11893_v4 = vld [vmem:[#allocation24_spill] sm:$0xff] }
 0x5e3   :  { %3557 = vmatpush1.bf16.msra.mxu0 %v11888_v44  ;;  %3598 = vmatpush1.bf16.msra.mxu1 %v9185_v11  ;;  %v11894_v44 = vld [vmem:[#allocation51_spill] sm:$0xff]  ;;  %v11895_v11 = vld [vmem:[#allocation25_spill] sm:$0xff] }
 0x5e4   :  { %3558 = vmatprep.subr.bf16.mxu0 %v11889_v58  ;;  %3599 = vmatprep.subr.bf16.mxu1 %v9191_v13  ;;  %v11896_v58 = vld [vmem:[#allocation53_spill] sm:$0xff]  ;;  %v11897_v13 = vld [vmem:[#allocation26_spill] sm:$0xff] }
 0x5e7   :  { %3559 = vmatpush1.bf16.msra.mxu0 %v11890_v53  ;;  %3600 = vmatpush1.bf16.msra.mxu1 %v9197_v23  ;;  %v11898_v53 = vld [vmem:[#allocation55_spill] sm:$0xff] }
 0x5e8   :  { %3560 = vmatprep.subr.bf16.mxu0 %v9106_v7  ;;  %3601 = vmatprep.subr.bf16.mxu1 %v9203_v17  ;;  %v11899_v23 = vld [vmem:[#allocation27_spill] sm:$0xff]  ;;  %v11900_v7 = vld [vmem:[#allocation57_spill] sm:$0xff]  ;;  %v11901_v17 = vld [vmem:[#allocation28_spill] sm:$0xff] }
 0x5eb   :  { %3561 = vmatpush1.bf16.msra.mxu0 %v11891_v0  ;;  %3602 = vmatpush1.bf16.msra.mxu1 %v11892_v26  ;;  %v11902_v0 = vld [vmem:[#allocation59_spill] sm:$0xff]  ;;  %v11903_v26 = vld [vmem:[#allocation29_spill] sm:$0xff] }
 0x5ec   :  { %3562 = vmatprep.subr.bf16.mxu0 %v11893_v4  ;;  %3603 = vmatprep.subr.bf16.mxu1 %v11894_v44  ;;  %v11904_v4 = vld [vmem:[#allocation61_spill] sm:$0xff]  ;;  %v11905_v44 = vld [vmem:[#allocation30_spill] sm:$0xff] }
 0x5ef   :  { %3563 = vmatpush1.bf16.msra.mxu0 %v11895_v11  ;;  %3604 = vmatpush1.bf16.msra.mxu1 %v11896_v58  ;;  %v11906_v11 = vld [vmem:[#allocation62_spill] sm:$0xff]  ;;  %v11907_v58 = vld [vmem:[#allocation32_spill] sm:$0xff] }
 0x5f0   :  { %3564 = vmatprep.subr.bf16.mxu0 %v11897_v13  ;;  %3605 = vmatprep.subr.bf16.mxu1 %v11898_v53  ;;  %v11908_v13 = vld [vmem:[#allocation64_spill] sm:$0xff]  ;;  %v11909_v53 = vld [vmem:[#allocation34_spill] sm:$0xff] }
 0x5f3   :  { %3565 = vmatpush1.bf16.msra.mxu0 %v11899_v23  ;;  %3606 = vmatpush1.bf16.msra.mxu1 %v11900_v7  ;;  %v11910_v23 = vld [vmem:[#allocation66_spill] sm:$0xff]  ;;  %v11911_v7 = vld [vmem:[#allocation36_spill] sm:$0xff] }
 0x5f4   :  { %3566 = vmatprep.subr.bf16.mxu0 %v11901_v17  ;;  %3607 = vmatprep.subr.bf16.mxu1 %v11902_v0  ;;  %v11912_v17 = vld [vmem:[#allocation68_spill] sm:$0xff]  ;;  %v11913_v0 = vld [vmem:[#allocation38_spill] sm:$0xff] }
 0x5f7   :  { %3567 = vmatpush1.bf16.msra.mxu0 %v11903_v26  ;;  %3608 = vmatpush1.bf16.msra.mxu1 %v11904_v4  ;;  %v11914_v26 = vld [vmem:[#allocation70_spill] sm:$0xff]  ;;  %v11915_v4 = vld [vmem:[#allocation40_spill] sm:$0xff] }
 0x5f8   :  { %3568 = vmatprep.subr.bf16.mxu0 %v11905_v44  ;;  %3609 = vmatprep.subr.bf16.mxu1 %v11906_v11  ;;  %v11916_v44 = vld [vmem:[#allocation72_spill] sm:$0xff]  ;;  %v11917_v11 = vld [vmem:[#allocation42_spill] sm:$0xff] }
 0x5fb   :  { %3569 = vmatpush2.bf16.msra.mxu0 %v11907_v58  ;;  %3610 = vmatpush2.bf16.msra.mxu1 %v11908_v13  ;;  %v11918_v58 = vld [vmem:[#allocation74_spill] sm:$0xff]  ;;  %v11919_v13 = vld [vmem:[#allocation44_spill] sm:$0xff] }
 0x5fc   :  { %3570 = vmatprep.subr.bf16.mxu0 %v11909_v53  ;;  %3611 = vmatprep.subr.bf16.mxu1 %v11910_v23  ;;  %v11920_v53 = vld [vmem:[#allocation76_spill] sm:$0xff]  ;;  %v11921_v23 = vld [vmem:[#allocation46_spill] sm:$0xff] }
 0x5ff   :  { %3571 = vmatpush2.bf16.msra.mxu0 %v11911_v7  ;;  %3612 = vmatpush2.bf16.msra.mxu1 %v11912_v17  ;;  %v11922_v7 = vld [vmem:[#allocation78_spill] sm:$0xff]  ;;  %v11923_v17 = vld [vmem:[#allocation48_spill] sm:$0xff] }
 0x600   :  { %3572 = vmatprep.subr.bf16.mxu0 %v11913_v0  ;;  %3613 = vmatprep.subr.bf16.mxu1 %v11914_v26  ;;  %v11924_v0 = vld [vmem:[#allocation80_spill] sm:$0xff]  ;;  %v11925_v26 = vld [vmem:[#allocation50_spill] sm:$0xff] }
 0x603   :  { %3573 = vmatpush2.bf16.msra.mxu0 %v11915_v4  ;;  %3614 = vmatpush2.bf16.msra.mxu1 %v11916_v44  ;;  %v11926_v4 = vld [vmem:[#allocation82_spill] sm:$0xff]  ;;  %v11927_v44 = vld [vmem:[#allocation52_spill] sm:$0xff] }
 0x604   :  { %3574 = vmatprep.subr.bf16.mxu0 %v11917_v11  ;;  %3615 = vmatprep.subr.bf16.mxu1 %v11918_v58  ;;  %v11928_v11 = vld [vmem:[#allocation84_spill] sm:$0xff]  ;;  %v11929_v58 = vld [vmem:[#allocation54_spill] sm:$0xff] }
 0x607   :  { %3575 = vmatpush2.bf16.msra.mxu0 %v11919_v13  ;;  %3616 = vmatpush2.bf16.msra.mxu1 %v11920_v53  ;;  %v11930_v13 = vld [vmem:[#allocation86_spill] sm:$0xff]  ;;  %v11931_v53 = vld [vmem:[#allocation56_spill] sm:$0xff] }
 0x608   :  { %3576 = vmatprep.subr.bf16.mxu0 %v11921_v23  ;;  %3617 = vmatprep.subr.bf16.mxu1 %v11922_v7  ;;  %v11932_v23 = vld [vmem:[#allocation88_spill] sm:$0xff]  ;;  %v11933_v7 = vld [vmem:[#allocation58_spill] sm:$0xff] }
 0x60b   :  { %3577 = vmatpush2.bf16.msra.mxu0 %v11923_v17  ;;  %3618 = vmatpush2.bf16.msra.mxu1 %v11924_v0  ;;  %v11934_v17 = vld [vmem:[#allocation90_spill] sm:$0xff]  ;;  %v11935_v0 = vld [vmem:[#allocation60_spill] sm:$0xff] }
 0x60c   :  { %3578 = vmatprep.subr.bf16.mxu0 %v11925_v26  ;;  %3619 = vmatprep.subr.bf16.mxu1 %v11926_v4  ;;  %v11936_v26 = vld [vmem:[#allocation92_spill] sm:$0xff]  ;;  %v11937_v4 = vld [vmem:[#allocation63_spill] sm:$0xff] }
 0x60f   :  { %3579 = vmatpush2.bf16.msra.mxu0 %v11927_v44  ;;  %3620 = vmatpush2.bf16.msra.mxu1 %v11928_v11  ;;  %v11938_v44 = vld [vmem:[#allocation95_spill] sm:$0xff] }
 0x610   :  { %3580 = vmatprep.subr.bf16.mxu0 %v11929_v58  ;;  %3621 = vmatprep.subr.bf16.mxu1 %v11930_v13 }
 0x613   :  { %3581 = vmatpush2.bf16.msra.mxu0 %v11931_v53  ;;  %3622 = vmatpush2.bf16.msra.mxu1 %v11932_v23 }
 0x614   :  { %3582 = vmatprep.subr.bf16.mxu0 %v11933_v7  ;;  %3623 = vmatprep.subr.bf16.mxu1 %v11934_v17 }
 0x617   :  { %3583 = vmatpush2.bf16.msra.mxu0 %v11935_v0  ;;  %3624 = vmatpush2.bf16.msra.mxu1 %v11936_v26  ;;  %v11636_v26 = vrot.slane %v9588_v25, 5 }
 0x618   :  { %3634 = vmatprep.subr.bf16.mxu0 %v11937_v4  ;;  %3675 = vmatprep.subr.bf16.mxu1 %v11938_v44 }
 0x65a   :  { %v3302_v11 = vpop.f32.mrf.mxu0  ;;  %v3343_v58 = vpop.f32.mrf.mxu1 }
 0x65b   :  { %v3440_v29 = vrot.slane %v3302_v11, 7  ;;  %v3442_v7 = vrot.slane %v3343_v58, 7 }
 0x65c   :  { %v3304_v52 = vpop.f32.mrf.mxu0  ;;  %v3345_v13 = vpop.f32.mrf.mxu1 }
 0x65d   :  { %v3441_v40 = vrot.slane %v3304_v52, 7  ;;  %v3456_v17 = vadd.f32 %v3440_v29, %v9586_v63  ;;  %v3458_v0 = vadd.f32 %v3442_v7, %v9592_v2  ;;  %v3443_v4 = vrot.slane %v3345_v13, 7 }
 0x65e   :  { %v3306_v56 = vpop.f32.mrf.mxu0  ;;  %v3347_v53 = vpop.f32.mrf.mxu1 }
 0x65f   :  { %v3457_v44 = vadd.f32 %v3441_v40, %v11636_v26  ;;  %v7162_v39 = vmul.f32 -1.442695, %v3456_v17  ;;  %v7164_v56 = vmul.f32 -1.442695, %v3458_v0 }
 0x660   :  { %v3307_v62 = vpop.f32.mrf.mxu0  ;;  %v3348_v23 = vpop.f32.mrf.mxu1 }
 0x661   :  { %v3459_v62 = vadd.f32 %v3443_v4, %v11639_v45  ;;  %v7163_v53 = vmul.f32 -1.442695, %v3457_v44  ;;  %7853 = vpow2.f32 %v7162_v39  ;;  %v11640_v44 = vrot.slane %v9605_v1, 5 }
 0x662   :  { %7855 = vpow2.f32 %v7164_v56  ;;  %v11641_v56 = vrot.slane %v9617_v8, 5 }
 0x663   :  { %v7165_v11 = vmul.f32 -1.442695, %v3459_v62  ;;  %7857 = vpow2.f32 %v7163_v53 }
 0x665   :  { %7859 = vpow2.f32 %v7165_v11 }
 0x66e   :  { %v7854_v7 = vpop.eup %7853 }
 0x66f   :  { %v7856_v23 = vpop.eup %7855  ;;  %v3470_v13 = vadd.f32 1.0, %v7854_v7 }
 0x670   :  { %v7858_v29 = vpop.eup %7857  ;;  %v3482_v52 = vadd.f32 1.0, %v7856_v23 }
 0x671   :  { %v3471_v40 = vadd.f32 1.0, %v7858_v29  ;;  %7861 = vrcp.f32 %v3470_v13 }
 0x672   :  { %v7860_v58 = vpop.eup %7859  ;;  %7863 = vrcp.f32 %v3482_v52 }
 0x673   :  { %v3483_v4 = vadd.f32 1.0, %v7860_v58  ;;  %7865 = vrcp.f32 %v3471_v40 }
 0x69a   :  { %v3384_v26 = vpop.f32.mrf.mxu0  ;;  %v3425_v25 = vpop.f32.mrf.mxu1 }
 0x69b   :  { %v3444_v0 = vrot.slane %v3384_v26, 7  ;;  %v3446_v17 = vrot.slane %v3425_v25, 7 }
 0x69c   :  { %v3386_v39 = vpop.f32.mrf.mxu0  ;;  %v3427_v62 = vpop.f32.mrf.mxu1 }
 0x69d   :  { %v3460_v53 = vadd.f32 %v3444_v0, %v9609_v14  ;;  %v3462_v11 = vadd.f32 %v3446_v17, %v9620_v51  ;;  %v3445_v7 = vrot.slane %v3386_v39, 7  ;;  %v3447_v23 = vrot.slane %v3427_v62, 7  ;;  %v7862_v17 = vpop.eup %7861 }
 0x69e   :  { %v3388_v29 = vpop.f32.mrf.mxu0  ;;  %v3429_v45 = vpop.f32.mrf.mxu1 }
 0x69f   :  { %7867 = vtanh.f32 %v3460_v53  ;;  %v7166_v26 = vmul.f32 -1.442695, %v3462_v11  ;;  %v3461_v25 = vadd.f32 %v3445_v7, %v11640_v44  ;;  %v3463_v13 = vadd.f32 %v3447_v23, %v11641_v56  ;;  %v7864_v39 = vpop.eup %7863  ;;  %v11955_v56 = vld [vmem:[#allocation131_spill] sm:$0xff] }
 0x6a0   :  { %7869 = vrcp.f32 %v3483_v4  ;;  %v3389_v52 = vpop.f32.mrf.mxu0  ;;  %v3430_v58 = vpop.f32.mrf.mxu1  ;;  %v3504_v45 = vrot.slane %v9626_v41, 7  ;;  %v3505_v44 = vrot.slane %v9628_v3, 7 }
 0x6a1   :  { %7871 = vpow2.f32 %v7166_v26  ;;  %v7167_v0 = vmul.f32 -1.442695, %v3463_v13  ;;  %v7866_v40 = vpop.eup %7865 }
 0x6a2   :  { %7873 = vtanh.f32 %v3461_v25  ;;  %v3508_v11 = vmul.f32 %v7864_v39, %v3504_v45 }
 0x6a3   :  { %7875 = vpow2.f32 %v7167_v0 }
 0x6ac   :  { %v7868_v62 = vpop.eup %7867 }
 0x6ad   :  { %v7870_v53 = vpop.eup %7869  ;;  %v3510_v29 = vmul.f32 %v7868_v62, %v7862_v17 }
 0x6ae   :  { %v7872_v7 = vpop.eup %7871  ;;  %v3509_v13 = vmul.f32 %v7870_v53, %v3505_v44 }
 0x6af   :  { %v7874_v23 = vpop.eup %7873  ;;  %v9792_v4 = vadd.f32 %v3510_v29, %v3508_v11  ;;  %v3496_v52 = vadd.f32 1.0, %v7872_v7  ;;  %v11940_v29 = vld [vmem:[#allocation107_spill] sm:$0xff]  ;;  %v11941_v7 = vld [vmem:[#allocation109_spill] sm:$0xff] }
 0x6b0   :  { %v7876_v26 = vpop.eup %7875  ;;  %v3511_v25 = vmul.f32 %v7874_v23, %v7866_v40  ;;  %v11942_v23 = vld [vmem:[#allocation111_spill] sm:$0xff] }
 0x6b1   :  { %7877 = vtanh.f32 %v9792_v4  ;;  %v3497_v58 = vadd.f32 1.0, %v7876_v26  ;;  %v11944_v26 = vld [vmem:[#allocation115_spill] sm:$0xff] }
 0x6b2   :  { %7879 = vrcp.f32 %v3496_v52  ;;  %v9795_v0 = vadd.f32 %v3511_v25, %v3509_v13  ;;  %v11943_v52 = vld [vmem:[#allocation113_spill] sm:$0xff]  ;;  %v11946_v25 = vld [vmem:[#allocation119_spill] sm:$0xff] }
 0x6b3   :  { %7881 = vrcp.f32 %v3497_v58  ;;  %v11945_v13 = vld [vmem:[#allocation117_spill] sm:$0xff] }
 0x6b4   :  { %7883 = vtanh.f32 %v9795_v0  ;;  %v11947_v58 = vld [vmem:[#allocation121_spill] sm:$0xff] }
 0x6be   :  { %v7878_v41 = vpop.eup %7877 }
 0x6bf   :  { %v7880_v17 = vpop.eup %7879 }
 0x6c0   :  { %v7882_v39 = vpop.eup %7881  ;;  %v9798_v3 = vmul.f32 %v7880_v17, %v7878_v41  ;;  %v11948_v41 = vld [vmem:[#allocation123_spill] sm:$0xff]  ;;  %v11949_v17 = vld [vmem:[#allocation125_spill] sm:$0xff] }
 0x6c1   :  { %v7884_v45 = vpop.eup %7883 }
 0x6c2   :  { %v9800_v62 = vmul.f32 %v7884_v45, %v7882_v39  ;;  %v3542_v44 = vpack.c.bf16 %v9798_v3, %v9798_v3  ;;  %v11950_v39 = vld [vmem:[#allocation126_spill] sm:$0xff]  ;;  %v11951_v45 = vld [vmem:[#allocation127_spill] sm:$0xff] }
 0x6c4   :  { %11939 = vst [vmem:[#allocation65_spill] sm:$0xff] %v9800_v62  ;;  %v3543_v40 = vpack.c.bf16 %v9800_v62, %v9800_v62  ;;  %v9806_v11 = vshrl.u32 %v3542_v44, 16  ;;  %v11952_v44 = vld [vmem:[#allocation128_spill] sm:$0xff] }
 0x6c5   :  { %v11956_v62 = vld [vmem:[#allocation132_spill] sm:$0xff] }
 0x6c6   :  { %v3548_v53 = vshrl.u32 %v3543_v40, 16  ;;  %v11953_v40 = vld [vmem:[#allocation129_spill] sm:$0xff] }
 0x6c8   :  { %3584 = vmatprep.mubr.bf16.mxu0 %v3548_v53  ;;  %3625 = vmatprep.mubr.bf16.mxu1 %v3548_v53 }
 0x6c9   :  { %3585 = vmatmul.mubr.bf16.vlgmr.msra.gmra.mxu0 %v9806_v11  ;;  %3626 = vmatmul.mubr.bf16.vlgmr.msra.gmra.mxu1 %v9806_v11 }
 0x6ca   :  { %3635 = vmatpush1.bf16.msra.mxu0 %v11845_v10  ;;  %3676 = vmatpush1.bf16.msra.mxu1 %v11846_v34 }
 0x6cb   :  { %3666 = vmatprep.mubr.bf16.mxu0 %v3548_v53  ;;  %3707 = vmatprep.mubr.bf16.mxu1 %v3548_v53  ;;  %v11954_v53 = vld [vmem:[#allocation130_spill] sm:$0xff] }
 0x6cc   :  { %3636 = vmatprep.subr.bf16.mxu0 %v11847_v12  ;;  %3677 = vmatprep.subr.bf16.mxu1 %v11848_v55 }
 0x6ce   :  { %3637 = vmatpush1.bf16.msra.mxu0 %v11849_v33  ;;  %3678 = vmatpush1.bf16.msra.mxu1 %v11850_v43 }
 0x6cf   :  { %3638 = vmatprep.subr.bf16.mxu0 %v11851_v36  ;;  %3679 = vmatprep.subr.bf16.mxu1 %v11852_v9 }
 0x6d2   :  { %3639 = vmatpush1.bf16.msra.mxu0 %v11853_v32  ;;  %3680 = vmatpush1.bf16.msra.mxu1 %v11854_v48 }
 0x6d3   :  { %3640 = vmatprep.subr.bf16.mxu0 %v11855_v6  ;;  %3681 = vmatprep.subr.bf16.mxu1 %v11940_v29 }
 0x6d6   :  { %3641 = vmatpush1.bf16.msra.mxu0 %v11857_v60  ;;  %3682 = vmatpush1.bf16.msra.mxu1 %v11941_v7 }
 0x6d7   :  { %3642 = vmatprep.subr.bf16.mxu0 %v11859_v35  ;;  %3683 = vmatprep.subr.bf16.mxu1 %v11942_v23 }
 0x6da   :  { %3643 = vmatpush1.bf16.msra.mxu0 %v11861_v30  ;;  %3684 = vmatpush1.bf16.msra.mxu1 %v11943_v52 }
 0x6db   :  { %3644 = vmatprep.subr.bf16.mxu0 %v11862_v42  ;;  %3685 = vmatprep.subr.bf16.mxu1 %v11944_v26 }
 0x6de   :  { %3645 = vmatpush1.bf16.msra.mxu0 %v11863_v57  ;;  %3686 = vmatpush1.bf16.msra.mxu1 %v11945_v13 }
 0x6df   :  { %3646 = vmatprep.subr.bf16.mxu0 %v11864_v22  ;;  %3687 = vmatprep.subr.bf16.mxu1 %v11946_v25 }
 0x6e2   :  { %3647 = vmatpush1.bf16.msra.mxu0 %v11865_v46  ;;  %3688 = vmatpush1.bf16.msra.mxu1 %v11947_v58 }
 0x6e3   :  { %3648 = vmatprep.subr.bf16.mxu0 %v11866_v50  ;;  %3689 = vmatprep.subr.bf16.mxu1 %v11948_v41 }
 0x6e6   :  { %3649 = vmatpush1.bf16.msra.mxu0 %v11867_v16  ;;  %3690 = vmatpush1.bf16.msra.mxu1 %v11949_v17 }
 0x6e7   :  { %3650 = vmatprep.subr.bf16.mxu0 %v11868_v47  ;;  %3691 = vmatprep.subr.bf16.mxu1 %v11950_v39 }
 0x6ea   :  { %3651 = vmatpush2.bf16.msra.mxu0 %v11869_v21  ;;  %3692 = vmatpush2.bf16.msra.mxu1 %v11951_v45 }
 0x6eb   :  { %3652 = vmatprep.subr.bf16.mxu0 %v11870_v18  ;;  %3693 = vmatprep.subr.bf16.mxu1 %v11952_v44 }
 0x6ee   :  { %3653 = vmatpush2.bf16.msra.mxu0 %v11871_v24  ;;  %3694 = vmatpush2.bf16.msra.mxu1 %v11953_v40  ;;  %v11957_v24 = vld [vmem:[#allocation134_spill] sm:$0xff]  ;;  %v11661_v40 = vrot.slane %v9590_v49, 3 }
 0x6ef   :  { %3654 = vmatprep.subr.bf16.mxu0 %v11872_v38  ;;  %3695 = vmatprep.subr.bf16.mxu1 %v11954_v53  ;;  %v11958_v38 = vld [vmem:[#allocation135_spill] sm:$0xff] }
 0x6f2   :  { %3655 = vmatpush2.bf16.msra.mxu0 %v11873_v61  ;;  %3696 = vmatpush2.bf16.msra.mxu1 %v11955_v56  ;;  %v11959_v61 = vld [vmem:[#allocation136_spill] sm:$0xff] }
 0x6f3   :  { %3656 = vmatprep.subr.bf16.mxu0 %v11874_v59  ;;  %3697 = vmatprep.subr.bf16.mxu1 %v11956_v62 }
 0x6f6   :  { %3657 = vmatpush2.bf16.msra.mxu0 %v11875_v15  ;;  %3698 = vmatpush2.bf16.msra.mxu1 %v9473_v31  ;;  %v11960_v15 = vld [vmem:[#allocation138_spill] sm:$0xff] }
 0x6f7   :  { %3658 = vmatprep.subr.bf16.mxu0 %v11876_v19  ;;  %3699 = vmatprep.subr.bf16.mxu1 %v11957_v24  ;;  %v11961_v19 = vld [vmem:[#allocation139_spill] sm:$0xff]  ;;  %v11962_v24 = vld [vmem:[#allocation122_spill] sm:$0xff] }
 0x6fa   :  { %3659 = vmatpush2.bf16.msra.mxu0 %v11877_v27  ;;  %3700 = vmatpush2.bf16.msra.mxu1 %v11958_v38  ;;  %v11963_v27 = vld [vmem:[#allocation140_spill] sm:$0xff] }
 0x6fb   :  { %3660 = vmatprep.subr.bf16.mxu0 %v11878_v20  ;;  %3701 = vmatprep.subr.bf16.mxu1 %v11959_v61  ;;  %v11964_v38 = vld [vmem:[#allocation124_spill] sm:$0xff]  ;;  %v11965_v20 = vld [vmem:[#allocation141_spill] sm:$0xff]  ;;  %v11966_v61 = vld [vmem:[#allocation14_spill] sm:$0xff] }
 0x6fe   :  { %3661 = vmatpush2.bf16.msra.mxu0 %v11879_v28  ;;  %3702 = vmatpush2.bf16.msra.mxu1 %v9489_v54  ;;  %v11967_v28 = vld [vmem:[#allocation31_spill] sm:$0xff] }
 0x6ff   :  { %3662 = vmatprep.subr.bf16.mxu0 %v11880_v5  ;;  %3703 = vmatprep.subr.bf16.mxu1 %v11960_v15  ;;  %v11968_v15 = vld [vmem:[#allocation15_spill] sm:$0xff]  ;;  %v11977_v5 = vld [vmem:[#allocation41_spill] sm:$0xff] }
 0x702   :  { %3663 = vmatpush2.bf16.msra.mxu0 %v9427_v37  ;;  %3704 = vmatpush2.bf16.msra.mxu1 %v11961_v19  ;;  %v11969_v37 = vld [vmem:[#allocation33_spill] sm:$0xff]  ;;  %v11970_v19 = vld [vmem:[#allocation16_spill] sm:$0xff] }
 0x703   :  { %3664 = vmatprep.subr.bf16.mxu0 %v11962_v24  ;;  %3705 = vmatprep.subr.bf16.mxu1 %v11963_v27  ;;  %v11971_v24 = vld [vmem:[#allocation35_spill] sm:$0xff]  ;;  %v11972_v27 = vld [vmem:[#allocation17_spill] sm:$0xff] }
 0x706   :  { %3665 = vmatpush2.bf16.msra.mxu0 %v11964_v38  ;;  %3706 = vmatpush2.bf16.msra.mxu1 %v11965_v20  ;;  %v11973_v38 = vld [vmem:[#allocation37_spill] sm:$0xff]  ;;  %v11974_v20 = vld [vmem:[#allocation18_spill] sm:$0xff] }
 0x707   :  { %3834 = vmatprep.subr.bf16.mxu0 %v11966_v61  ;;  %3875 = vmatprep.subr.bf16.mxu1 %v11967_v28  ;;  %v11975_v61 = vld [vmem:[#allocation39_spill] sm:$0xff] }
 0x708   :  { %v11976_v28 = vld [vmem:[#allocation19_spill] sm:$0xff] }
 0x709   :  { %3667 = vmatmul.mubr.bf16.vlgmr.msra.gmra.mxu0 %v9806_v11  ;;  %3708 = vmatmul.mubr.bf16.vlgmr.msra.gmra.mxu1 %v9806_v11  ;;  %v11978_v11 = vld [vmem:[#allocation20_spill] sm:$0xff] }
 0x70a   :  { %3835 = vmatpush1.bf16.msra.mxu0 %v11968_v15  ;;  %3876 = vmatpush1.bf16.msra.mxu1 %v11969_v37  ;;  %v11979_v15 = vld [vmem:[#allocation43_spill] sm:$0xff]  ;;  %v11980_v37 = vld [vmem:[#allocation21_spill] sm:$0xff] }
 0x70b   :  { %3836 = vmatprep.subr.bf16.mxu0 %v11970_v19  ;;  %3877 = vmatprep.subr.bf16.mxu1 %v11971_v24  ;;  %v11981_v19 = vld [vmem:[#allocation45_spill] sm:$0xff]  ;;  %v11982_v24 = vld [vmem:[#allocation22_spill] sm:$0xff] }
 0x70e   :  { %3837 = vmatpush1.bf16.msra.mxu0 %v11972_v27  ;;  %3878 = vmatpush1.bf16.msra.mxu1 %v11973_v38  ;;  %v11983_v27 = vld [vmem:[#allocation47_spill] sm:$0xff] }
 0x70f   :  { %3838 = vmatprep.subr.bf16.mxu0 %v11974_v20  ;;  %3879 = vmatprep.subr.bf16.mxu1 %v11975_v61  ;;  %v11984_v38 = vld [vmem:[#allocation23_spill] sm:$0xff]  ;;  %v11985_v20 = vld [vmem:[#allocation49_spill] sm:$0xff]  ;;  %v11986_v61 = vld [vmem:[#allocation24_spill] sm:$0xff] }
 0x712   :  { %3839 = vmatpush1.bf16.msra.mxu0 %v11976_v28  ;;  %3880 = vmatpush1.bf16.msra.mxu1 %v11977_v5  ;;  %v11987_v28 = vld [vmem:[#allocation51_spill] sm:$0xff]  ;;  %v11988_v5 = vld [vmem:[#allocation25_spill] sm:$0xff] }
 0x713   :  { %3840 = vmatprep.subr.bf16.mxu0 %v11978_v11  ;;  %3881 = vmatprep.subr.bf16.mxu1 %v11979_v15  ;;  %v11989_v11 = vld [vmem:[#allocation53_spill] sm:$0xff]  ;;  %v11990_v15 = vld [vmem:[#allocation26_spill] sm:$0xff] }
 0x716   :  { %3841 = vmatpush1.bf16.msra.mxu0 %v11980_v37  ;;  %3882 = vmatpush1.bf16.msra.mxu1 %v11981_v19  ;;  %v11991_v37 = vld [vmem:[#allocation55_spill] sm:$0xff] }
 0x717   :  { %3842 = vmatprep.subr.bf16.mxu0 %v11982_v24  ;;  %3883 = vmatprep.subr.bf16.mxu1 %v11983_v27  ;;  %v11992_v19 = vld [vmem:[#allocation27_spill] sm:$0xff]  ;;  %v11993_v24 = vld [vmem:[#allocation57_spill] sm:$0xff]  ;;  %v11994_v27 = vld [vmem:[#allocation28_spill] sm:$0xff] }
 0x71a   :  { %3843 = vmatpush1.bf16.msra.mxu0 %v11984_v38  ;;  %3884 = vmatpush1.bf16.msra.mxu1 %v11985_v20  ;;  %v11995_v38 = vld [vmem:[#allocation59_spill] sm:$0xff]  ;;  %v11996_v20 = vld [vmem:[#allocation29_spill] sm:$0xff] }
 0x71b   :  { %3844 = vmatprep.subr.bf16.mxu0 %v11986_v61  ;;  %3885 = vmatprep.subr.bf16.mxu1 %v11987_v28  ;;  %v11997_v61 = vld [vmem:[#allocation61_spill] sm:$0xff]  ;;  %v11998_v28 = vld [vmem:[#allocation30_spill] sm:$0xff] }
 0x71e   :  { %3845 = vmatpush1.bf16.msra.mxu0 %v11988_v5  ;;  %3886 = vmatpush1.bf16.msra.mxu1 %v11989_v11  ;;  %v11999_v5 = vld [vmem:[#allocation62_spill] sm:$0xff]  ;;  %v12000_v11 = vld [vmem:[#allocation32_spill] sm:$0xff] }
 0x71f   :  { %3846 = vmatprep.subr.bf16.mxu0 %v11990_v15  ;;  %3887 = vmatprep.subr.bf16.mxu1 %v11991_v37  ;;  %v12001_v15 = vld [vmem:[#allocation64_spill] sm:$0xff]  ;;  %v12002_v37 = vld [vmem:[#allocation34_spill] sm:$0xff] }
 0x722   :  { %3847 = vmatpush1.bf16.msra.mxu0 %v11992_v19  ;;  %3888 = vmatpush1.bf16.msra.mxu1 %v11993_v24  ;;  %v12003_v19 = vld [vmem:[#allocation66_spill] sm:$0xff]  ;;  %v12004_v24 = vld [vmem:[#allocation36_spill] sm:$0xff] }
 0x723   :  { %3848 = vmatprep.subr.bf16.mxu0 %v11994_v27  ;;  %3889 = vmatprep.subr.bf16.mxu1 %v11995_v38  ;;  %v12005_v27 = vld [vmem:[#allocation68_spill] sm:$0xff]  ;;  %v12006_v38 = vld [vmem:[#allocation38_spill] sm:$0xff] }
 0x726   :  { %3849 = vmatpush1.bf16.msra.mxu0 %v11996_v20  ;;  %3890 = vmatpush1.bf16.msra.mxu1 %v11997_v61  ;;  %v12007_v20 = vld [vmem:[#allocation70_spill] sm:$0xff]  ;;  %v12008_v61 = vld [vmem:[#allocation40_spill] sm:$0xff] }
 0x727   :  { %3850 = vmatprep.subr.bf16.mxu0 %v11998_v28  ;;  %3891 = vmatprep.subr.bf16.mxu1 %v11999_v5  ;;  %v12009_v28 = vld [vmem:[#allocation72_spill] sm:$0xff]  ;;  %v12010_v5 = vld [vmem:[#allocation42_spill] sm:$0xff] }
 0x72a   :  { %3851 = vmatpush2.bf16.msra.mxu0 %v12000_v11  ;;  %3892 = vmatpush2.bf16.msra.mxu1 %v12001_v15  ;;  %v12011_v11 = vld [vmem:[#allocation74_spill] sm:$0xff]  ;;  %v12012_v15 = vld [vmem:[#allocation44_spill] sm:$0xff] }
 0x72b   :  { %3852 = vmatprep.subr.bf16.mxu0 %v12002_v37  ;;  %3893 = vmatprep.subr.bf16.mxu1 %v12003_v19  ;;  %v12013_v37 = vld [vmem:[#allocation76_spill] sm:$0xff]  ;;  %v12014_v19 = vld [vmem:[#allocation46_spill] sm:$0xff] }
 0x72e   :  { %3853 = vmatpush2.bf16.msra.mxu0 %v12004_v24  ;;  %3894 = vmatpush2.bf16.msra.mxu1 %v12005_v27  ;;  %v12015_v24 = vld [vmem:[#allocation78_spill] sm:$0xff]  ;;  %v12016_v27 = vld [vmem:[#allocation48_spill] sm:$0xff] }
 0x72f   :  { %3854 = vmatprep.subr.bf16.mxu0 %v12006_v38  ;;  %3895 = vmatprep.subr.bf16.mxu1 %v12007_v20  ;;  %v12017_v38 = vld [vmem:[#allocation80_spill] sm:$0xff]  ;;  %v12018_v20 = vld [vmem:[#allocation50_spill] sm:$0xff] }
 0x732   :  { %3855 = vmatpush2.bf16.msra.mxu0 %v12008_v61  ;;  %3896 = vmatpush2.bf16.msra.mxu1 %v12009_v28  ;;  %v12019_v61 = vld [vmem:[#allocation82_spill] sm:$0xff]  ;;  %v12020_v28 = vld [vmem:[#allocation52_spill] sm:$0xff] }
 0x733   :  { %3856 = vmatprep.subr.bf16.mxu0 %v12010_v5  ;;  %3897 = vmatprep.subr.bf16.mxu1 %v12011_v11  ;;  %v12021_v5 = vld [vmem:[#allocation84_spill] sm:$0xff]  ;;  %v12022_v11 = vld [vmem:[#allocation54_spill] sm:$0xff] }
 0x736   :  { %3857 = vmatpush2.bf16.msra.mxu0 %v12012_v15  ;;  %3898 = vmatpush2.bf16.msra.mxu1 %v12013_v37  ;;  %v12023_v15 = vld [vmem:[#allocation86_spill] sm:$0xff]  ;;  %v12024_v37 = vld [vmem:[#allocation56_spill] sm:$0xff] }
 0x737   :  { %3858 = vmatprep.subr.bf16.mxu0 %v12014_v19  ;;  %3899 = vmatprep.subr.bf16.mxu1 %v12015_v24  ;;  %v12025_v19 = vld [vmem:[#allocation88_spill] sm:$0xff]  ;;  %v12026_v24 = vld [vmem:[#allocation58_spill] sm:$0xff] }
 0x73a   :  { %3859 = vmatpush2.bf16.msra.mxu0 %v12016_v27  ;;  %3900 = vmatpush2.bf16.msra.mxu1 %v12017_v38  ;;  %v12027_v27 = vld [vmem:[#allocation90_spill] sm:$0xff]  ;;  %v12028_v38 = vld [vmem:[#allocation60_spill] sm:$0xff] }
 0x73b   :  { %3860 = vmatprep.subr.bf16.mxu0 %v12018_v20  ;;  %3901 = vmatprep.subr.bf16.mxu1 %v12019_v61  ;;  %v12029_v20 = vld [vmem:[#allocation92_spill] sm:$0xff]  ;;  %v12030_v61 = vld [vmem:[#allocation63_spill] sm:$0xff] }
 0x73e   :  { %3861 = vmatpush2.bf16.msra.mxu0 %v12020_v28  ;;  %3902 = vmatpush2.bf16.msra.mxu1 %v12021_v5  ;;  %v12031_v28 = vld [vmem:[#allocation95_spill] sm:$0xff] }
 0x73f   :  { %3862 = vmatprep.subr.bf16.mxu0 %v12022_v11  ;;  %3903 = vmatprep.subr.bf16.mxu1 %v12023_v15 }
 0x742   :  { %3863 = vmatpush2.bf16.msra.mxu0 %v12024_v37  ;;  %3904 = vmatpush2.bf16.msra.mxu1 %v12025_v19 }
 0x743   :  { %3864 = vmatprep.subr.bf16.mxu0 %v12026_v24  ;;  %3905 = vmatprep.subr.bf16.mxu1 %v12027_v27 }
 0x746   :  { %3865 = vmatpush2.bf16.msra.mxu0 %v12028_v38  ;;  %3906 = vmatpush2.bf16.msra.mxu1 %v12029_v20  ;;  %v12032_v20 = vld [vmem:[#allocation142_spill] sm:$0xff] }
 0x747   :  { %3916 = vmatprep.subr.bf16.mxu0 %v12030_v61  ;;  %3957 = vmatprep.subr.bf16.mxu1 %v12031_v28  ;;  %v11659_v53 = vrot.slane %v12032_v20, 3 }
 0x789   :  { %v3586_v5 = vpop.f32.mrf.mxu0  ;;  %v3627_v11 = vpop.f32.mrf.mxu1 }
 0x78a   :  { %v3724_v59 = vrot.slane %v3586_v5, 6  ;;  %v3726_v24 = vrot.slane %v3627_v11, 6 }
 0x78b   :  { %v3588_v54 = vpop.f32.mrf.mxu0  ;;  %v3629_v15 = vpop.f32.mrf.mxu1 }
 0x78c   :  { %v3725_v56 = vrot.slane %v3588_v54, 6  ;;  %v3740_v27 = vadd.f32 %v3724_v59, %v9586_v63  ;;  %v3742_v38 = vadd.f32 %v3726_v24, %v9592_v2  ;;  %v3727_v61 = vrot.slane %v3629_v15, 6 }
 0x78d   :  { %v3590_v31 = vpop.f32.mrf.mxu0  ;;  %v3631_v37 = vpop.f32.mrf.mxu1 }
 0x78e   :  { %v3741_v28 = vadd.f32 %v3725_v56, %v11659_v53  ;;  %v7168_v44 = vmul.f32 -1.442695, %v3740_v27  ;;  %v7170_v31 = vmul.f32 -1.442695, %v3742_v38  ;;  %v3743_v37 = vadd.f32 %v3727_v61, %v11661_v40 }
 0x78f   :  { %v3591_v62 = vpop.f32.mrf.mxu0  ;;  %v3632_v19 = vpop.f32.mrf.mxu1 }
 0x790   :  { %v7169_v19 = vmul.f32 -1.442695, %v3741_v28  ;;  %7885 = vpow2.f32 %v7168_v44  ;;  %v7171_v54 = vmul.f32 -1.442695, %v3743_v37  ;;  %v11662_v28 = vrot.slane %v9605_v1, 3 }
 0x791   :  { %7887 = vpow2.f32 %v7170_v31  ;;  %v11663_v31 = vrot.slane %v9617_v8, 3 }
 0x792   :  { %7889 = vpow2.f32 %v7169_v19 }
 0x793   :  { %7891 = vpow2.f32 %v7171_v54 }
 0x79d   :  { %v7886_v24 = vpop.eup %7885 }
 0x79e   :  { %v7888_v59 = vpop.eup %7887  ;;  %v3754_v15 = vadd.f32 1.0, %v7886_v24 }
 0x79f   :  { %v7890_v5 = vpop.eup %7889  ;;  %v3766_v62 = vadd.f32 1.0, %v7888_v59 }
 0x7a0   :  { %v7892_v11 = vpop.eup %7891  ;;  %v3755_v56 = vadd.f32 1.0, %v7890_v5  ;;  %7893 = vrcp.f32 %v3754_v15 }
 0x7a1   :  { %7895 = vrcp.f32 %v3766_v62  ;;  %v3767_v61 = vadd.f32 1.0, %v7892_v11 }
 0x7a2   :  { %7897 = vrcp.f32 %v3755_v56 }
 0x7c9   :  { %v3668_v53 = vpop.f32.mrf.mxu0  ;;  %v3709_v20 = vpop.f32.mrf.mxu1 }
 0x7ca   :  { %v3728_v38 = vrot.slane %v3668_v53, 6  ;;  %v3730_v27 = vrot.slane %v3709_v20, 6 }
 0x7cb   :  { %v3670_v44 = vpop.f32.mrf.mxu0  ;;  %v3711_v37 = vpop.f32.mrf.mxu1 }
 0x7cc   :  { %v3744_v19 = vadd.f32 %v3728_v38, %v9609_v14  ;;  %v3746_v54 = vadd.f32 %v3730_v27, %v9620_v51  ;;  %v3729_v24 = vrot.slane %v3670_v44, 6  ;;  %v3731_v59 = vrot.slane %v3711_v37, 6  ;;  %v7894_v27 = vpop.eup %7893 }
 0x7cd   :  { %v3672_v5 = vpop.f32.mrf.mxu0  ;;  %v3713_v40 = vpop.f32.mrf.mxu1 }
 0x7ce   :  { %7899 = vtanh.f32 %v3744_v19  ;;  %v7172_v53 = vmul.f32 -1.442695, %v3746_v54  ;;  %v3745_v20 = vadd.f32 %v3729_v24, %v11662_v28  ;;  %v3747_v15 = vadd.f32 %v3731_v59, %v11663_v31  ;;  %v7896_v44 = vpop.eup %7895  ;;  %v12051_v31 = vld [vmem:[#allocation136_spill] sm:$0xff] }
 0x7cf   :  { %7901 = vrcp.f32 %v3767_v61  ;;  %v3673_v62 = vpop.f32.mrf.mxu0  ;;  %v3714_v11 = vpop.f32.mrf.mxu1  ;;  %v3788_v40 = vrot.slane %v9792_v4, 7  ;;  %v3789_v28 = vrot.slane %v9795_v0, 7 }
 0x7d0   :  { %7903 = vpow2.f32 %v7172_v53  ;;  %v7173_v38 = vmul.f32 -1.442695, %v3747_v15  ;;  %v7898_v56 = vpop.eup %7897 }
 0x7d1   :  { %7905 = vtanh.f32 %v3745_v20  ;;  %v3792_v54 = vmul.f32 %v7896_v44, %v3788_v40 }
 0x7d2   :  { %7907 = vpow2.f32 %v7173_v38 }
 0x7db   :  { %v7900_v37 = vpop.eup %7899 }
 0x7dc   :  { %v7902_v19 = vpop.eup %7901  ;;  %v3794_v5 = vmul.f32 %v7900_v37, %v7894_v27  ;;  %v12033_v37 = vld [vmem:[#allocation143_spill] sm:$0xff] }
 0x7dd   :  { %v7904_v24 = vpop.eup %7903  ;;  %v3793_v15 = vmul.f32 %v7902_v19, %v3789_v28 }
 0x7de   :  { %v7906_v59 = vpop.eup %7905  ;;  %v9958_v61 = vadd.f32 %v3794_v5, %v3792_v54  ;;  %v3780_v62 = vadd.f32 1.0, %v7904_v24  ;;  %v5124_v54 = vsel %vm248_vm4, %v12033_v37, %v9798_v3  ;;  %v12035_v3 = vld [vmem:[#allocation128_spill] sm:$0xff]  ;;  %v12046_v37 = vld [vmem:[#allocation110_spill] sm:$0xff] }
 0x7df   :  { %v7908_v53 = vpop.eup %7907  ;;  %v3795_v20 = vmul.f32 %v7906_v59, %v7898_v56 }
 0x7e0   :  { %7909 = vtanh.f32 %v9958_v61  ;;  %v3781_v11 = vadd.f32 1.0, %v7908_v53  ;;  %v12037_v53 = vld [vmem:[#allocation129_spill] sm:$0xff] }
 0x7e1   :  { %7911 = vrcp.f32 %v3780_v62  ;;  %v9961_v38 = vadd.f32 %v3795_v20, %v3793_v15  ;;  %v12036_v62 = vld [vmem:[#allocation100_spill] sm:$0xff]  ;;  %v12038_v15 = vld [vmem:[#allocation102_spill] sm:$0xff] }
 0x7e2   :  { %7913 = vrcp.f32 %v3781_v11  ;;  %v12039_v20 = vld [vmem:[#allocation130_spill] sm:$0xff]  ;;  %v12040_v11 = vld [vmem:[#allocation104_spill] sm:$0xff] }
 0x7e3   :  { %7915 = vtanh.f32 %v9961_v38 }
 0x7ed   :  { %v7910_v4 = vpop.eup %7909 }
 0x7ee   :  { %v7912_v27 = vpop.eup %7911 }
 0x7ef   :  { %v7914_v44 = vpop.eup %7913  ;;  %v3800_v0 = vmul.f32 %v7912_v27, %v7910_v4  ;;  %v12041_v4 = vld [vmem:[#allocation131_spill] sm:$0xff]  ;;  %v12042_v27 = vld [vmem:[#allocation106_spill] sm:$0xff] }
 0x7f0   :  { %v7916_v40 = vpop.eup %7915 }
 0x7f1   :  { %v9967_v28 = vmul.f32 %v7916_v40, %v7914_v44  ;;  %v9970_v56 = vsel %vm250_vm5, %v5124_v54, %v3800_v0  ;;  %v3826_v19 = vpack.c.bf16 %v3800_v0, %v3800_v0  ;;  %v12043_v44 = vld [vmem:[#allocation132_spill] sm:$0xff]  ;;  %v12045_v40 = vld [vmem:[#allocation133_spill] sm:$0xff]  ;;  %v12047_v54 = vld [vmem:[#allocation134_spill] sm:$0xff] }
 0x7f2   :  { %v12044_v0 = vld [vmem:[#allocation108_spill] sm:$0xff] }
 0x7f3   :  { %12034 = vst [vmem:[#allocation97_spill] sm:$0xff] %v9967_v28  ;;  %v3827_v5 = vpack.c.bf16 %v9967_v28, %v9967_v28  ;;  %v9974_v59 = vrot.slane %v3826_v19, 1  ;;  %v12048_v19 = vld [vmem:[#allocation112_spill] sm:$0xff] }
 0x7f4   :  { %v12052_v28 = vld [vmem:[#allocation116_spill] sm:$0xff] }
 0x7f5   :  { %v3831_v24 = vrot.slane %v3827_v5, 1  ;;  %v12049_v5 = vld [vmem:[#allocation135_spill] sm:$0xff] }
 0x7f7   :  { %3866 = vmatprep.mubr.bf16.mxu0 %v3831_v24  ;;  %3907 = vmatprep.mubr.bf16.mxu1 %v3831_v24 }
 0x7f8   :  { %3867 = vmatmul.mubr.bf16.vlgmr.msra.gmra.mxu0 %v9974_v59  ;;  %3908 = vmatmul.mubr.bf16.vlgmr.msra.gmra.mxu1 %v9974_v59 }
 0x7f9   :  { %3917 = vmatpush1.bf16.msra.mxu0 %v11845_v10  ;;  %3958 = vmatpush1.bf16.msra.mxu1 %v11846_v34 }
 0x7fa   :  { %3948 = vmatprep.mubr.bf16.mxu0 %v3831_v24  ;;  %3989 = vmatprep.mubr.bf16.mxu1 %v3831_v24  ;;  %v12050_v24 = vld [vmem:[#allocation114_spill] sm:$0xff] }
 0x7fb   :  { %3918 = vmatprep.subr.bf16.mxu0 %v11847_v12  ;;  %3959 = vmatprep.subr.bf16.mxu1 %v11848_v55 }
 0x7fd   :  { %3919 = vmatpush1.bf16.msra.mxu0 %v11849_v33  ;;  %3960 = vmatpush1.bf16.msra.mxu1 %v11850_v43 }
 0x7fe   :  { %3920 = vmatprep.subr.bf16.mxu0 %v11851_v36  ;;  %3961 = vmatprep.subr.bf16.mxu1 %v11852_v9 }
 0x801   :  { %3921 = vmatpush1.bf16.msra.mxu0 %v11853_v32  ;;  %3962 = vmatpush1.bf16.msra.mxu1 %v11854_v48 }
 0x802   :  { %3922 = vmatprep.subr.bf16.mxu0 %v11855_v6  ;;  %3963 = vmatprep.subr.bf16.mxu1 %v11940_v29 }
 0x805   :  { %3923 = vmatpush1.bf16.msra.mxu0 %v11857_v60  ;;  %3964 = vmatpush1.bf16.msra.mxu1 %v11941_v7 }
 0x806   :  { %3924 = vmatprep.subr.bf16.mxu0 %v11859_v35  ;;  %3965 = vmatprep.subr.bf16.mxu1 %v11942_v23 }
 0x809   :  { %3925 = vmatpush1.bf16.msra.mxu0 %v11861_v30  ;;  %3966 = vmatpush1.bf16.msra.mxu1 %v11943_v52 }
 0x80a   :  { %3926 = vmatprep.subr.bf16.mxu0 %v11862_v42  ;;  %3967 = vmatprep.subr.bf16.mxu1 %v11944_v26 }
 0x80d   :  { %3927 = vmatpush1.bf16.msra.mxu0 %v11863_v57  ;;  %3968 = vmatpush1.bf16.msra.mxu1 %v11945_v13 }
 0x80e   :  { %3928 = vmatprep.subr.bf16.mxu0 %v11864_v22  ;;  %3969 = vmatprep.subr.bf16.mxu1 %v11946_v25 }
 0x811   :  { %3929 = vmatpush1.bf16.msra.mxu0 %v11865_v46  ;;  %3970 = vmatpush1.bf16.msra.mxu1 %v11947_v58 }
 0x812   :  { %3930 = vmatprep.subr.bf16.mxu0 %v11866_v50  ;;  %3971 = vmatprep.subr.bf16.mxu1 %v11948_v41 }
 0x815   :  { %3931 = vmatpush1.bf16.msra.mxu0 %v11867_v16  ;;  %3972 = vmatpush1.bf16.msra.mxu1 %v11949_v17 }
 0x816   :  { %3932 = vmatprep.subr.bf16.mxu0 %v11868_v47  ;;  %3973 = vmatprep.subr.bf16.mxu1 %v11950_v39 }
 0x819   :  { %3933 = vmatpush2.bf16.msra.mxu0 %v11869_v21  ;;  %3974 = vmatpush2.bf16.msra.mxu1 %v11951_v45 }
 0x81a   :  { %3934 = vmatprep.subr.bf16.mxu0 %v11870_v18  ;;  %3975 = vmatprep.subr.bf16.mxu1 %v12035_v3 }
 0x81d   :  { %3935 = vmatpush2.bf16.msra.mxu0 %v12036_v62  ;;  %3976 = vmatpush2.bf16.msra.mxu1 %v12037_v53  ;;  %v11667_v62 = vrot.slane %v9590_v49, 1 }
 0x81e   :  { %3936 = vmatprep.subr.bf16.mxu0 %v12038_v15  ;;  %3977 = vmatprep.subr.bf16.mxu1 %v12039_v20 }
 0x821   :  { %3937 = vmatpush2.bf16.msra.mxu0 %v12040_v11  ;;  %3978 = vmatpush2.bf16.msra.mxu1 %v12041_v4 }
 0x822   :  { %3938 = vmatprep.subr.bf16.mxu0 %v12042_v27  ;;  %3979 = vmatprep.subr.bf16.mxu1 %v12043_v44  ;;  %v12053_v27 = vld [vmem:[#allocation137_spill] sm:$0xff]  ;;  %v12054_v44 = vld [vmem:[#allocation118_spill] sm:$0xff] }
 0x825   :  { %3939 = vmatpush2.bf16.msra.mxu0 %v12044_v0  ;;  %3980 = vmatpush2.bf16.msra.mxu1 %v12045_v40  ;;  %v12055_v0 = vld [vmem:[#allocation138_spill] sm:$0xff]  ;;  %v12056_v40 = vld [vmem:[#allocation120_spill] sm:$0xff] }
 0x826   :  { %3940 = vmatprep.subr.bf16.mxu0 %v12046_v37  ;;  %3981 = vmatprep.subr.bf16.mxu1 %v12047_v54  ;;  %v12057_v37 = vld [vmem:[#allocation139_spill] sm:$0xff]  ;;  %v12058_v54 = vld [vmem:[#allocation122_spill] sm:$0xff] }
 0x829   :  { %3941 = vmatpush2.bf16.msra.mxu0 %v12048_v19  ;;  %3982 = vmatpush2.bf16.msra.mxu1 %v12049_v5  ;;  %v12059_v19 = vld [vmem:[#allocation140_spill] sm:$0xff] }
 0x82a   :  { %3942 = vmatprep.subr.bf16.mxu0 %v12050_v24  ;;  %3983 = vmatprep.subr.bf16.mxu1 %v12051_v31  ;;  %v12060_v5 = vld [vmem:[#allocation124_spill] sm:$0xff]  ;;  %v12061_v24 = vld [vmem:[#allocation141_spill] sm:$0xff]  ;;  %v12062_v31 = vld [vmem:[#allocation14_spill] sm:$0xff] }
 0x82d   :  { %3943 = vmatpush2.bf16.msra.mxu0 %v12052_v28  ;;  %3984 = vmatpush2.bf16.msra.mxu1 %v12053_v27  ;;  %v12063_v28 = vld [vmem:[#allocation31_spill] sm:$0xff] }
 0x82e   :  { %3944 = vmatprep.subr.bf16.mxu0 %v12054_v44  ;;  %3985 = vmatprep.subr.bf16.mxu1 %v12055_v0  ;;  %v12064_v0 = vld [vmem:[#allocation15_spill] sm:$0xff]  ;;  %v12073_v44 = vld [vmem:[#allocation41_spill] sm:$0xff] }
 0x831   :  { %3945 = vmatpush2.bf16.msra.mxu0 %v12056_v40  ;;  %3986 = vmatpush2.bf16.msra.mxu1 %v12057_v37  ;;  %v12065_v40 = vld [vmem:[#allocation33_spill] sm:$0xff]  ;;  %v12066_v37 = vld [vmem:[#allocation16_spill] sm:$0xff] }
 0x832   :  { %3946 = vmatprep.subr.bf16.mxu0 %v12058_v54  ;;  %3987 = vmatprep.subr.bf16.mxu1 %v12059_v19  ;;  %v12067_v54 = vld [vmem:[#allocation35_spill] sm:$0xff]  ;;  %v12068_v19 = vld [vmem:[#allocation17_spill] sm:$0xff] }
 0x835   :  { %3947 = vmatpush2.bf16.msra.mxu0 %v12060_v5  ;;  %3988 = vmatpush2.bf16.msra.mxu1 %v12061_v24  ;;  %v12069_v5 = vld [vmem:[#allocation37_spill] sm:$0xff]  ;;  %v12070_v24 = vld [vmem:[#allocation18_spill] sm:$0xff] }
 0x836   :  { %4096 = vmatprep.subr.bf16.mxu0 %v12062_v31  ;;  %4137 = vmatprep.subr.bf16.mxu1 %v12063_v28  ;;  %v12071_v31 = vld [vmem:[#allocation39_spill] sm:$0xff] }
 0x837   :  { %v12072_v28 = vld [vmem:[#allocation19_spill] sm:$0xff] }
 0x838   :  { %3949 = vmatmul.mubr.bf16.vlgmr.msra.gmra.mxu0 %v9974_v59  ;;  %3990 = vmatmul.mubr.bf16.vlgmr.msra.gmra.mxu1 %v9974_v59  ;;  %v12074_v59 = vld [vmem:[#allocation20_spill] sm:$0xff] }
 0x839   :  { %4097 = vmatpush1.bf16.msra.mxu0 %v12064_v0  ;;  %4138 = vmatpush1.bf16.msra.mxu1 %v12065_v40  ;;  %v12075_v0 = vld [vmem:[#allocation43_spill] sm:$0xff]  ;;  %v12076_v40 = vld [vmem:[#allocation21_spill] sm:$0xff] }
 0x83a   :  { %4098 = vmatprep.subr.bf16.mxu0 %v12066_v37  ;;  %4139 = vmatprep.subr.bf16.mxu1 %v12067_v54  ;;  %v12077_v37 = vld [vmem:[#allocation45_spill] sm:$0xff]  ;;  %v12078_v54 = vld [vmem:[#allocation22_spill] sm:$0xff] }
 0x83d   :  { %4099 = vmatpush1.bf16.msra.mxu0 %v12068_v19  ;;  %4140 = vmatpush1.bf16.msra.mxu1 %v12069_v5  ;;  %v12079_v19 = vld [vmem:[#allocation47_spill] sm:$0xff] }
 0x83e   :  { %4100 = vmatprep.subr.bf16.mxu0 %v12070_v24  ;;  %4141 = vmatprep.subr.bf16.mxu1 %v12071_v31  ;;  %v12080_v5 = vld [vmem:[#allocation23_spill] sm:$0xff]  ;;  %v12081_v24 = vld [vmem:[#allocation49_spill] sm:$0xff]  ;;  %v12082_v31 = vld [vmem:[#allocation24_spill] sm:$0xff] }
 0x841   :  { %4101 = vmatpush1.bf16.msra.mxu0 %v12072_v28  ;;  %4142 = vmatpush1.bf16.msra.mxu1 %v12073_v44  ;;  %v12083_v28 = vld [vmem:[#allocation51_spill] sm:$0xff]  ;;  %v12084_v44 = vld [vmem:[#allocation25_spill] sm:$0xff] }
 0x842   :  { %4102 = vmatprep.subr.bf16.mxu0 %v12074_v59  ;;  %4143 = vmatprep.subr.bf16.mxu1 %v12075_v0  ;;  %v12085_v59 = vld [vmem:[#allocation53_spill] sm:$0xff]  ;;  %v12086_v0 = vld [vmem:[#allocation26_spill] sm:$0xff] }
 0x845   :  { %4103 = vmatpush1.bf16.msra.mxu0 %v12076_v40  ;;  %4144 = vmatpush1.bf16.msra.mxu1 %v12077_v37  ;;  %v12087_v40 = vld [vmem:[#allocation55_spill] sm:$0xff] }
 0x846   :  { %4104 = vmatprep.subr.bf16.mxu0 %v12078_v54  ;;  %4145 = vmatprep.subr.bf16.mxu1 %v12079_v19  ;;  %v12088_v37 = vld [vmem:[#allocation27_spill] sm:$0xff]  ;;  %v12089_v54 = vld [vmem:[#allocation57_spill] sm:$0xff]  ;;  %v12090_v19 = vld [vmem:[#allocation28_spill] sm:$0xff] }
 0x849   :  { %4105 = vmatpush1.bf16.msra.mxu0 %v12080_v5  ;;  %4146 = vmatpush1.bf16.msra.mxu1 %v12081_v24  ;;  %v12091_v5 = vld [vmem:[#allocation59_spill] sm:$0xff]  ;;  %v12092_v24 = vld [vmem:[#allocation29_spill] sm:$0xff] }
 0x84a   :  { %4106 = vmatprep.subr.bf16.mxu0 %v12082_v31  ;;  %4147 = vmatprep.subr.bf16.mxu1 %v12083_v28  ;;  %v12093_v31 = vld [vmem:[#allocation61_spill] sm:$0xff]  ;;  %v12094_v28 = vld [vmem:[#allocation30_spill] sm:$0xff] }
 0x84d   :  { %4107 = vmatpush1.bf16.msra.mxu0 %v12084_v44  ;;  %4148 = vmatpush1.bf16.msra.mxu1 %v12085_v59  ;;  %v12095_v44 = vld [vmem:[#allocation62_spill] sm:$0xff]  ;;  %v12096_v59 = vld [vmem:[#allocation32_spill] sm:$0xff] }
 0x84e   :  { %4108 = vmatprep.subr.bf16.mxu0 %v12086_v0  ;;  %4149 = vmatprep.subr.bf16.mxu1 %v12087_v40  ;;  %v12097_v0 = vld [vmem:[#allocation64_spill] sm:$0xff]  ;;  %v12098_v40 = vld [vmem:[#allocation34_spill] sm:$0xff] }
 0x851   :  { %4109 = vmatpush1.bf16.msra.mxu0 %v12088_v37  ;;  %4150 = vmatpush1.bf16.msra.mxu1 %v12089_v54  ;;  %v12099_v37 = vld [vmem:[#allocation66_spill] sm:$0xff]  ;;  %v12100_v54 = vld [vmem:[#allocation36_spill] sm:$0xff] }
 0x852   :  { %4110 = vmatprep.subr.bf16.mxu0 %v12090_v19  ;;  %4151 = vmatprep.subr.bf16.mxu1 %v12091_v5  ;;  %v12101_v19 = vld [vmem:[#allocation68_spill] sm:$0xff]  ;;  %v12102_v5 = vld [vmem:[#allocation38_spill] sm:$0xff] }
 0x855   :  { %4111 = vmatpush1.bf16.msra.mxu0 %v12092_v24  ;;  %4152 = vmatpush1.bf16.msra.mxu1 %v12093_v31  ;;  %v12103_v24 = vld [vmem:[#allocation70_spill] sm:$0xff]  ;;  %v12104_v31 = vld [vmem:[#allocation40_spill] sm:$0xff] }
 0x856   :  { %4112 = vmatprep.subr.bf16.mxu0 %v12094_v28  ;;  %4153 = vmatprep.subr.bf16.mxu1 %v12095_v44  ;;  %v12105_v28 = vld [vmem:[#allocation72_spill] sm:$0xff]  ;;  %v12106_v44 = vld [vmem:[#allocation42_spill] sm:$0xff] }
 0x859   :  { %4113 = vmatpush2.bf16.msra.mxu0 %v12096_v59  ;;  %4154 = vmatpush2.bf16.msra.mxu1 %v12097_v0  ;;  %v12107_v59 = vld [vmem:[#allocation74_spill] sm:$0xff]  ;;  %v12108_v0 = vld [vmem:[#allocation44_spill] sm:$0xff] }
 0x85a   :  { %4114 = vmatprep.subr.bf16.mxu0 %v12098_v40  ;;  %4155 = vmatprep.subr.bf16.mxu1 %v12099_v37  ;;  %v12109_v40 = vld [vmem:[#allocation76_spill] sm:$0xff]  ;;  %v12110_v37 = vld [vmem:[#allocation46_spill] sm:$0xff] }
 0x85d   :  { %4115 = vmatpush2.bf16.msra.mxu0 %v12100_v54  ;;  %4156 = vmatpush2.bf16.msra.mxu1 %v12101_v19  ;;  %v12111_v54 = vld [vmem:[#allocation78_spill] sm:$0xff]  ;;  %v12112_v19 = vld [vmem:[#allocation48_spill] sm:$0xff] }
 0x85e   :  { %4116 = vmatprep.subr.bf16.mxu0 %v12102_v5  ;;  %4157 = vmatprep.subr.bf16.mxu1 %v12103_v24  ;;  %v12113_v5 = vld [vmem:[#allocation80_spill] sm:$0xff]  ;;  %v12114_v24 = vld [vmem:[#allocation50_spill] sm:$0xff] }
 0x861   :  { %4117 = vmatpush2.bf16.msra.mxu0 %v12104_v31  ;;  %4158 = vmatpush2.bf16.msra.mxu1 %v12105_v28  ;;  %v12115_v31 = vld [vmem:[#allocation82_spill] sm:$0xff]  ;;  %v12116_v28 = vld [vmem:[#allocation52_spill] sm:$0xff] }
 0x862   :  { %4118 = vmatprep.subr.bf16.mxu0 %v12106_v44  ;;  %4159 = vmatprep.subr.bf16.mxu1 %v12107_v59  ;;  %v12117_v44 = vld [vmem:[#allocation84_spill] sm:$0xff]  ;;  %v12118_v59 = vld [vmem:[#allocation54_spill] sm:$0xff] }
 0x865   :  { %4119 = vmatpush2.bf16.msra.mxu0 %v12108_v0  ;;  %4160 = vmatpush2.bf16.msra.mxu1 %v12109_v40  ;;  %v12119_v0 = vld [vmem:[#allocation86_spill] sm:$0xff]  ;;  %v12120_v40 = vld [vmem:[#allocation56_spill] sm:$0xff] }
 0x866   :  { %4120 = vmatprep.subr.bf16.mxu0 %v12110_v37  ;;  %4161 = vmatprep.subr.bf16.mxu1 %v12111_v54  ;;  %v12121_v37 = vld [vmem:[#allocation88_spill] sm:$0xff]  ;;  %v12122_v54 = vld [vmem:[#allocation58_spill] sm:$0xff] }
 0x869   :  { %4121 = vmatpush2.bf16.msra.mxu0 %v12112_v19  ;;  %4162 = vmatpush2.bf16.msra.mxu1 %v12113_v5  ;;  %v12123_v19 = vld [vmem:[#allocation90_spill] sm:$0xff]  ;;  %v12124_v5 = vld [vmem:[#allocation60_spill] sm:$0xff] }
 0x86a   :  { %4122 = vmatprep.subr.bf16.mxu0 %v12114_v24  ;;  %4163 = vmatprep.subr.bf16.mxu1 %v12115_v31  ;;  %v12125_v24 = vld [vmem:[#allocation92_spill] sm:$0xff]  ;;  %v12126_v31 = vld [vmem:[#allocation63_spill] sm:$0xff] }
 0x86d   :  { %4123 = vmatpush2.bf16.msra.mxu0 %v12116_v28  ;;  %4164 = vmatpush2.bf16.msra.mxu1 %v12117_v44  ;;  %v12127_v28 = vld [vmem:[#allocation95_spill] sm:$0xff] }
 0x86e   :  { %4124 = vmatprep.subr.bf16.mxu0 %v12118_v59  ;;  %4165 = vmatprep.subr.bf16.mxu1 %v12119_v0 }
 0x871   :  { %4125 = vmatpush2.bf16.msra.mxu0 %v12120_v40  ;;  %4166 = vmatpush2.bf16.msra.mxu1 %v12121_v37 }
 0x872   :  { %4126 = vmatprep.subr.bf16.mxu0 %v12122_v54  ;;  %4167 = vmatprep.subr.bf16.mxu1 %v12123_v19 }
 0x875   :  { %4127 = vmatpush2.bf16.msra.mxu0 %v12124_v5  ;;  %4168 = vmatpush2.bf16.msra.mxu1 %v12125_v24  ;;  %v12128_v24 = vld [vmem:[#allocation142_spill] sm:$0xff] }
 0x876   :  { %4178 = vmatprep.subr.bf16.mxu0 %v12126_v31  ;;  %4219 = vmatprep.subr.bf16.mxu1 %v12127_v28  ;;  %v11665_v53 = vrot.slane %v12128_v24, 1 }
 0x8b8   :  { %v3868_v44 = vpop.f32.mrf.mxu0  ;;  %v3909_v59 = vpop.f32.mrf.mxu1 }
 0x8b9   :  { %v4006_v20 = vrot.slane %v3868_v44, 5  ;;  %v4008_v54 = vrot.slane %v3909_v59, 5 }
 0x8ba   :  { %v3870_v27 = vpop.f32.mrf.mxu0  ;;  %v3911_v0 = vpop.f32.mrf.mxu1 }
 0x8bb   :  { %v4007_v15 = vrot.slane %v3870_v27, 5  ;;  %v4022_v19 = vadd.f32 %v4006_v20, %v9586_v63  ;;  %v4024_v5 = vadd.f32 %v4008_v54, %v9592_v2  ;;  %v4009_v31 = vrot.slane %v3911_v0, 5 }
 0x8bc   :  { %v3872_v4 = vpop.f32.mrf.mxu0  ;;  %v3913_v40 = vpop.f32.mrf.mxu1 }
 0x8bd   :  { %v4023_v28 = vadd.f32 %v4007_v15, %v11665_v53  ;;  %v7174_v3 = vmul.f32 -1.442695, %v4022_v19  ;;  %v7176_v4 = vmul.f32 -1.442695, %v4024_v5 }
 0x8be   :  { %v3873_v11 = vpop.f32.mrf.mxu0  ;;  %v3914_v37 = vpop.f32.mrf.mxu1 }
 0x8bf   :  { %v4025_v11 = vadd.f32 %v4009_v31, %v11667_v62  ;;  %v7175_v44 = vmul.f32 -1.442695, %v4023_v28  ;;  %7917 = vpow2.f32 %v7174_v3  ;;  %v11668_v28 = vrot.slane %v9605_v1, 1 }
 0x8c0   :  { %7919 = vpow2.f32 %v7176_v4  ;;  %v11669_v4 = vrot.slane %v9617_v8, 1 }
 0x8c1   :  { %v7177_v27 = vmul.f32 -1.442695, %v4025_v11  ;;  %7921 = vpow2.f32 %v7175_v44 }
 0x8c3   :  { %7923 = vpow2.f32 %v7177_v27 }
 0x8cc   :  { %v7918_v20 = vpop.eup %7917 }
 0x8cd   :  { %v7920_v40 = vpop.eup %7919  ;;  %v4036_v0 = vadd.f32 1.0, %v7918_v20 }
 0x8ce   :  { %v7922_v37 = vpop.eup %7921  ;;  %v4048_v54 = vadd.f32 1.0, %v7920_v40 }
 0x8cf   :  { %v4037_v15 = vadd.f32 1.0, %v7922_v37  ;;  %7925 = vrcp.f32 %v4036_v0 }
 0x8d0   :  { %v7924_v59 = vpop.eup %7923  ;;  %7927 = vrcp.f32 %v4048_v54 }
 0x8d1   :  { %v4049_v31 = vadd.f32 1.0, %v7924_v59  ;;  %7929 = vrcp.f32 %v4037_v15 }
 0x8f8   :  { %v3950_v53 = vpop.f32.mrf.mxu0  ;;  %v3991_v24 = vpop.f32.mrf.mxu1 }
 0x8f9   :  { %v4010_v19 = vrot.slane %v3950_v53, 5  ;;  %v4012_v5 = vrot.slane %v3991_v24, 5 }
 0x8fa   :  { %v3952_v3 = vpop.f32.mrf.mxu0  ;;  %v3993_v11 = vpop.f32.mrf.mxu1 }
 0x8fb   :  { %v4026_v44 = vadd.f32 %v4010_v19, %v9609_v14  ;;  %v4028_v27 = vadd.f32 %v4012_v5, %v9620_v51  ;;  %v4011_v20 = vrot.slane %v3952_v3, 5  ;;  %v4013_v40 = vrot.slane %v3993_v11, 5  ;;  %v7926_v5 = vpop.eup %7925 }
 0x8fc   :  { %v3954_v37 = vpop.f32.mrf.mxu0  ;;  %v3995_v62 = vpop.f32.mrf.mxu1 }
 0x8fd   :  { %7931 = vtanh.f32 %v4026_v44  ;;  %v7178_v53 = vmul.f32 -1.442695, %v4028_v27  ;;  %v4027_v24 = vadd.f32 %v4011_v20, %v11668_v28  ;;  %v4029_v0 = vadd.f32 %v4013_v40, %v11669_v4  ;;  %v7928_v3 = vpop.eup %7927  ;;  %v12146_v4 = vld [vmem:[#allocation136_spill] sm:$0xff] }
 0x8fe   :  { %7933 = vrcp.f32 %v4049_v31  ;;  %v3955_v54 = vpop.f32.mrf.mxu0  ;;  %v3996_v59 = vpop.f32.mrf.mxu1  ;;  %v4070_v62 = vrot.slane %v9958_v61, 7  ;;  %v4071_v28 = vrot.slane %v9961_v38, 7 }
 0x8ff   :  { %7935 = vpow2.f32 %v7178_v53  ;;  %v7179_v19 = vmul.f32 -1.442695, %v4029_v0  ;;  %v7930_v15 = vpop.eup %7929 }
 0x900   :  { %7937 = vtanh.f32 %v4027_v24  ;;  %v4074_v27 = vmul.f32 %v7928_v3, %v4070_v62 }
 0x901   :  { %7939 = vpow2.f32 %v7179_v19 }
 0x90a   :  { %v7932_v11 = vpop.eup %7931 }
 0x90b   :  { %v7934_v44 = vpop.eup %7933  ;;  %v4076_v37 = vmul.f32 %v7932_v11, %v7926_v5 }
 0x90c   :  { %v7936_v20 = vpop.eup %7935  ;;  %v4075_v0 = vmul.f32 %v7934_v44, %v4071_v28 }
 0x90d   :  { %v7938_v40 = vpop.eup %7937  ;;  %v10126_v31 = vadd.f32 %v4076_v37, %v4074_v27  ;;  %v4062_v54 = vadd.f32 1.0, %v7936_v20 }
 0x90e   :  { %v7940_v53 = vpop.eup %7939  ;;  %v4077_v24 = vmul.f32 %v7938_v40, %v7930_v15 }
 0x90f   :  { %7941 = vtanh.f32 %v10126_v31  ;;  %v4063_v59 = vadd.f32 1.0, %v7940_v53  ;;  %v12132_v53 = vld [vmem:[#allocation129_spill] sm:$0xff] }
 0x910   :  { %7943 = vrcp.f32 %v4062_v54  ;;  %v10129_v19 = vadd.f32 %v4077_v24, %v4075_v0  ;;  %v12131_v54 = vld [vmem:[#allocation100_spill] sm:$0xff]  ;;  %v12133_v0 = vld [vmem:[#allocation102_spill] sm:$0xff] }
 0x911   :  { %7945 = vrcp.f32 %v4063_v59  ;;  %v12134_v24 = vld [vmem:[#allocation130_spill] sm:$0xff]  ;;  %v12135_v59 = vld [vmem:[#allocation104_spill] sm:$0xff] }
 0x912   :  { %7947 = vtanh.f32 %v10129_v19 }
 0x91c   :  { %v7942_v61 = vpop.eup %7941 }
 0x91d   :  { %v7944_v5 = vpop.eup %7943 }
 0x91e   :  { %v7946_v3 = vpop.eup %7945  ;;  %v4082_v38 = vmul.f32 %v7944_v5, %v7942_v61  ;;  %v12136_v61 = vld [vmem:[#allocation131_spill] sm:$0xff]  ;;  %v12137_v5 = vld [vmem:[#allocation106_spill] sm:$0xff] }
 0x91f   :  { %v7948_v62 = vpop.eup %7947 }
 0x920   :  { %v10132_v11 = vmul.f32 %v7948_v62, %v7946_v3  ;;  %v4084_v27 = vpack.c.bf16 %v4082_v38, %v4082_v38  ;;  %v10136_v28 = vsel %vm252_vm6, %v9970_v56, %v4082_v38  ;;  %v12130_v56 = vld [vmem:[#allocation128_spill] sm:$0xff]  ;;  %v12140_v62 = vld [vmem:[#allocation133_spill] sm:$0xff] }
 0x921   :  { %v12138_v3 = vld [vmem:[#allocation132_spill] sm:$0xff] }
 0x922   :  { %12129 = vst [vmem:[#allocation67_spill] sm:$0xff] %v10132_v11  ;;  %v4085_v15 = vpack.c.bf16 %v10132_v11, %v10132_v11  ;;  %v4087_v44 = vshrl.u32 %v4084_v27, 16  ;;  %v12139_v38 = vld [vmem:[#allocation108_spill] sm:$0xff]  ;;  %v12141_v27 = vld [vmem:[#allocation110_spill] sm:$0xff] }
 0x923   :  { %v12147_v11 = vld [vmem:[#allocation116_spill] sm:$0xff] }
 0x924   :  { %v4091_v37 = vshrl.u32 %v4085_v15, 16  ;;  %v10140_v40 = vrot.slane %v4087_v44, 1  ;;  %v12142_v15 = vld [vmem:[#allocation134_spill] sm:$0xff]  ;;  %v12143_v44 = vld [vmem:[#allocation112_spill] sm:$0xff] }
 0x926   :  { %v4093_v20 = vrot.slane %v4091_v37, 1  ;;  %v12144_v37 = vld [vmem:[#allocation135_spill] sm:$0xff] }
 0x928   :  { %4128 = vmatprep.mubr.bf16.mxu0 %v4093_v20  ;;  %4169 = vmatprep.mubr.bf16.mxu1 %v4093_v20 }
 0x929   :  { %4129 = vmatmul.mubr.bf16.vlgmr.msra.gmra.mxu0 %v10140_v40  ;;  %4170 = vmatmul.mubr.bf16.vlgmr.msra.gmra.mxu1 %v10140_v40 }
 0x92a   :  { %4179 = vmatpush1.bf16.msra.mxu0 %v11845_v10  ;;  %4220 = vmatpush1.bf16.msra.mxu1 %v11846_v34 }
 0x92b   :  { %4210 = vmatprep.mubr.bf16.mxu0 %v4093_v20  ;;  %4251 = vmatprep.mubr.bf16.mxu1 %v4093_v20  ;;  %v12145_v20 = vld [vmem:[#allocation114_spill] sm:$0xff] }
 0x92c   :  { %4180 = vmatprep.subr.bf16.mxu0 %v11847_v12  ;;  %4221 = vmatprep.subr.bf16.mxu1 %v11848_v55 }
 0x92e   :  { %4181 = vmatpush1.bf16.msra.mxu0 %v11849_v33  ;;  %4222 = vmatpush1.bf16.msra.mxu1 %v11850_v43 }
 0x92f   :  { %4182 = vmatprep.subr.bf16.mxu0 %v11851_v36  ;;  %4223 = vmatprep.subr.bf16.mxu1 %v11852_v9 }
 0x932   :  { %4183 = vmatpush1.bf16.msra.mxu0 %v11853_v32  ;;  %4224 = vmatpush1.bf16.msra.mxu1 %v11854_v48 }
 0x933   :  { %4184 = vmatprep.subr.bf16.mxu0 %v11855_v6  ;;  %4225 = vmatprep.subr.bf16.mxu1 %v11940_v29 }
 0x936   :  { %4185 = vmatpush1.bf16.msra.mxu0 %v11857_v60  ;;  %4226 = vmatpush1.bf16.msra.mxu1 %v11941_v7 }
 0x937   :  { %4186 = vmatprep.subr.bf16.mxu0 %v11859_v35  ;;  %4227 = vmatprep.subr.bf16.mxu1 %v11942_v23 }
 0x93a   :  { %4187 = vmatpush1.bf16.msra.mxu0 %v11861_v30  ;;  %4228 = vmatpush1.bf16.msra.mxu1 %v11943_v52 }
 0x93b   :  { %4188 = vmatprep.subr.bf16.mxu0 %v11862_v42  ;;  %4229 = vmatprep.subr.bf16.mxu1 %v11944_v26 }
 0x93e   :  { %4189 = vmatpush1.bf16.msra.mxu0 %v11863_v57  ;;  %4230 = vmatpush1.bf16.msra.mxu1 %v11945_v13 }
 0x93f   :  { %4190 = vmatprep.subr.bf16.mxu0 %v11864_v22  ;;  %4231 = vmatprep.subr.bf16.mxu1 %v11946_v25 }
 0x942   :  { %4191 = vmatpush1.bf16.msra.mxu0 %v11865_v46  ;;  %4232 = vmatpush1.bf16.msra.mxu1 %v11947_v58 }
 0x943   :  { %4192 = vmatprep.subr.bf16.mxu0 %v11866_v50  ;;  %4233 = vmatprep.subr.bf16.mxu1 %v11948_v41 }
 0x946   :  { %4193 = vmatpush1.bf16.msra.mxu0 %v11867_v16  ;;  %4234 = vmatpush1.bf16.msra.mxu1 %v11949_v17 }
 0x947   :  { %4194 = vmatprep.subr.bf16.mxu0 %v11868_v47  ;;  %4235 = vmatprep.subr.bf16.mxu1 %v11950_v39 }
 0x94a   :  { %4195 = vmatpush2.bf16.msra.mxu0 %v11869_v21  ;;  %4236 = vmatpush2.bf16.msra.mxu1 %v11951_v45 }
 0x94b   :  { %4196 = vmatprep.subr.bf16.mxu0 %v11870_v18  ;;  %4237 = vmatprep.subr.bf16.mxu1 %v12130_v56  ;;  %v12225_v18 = vrot.slane %v9590_v49, 7 }
 0x94e   :  { %4197 = vmatpush2.bf16.msra.mxu0 %v12131_v54  ;;  %4238 = vmatpush2.bf16.msra.mxu1 %v12132_v53  ;;  %v12223_v53 = vld [vmem:[#allocation142_spill] sm:$0xff] }
 0x94f   :  { %4198 = vmatprep.subr.bf16.mxu0 %v12133_v0  ;;  %4239 = vmatprep.subr.bf16.mxu1 %v12134_v24 }
 0x952   :  { %4199 = vmatpush2.bf16.msra.mxu0 %v12135_v59  ;;  %4240 = vmatpush2.bf16.msra.mxu1 %v12136_v61 }
 0x953   :  { %4200 = vmatprep.subr.bf16.mxu0 %v12137_v5  ;;  %4241 = vmatprep.subr.bf16.mxu1 %v12138_v3  ;;  %v12148_v5 = vld [vmem:[#allocation137_spill] sm:$0xff]  ;;  %v12149_v3 = vld [vmem:[#allocation118_spill] sm:$0xff] }
 0x956   :  { %4201 = vmatpush2.bf16.msra.mxu0 %v12139_v38  ;;  %4242 = vmatpush2.bf16.msra.mxu1 %v12140_v62  ;;  %v12150_v38 = vld [vmem:[#allocation138_spill] sm:$0xff]  ;;  %v12151_v62 = vld [vmem:[#allocation120_spill] sm:$0xff] }
 0x957   :  { %4202 = vmatprep.subr.bf16.mxu0 %v12141_v27  ;;  %4243 = vmatprep.subr.bf16.mxu1 %v12142_v15  ;;  %v12152_v27 = vld [vmem:[#allocation139_spill] sm:$0xff]  ;;  %v12153_v15 = vld [vmem:[#allocation122_spill] sm:$0xff] }
 0x95a   :  { %4203 = vmatpush2.bf16.msra.mxu0 %v12143_v44  ;;  %4244 = vmatpush2.bf16.msra.mxu1 %v12144_v37  ;;  %v12154_v44 = vld [vmem:[#allocation140_spill] sm:$0xff] }
 0x95b   :  { %4204 = vmatprep.subr.bf16.mxu0 %v12145_v20  ;;  %4245 = vmatprep.subr.bf16.mxu1 %v12146_v4  ;;  %v12155_v37 = vld [vmem:[#allocation124_spill] sm:$0xff]  ;;  %v12156_v20 = vld [vmem:[#allocation141_spill] sm:$0xff]  ;;  %v12157_v4 = vld [vmem:[#allocation14_spill] sm:$0xff] }
 0x95e   :  { %4205 = vmatpush2.bf16.msra.mxu0 %v12147_v11  ;;  %4246 = vmatpush2.bf16.msra.mxu1 %v12148_v5  ;;  %v12158_v11 = vld [vmem:[#allocation31_spill] sm:$0xff] }
 0x95f   :  { %4206 = vmatprep.subr.bf16.mxu0 %v12149_v3  ;;  %4247 = vmatprep.subr.bf16.mxu1 %v12150_v38  ;;  %v12159_v38 = vld [vmem:[#allocation15_spill] sm:$0xff]  ;;  %v12168_v3 = vld [vmem:[#allocation41_spill] sm:$0xff] }
 0x962   :  { %4207 = vmatpush2.bf16.msra.mxu0 %v12151_v62  ;;  %4248 = vmatpush2.bf16.msra.mxu1 %v12152_v27  ;;  %v12160_v62 = vld [vmem:[#allocation33_spill] sm:$0xff]  ;;  %v12161_v27 = vld [vmem:[#allocation16_spill] sm:$0xff] }
 0x963   :  { %4208 = vmatprep.subr.bf16.mxu0 %v12153_v15  ;;  %4249 = vmatprep.subr.bf16.mxu1 %v12154_v44  ;;  %v12162_v15 = vld [vmem:[#allocation35_spill] sm:$0xff]  ;;  %v12163_v44 = vld [vmem:[#allocation17_spill] sm:$0xff] }
 0x966   :  { %4209 = vmatpush2.bf16.msra.mxu0 %v12155_v37  ;;  %4250 = vmatpush2.bf16.msra.mxu1 %v12156_v20  ;;  %v12164_v37 = vld [vmem:[#allocation37_spill] sm:$0xff]  ;;  %v12165_v20 = vld [vmem:[#allocation18_spill] sm:$0xff] }
 0x967   :  { %4354 = vmatprep.subr.bf16.mxu0 %v12157_v4  ;;  %4395 = vmatprep.subr.bf16.mxu1 %v12158_v11  ;;  %v12166_v4 = vld [vmem:[#allocation39_spill] sm:$0xff] }
 0x968   :  { %v12167_v11 = vld [vmem:[#allocation19_spill] sm:$0xff] }
 0x969   :  { %4211 = vmatmul.mubr.bf16.vlgmr.msra.gmra.mxu0 %v10140_v40  ;;  %4252 = vmatmul.mubr.bf16.vlgmr.msra.gmra.mxu1 %v10140_v40  ;;  %v12169_v40 = vld [vmem:[#allocation20_spill] sm:$0xff] }
 0x96a   :  { %4355 = vmatpush1.bf16.msra.mxu0 %v12159_v38  ;;  %4396 = vmatpush1.bf16.msra.mxu1 %v12160_v62  ;;  %v12170_v38 = vld [vmem:[#allocation43_spill] sm:$0xff]  ;;  %v12171_v62 = vld [vmem:[#allocation21_spill] sm:$0xff] }
 0x96b   :  { %4356 = vmatprep.subr.bf16.mxu0 %v12161_v27  ;;  %4397 = vmatprep.subr.bf16.mxu1 %v12162_v15  ;;  %v12172_v27 = vld [vmem:[#allocation45_spill] sm:$0xff]  ;;  %v12173_v15 = vld [vmem:[#allocation22_spill] sm:$0xff] }
 0x96e   :  { %4357 = vmatpush1.bf16.msra.mxu0 %v12163_v44  ;;  %4398 = vmatpush1.bf16.msra.mxu1 %v12164_v37  ;;  %v12174_v44 = vld [vmem:[#allocation47_spill] sm:$0xff] }
 0x96f   :  { %4358 = vmatprep.subr.bf16.mxu0 %v12165_v20  ;;  %4399 = vmatprep.subr.bf16.mxu1 %v12166_v4  ;;  %v12175_v37 = vld [vmem:[#allocation23_spill] sm:$0xff]  ;;  %v12176_v20 = vld [vmem:[#allocation49_spill] sm:$0xff]  ;;  %v12177_v4 = vld [vmem:[#allocation24_spill] sm:$0xff] }
 0x972   :  { %4359 = vmatpush1.bf16.msra.mxu0 %v12167_v11  ;;  %4400 = vmatpush1.bf16.msra.mxu1 %v12168_v3  ;;  %v12178_v11 = vld [vmem:[#allocation51_spill] sm:$0xff]  ;;  %v12179_v3 = vld [vmem:[#allocation25_spill] sm:$0xff] }
 0x973   :  { %4360 = vmatprep.subr.bf16.mxu0 %v12169_v40  ;;  %4401 = vmatprep.subr.bf16.mxu1 %v12170_v38  ;;  %v12180_v40 = vld [vmem:[#allocation53_spill] sm:$0xff]  ;;  %v12181_v38 = vld [vmem:[#allocation26_spill] sm:$0xff] }
 0x976   :  { %4361 = vmatpush1.bf16.msra.mxu0 %v12171_v62  ;;  %4402 = vmatpush1.bf16.msra.mxu1 %v12172_v27  ;;  %v12182_v62 = vld [vmem:[#allocation55_spill] sm:$0xff] }
 0x977   :  { %4362 = vmatprep.subr.bf16.mxu0 %v12173_v15  ;;  %4403 = vmatprep.subr.bf16.mxu1 %v12174_v44  ;;  %v12183_v27 = vld [vmem:[#allocation27_spill] sm:$0xff]  ;;  %v12184_v15 = vld [vmem:[#allocation57_spill] sm:$0xff]  ;;  %v12185_v44 = vld [vmem:[#allocation28_spill] sm:$0xff] }
 0x97a   :  { %4363 = vmatpush1.bf16.msra.mxu0 %v12175_v37  ;;  %4404 = vmatpush1.bf16.msra.mxu1 %v12176_v20  ;;  %v12186_v37 = vld [vmem:[#allocation59_spill] sm:$0xff]  ;;  %v12187_v20 = vld [vmem:[#allocation29_spill] sm:$0xff] }
 0x97b   :  { %4364 = vmatprep.subr.bf16.mxu0 %v12177_v4  ;;  %4405 = vmatprep.subr.bf16.mxu1 %v12178_v11  ;;  %v12188_v4 = vld [vmem:[#allocation61_spill] sm:$0xff]  ;;  %v12189_v11 = vld [vmem:[#allocation30_spill] sm:$0xff] }
 0x97e   :  { %4365 = vmatpush1.bf16.msra.mxu0 %v12179_v3  ;;  %4406 = vmatpush1.bf16.msra.mxu1 %v12180_v40  ;;  %v12190_v3 = vld [vmem:[#allocation62_spill] sm:$0xff]  ;;  %v12191_v40 = vld [vmem:[#allocation32_spill] sm:$0xff] }
 0x97f   :  { %4366 = vmatprep.subr.bf16.mxu0 %v12181_v38  ;;  %4407 = vmatprep.subr.bf16.mxu1 %v12182_v62  ;;  %v12192_v38 = vld [vmem:[#allocation64_spill] sm:$0xff]  ;;  %v12193_v62 = vld [vmem:[#allocation34_spill] sm:$0xff] }
 0x982   :  { %4367 = vmatpush1.bf16.msra.mxu0 %v12183_v27  ;;  %4408 = vmatpush1.bf16.msra.mxu1 %v12184_v15  ;;  %v12194_v27 = vld [vmem:[#allocation66_spill] sm:$0xff]  ;;  %v12195_v15 = vld [vmem:[#allocation36_spill] sm:$0xff] }
 0x983   :  { %4368 = vmatprep.subr.bf16.mxu0 %v12185_v44  ;;  %4409 = vmatprep.subr.bf16.mxu1 %v12186_v37  ;;  %v12196_v44 = vld [vmem:[#allocation68_spill] sm:$0xff]  ;;  %v12197_v37 = vld [vmem:[#allocation38_spill] sm:$0xff] }
 0x986   :  { %4369 = vmatpush1.bf16.msra.mxu0 %v12187_v20  ;;  %4410 = vmatpush1.bf16.msra.mxu1 %v12188_v4  ;;  %v12198_v20 = vld [vmem:[#allocation70_spill] sm:$0xff]  ;;  %v12199_v4 = vld [vmem:[#allocation40_spill] sm:$0xff] }
 0x987   :  { %4370 = vmatprep.subr.bf16.mxu0 %v12189_v11  ;;  %4411 = vmatprep.subr.bf16.mxu1 %v12190_v3  ;;  %v12200_v11 = vld [vmem:[#allocation72_spill] sm:$0xff]  ;;  %v12201_v3 = vld [vmem:[#allocation42_spill] sm:$0xff] }
 0x98a   :  { %4371 = vmatpush2.bf16.msra.mxu0 %v12191_v40  ;;  %4412 = vmatpush2.bf16.msra.mxu1 %v12192_v38  ;;  %v12202_v40 = vld [vmem:[#allocation74_spill] sm:$0xff]  ;;  %v12203_v38 = vld [vmem:[#allocation44_spill] sm:$0xff] }
 0x98b   :  { %4372 = vmatprep.subr.bf16.mxu0 %v12193_v62  ;;  %4413 = vmatprep.subr.bf16.mxu1 %v12194_v27  ;;  %v12204_v62 = vld [vmem:[#allocation76_spill] sm:$0xff]  ;;  %v12205_v27 = vld [vmem:[#allocation46_spill] sm:$0xff] }
 0x98e   :  { %4373 = vmatpush2.bf16.msra.mxu0 %v12195_v15  ;;  %4414 = vmatpush2.bf16.msra.mxu1 %v12196_v44  ;;  %v12206_v15 = vld [vmem:[#allocation78_spill] sm:$0xff]  ;;  %v12207_v44 = vld [vmem:[#allocation48_spill] sm:$0xff] }
 0x98f   :  { %4374 = vmatprep.subr.bf16.mxu0 %v12197_v37  ;;  %4415 = vmatprep.subr.bf16.mxu1 %v12198_v20  ;;  %v12208_v37 = vld [vmem:[#allocation80_spill] sm:$0xff]  ;;  %v12209_v20 = vld [vmem:[#allocation50_spill] sm:$0xff] }
 0x992   :  { %4375 = vmatpush2.bf16.msra.mxu0 %v12199_v4  ;;  %4416 = vmatpush2.bf16.msra.mxu1 %v12200_v11  ;;  %v12210_v4 = vld [vmem:[#allocation82_spill] sm:$0xff]  ;;  %v12211_v11 = vld [vmem:[#allocation52_spill] sm:$0xff] }
 0x993   :  { %4376 = vmatprep.subr.bf16.mxu0 %v12201_v3  ;;  %4417 = vmatprep.subr.bf16.mxu1 %v12202_v40  ;;  %v12212_v3 = vld [vmem:[#allocation84_spill] sm:$0xff]  ;;  %v12213_v40 = vld [vmem:[#allocation54_spill] sm:$0xff] }
 0x996   :  { %4377 = vmatpush2.bf16.msra.mxu0 %v12203_v38  ;;  %4418 = vmatpush2.bf16.msra.mxu1 %v12204_v62  ;;  %v12214_v38 = vld [vmem:[#allocation86_spill] sm:$0xff]  ;;  %v12215_v62 = vld [vmem:[#allocation56_spill] sm:$0xff] }
 0x997   :  { %4378 = vmatprep.subr.bf16.mxu0 %v12205_v27  ;;  %4419 = vmatprep.subr.bf16.mxu1 %v12206_v15  ;;  %v12216_v27 = vld [vmem:[#allocation88_spill] sm:$0xff]  ;;  %v12217_v15 = vld [vmem:[#allocation58_spill] sm:$0xff] }
 0x99a   :  { %4379 = vmatpush2.bf16.msra.mxu0 %v12207_v44  ;;  %4420 = vmatpush2.bf16.msra.mxu1 %v12208_v37  ;;  %v12218_v44 = vld [vmem:[#allocation90_spill] sm:$0xff]  ;;  %v12219_v37 = vld [vmem:[#allocation60_spill] sm:$0xff] }
 0x99b   :  { %4380 = vmatprep.subr.bf16.mxu0 %v12209_v20  ;;  %4421 = vmatprep.subr.bf16.mxu1 %v12210_v4  ;;  %v12220_v20 = vld [vmem:[#allocation92_spill] sm:$0xff]  ;;  %v12221_v4 = vld [vmem:[#allocation63_spill] sm:$0xff] }
 0x99e   :  { %4381 = vmatpush2.bf16.msra.mxu0 %v12211_v11  ;;  %4422 = vmatpush2.bf16.msra.mxu1 %v12212_v3  ;;  %v12222_v11 = vld [vmem:[#allocation95_spill] sm:$0xff] }
 0x99f   :  { %4382 = vmatprep.subr.bf16.mxu0 %v12213_v40  ;;  %4423 = vmatprep.subr.bf16.mxu1 %v12214_v38 }
 0x9a2   :  { %4383 = vmatpush2.bf16.msra.mxu0 %v12215_v62  ;;  %4424 = vmatpush2.bf16.msra.mxu1 %v12216_v27 }
 0x9a3   :  { %4384 = vmatprep.subr.bf16.mxu0 %v12217_v15  ;;  %4425 = vmatprep.subr.bf16.mxu1 %v12218_v44 }
 0x9a6   :  { %4385 = vmatpush2.bf16.msra.mxu0 %v12219_v37  ;;  %4426 = vmatpush2.bf16.msra.mxu1 %v12220_v20 }
 0x9a7   :  { %4436 = vmatprep.subr.bf16.mxu0 %v12221_v4  ;;  %4477 = vmatprep.subr.bf16.mxu1 %v12222_v11  ;;  %v12224_v4 = vrot.slane %v12223_v53, 7 }
 0x9e9   :  { %v4130_v3 = vpop.f32.mrf.mxu0  ;;  %v4171_v40 = vpop.f32.mrf.mxu1 }
 0x9ea   :  { %v4268_v24 = vrot.slane %v4130_v3, 4  ;;  %v4270_v15 = vrot.slane %v4171_v40, 4 }
 0x9eb   :  { %v4132_v5 = vpop.f32.mrf.mxu0  ;;  %v4173_v38 = vpop.f32.mrf.mxu1 }
 0x9ec   :  { %v4269_v0 = vrot.slane %v4132_v5, 4  ;;  %v4284_v44 = vadd.f32 %v4268_v24, %v9586_v63  ;;  %v4286_v37 = vadd.f32 %v4270_v15, %v9592_v2  ;;  %v4271_v20 = vrot.slane %v4173_v38, 4 }
 0x9ed   :  { %v4134_v61 = vpop.f32.mrf.mxu0  ;;  %v4175_v62 = vpop.f32.mrf.mxu1 }
 0x9ee   :  { %v4285_v54 = vadd.f32 %v4269_v0, %v12224_v4  ;;  %v7180_v11 = vmul.f32 -1.442695, %v4284_v44  ;;  %v7182_v56 = vmul.f32 -1.442695, %v4286_v37  ;;  %v4287_v45 = vadd.f32 %v4271_v20, %v12225_v18 }
 0x9ef   :  { %v4135_v59 = vpop.f32.mrf.mxu0  ;;  %v4176_v27 = vpop.f32.mrf.mxu1 }
 0x9f0   :  { %v7181_v61 = vmul.f32 -1.442695, %v4285_v54  ;;  %7949 = vpow2.f32 %v7180_v11  ;;  %v7183_v59 = vmul.f32 -1.442695, %v4287_v45 }
 0x9f1   :  { %7951 = vpow2.f32 %v7182_v56 }
 0x9f2   :  { %7953 = vpow2.f32 %v7181_v61 }
 0x9f3   :  { %7955 = vpow2.f32 %v7183_v59 }
 0x9fd   :  { %v7950_v5 = vpop.eup %7949 }
 0x9fe   :  { %v7952_v3 = vpop.eup %7951  ;;  %v4298_v62 = vadd.f32 1.0, %v7950_v5 }
 0x9ff   :  { %v7954_v24 = vpop.eup %7953  ;;  %v4310_v27 = vadd.f32 1.0, %v7952_v3  ;;  %v12226_v3 = vrot.slane %v9605_v1, 7 }
 0xa00   :  { %v7956_v38 = vpop.eup %7955  ;;  %v4299_v15 = vadd.f32 1.0, %v7954_v24  ;;  %7957 = vrcp.f32 %v4298_v62  ;;  %v12227_v62 = vrot.slane %v9617_v8, 7 }
 0xa01   :  { %7959 = vrcp.f32 %v4310_v27  ;;  %v4311_v18 = vadd.f32 1.0, %v7956_v38 }
 0xa02   :  { %7961 = vrcp.f32 %v4299_v15 }
 0xa29   :  { %v4212_v40 = vpop.f32.mrf.mxu0  ;;  %v4253_v4 = vpop.f32.mrf.mxu1 }
 0xa2a   :  { %v4272_v0 = vrot.slane %v4212_v40, 4  ;;  %v4274_v44 = vrot.slane %v4253_v4, 4 }
 0xa2b   :  { %v4214_v54 = vpop.f32.mrf.mxu0  ;;  %v4255_v11 = vpop.f32.mrf.mxu1 }
 0xa2c   :  { %v4288_v45 = vadd.f32 %v4272_v0, %v9609_v14  ;;  %v4290_v56 = vadd.f32 %v4274_v44, %v9620_v51  ;;  %v4273_v37 = vrot.slane %v4214_v54, 4  ;;  %v4275_v20 = vrot.slane %v4255_v11, 4  ;;  %v7958_v0 = vpop.eup %7957 }
 0xa2d   :  { %v4216_v61 = vpop.f32.mrf.mxu0  ;;  %v4257_v59 = vpop.f32.mrf.mxu1  ;;  %v4332_v54 = vrot.slane %v10126_v31, 7 }
 0xa2e   :  { %7963 = vtanh.f32 %v4288_v45  ;;  %v7184_v5 = vmul.f32 -1.442695, %v4290_v56  ;;  %v4289_v24 = vadd.f32 %v4273_v37, %v12226_v3  ;;  %v4291_v27 = vadd.f32 %v4275_v20, %v12227_v62  ;;  %v7960_v44 = vpop.eup %7959 }
 0xa2f   :  { %7965 = vrcp.f32 %v4311_v18  ;;  %v4217_v38 = vpop.f32.mrf.mxu0  ;;  %v4258_v40 = vpop.f32.mrf.mxu1  ;;  %v4336_v56 = vmul.f32 %v7960_v44, %v4332_v54  ;;  %v4333_v59 = vrot.slane %v10129_v19, 7 }
 0xa30   :  { %7967 = vpow2.f32 %v7184_v5  ;;  %v7185_v4 = vmul.f32 -1.442695, %v4291_v27  ;;  %v7962_v15 = vpop.eup %7961 }
 0xa31   :  { %7969 = vtanh.f32 %v4289_v24 }
 0xa32   :  { %7971 = vpow2.f32 %v7185_v4 }
 0xa3b   :  { %v7964_v11 = vpop.eup %7963 }
 0xa3c   :  { %v7966_v45 = vpop.eup %7965  ;;  %v4338_v61 = vmul.f32 %v7964_v11, %v7958_v0 }
 0xa3d   :  { %v7968_v37 = vpop.eup %7967  ;;  %v4337_v62 = vmul.f32 %v7966_v45, %v4333_v59  ;;  %v12232_v59 = vld [vmem:[#allocation100_spill] sm:$0xff] }
 0xa3e   :  { %v7970_v20 = vpop.eup %7969  ;;  %v10288_v18 = vadd.f32 %v4338_v61, %v4336_v56  ;;  %v4324_v3 = vadd.f32 1.0, %v7968_v37  ;;  %v12230_v61 = vld [vmem:[#allocation98_spill] sm:$0xff]  ;;  %v12231_v37 = vld [vmem:[#allocation128_spill] sm:$0xff] }
 0xa3f   :  { %v7972_v5 = vpop.eup %7971  ;;  %v4339_v24 = vmul.f32 %v7970_v20, %v7962_v15  ;;  %v12233_v20 = vld [vmem:[#allocation129_spill] sm:$0xff] }
 0xa40   :  { %7973 = vtanh.f32 %v10288_v18  ;;  %v4325_v27 = vadd.f32 1.0, %v7972_v5  ;;  %v12235_v5 = vld [vmem:[#allocation130_spill] sm:$0xff] }
 0xa41   :  { %7975 = vrcp.f32 %v4324_v3  ;;  %v10291_v38 = vadd.f32 %v4339_v24, %v4337_v62  ;;  %v12234_v3 = vld [vmem:[#allocation102_spill] sm:$0xff]  ;;  %v12236_v62 = vld [vmem:[#allocation104_spill] sm:$0xff]  ;;  %v12237_v24 = vld [vmem:[#allocation131_spill] sm:$0xff] }
 0xa42   :  { %7977 = vrcp.f32 %v4325_v27  ;;  %v12238_v27 = vld [vmem:[#allocation106_spill] sm:$0xff] }
 0xa43   :  { %7979 = vtanh.f32 %v10291_v38 }
 0xa4d   :  { %v7974_v31 = vpop.eup %7973 }
 0xa4e   :  { %v7976_v40 = vpop.eup %7975 }
 0xa4f   :  { %v7978_v4 = vpop.eup %7977  ;;  %v4344_v19 = vmul.f32 %v7976_v40, %v7974_v31  ;;  %v12239_v31 = vld [vmem:[#allocation132_spill] sm:$0xff] }
 0xa50   :  { %v7980_v0 = vpop.eup %7979  ;;  %v12240_v40 = vld [vmem:[#allocation108_spill] sm:$0xff] }
 0xa51   :  { %v10294_v44 = vmul.f32 %v7980_v0, %v7978_v4  ;;  %v10298_v54 = vsel %vm254_vm7, %v10136_v28, %v4344_v19  ;;  %v4346_v15 = vpack.c.bf16 %v4344_v19, %v4344_v19  ;;  %v12229_v28 = vld [vmem:[#allocation127_spill] sm:$0xff]  ;;  %v12241_v4 = vld [vmem:[#allocation133_spill] sm:$0xff]  ;;  %v12242_v19 = vld [vmem:[#allocation110_spill] sm:$0xff] }
 0xa52   :  { %v12243_v0 = vld [vmem:[#allocation134_spill] sm:$0xff] }
 0xa53   :  { %12228 = vst [vmem:[#allocation99_spill] sm:$0xff] %v10294_v44  ;;  %v4347_v11 = vpack.c.bf16 %v10294_v44, %v10294_v44  ;;  %v10302_v56 = vrot.slane %v4346_v15, 2  ;;  %v12244_v15 = vld [vmem:[#allocation112_spill] sm:$0xff] }
 0xa54   :  { %v12247_v44 = vld [vmem:[#allocation136_spill] sm:$0xff] }
 0xa55   :  { %v4351_v45 = vrot.slane %v4347_v11, 2  ;;  %v12245_v11 = vld [vmem:[#allocation135_spill] sm:$0xff] }
 0xa57   :  { %4386 = vmatprep.mubr.bf16.mxu0 %v4351_v45  ;;  %4427 = vmatprep.mubr.bf16.mxu1 %v4351_v45 }
 0xa58   :  { %4387 = vmatmul.mubr.bf16.vlgmr.msra.gmra.mxu0 %v10302_v56  ;;  %4428 = vmatmul.mubr.bf16.vlgmr.msra.gmra.mxu1 %v10302_v56 }
 0xa59   :  { %4437 = vmatpush1.bf16.msra.mxu0 %v11845_v10  ;;  %4478 = vmatpush1.bf16.msra.mxu1 %v11846_v34 }
 0xa5a   :  { %4468 = vmatprep.mubr.bf16.mxu0 %v4351_v45  ;;  %4509 = vmatprep.mubr.bf16.mxu1 %v4351_v45  ;;  %v12246_v45 = vld [vmem:[#allocation114_spill] sm:$0xff] }
 0xa5b   :  { %4438 = vmatprep.subr.bf16.mxu0 %v11847_v12  ;;  %4479 = vmatprep.subr.bf16.mxu1 %v11848_v55 }
 0xa5d   :  { %4439 = vmatpush1.bf16.msra.mxu0 %v11849_v33  ;;  %4480 = vmatpush1.bf16.msra.mxu1 %v11850_v43 }
 0xa5e   :  { %4440 = vmatprep.subr.bf16.mxu0 %v11851_v36  ;;  %4481 = vmatprep.subr.bf16.mxu1 %v11852_v9 }
 0xa61   :  { %4441 = vmatpush1.bf16.msra.mxu0 %v11853_v32  ;;  %4482 = vmatpush1.bf16.msra.mxu1 %v11854_v48 }
 0xa62   :  { %4442 = vmatprep.subr.bf16.mxu0 %v11855_v6  ;;  %4483 = vmatprep.subr.bf16.mxu1 %v11940_v29 }
 0xa65   :  { %4443 = vmatpush1.bf16.msra.mxu0 %v11857_v60  ;;  %4484 = vmatpush1.bf16.msra.mxu1 %v11941_v7 }
 0xa66   :  { %4444 = vmatprep.subr.bf16.mxu0 %v11859_v35  ;;  %4485 = vmatprep.subr.bf16.mxu1 %v11942_v23 }
 0xa69   :  { %4445 = vmatpush1.bf16.msra.mxu0 %v11861_v30  ;;  %4486 = vmatpush1.bf16.msra.mxu1 %v11943_v52 }
 0xa6a   :  { %4446 = vmatprep.subr.bf16.mxu0 %v11862_v42  ;;  %4487 = vmatprep.subr.bf16.mxu1 %v11944_v26 }
 0xa6d   :  { %4447 = vmatpush1.bf16.msra.mxu0 %v11863_v57  ;;  %4488 = vmatpush1.bf16.msra.mxu1 %v11945_v13 }
 0xa6e   :  { %4448 = vmatprep.subr.bf16.mxu0 %v11864_v22  ;;  %4489 = vmatprep.subr.bf16.mxu1 %v11946_v25 }
 0xa71   :  { %4449 = vmatpush1.bf16.msra.mxu0 %v11865_v46  ;;  %4490 = vmatpush1.bf16.msra.mxu1 %v11947_v58 }
 0xa72   :  { %4450 = vmatprep.subr.bf16.mxu0 %v11866_v50  ;;  %4491 = vmatprep.subr.bf16.mxu1 %v11948_v41 }
 0xa75   :  { %4451 = vmatpush1.bf16.msra.mxu0 %v11867_v16  ;;  %4492 = vmatpush1.bf16.msra.mxu1 %v11949_v17 }
 0xa76   :  { %4452 = vmatprep.subr.bf16.mxu0 %v11868_v47  ;;  %4493 = vmatprep.subr.bf16.mxu1 %v11950_v39 }
 0xa79   :  { %4453 = vmatpush2.bf16.msra.mxu0 %v11869_v21  ;;  %4494 = vmatpush2.bf16.msra.mxu1 %v12229_v28 }
 0xa7a   :  { %4454 = vmatprep.subr.bf16.mxu0 %v12230_v61  ;;  %4495 = vmatprep.subr.bf16.mxu1 %v12231_v37  ;;  %v12325_v61 = vrot.slane %v9590_v49, 5 }
 0xa7d   :  { %4455 = vmatpush2.bf16.msra.mxu0 %v12232_v59  ;;  %4496 = vmatpush2.bf16.msra.mxu1 %v12233_v20 }
 0xa7e   :  { %4456 = vmatprep.subr.bf16.mxu0 %v12234_v3  ;;  %4497 = vmatprep.subr.bf16.mxu1 %v12235_v5 }
 0xa81   :  { %4457 = vmatpush2.bf16.msra.mxu0 %v12236_v62  ;;  %4498 = vmatpush2.bf16.msra.mxu1 %v12237_v24  ;;  %v12248_v24 = vld [vmem:[#allocation116_spill] sm:$0xff] }
 0xa82   :  { %4458 = vmatprep.subr.bf16.mxu0 %v12238_v27  ;;  %4499 = vmatprep.subr.bf16.mxu1 %v12239_v31  ;;  %v12249_v27 = vld [vmem:[#allocation137_spill] sm:$0xff]  ;;  %v12250_v31 = vld [vmem:[#allocation118_spill] sm:$0xff] }
 0xa85   :  { %4459 = vmatpush2.bf16.msra.mxu0 %v12240_v40  ;;  %4500 = vmatpush2.bf16.msra.mxu1 %v12241_v4  ;;  %v12251_v40 = vld [vmem:[#allocation138_spill] sm:$0xff]  ;;  %v12252_v4 = vld [vmem:[#allocation120_spill] sm:$0xff] }
 0xa86   :  { %4460 = vmatprep.subr.bf16.mxu0 %v12242_v19  ;;  %4501 = vmatprep.subr.bf16.mxu1 %v12243_v0  ;;  %v12253_v19 = vld [vmem:[#allocation139_spill] sm:$0xff]  ;;  %v12254_v0 = vld [vmem:[#allocation122_spill] sm:$0xff] }
 0xa89   :  { %4461 = vmatpush2.bf16.msra.mxu0 %v12244_v15  ;;  %4502 = vmatpush2.bf16.msra.mxu1 %v12245_v11  ;;  %v12255_v15 = vld [vmem:[#allocation140_spill] sm:$0xff] }
 0xa8a   :  { %4462 = vmatprep.subr.bf16.mxu0 %v12246_v45  ;;  %4503 = vmatprep.subr.bf16.mxu1 %v12247_v44  ;;  %v12256_v11 = vld [vmem:[#allocation124_spill] sm:$0xff]  ;;  %v12257_v45 = vld [vmem:[#allocation141_spill] sm:$0xff]  ;;  %v12258_v44 = vld [vmem:[#allocation14_spill] sm:$0xff] }
 0xa8d   :  { %4463 = vmatpush2.bf16.msra.mxu0 %v12248_v24  ;;  %4504 = vmatpush2.bf16.msra.mxu1 %v12249_v27  ;;  %v12259_v24 = vld [vmem:[#allocation31_spill] sm:$0xff] }
 0xa8e   :  { %4464 = vmatprep.subr.bf16.mxu0 %v12250_v31  ;;  %4505 = vmatprep.subr.bf16.mxu1 %v12251_v40  ;;  %v12260_v40 = vld [vmem:[#allocation15_spill] sm:$0xff]  ;;  %v12269_v31 = vld [vmem:[#allocation41_spill] sm:$0xff] }
 0xa91   :  { %4465 = vmatpush2.bf16.msra.mxu0 %v12252_v4  ;;  %4506 = vmatpush2.bf16.msra.mxu1 %v12253_v19  ;;  %v12261_v4 = vld [vmem:[#allocation33_spill] sm:$0xff]  ;;  %v12262_v19 = vld [vmem:[#allocation16_spill] sm:$0xff] }
 0xa92   :  { %4466 = vmatprep.subr.bf16.mxu0 %v12254_v0  ;;  %4507 = vmatprep.subr.bf16.mxu1 %v12255_v15  ;;  %v12263_v0 = vld [vmem:[#allocation35_spill] sm:$0xff]  ;;  %v12264_v15 = vld [vmem:[#allocation17_spill] sm:$0xff] }
 0xa95   :  { %4467 = vmatpush2.bf16.msra.mxu0 %v12256_v11  ;;  %4508 = vmatpush2.bf16.msra.mxu1 %v12257_v45  ;;  %v12265_v11 = vld [vmem:[#allocation37_spill] sm:$0xff]  ;;  %v12266_v45 = vld [vmem:[#allocation18_spill] sm:$0xff] }
 0xa96   :  { %4616 = vmatprep.subr.bf16.mxu0 %v12258_v44  ;;  %4657 = vmatprep.subr.bf16.mxu1 %v12259_v24  ;;  %v12267_v44 = vld [vmem:[#allocation39_spill] sm:$0xff] }
 0xa97   :  { %v12268_v24 = vld [vmem:[#allocation19_spill] sm:$0xff] }
 0xa98   :  { %4469 = vmatmul.mubr.bf16.vlgmr.msra.gmra.mxu0 %v10302_v56  ;;  %4510 = vmatmul.mubr.bf16.vlgmr.msra.gmra.mxu1 %v10302_v56  ;;  %v12270_v56 = vld [vmem:[#allocation20_spill] sm:$0xff] }
 0xa99   :  { %4617 = vmatpush1.bf16.msra.mxu0 %v12260_v40  ;;  %4658 = vmatpush1.bf16.msra.mxu1 %v12261_v4  ;;  %v12271_v40 = vld [vmem:[#allocation43_spill] sm:$0xff]  ;;  %v12272_v4 = vld [vmem:[#allocation21_spill] sm:$0xff] }
 0xa9a   :  { %4618 = vmatprep.subr.bf16.mxu0 %v12262_v19  ;;  %4659 = vmatprep.subr.bf16.mxu1 %v12263_v0  ;;  %v12273_v19 = vld [vmem:[#allocation45_spill] sm:$0xff]  ;;  %v12274_v0 = vld [vmem:[#allocation22_spill] sm:$0xff] }
 0xa9d   :  { %4619 = vmatpush1.bf16.msra.mxu0 %v12264_v15  ;;  %4660 = vmatpush1.bf16.msra.mxu1 %v12265_v11  ;;  %v12275_v15 = vld [vmem:[#allocation47_spill] sm:$0xff] }
 0xa9e   :  { %4620 = vmatprep.subr.bf16.mxu0 %v12266_v45  ;;  %4661 = vmatprep.subr.bf16.mxu1 %v12267_v44  ;;  %v12276_v11 = vld [vmem:[#allocation23_spill] sm:$0xff]  ;;  %v12277_v45 = vld [vmem:[#allocation49_spill] sm:$0xff]  ;;  %v12278_v44 = vld [vmem:[#allocation24_spill] sm:$0xff] }
 0xaa1   :  { %4621 = vmatpush1.bf16.msra.mxu0 %v12268_v24  ;;  %4662 = vmatpush1.bf16.msra.mxu1 %v12269_v31  ;;  %v12279_v24 = vld [vmem:[#allocation51_spill] sm:$0xff]  ;;  %v12280_v31 = vld [vmem:[#allocation25_spill] sm:$0xff] }
 0xaa2   :  { %4622 = vmatprep.subr.bf16.mxu0 %v12270_v56  ;;  %4663 = vmatprep.subr.bf16.mxu1 %v12271_v40  ;;  %v12281_v56 = vld [vmem:[#allocation53_spill] sm:$0xff]  ;;  %v12282_v40 = vld [vmem:[#allocation26_spill] sm:$0xff] }
 0xaa5   :  { %4623 = vmatpush1.bf16.msra.mxu0 %v12272_v4  ;;  %4664 = vmatpush1.bf16.msra.mxu1 %v12273_v19  ;;  %v12283_v4 = vld [vmem:[#allocation55_spill] sm:$0xff] }
 0xaa6   :  { %4624 = vmatprep.subr.bf16.mxu0 %v12274_v0  ;;  %4665 = vmatprep.subr.bf16.mxu1 %v12275_v15  ;;  %v12284_v19 = vld [vmem:[#allocation27_spill] sm:$0xff]  ;;  %v12285_v0 = vld [vmem:[#allocation57_spill] sm:$0xff]  ;;  %v12286_v15 = vld [vmem:[#allocation28_spill] sm:$0xff] }
 0xaa9   :  { %4625 = vmatpush1.bf16.msra.mxu0 %v12276_v11  ;;  %4666 = vmatpush1.bf16.msra.mxu1 %v12277_v45  ;;  %v12287_v11 = vld [vmem:[#allocation59_spill] sm:$0xff]  ;;  %v12288_v45 = vld [vmem:[#allocation29_spill] sm:$0xff] }
 0xaaa   :  { %4626 = vmatprep.subr.bf16.mxu0 %v12278_v44  ;;  %4667 = vmatprep.subr.bf16.mxu1 %v12279_v24  ;;  %v12289_v44 = vld [vmem:[#allocation61_spill] sm:$0xff]  ;;  %v12290_v24 = vld [vmem:[#allocation30_spill] sm:$0xff] }
 0xaad   :  { %4627 = vmatpush1.bf16.msra.mxu0 %v12280_v31  ;;  %4668 = vmatpush1.bf16.msra.mxu1 %v12281_v56  ;;  %v12291_v31 = vld [vmem:[#allocation62_spill] sm:$0xff]  ;;  %v12292_v56 = vld [vmem:[#allocation32_spill] sm:$0xff] }
 0xaae   :  { %4628 = vmatprep.subr.bf16.mxu0 %v12282_v40  ;;  %4669 = vmatprep.subr.bf16.mxu1 %v12283_v4  ;;  %v12293_v40 = vld [vmem:[#allocation64_spill] sm:$0xff]  ;;  %v12294_v4 = vld [vmem:[#allocation34_spill] sm:$0xff] }
 0xab1   :  { %4629 = vmatpush1.bf16.msra.mxu0 %v12284_v19  ;;  %4670 = vmatpush1.bf16.msra.mxu1 %v12285_v0  ;;  %v12295_v19 = vld [vmem:[#allocation66_spill] sm:$0xff]  ;;  %v12296_v0 = vld [vmem:[#allocation36_spill] sm:$0xff] }
 0xab2   :  { %4630 = vmatprep.subr.bf16.mxu0 %v12286_v15  ;;  %4671 = vmatprep.subr.bf16.mxu1 %v12287_v11  ;;  %v12297_v15 = vld [vmem:[#allocation68_spill] sm:$0xff]  ;;  %v12298_v11 = vld [vmem:[#allocation38_spill] sm:$0xff] }
 0xab5   :  { %4631 = vmatpush1.bf16.msra.mxu0 %v12288_v45  ;;  %4672 = vmatpush1.bf16.msra.mxu1 %v12289_v44  ;;  %v12299_v45 = vld [vmem:[#allocation70_spill] sm:$0xff]  ;;  %v12300_v44 = vld [vmem:[#allocation40_spill] sm:$0xff] }
 0xab6   :  { %4632 = vmatprep.subr.bf16.mxu0 %v12290_v24  ;;  %4673 = vmatprep.subr.bf16.mxu1 %v12291_v31  ;;  %v12301_v24 = vld [vmem:[#allocation72_spill] sm:$0xff]  ;;  %v12302_v31 = vld [vmem:[#allocation42_spill] sm:$0xff] }
 0xab9   :  { %4633 = vmatpush2.bf16.msra.mxu0 %v12292_v56  ;;  %4674 = vmatpush2.bf16.msra.mxu1 %v12293_v40  ;;  %v12303_v56 = vld [vmem:[#allocation74_spill] sm:$0xff]  ;;  %v12304_v40 = vld [vmem:[#allocation44_spill] sm:$0xff] }
 0xaba   :  { %4634 = vmatprep.subr.bf16.mxu0 %v12294_v4  ;;  %4675 = vmatprep.subr.bf16.mxu1 %v12295_v19  ;;  %v12305_v4 = vld [vmem:[#allocation76_spill] sm:$0xff]  ;;  %v12306_v19 = vld [vmem:[#allocation46_spill] sm:$0xff] }
 0xabd   :  { %4635 = vmatpush2.bf16.msra.mxu0 %v12296_v0  ;;  %4676 = vmatpush2.bf16.msra.mxu1 %v12297_v15  ;;  %v12307_v0 = vld [vmem:[#allocation78_spill] sm:$0xff]  ;;  %v12308_v15 = vld [vmem:[#allocation48_spill] sm:$0xff] }
 0xabe   :  { %4636 = vmatprep.subr.bf16.mxu0 %v12298_v11  ;;  %4677 = vmatprep.subr.bf16.mxu1 %v12299_v45  ;;  %v12309_v11 = vld [vmem:[#allocation80_spill] sm:$0xff]  ;;  %v12310_v45 = vld [vmem:[#allocation50_spill] sm:$0xff] }
 0xac1   :  { %4637 = vmatpush2.bf16.msra.mxu0 %v12300_v44  ;;  %4678 = vmatpush2.bf16.msra.mxu1 %v12301_v24  ;;  %v12311_v44 = vld [vmem:[#allocation82_spill] sm:$0xff]  ;;  %v12312_v24 = vld [vmem:[#allocation52_spill] sm:$0xff] }
 0xac2   :  { %4638 = vmatprep.subr.bf16.mxu0 %v12302_v31  ;;  %4679 = vmatprep.subr.bf16.mxu1 %v12303_v56  ;;  %v12313_v31 = vld [vmem:[#allocation84_spill] sm:$0xff]  ;;  %v12314_v56 = vld [vmem:[#allocation54_spill] sm:$0xff] }
 0xac5   :  { %4639 = vmatpush2.bf16.msra.mxu0 %v12304_v40  ;;  %4680 = vmatpush2.bf16.msra.mxu1 %v12305_v4  ;;  %v12315_v40 = vld [vmem:[#allocation86_spill] sm:$0xff]  ;;  %v12316_v4 = vld [vmem:[#allocation56_spill] sm:$0xff] }
 0xac6   :  { %4640 = vmatprep.subr.bf16.mxu0 %v12306_v19  ;;  %4681 = vmatprep.subr.bf16.mxu1 %v12307_v0  ;;  %v12317_v19 = vld [vmem:[#allocation88_spill] sm:$0xff]  ;;  %v12318_v0 = vld [vmem:[#allocation58_spill] sm:$0xff] }
 0xac9   :  { %4641 = vmatpush2.bf16.msra.mxu0 %v12308_v15  ;;  %4682 = vmatpush2.bf16.msra.mxu1 %v12309_v11  ;;  %v12319_v15 = vld [vmem:[#allocation90_spill] sm:$0xff]  ;;  %v12320_v11 = vld [vmem:[#allocation60_spill] sm:$0xff] }
 0xaca   :  { %4642 = vmatprep.subr.bf16.mxu0 %v12310_v45  ;;  %4683 = vmatprep.subr.bf16.mxu1 %v12311_v44  ;;  %v12321_v45 = vld [vmem:[#allocation92_spill] sm:$0xff]  ;;  %v12322_v44 = vld [vmem:[#allocation63_spill] sm:$0xff] }
 0xacd   :  { %4643 = vmatpush2.bf16.msra.mxu0 %v12312_v24  ;;  %4684 = vmatpush2.bf16.msra.mxu1 %v12313_v31  ;;  %v12323_v24 = vld [vmem:[#allocation95_spill] sm:$0xff] }
 0xace   :  { %4644 = vmatprep.subr.bf16.mxu0 %v12314_v56  ;;  %4685 = vmatprep.subr.bf16.mxu1 %v12315_v40 }
 0xad1   :  { %4645 = vmatpush2.bf16.msra.mxu0 %v12316_v4  ;;  %4686 = vmatpush2.bf16.msra.mxu1 %v12317_v19 }
 0xad2   :  { %4646 = vmatprep.subr.bf16.mxu0 %v12318_v0  ;;  %4687 = vmatprep.subr.bf16.mxu1 %v12319_v15 }
 0xad5   :  { %4647 = vmatpush2.bf16.msra.mxu0 %v12320_v11  ;;  %4688 = vmatpush2.bf16.msra.mxu1 %v12321_v45 }
 0xad6   :  { %4698 = vmatprep.subr.bf16.mxu0 %v12322_v44  ;;  %4739 = vmatprep.subr.bf16.mxu1 %v12323_v24  ;;  %v12324_v44 = vrot.slane %v12223_v53, 5 }
 0xb18   :  { %v4388_v31 = vpop.f32.mrf.mxu0  ;;  %v4429_v56 = vpop.f32.mrf.mxu1 }
 0xb19   :  { %v4526_v3 = vrot.slane %v4388_v31, 3  ;;  %v4528_v0 = vrot.slane %v4429_v56, 3 }
 0xb1a   :  { %v4390_v27 = vpop.f32.mrf.mxu0  ;;  %v4431_v40 = vpop.f32.mrf.mxu1 }
 0xb1b   :  { %v4527_v20 = vrot.slane %v4390_v27, 3  ;;  %v4542_v15 = vadd.f32 %v4526_v3, %v9586_v63  ;;  %v4544_v11 = vadd.f32 %v4528_v0, %v9592_v2  ;;  %v4529_v45 = vrot.slane %v4431_v40, 3 }
 0xb1c   :  { %v4392_v62 = vpop.f32.mrf.mxu0  ;;  %v4433_v4 = vpop.f32.mrf.mxu1 }
 0xb1d   :  { %v4543_v59 = vadd.f32 %v4527_v20, %v12324_v44  ;;  %v7186_v24 = vmul.f32 -1.442695, %v4542_v15  ;;  %v7188_v37 = vmul.f32 -1.442695, %v4544_v11  ;;  %v4545_v28 = vadd.f32 %v4529_v45, %v12325_v61 }
 0xb1e   :  { %v4393_v5 = vpop.f32.mrf.mxu0  ;;  %v4434_v19 = vpop.f32.mrf.mxu1 }
 0xb1f   :  { %v7187_v62 = vmul.f32 -1.442695, %v4543_v59  ;;  %7981 = vpow2.f32 %v7186_v24  ;;  %v7189_v5 = vmul.f32 -1.442695, %v4545_v28 }
 0xb20   :  { %7983 = vpow2.f32 %v7188_v37 }
 0xb21   :  { %7985 = vpow2.f32 %v7187_v62 }
 0xb22   :  { %7987 = vpow2.f32 %v7189_v5 }
 0xb2c   :  { %v7982_v27 = vpop.eup %7981 }
 0xb2d   :  { %v7984_v31 = vpop.eup %7983  ;;  %v4556_v4 = vadd.f32 1.0, %v7982_v27 }
 0xb2e   :  { %v7986_v3 = vpop.eup %7985  ;;  %v4568_v19 = vadd.f32 1.0, %v7984_v31  ;;  %v12326_v31 = vrot.slane %v9605_v1, 5 }
 0xb2f   :  { %v7988_v40 = vpop.eup %7987  ;;  %v4557_v0 = vadd.f32 1.0, %v7986_v3  ;;  %7989 = vrcp.f32 %v4556_v4  ;;  %v12327_v4 = vrot.slane %v9617_v8, 5 }
 0xb30   :  { %7991 = vrcp.f32 %v4568_v19  ;;  %v4569_v61 = vadd.f32 1.0, %v7988_v40 }
 0xb31   :  { %7993 = vrcp.f32 %v4557_v0 }
 0xb58   :  { %v4470_v56 = vpop.f32.mrf.mxu0  ;;  %v4511_v44 = vpop.f32.mrf.mxu1 }
 0xb59   :  { %v4530_v20 = vrot.slane %v4470_v56, 3  ;;  %v4532_v15 = vrot.slane %v4511_v44, 3 }
 0xb5a   :  { %v4472_v59 = vpop.f32.mrf.mxu0  ;;  %v4513_v24 = vpop.f32.mrf.mxu1 }
 0xb5b   :  { %v4546_v28 = vadd.f32 %v4530_v20, %v9609_v14  ;;  %v4548_v37 = vadd.f32 %v4532_v15, %v9620_v51  ;;  %v4531_v11 = vrot.slane %v4472_v59, 3  ;;  %v4533_v45 = vrot.slane %v4513_v24, 3  ;;  %v7990_v20 = vpop.eup %7989 }
 0xb5c   :  { %v4474_v62 = vpop.f32.mrf.mxu0  ;;  %v4515_v5 = vpop.f32.mrf.mxu1  ;;  %v4590_v59 = vrot.slane %v10288_v18, 7 }
 0xb5d   :  { %7995 = vtanh.f32 %v4546_v28  ;;  %v7190_v27 = vmul.f32 -1.442695, %v4548_v37  ;;  %v4547_v3 = vadd.f32 %v4531_v11, %v12326_v31  ;;  %v4549_v19 = vadd.f32 %v4533_v45, %v12327_v4  ;;  %v7992_v15 = vpop.eup %7991 }
 0xb5e   :  { %7997 = vrcp.f32 %v4569_v61  ;;  %v4475_v40 = vpop.f32.mrf.mxu0  ;;  %v4516_v56 = vpop.f32.mrf.mxu1  ;;  %v4594_v37 = vmul.f32 %v7992_v15, %v4590_v59  ;;  %v4591_v5 = vrot.slane %v10291_v38, 7 }
 0xb5f   :  { %7999 = vpow2.f32 %v7190_v27  ;;  %v7191_v44 = vmul.f32 -1.442695, %v4549_v19  ;;  %v7994_v0 = vpop.eup %7993 }
 0xb60   :  { %8001 = vtanh.f32 %v4547_v3 }
 0xb61   :  { %8003 = vpow2.f32 %v7191_v44 }
 0xb6a   :  { %v7996_v24 = vpop.eup %7995 }
 0xb6b   :  { %v7998_v28 = vpop.eup %7997  ;;  %v4596_v62 = vmul.f32 %v7996_v24, %v7990_v20 }
 0xb6c   :  { %v8000_v11 = vpop.eup %7999  ;;  %v4595_v4 = vmul.f32 %v7998_v28, %v4591_v5  ;;  %v12330_v5 = vld [vmem:[#allocation98_spill] sm:$0xff] }
 0xb6d   :  { %v8002_v45 = vpop.eup %8001  ;;  %v10450_v61 = vadd.f32 %v4596_v62, %v4594_v37  ;;  %v4582_v31 = vadd.f32 1.0, %v8000_v11 }
 0xb6e   :  { %v8004_v27 = vpop.eup %8003  ;;  %v4597_v3 = vmul.f32 %v8002_v45, %v7994_v0  ;;  %v12331_v45 = vld [vmem:[#allocation128_spill] sm:$0xff] }
 0xb6f   :  { %8005 = vtanh.f32 %v10450_v61  ;;  %v4583_v19 = vadd.f32 1.0, %v8004_v27  ;;  %v12333_v27 = vld [vmem:[#allocation129_spill] sm:$0xff] }
 0xb70   :  { %8007 = vrcp.f32 %v4582_v31  ;;  %v10453_v40 = vadd.f32 %v4597_v3, %v4595_v4  ;;  %v12332_v31 = vld [vmem:[#allocation100_spill] sm:$0xff]  ;;  %v12334_v4 = vld [vmem:[#allocation102_spill] sm:$0xff] }
 0xb71   :  { %8009 = vrcp.f32 %v4583_v19  ;;  %v12335_v3 = vld [vmem:[#allocation130_spill] sm:$0xff]  ;;  %v12336_v19 = vld [vmem:[#allocation104_spill] sm:$0xff] }
 0xb72   :  { %8011 = vtanh.f32 %v10453_v40 }
 0xb7c   :  { %v8006_v18 = vpop.eup %8005 }
 0xb7d   :  { %v8008_v56 = vpop.eup %8007 }
 0xb7e   :  { %v8010_v44 = vpop.eup %8009  ;;  %v4602_v38 = vmul.f32 %v8008_v56, %v8006_v18  ;;  %v12337_v18 = vld [vmem:[#allocation131_spill] sm:$0xff]  ;;  %v12338_v56 = vld [vmem:[#allocation106_spill] sm:$0xff] }
 0xb7f   :  { %v8012_v20 = vpop.eup %8011 }
 0xb80   :  { %v10456_v15 = vmul.f32 %v8012_v20, %v8010_v44  ;;  %v4604_v59 = vpack.c.bf16 %v4602_v38, %v4602_v38  ;;  %v10460_v0 = vsel %vm256_vm8, %v10298_v54, %v4602_v38  ;;  %v12329_v54 = vld [vmem:[#allocation127_spill] sm:$0xff]  ;;  %v12339_v44 = vld [vmem:[#allocation132_spill] sm:$0xff]  ;;  %v12341_v20 = vld [vmem:[#allocation133_spill] sm:$0xff] }
 0xb81   :  { %v12340_v38 = vld [vmem:[#allocation108_spill] sm:$0xff] }
 0xb82   :  { %12328 = vst [vmem:[#allocation69_spill] sm:$0xff] %v10456_v15  ;;  %v4605_v24 = vpack.c.bf16 %v10456_v15, %v10456_v15  ;;  %v4607_v28 = vshrl.u32 %v4604_v59, 16  ;;  %v12342_v59 = vld [vmem:[#allocation110_spill] sm:$0xff]  ;;  %v12347_v15 = vld [vmem:[#allocation136_spill] sm:$0xff] }
 0xb84   :  { %v4611_v37 = vshrl.u32 %v4605_v24, 16  ;;  %v10464_v11 = vrot.slane %v4607_v28, 2  ;;  %v12343_v24 = vld [vmem:[#allocation134_spill] sm:$0xff]  ;;  %v12344_v28 = vld [vmem:[#allocation112_spill] sm:$0xff] }
 0xb86   :  { %v4613_v62 = vrot.slane %v4611_v37, 2  ;;  %v12345_v37 = vld [vmem:[#allocation135_spill] sm:$0xff] }
 0xb88   :  { %4648 = vmatprep.mubr.bf16.mxu0 %v4613_v62  ;;  %4689 = vmatprep.mubr.bf16.mxu1 %v4613_v62 }
 0xb89   :  { %4649 = vmatmul.mubr.bf16.vlgmr.msra.gmra.mxu0 %v10464_v11  ;;  %4690 = vmatmul.mubr.bf16.vlgmr.msra.gmra.mxu1 %v10464_v11 }
 0xb8a   :  { %4699 = vmatpush1.bf16.msra.mxu0 %v11845_v10  ;;  %4740 = vmatpush1.bf16.msra.mxu1 %v11846_v34 }
 0xb8b   :  { %4730 = vmatprep.mubr.bf16.mxu0 %v4613_v62  ;;  %4771 = vmatprep.mubr.bf16.mxu1 %v4613_v62  ;;  %v12346_v62 = vld [vmem:[#allocation114_spill] sm:$0xff] }
 0xb8c   :  { %4700 = vmatprep.subr.bf16.mxu0 %v11847_v12  ;;  %4741 = vmatprep.subr.bf16.mxu1 %v11848_v55 }
 0xb8e   :  { %4701 = vmatpush1.bf16.msra.mxu0 %v11849_v33  ;;  %4742 = vmatpush1.bf16.msra.mxu1 %v11850_v43 }
 0xb8f   :  { %4702 = vmatprep.subr.bf16.mxu0 %v11851_v36  ;;  %4743 = vmatprep.subr.bf16.mxu1 %v11852_v9 }
 0xb92   :  { %4703 = vmatpush1.bf16.msra.mxu0 %v11853_v32  ;;  %4744 = vmatpush1.bf16.msra.mxu1 %v11854_v48 }
 0xb93   :  { %4704 = vmatprep.subr.bf16.mxu0 %v11855_v6  ;;  %4745 = vmatprep.subr.bf16.mxu1 %v11940_v29 }
 0xb96   :  { %4705 = vmatpush1.bf16.msra.mxu0 %v11857_v60  ;;  %4746 = vmatpush1.bf16.msra.mxu1 %v11941_v7 }
 0xb97   :  { %4706 = vmatprep.subr.bf16.mxu0 %v11859_v35  ;;  %4747 = vmatprep.subr.bf16.mxu1 %v11942_v23 }
 0xb9a   :  { %4707 = vmatpush1.bf16.msra.mxu0 %v11861_v30  ;;  %4748 = vmatpush1.bf16.msra.mxu1 %v11943_v52 }
 0xb9b   :  { %4708 = vmatprep.subr.bf16.mxu0 %v11862_v42  ;;  %4749 = vmatprep.subr.bf16.mxu1 %v11944_v26 }
 0xb9e   :  { %4709 = vmatpush1.bf16.msra.mxu0 %v11863_v57  ;;  %4750 = vmatpush1.bf16.msra.mxu1 %v11945_v13 }
 0xb9f   :  { %4710 = vmatprep.subr.bf16.mxu0 %v11864_v22  ;;  %4751 = vmatprep.subr.bf16.mxu1 %v11946_v25 }
 0xba2   :  { %4711 = vmatpush1.bf16.msra.mxu0 %v11865_v46  ;;  %4752 = vmatpush1.bf16.msra.mxu1 %v11947_v58 }
 0xba3   :  { %4712 = vmatprep.subr.bf16.mxu0 %v11866_v50  ;;  %4753 = vmatprep.subr.bf16.mxu1 %v11948_v41 }
 0xba6   :  { %4713 = vmatpush1.bf16.msra.mxu0 %v11867_v16  ;;  %4754 = vmatpush1.bf16.msra.mxu1 %v11949_v17 }
 0xba7   :  { %4714 = vmatprep.subr.bf16.mxu0 %v11868_v47  ;;  %4755 = vmatprep.subr.bf16.mxu1 %v11950_v39 }
 0xbaa   :  { %4715 = vmatpush2.bf16.msra.mxu0 %v11869_v21  ;;  %4756 = vmatpush2.bf16.msra.mxu1 %v12329_v54 }
 0xbab   :  { %4716 = vmatprep.subr.bf16.mxu0 %v12330_v5  ;;  %4757 = vmatprep.subr.bf16.mxu1 %v12331_v45  ;;  %v12425_v5 = vrot.slane %v9590_v49, 3 }
 0xbae   :  { %4717 = vmatpush2.bf16.msra.mxu0 %v12332_v31  ;;  %4758 = vmatpush2.bf16.msra.mxu1 %v12333_v27 }
 0xbaf   :  { %4718 = vmatprep.subr.bf16.mxu0 %v12334_v4  ;;  %4759 = vmatprep.subr.bf16.mxu1 %v12335_v3 }
 0xbb2   :  { %4719 = vmatpush2.bf16.msra.mxu0 %v12336_v19  ;;  %4760 = vmatpush2.bf16.msra.mxu1 %v12337_v18  ;;  %v12348_v18 = vld [vmem:[#allocation116_spill] sm:$0xff] }
 0xbb3   :  { %4720 = vmatprep.subr.bf16.mxu0 %v12338_v56  ;;  %4761 = vmatprep.subr.bf16.mxu1 %v12339_v44  ;;  %v12349_v56 = vld [vmem:[#allocation137_spill] sm:$0xff]  ;;  %v12350_v44 = vld [vmem:[#allocation118_spill] sm:$0xff] }
 0xbb6   :  { %4721 = vmatpush2.bf16.msra.mxu0 %v12340_v38  ;;  %4762 = vmatpush2.bf16.msra.mxu1 %v12341_v20  ;;  %v12351_v38 = vld [vmem:[#allocation138_spill] sm:$0xff]  ;;  %v12352_v20 = vld [vmem:[#allocation120_spill] sm:$0xff] }
 0xbb7   :  { %4722 = vmatprep.subr.bf16.mxu0 %v12342_v59  ;;  %4763 = vmatprep.subr.bf16.mxu1 %v12343_v24  ;;  %v12353_v59 = vld [vmem:[#allocation139_spill] sm:$0xff]  ;;  %v12354_v24 = vld [vmem:[#allocation122_spill] sm:$0xff] }
 0xbba   :  { %4723 = vmatpush2.bf16.msra.mxu0 %v12344_v28  ;;  %4764 = vmatpush2.bf16.msra.mxu1 %v12345_v37  ;;  %v12355_v28 = vld [vmem:[#allocation140_spill] sm:$0xff] }
 0xbbb   :  { %4724 = vmatprep.subr.bf16.mxu0 %v12346_v62  ;;  %4765 = vmatprep.subr.bf16.mxu1 %v12347_v15  ;;  %v12356_v37 = vld [vmem:[#allocation124_spill] sm:$0xff]  ;;  %v12357_v62 = vld [vmem:[#allocation141_spill] sm:$0xff]  ;;  %v12358_v15 = vld [vmem:[#allocation14_spill] sm:$0xff] }
 0xbbe   :  { %4725 = vmatpush2.bf16.msra.mxu0 %v12348_v18  ;;  %4766 = vmatpush2.bf16.msra.mxu1 %v12349_v56  ;;  %v12359_v18 = vld [vmem:[#allocation31_spill] sm:$0xff] }
 0xbbf   :  { %4726 = vmatprep.subr.bf16.mxu0 %v12350_v44  ;;  %4767 = vmatprep.subr.bf16.mxu1 %v12351_v38  ;;  %v12360_v38 = vld [vmem:[#allocation15_spill] sm:$0xff]  ;;  %v12369_v44 = vld [vmem:[#allocation41_spill] sm:$0xff] }
 0xbc2   :  { %4727 = vmatpush2.bf16.msra.mxu0 %v12352_v20  ;;  %4768 = vmatpush2.bf16.msra.mxu1 %v12353_v59  ;;  %v12361_v20 = vld [vmem:[#allocation33_spill] sm:$0xff]  ;;  %v12362_v59 = vld [vmem:[#allocation16_spill] sm:$0xff] }
 0xbc3   :  { %4728 = vmatprep.subr.bf16.mxu0 %v12354_v24  ;;  %4769 = vmatprep.subr.bf16.mxu1 %v12355_v28  ;;  %v12363_v24 = vld [vmem:[#allocation35_spill] sm:$0xff]  ;;  %v12364_v28 = vld [vmem:[#allocation17_spill] sm:$0xff] }
 0xbc6   :  { %4729 = vmatpush2.bf16.msra.mxu0 %v12356_v37  ;;  %4770 = vmatpush2.bf16.msra.mxu1 %v12357_v62  ;;  %v12365_v37 = vld [vmem:[#allocation37_spill] sm:$0xff]  ;;  %v12366_v62 = vld [vmem:[#allocation18_spill] sm:$0xff] }
 0xbc7   :  { %4874 = vmatprep.subr.bf16.mxu0 %v12358_v15  ;;  %4915 = vmatprep.subr.bf16.mxu1 %v12359_v18  ;;  %v12367_v15 = vld [vmem:[#allocation39_spill] sm:$0xff] }
 0xbc8   :  { %v12368_v18 = vld [vmem:[#allocation19_spill] sm:$0xff] }
 0xbc9   :  { %4731 = vmatmul.mubr.bf16.vlgmr.msra.gmra.mxu0 %v10464_v11  ;;  %4772 = vmatmul.mubr.bf16.vlgmr.msra.gmra.mxu1 %v10464_v11  ;;  %v12370_v11 = vld [vmem:[#allocation20_spill] sm:$0xff] }
 0xbca   :  { %4875 = vmatpush1.bf16.msra.mxu0 %v12360_v38  ;;  %4916 = vmatpush1.bf16.msra.mxu1 %v12361_v20  ;;  %v12371_v38 = vld [vmem:[#allocation43_spill] sm:$0xff]  ;;  %v12372_v20 = vld [vmem:[#allocation21_spill] sm:$0xff] }
 0xbcb   :  { %4876 = vmatprep.subr.bf16.mxu0 %v12362_v59  ;;  %4917 = vmatprep.subr.bf16.mxu1 %v12363_v24  ;;  %v12373_v59 = vld [vmem:[#allocation45_spill] sm:$0xff]  ;;  %v12374_v24 = vld [vmem:[#allocation22_spill] sm:$0xff] }
 0xbce   :  { %4877 = vmatpush1.bf16.msra.mxu0 %v12364_v28  ;;  %4918 = vmatpush1.bf16.msra.mxu1 %v12365_v37  ;;  %v12375_v28 = vld [vmem:[#allocation47_spill] sm:$0xff] }
 0xbcf   :  { %4878 = vmatprep.subr.bf16.mxu0 %v12366_v62  ;;  %4919 = vmatprep.subr.bf16.mxu1 %v12367_v15  ;;  %v12376_v37 = vld [vmem:[#allocation23_spill] sm:$0xff]  ;;  %v12377_v62 = vld [vmem:[#allocation49_spill] sm:$0xff]  ;;  %v12378_v15 = vld [vmem:[#allocation24_spill] sm:$0xff] }
 0xbd2   :  { %4879 = vmatpush1.bf16.msra.mxu0 %v12368_v18  ;;  %4920 = vmatpush1.bf16.msra.mxu1 %v12369_v44  ;;  %v12379_v18 = vld [vmem:[#allocation51_spill] sm:$0xff]  ;;  %v12380_v44 = vld [vmem:[#allocation25_spill] sm:$0xff] }
 0xbd3   :  { %4880 = vmatprep.subr.bf16.mxu0 %v12370_v11  ;;  %4921 = vmatprep.subr.bf16.mxu1 %v12371_v38  ;;  %v12381_v11 = vld [vmem:[#allocation53_spill] sm:$0xff]  ;;  %v12382_v38 = vld [vmem:[#allocation26_spill] sm:$0xff] }
 0xbd6   :  { %4881 = vmatpush1.bf16.msra.mxu0 %v12372_v20  ;;  %4922 = vmatpush1.bf16.msra.mxu1 %v12373_v59  ;;  %v12383_v20 = vld [vmem:[#allocation55_spill] sm:$0xff] }
 0xbd7   :  { %4882 = vmatprep.subr.bf16.mxu0 %v12374_v24  ;;  %4923 = vmatprep.subr.bf16.mxu1 %v12375_v28  ;;  %v12384_v59 = vld [vmem:[#allocation27_spill] sm:$0xff]  ;;  %v12385_v24 = vld [vmem:[#allocation57_spill] sm:$0xff]  ;;  %v12386_v28 = vld [vmem:[#allocation28_spill] sm:$0xff] }
 0xbda   :  { %4883 = vmatpush1.bf16.msra.mxu0 %v12376_v37  ;;  %4924 = vmatpush1.bf16.msra.mxu1 %v12377_v62  ;;  %v12387_v37 = vld [vmem:[#allocation59_spill] sm:$0xff]  ;;  %v12388_v62 = vld [vmem:[#allocation29_spill] sm:$0xff] }
 0xbdb   :  { %4884 = vmatprep.subr.bf16.mxu0 %v12378_v15  ;;  %4925 = vmatprep.subr.bf16.mxu1 %v12379_v18  ;;  %v12389_v15 = vld [vmem:[#allocation61_spill] sm:$0xff]  ;;  %v12390_v18 = vld [vmem:[#allocation30_spill] sm:$0xff] }
 0xbde   :  { %4885 = vmatpush1.bf16.msra.mxu0 %v12380_v44  ;;  %4926 = vmatpush1.bf16.msra.mxu1 %v12381_v11  ;;  %v12391_v44 = vld [vmem:[#allocation62_spill] sm:$0xff]  ;;  %v12392_v11 = vld [vmem:[#allocation32_spill] sm:$0xff] }
 0xbdf   :  { %4886 = vmatprep.subr.bf16.mxu0 %v12382_v38  ;;  %4927 = vmatprep.subr.bf16.mxu1 %v12383_v20  ;;  %v12393_v38 = vld [vmem:[#allocation64_spill] sm:$0xff]  ;;  %v12394_v20 = vld [vmem:[#allocation34_spill] sm:$0xff] }
 0xbe2   :  { %4887 = vmatpush1.bf16.msra.mxu0 %v12384_v59  ;;  %4928 = vmatpush1.bf16.msra.mxu1 %v12385_v24  ;;  %v12395_v59 = vld [vmem:[#allocation66_spill] sm:$0xff]  ;;  %v12396_v24 = vld [vmem:[#allocation36_spill] sm:$0xff] }
 0xbe3   :  { %4888 = vmatprep.subr.bf16.mxu0 %v12386_v28  ;;  %4929 = vmatprep.subr.bf16.mxu1 %v12387_v37  ;;  %v12397_v28 = vld [vmem:[#allocation68_spill] sm:$0xff]  ;;  %v12398_v37 = vld [vmem:[#allocation38_spill] sm:$0xff] }
 0xbe6   :  { %4889 = vmatpush1.bf16.msra.mxu0 %v12388_v62  ;;  %4930 = vmatpush1.bf16.msra.mxu1 %v12389_v15  ;;  %v12399_v62 = vld [vmem:[#allocation70_spill] sm:$0xff]  ;;  %v12400_v15 = vld [vmem:[#allocation40_spill] sm:$0xff] }
 0xbe7   :  { %4890 = vmatprep.subr.bf16.mxu0 %v12390_v18  ;;  %4931 = vmatprep.subr.bf16.mxu1 %v12391_v44  ;;  %v12401_v18 = vld [vmem:[#allocation72_spill] sm:$0xff]  ;;  %v12402_v44 = vld [vmem:[#allocation42_spill] sm:$0xff] }
 0xbea   :  { %4891 = vmatpush2.bf16.msra.mxu0 %v12392_v11  ;;  %4932 = vmatpush2.bf16.msra.mxu1 %v12393_v38  ;;  %v12403_v11 = vld [vmem:[#allocation74_spill] sm:$0xff]  ;;  %v12404_v38 = vld [vmem:[#allocation44_spill] sm:$0xff] }
 0xbeb   :  { %4892 = vmatprep.subr.bf16.mxu0 %v12394_v20  ;;  %4933 = vmatprep.subr.bf16.mxu1 %v12395_v59  ;;  %v12405_v20 = vld [vmem:[#allocation76_spill] sm:$0xff]  ;;  %v12406_v59 = vld [vmem:[#allocation46_spill] sm:$0xff] }
 0xbee   :  { %4893 = vmatpush2.bf16.msra.mxu0 %v12396_v24  ;;  %4934 = vmatpush2.bf16.msra.mxu1 %v12397_v28  ;;  %v12407_v24 = vld [vmem:[#allocation78_spill] sm:$0xff]  ;;  %v12408_v28 = vld [vmem:[#allocation48_spill] sm:$0xff] }
 0xbef   :  { %4894 = vmatprep.subr.bf16.mxu0 %v12398_v37  ;;  %4935 = vmatprep.subr.bf16.mxu1 %v12399_v62  ;;  %v12409_v37 = vld [vmem:[#allocation80_spill] sm:$0xff]  ;;  %v12410_v62 = vld [vmem:[#allocation50_spill] sm:$0xff] }
 0xbf2   :  { %4895 = vmatpush2.bf16.msra.mxu0 %v12400_v15  ;;  %4936 = vmatpush2.bf16.msra.mxu1 %v12401_v18  ;;  %v12411_v15 = vld [vmem:[#allocation82_spill] sm:$0xff]  ;;  %v12412_v18 = vld [vmem:[#allocation52_spill] sm:$0xff] }
 0xbf3   :  { %4896 = vmatprep.subr.bf16.mxu0 %v12402_v44  ;;  %4937 = vmatprep.subr.bf16.mxu1 %v12403_v11  ;;  %v12413_v44 = vld [vmem:[#allocation84_spill] sm:$0xff]  ;;  %v12414_v11 = vld [vmem:[#allocation54_spill] sm:$0xff] }
 0xbf6   :  { %4897 = vmatpush2.bf16.msra.mxu0 %v12404_v38  ;;  %4938 = vmatpush2.bf16.msra.mxu1 %v12405_v20  ;;  %v12415_v38 = vld [vmem:[#allocation86_spill] sm:$0xff]  ;;  %v12416_v20 = vld [vmem:[#allocation56_spill] sm:$0xff] }
 0xbf7   :  { %4898 = vmatprep.subr.bf16.mxu0 %v12406_v59  ;;  %4939 = vmatprep.subr.bf16.mxu1 %v12407_v24  ;;  %v12417_v59 = vld [vmem:[#allocation88_spill] sm:$0xff]  ;;  %v12418_v24 = vld [vmem:[#allocation58_spill] sm:$0xff] }
 0xbfa   :  { %4899 = vmatpush2.bf16.msra.mxu0 %v12408_v28  ;;  %4940 = vmatpush2.bf16.msra.mxu1 %v12409_v37  ;;  %v12419_v28 = vld [vmem:[#allocation90_spill] sm:$0xff]  ;;  %v12420_v37 = vld [vmem:[#allocation60_spill] sm:$0xff] }
 0xbfb   :  { %4900 = vmatprep.subr.bf16.mxu0 %v12410_v62  ;;  %4941 = vmatprep.subr.bf16.mxu1 %v12411_v15  ;;  %v12421_v62 = vld [vmem:[#allocation92_spill] sm:$0xff]  ;;  %v12422_v15 = vld [vmem:[#allocation63_spill] sm:$0xff] }
 0xbfe   :  { %4901 = vmatpush2.bf16.msra.mxu0 %v12412_v18  ;;  %4942 = vmatpush2.bf16.msra.mxu1 %v12413_v44  ;;  %v12423_v18 = vld [vmem:[#allocation95_spill] sm:$0xff] }
 0xbff   :  { %4902 = vmatprep.subr.bf16.mxu0 %v12414_v11  ;;  %4943 = vmatprep.subr.bf16.mxu1 %v12415_v38 }
 0xc02   :  { %4903 = vmatpush2.bf16.msra.mxu0 %v12416_v20  ;;  %4944 = vmatpush2.bf16.msra.mxu1 %v12417_v59 }
 0xc03   :  { %4904 = vmatprep.subr.bf16.mxu0 %v12418_v24  ;;  %4945 = vmatprep.subr.bf16.mxu1 %v12419_v28 }
 0xc06   :  { %4905 = vmatpush2.bf16.msra.mxu0 %v12420_v37  ;;  %4946 = vmatpush2.bf16.msra.mxu1 %v12421_v62 }
 0xc07   :  { %4956 = vmatprep.subr.bf16.mxu0 %v12422_v15  ;;  %4997 = vmatprep.subr.bf16.mxu1 %v12423_v18  ;;  %v12424_v15 = vrot.slane %v12223_v53, 3 }
 0xc49   :  { %v4650_v44 = vpop.f32.mrf.mxu0  ;;  %v4691_v11 = vpop.f32.mrf.mxu1 }
 0xc4a   :  { %v4788_v4 = vrot.slane %v4650_v44, 2  ;;  %v4790_v24 = vrot.slane %v4691_v11, 2 }
 0xc4b   :  { %v4652_v56 = vpop.f32.mrf.mxu0  ;;  %v4693_v38 = vpop.f32.mrf.mxu1 }
 0xc4c   :  { %v4789_v27 = vrot.slane %v4652_v56, 2  ;;  %v4804_v28 = vadd.f32 %v4788_v4, %v9586_v63  ;;  %v4806_v37 = vadd.f32 %v4790_v24, %v9592_v2  ;;  %v4791_v62 = vrot.slane %v4693_v38, 2 }
 0xc4d   :  { %v4654_v19 = vpop.f32.mrf.mxu0  ;;  %v4695_v20 = vpop.f32.mrf.mxu1 }
 0xc4e   :  { %v4805_v31 = vadd.f32 %v4789_v27, %v12424_v15  ;;  %v7192_v18 = vmul.f32 -1.442695, %v4804_v28  ;;  %v7194_v45 = vmul.f32 -1.442695, %v4806_v37  ;;  %v4807_v54 = vadd.f32 %v4791_v62, %v12425_v5 }
 0xc4f   :  { %v4655_v3 = vpop.f32.mrf.mxu0  ;;  %v4696_v59 = vpop.f32.mrf.mxu1 }
 0xc50   :  { %v7193_v19 = vmul.f32 -1.442695, %v4805_v31  ;;  %8013 = vpow2.f32 %v7192_v18  ;;  %v7195_v3 = vmul.f32 -1.442695, %v4807_v54 }
 0xc51   :  { %8015 = vpow2.f32 %v7194_v45 }
 0xc52   :  { %8017 = vpow2.f32 %v7193_v19 }
 0xc53   :  { %8019 = vpow2.f32 %v7195_v3 }
 0xc5d   :  { %v8014_v56 = vpop.eup %8013 }
 0xc5e   :  { %v8016_v44 = vpop.eup %8015  ;;  %v4818_v11 = vadd.f32 1.0, %v8014_v56 }
 0xc5f   :  { %v8018_v4 = vpop.eup %8017  ;;  %v4830_v20 = vadd.f32 1.0, %v8016_v44  ;;  %v12426_v44 = vrot.slane %v9605_v1, 3 }
 0xc60   :  { %v8020_v38 = vpop.eup %8019  ;;  %v4819_v59 = vadd.f32 1.0, %v8018_v4  ;;  %8021 = vrcp.f32 %v4818_v11  ;;  %v12427_v11 = vrot.slane %v9617_v8, 3 }
 0xc61   :  { %8023 = vrcp.f32 %v4830_v20  ;;  %v4831_v5 = vadd.f32 1.0, %v8020_v38 }
 0xc62   :  { %8025 = vrcp.f32 %v4819_v59 }
 0xc89   :  { %v4732_v24 = vpop.f32.mrf.mxu0  ;;  %v4773_v27 = vpop.f32.mrf.mxu1 }
 0xc8a   :  { %v4792_v28 = vrot.slane %v4732_v24, 2  ;;  %v4794_v37 = vrot.slane %v4773_v27, 2 }
 0xc8b   :  { %v4734_v31 = vpop.f32.mrf.mxu0  ;;  %v4775_v62 = vpop.f32.mrf.mxu1 }
 0xc8c   :  { %v4808_v54 = vadd.f32 %v4792_v28, %v9609_v14  ;;  %v4810_v45 = vadd.f32 %v4794_v37, %v9620_v51  ;;  %v4793_v15 = vrot.slane %v4734_v31, 2  ;;  %v4795_v18 = vrot.slane %v4775_v62, 2  ;;  %v8022_v28 = vpop.eup %8021 }
 0xc8d   :  { %v4736_v19 = vpop.f32.mrf.mxu0  ;;  %v4777_v3 = vpop.f32.mrf.mxu1  ;;  %v4852_v31 = vrot.slane %v10450_v61, 7 }
 0xc8e   :  { %8027 = vtanh.f32 %v4808_v54  ;;  %v7196_v56 = vmul.f32 -1.442695, %v4810_v45  ;;  %v4809_v4 = vadd.f32 %v4793_v15, %v12426_v44  ;;  %v4811_v20 = vadd.f32 %v4795_v18, %v12427_v11  ;;  %v8024_v37 = vpop.eup %8023 }
 0xc8f   :  { %8029 = vrcp.f32 %v4831_v5  ;;  %v4737_v38 = vpop.f32.mrf.mxu0  ;;  %v4778_v24 = vpop.f32.mrf.mxu1  ;;  %v4856_v45 = vmul.f32 %v8024_v37, %v4852_v31  ;;  %v4853_v3 = vrot.slane %v10453_v40, 7 }
 0xc90   :  { %8031 = vpow2.f32 %v7196_v56  ;;  %v7197_v27 = vmul.f32 -1.442695, %v4811_v20  ;;  %v8026_v59 = vpop.eup %8025 }
 0xc91   :  { %8033 = vtanh.f32 %v4809_v4 }
 0xc92   :  { %8035 = vpow2.f32 %v7197_v27 }
 0xc9b   :  { %v8028_v62 = vpop.eup %8027 }
 0xc9c   :  { %v8030_v54 = vpop.eup %8029  ;;  %v4858_v19 = vmul.f32 %v8028_v62, %v8022_v28 }
 0xc9d   :  { %v8032_v15 = vpop.eup %8031  ;;  %v4857_v11 = vmul.f32 %v8030_v54, %v4853_v3  ;;  %v7727_v3 = vld [vmem:[#allocation5 + $0xc0] ss:$16 sps:$4 sm:$0xff]  }
 0xc9e   :  { %v8034_v18 = vpop.eup %8033  ;;  %v10612_v5 = vadd.f32 %v4858_v19, %v4856_v45  ;;  %v4844_v44 = vadd.f32 1.0, %v8032_v15  ;;  %v7729_v19 = vld [vmem:[#allocation5 + $0xc4] ss:$16 sps:$4 sm:$0xff]   ;;  %v7732_v15 = vld [vmem:[#allocation5 + $0xcc] ss:$16 sps:$4 sm:$0xff]  }
 0xc9f   :  { %v8036_v56 = vpop.eup %8035  ;;  %v4859_v4 = vmul.f32 %v8034_v18, %v8026_v59  ;;  %v7730_v18 = vld [vmem:[#allocation5 + $0xc8] ss:$16 sps:$4 sm:$0xff]  }
 0xca0   :  { %8037 = vtanh.f32 %v10612_v5  ;;  %v4845_v20 = vadd.f32 1.0, %v8036_v56  ;;  %v7738_v56 = vld [vmem:[#allocation5 + $0xac] ss:$16 sps:$4 sm:$0xff]  }
 0xca1   :  { %8039 = vrcp.f32 %v4844_v44  ;;  %v10615_v38 = vadd.f32 %v4859_v4, %v4857_v11  ;;  %v7735_v44 = vld [vmem:[#allocation5 + $0xa4] ss:$16 sps:$4 sm:$0xff]   ;;  %v7733_v11 = vld [vmem:[#allocation5 + $0xa0] ss:$16 sps:$4 sm:$0xff]   ;;  %v7736_v4 = vld [vmem:[#allocation5 + $0xa8] ss:$16 sps:$4 sm:$0xff]  }
 0xca2   :  { %8041 = vrcp.f32 %v4845_v20  ;;  %v7741_v20 = vld [vmem:[#allocation5 + $0x84] ss:$16 sps:$4 sm:$0xff]  }
 0xca3   :  { %8043 = vtanh.f32 %v10615_v38 }
 0xcad   :  { %v8038_v61 = vpop.eup %8037 }
 0xcae   :  { %v8040_v24 = vpop.eup %8039 }
 0xcaf   :  { %v8042_v27 = vpop.eup %8041  ;;  %v4864_v40 = vmul.f32 %v8040_v24, %v8038_v61  ;;  %v7744_v61 = vld [vmem:[#allocation5 + $0x8c] ss:$16 sps:$4 sm:$0xff]   ;;  %v7739_v24 = vld [vmem:[#allocation5 + $0x80] ss:$16 sps:$4 sm:$0xff]  }
 0xcb0   :  { %v8044_v28 = vpop.eup %8043 }
 0xcb1   :  { %v10618_v37 = vmul.f32 %v8044_v28, %v8042_v27  ;;  %v10622_v31 = vsel %vm258_vm9, %v10460_v0, %v4864_v40  ;;  %v4866_v59 = vpack.c.bf16 %v4864_v40, %v4864_v40  ;;  %v7724_v0 = vld [vmem:[#allocation5 + $0xe8] ss:$16 sps:$4 sm:$0xff]   ;;  %v7747_v40 = vld [vmem:[#allocation5 + $0x64] ss:$16 sps:$4 sm:$0xff]   ;;  %v7750_v28 = vld [vmem:[#allocation5 + $0x6c] ss:$16 sps:$4 sm:$0xff]  }
 0xcb2   :  { %v7742_v27 = vld [vmem:[#allocation5 + $0x88] ss:$16 sps:$4 sm:$0xff]  }
 0xcb3   :  { %v4867_v62 = vpack.c.bf16 %v10618_v37, %v10618_v37  ;;  %v10626_v45 = vrot.slane %v4866_v59, 3  ;;  %v7745_v59 = vld [vmem:[#allocation5 + $0x60] ss:$16 sps:$4 sm:$0xff]  }
 0xcb5   :  { %v4871_v54 = vrot.slane %v4867_v62, 3  ;;  %v7748_v62 = vld [vmem:[#allocation5 + $0x68] ss:$16 sps:$4 sm:$0xff]  }
 0xcb7   :  { %4906 = vmatprep.mubr.bf16.mxu0 %v4871_v54  ;;  %4947 = vmatprep.mubr.bf16.mxu1 %v4871_v54 }
 0xcb8   :  { %4907 = vmatmul.mubr.bf16.vlgmr.msra.gmra.mxu0 %v10626_v45  ;;  %4948 = vmatmul.mubr.bf16.vlgmr.msra.gmra.mxu1 %v10626_v45 }
 0xcb9   :  { %4957 = vmatpush1.bf16.msra.mxu0 %v11845_v10  ;;  %4998 = vmatpush1.bf16.msra.mxu1 %v11846_v34  ;;  %v12433_v10 = vld [vmem:[#allocation102_spill] sm:$0xff]  ;;  %v12435_v34 = vld [vmem:[#allocation104_spill] sm:$0xff] }
 0xcba   :  { %4988 = vmatprep.mubr.bf16.mxu0 %v4871_v54  ;;  %5029 = vmatprep.mubr.bf16.mxu1 %v4871_v54  ;;  %v7753_v54 = vld [vmem:[#allocation5 + $0x44] ss:$16 sps:$4 sm:$0xff]  }
 0xcbb   :  { %4958 = vmatprep.subr.bf16.mxu0 %v11847_v12  ;;  %4999 = vmatprep.subr.bf16.mxu1 %v11848_v55  ;;  %v12437_v12 = vld [vmem:[#allocation106_spill] sm:$0xff]  ;;  %v12439_v55 = vld [vmem:[#allocation108_spill] sm:$0xff] }
 0xcbd   :  { %4959 = vmatpush1.bf16.msra.mxu0 %v11849_v33  ;;  %5000 = vmatpush1.bf16.msra.mxu1 %v11850_v43  ;;  %v12440_v33 = vld [vmem:[#allocation133_spill] sm:$0xff]  ;;  %v12441_v43 = vld [vmem:[#allocation110_spill] sm:$0xff] }
 0xcbe   :  { %4960 = vmatprep.subr.bf16.mxu0 %v11851_v36  ;;  %5001 = vmatprep.subr.bf16.mxu1 %v11852_v9  ;;  %v12442_v36 = vld [vmem:[#allocation134_spill] sm:$0xff]  ;;  %v12443_v9 = vld [vmem:[#allocation112_spill] sm:$0xff] }
 0xcc1   :  { %4961 = vmatpush1.bf16.msra.mxu0 %v11853_v32  ;;  %5002 = vmatpush1.bf16.msra.mxu1 %v11854_v48  ;;  %v12444_v32 = vld [vmem:[#allocation135_spill] sm:$0xff]  ;;  %v12445_v48 = vld [vmem:[#allocation114_spill] sm:$0xff] }
 0xcc2   :  { %4962 = vmatprep.subr.bf16.mxu0 %v11855_v6  ;;  %5003 = vmatprep.subr.bf16.mxu1 %v11940_v29  ;;  %v12446_v6 = vld [vmem:[#allocation136_spill] sm:$0xff]  ;;  %v12450_v29 = vld [vmem:[#allocation138_spill] sm:$0xff] }
 0xcc5   :  { %4963 = vmatpush1.bf16.msra.mxu0 %v11857_v60  ;;  %5004 = vmatpush1.bf16.msra.mxu1 %v11941_v7  ;;  %v12448_v60 = vld [vmem:[#allocation137_spill] sm:$0xff]  ;;  %v12451_v7 = vld [vmem:[#allocation120_spill] sm:$0xff] }
 0xcc6   :  { %4964 = vmatprep.subr.bf16.mxu0 %v11859_v35  ;;  %5005 = vmatprep.subr.bf16.mxu1 %v11942_v23  ;;  %v12429_v35 = vld [vmem:[#allocation98_spill] sm:$0xff]  ;;  %v12452_v23 = vld [vmem:[#allocation139_spill] sm:$0xff] }
 0xcc9   :  { %4965 = vmatpush1.bf16.msra.mxu0 %v11861_v30  ;;  %5006 = vmatpush1.bf16.msra.mxu1 %v11943_v52  ;;  %v12428_v30 = vld [vmem:[#allocation127_spill] sm:$0xff]  ;;  %v12453_v52 = vld [vmem:[#allocation122_spill] sm:$0xff] }
 0xcca   :  { %4966 = vmatprep.subr.bf16.mxu0 %v11862_v42  ;;  %5007 = vmatprep.subr.bf16.mxu1 %v11944_v26  ;;  %v12431_v42 = vld [vmem:[#allocation100_spill] sm:$0xff] }
 0xccb   :  { %v12454_v26 = vld [vmem:[#allocation140_spill] sm:$0xff] }
 0xccd   :  { %4967 = vmatpush1.bf16.msra.mxu0 %v11863_v57  ;;  %5008 = vmatpush1.bf16.msra.mxu1 %v11945_v13  ;;  %v12430_v57 = vld [vmem:[#allocation128_spill] sm:$0xff] }
 0xcce   :  { %4968 = vmatprep.subr.bf16.mxu0 %v11864_v22  ;;  %5009 = vmatprep.subr.bf16.mxu1 %v11946_v25  ;;  %v12447_v22 = vld [vmem:[#allocation116_spill] sm:$0xff]  ;;  %v12456_v25 = vld [vmem:[#allocation141_spill] sm:$0xff] }
 0xccf   :  { %v12455_v13 = vld [vmem:[#allocation124_spill] sm:$0xff] }
 0xcd1   :  { %4969 = vmatpush1.bf16.msra.mxu0 %v11865_v46  ;;  %5010 = vmatpush1.bf16.msra.mxu1 %v11947_v58  ;;  %v12449_v46 = vld [vmem:[#allocation118_spill] sm:$0xff]  ;;  %v12457_v58 = vmov 0  }
 0xcd2   :  { %4970 = vmatprep.subr.bf16.mxu0 %v11866_v50  ;;  %5011 = vmatprep.subr.bf16.mxu1 %v11948_v41  ;;  %v12432_v50 = vld [vmem:[#allocation129_spill] sm:$0xff] }
 0xcd3   :  { %v7723_v41 = vld [vmem:[#allocation5 + $0xe4] ss:$16 sps:$4 sm:$0xff]  }
 0xcd5   :  { %4971 = vmatpush1.bf16.msra.mxu0 %v11867_v16  ;;  %5012 = vmatpush1.bf16.msra.mxu1 %v11949_v17  ;;  %v12434_v16 = vld [vmem:[#allocation130_spill] sm:$0xff] }
 0xcd6   :  { %4972 = vmatprep.subr.bf16.mxu0 %v11868_v47  ;;  %5013 = vmatprep.subr.bf16.mxu1 %v11950_v39  ;;  %v12436_v47 = vld [vmem:[#allocation131_spill] sm:$0xff]  ;;  %v7726_v17 = vld [vmem:[#allocation5 + $0xec] ss:$16 sps:$4 sm:$0xff]  }
 0xcd7   :  { %v7721_v39 = vld [vmem:[#allocation5 + $0xe0] ss:$16 sps:$4 sm:$0xff]  }
 0xcd9   :  { %4973 = vmatpush2.bf16.msra.mxu0 %v11869_v21  ;;  %5014 = vmatpush2.bf16.msra.mxu1 %v12428_v30  ;;  %v12438_v21 = vld [vmem:[#allocation132_spill] sm:$0xff]  ;;  %v7751_v30 = vld [vmem:[#allocation5 + $0x40] ss:$16 sps:$4 sm:$0xff]  }
 0xcda   :  { %4974 = vmatprep.subr.bf16.mxu0 %v12429_v35  ;;  %5015 = vmatprep.subr.bf16.mxu1 %v12430_v57  ;;  %v7754_v35 = vld [vmem:[#allocation5 + $0x48] ss:$16 sps:$4 sm:$0xff]   ;;  %v7759_v57 = vld [vmem:[#allocation5 + $0x24] ss:$16 sps:$4 sm:$0xff]  }
 0xcdd   :  { %4975 = vmatpush2.bf16.msra.mxu0 %v12431_v42  ;;  %5016 = vmatpush2.bf16.msra.mxu1 %v12432_v50  ;;  %v7757_v42 = vld [vmem:[#allocation5 + $0x20] ss:$16 sps:$4 sm:$0xff]   ;;  %v7760_v50 = vld [vmem:[#allocation5 + $0x28] ss:$16 sps:$4 sm:$0xff]  }
 0xcde   :  { %4976 = vmatprep.subr.bf16.mxu0 %v12433_v10  ;;  %5017 = vmatprep.subr.bf16.mxu1 %v12434_v16  ;;  %v7762_v10 = vld [vmem:[#allocation5 + $0x2c] ss:$16 sps:$4 sm:$0xff]   ;;  %v7765_v16 = vld [vmem:[#allocation5 + $0x4] ss:$16 sps:$4 sm:$0xff]  }
 0xce1   :  { %4977 = vmatpush2.bf16.msra.mxu0 %v12435_v34  ;;  %5018 = vmatpush2.bf16.msra.mxu1 %v12436_v47  ;;  %v7768_v34 = vld [vmem:[#allocation5 + $0xc] ss:$16 sps:$4 sm:$0xff]   ;;  %v7763_v47 = vld [vmem:[#allocation5] ss:$16 sps:$4 sm:$0xff]  }
 0xce2   :  { %4978 = vmatprep.subr.bf16.mxu0 %v12437_v12  ;;  %5019 = vmatprep.subr.bf16.mxu1 %v12438_v21  ;;  %v7766_v12 = vld [vmem:[#allocation5 + $0x8] ss:$16 sps:$4 sm:$0xff]   ;;  %v10696_v21 = vld [vmem:[#allocation7 + $0xe4] ss:$16 sps:$4 sm:$0xff]  }
 0xce5   :  { %4979 = vmatpush2.bf16.msra.mxu0 %v12439_v55  ;;  %5020 = vmatpush2.bf16.msra.mxu1 %v12440_v33  ;;  %v10698_v55 = vld [vmem:[#allocation7 + $0xec] ss:$16 sps:$4 sm:$0xff]  }
 0xce6   :  { %4980 = vmatprep.subr.bf16.mxu0 %v12441_v43  ;;  %5021 = vmatprep.subr.bf16.mxu1 %v12442_v36 }
 0xce9   :  { %4981 = vmatpush2.bf16.msra.mxu0 %v12443_v9  ;;  %5022 = vmatpush2.bf16.msra.mxu1 %v12444_v32 }
 0xcea   :  { %4982 = vmatprep.subr.bf16.mxu0 %v12445_v48  ;;  %5023 = vmatprep.subr.bf16.mxu1 %v12446_v6 }
 0xced   :  { %4983 = vmatpush2.bf16.msra.mxu0 %v12447_v22  ;;  %5024 = vmatpush2.bf16.msra.mxu1 %v12448_v60 }
 0xcee   :  { %4984 = vmatprep.subr.bf16.mxu0 %v12449_v46  ;;  %5025 = vmatprep.subr.bf16.mxu1 %v12450_v29 }
 0xcf1   :  { %4985 = vmatpush2.bf16.msra.mxu0 %v12451_v7  ;;  %5026 = vmatpush2.bf16.msra.mxu1 %v12452_v23 }
 0xcf2   :  { %4986 = vmatprep.subr.bf16.mxu0 %v12453_v52  ;;  %5027 = vmatprep.subr.bf16.mxu1 %v12454_v26  ;;  %v12458_v26 = vrot.slane %v12223_v53, 1 }
 0xcf5   :  { %4987 = vmatpush2.bf16.msra.mxu0 %v12455_v13  ;;  %5028 = vmatpush2.bf16.msra.mxu1 %v12456_v25 }
 0xcf6   :  { %5378 = vmatprep.subr.bf16.mxu0 %v7723_v41  ;;  %5419 = vmatprep.subr.bf16.mxu1 %v7726_v17  ;;  %v12459_v17 = vrot.slane %v9590_v49, 1 }
 0xcf8   :  { %4989 = vmatmul.mubr.bf16.vlgmr.msra.gmra.mxu0 %v10626_v45  ;;  %5030 = vmatmul.mubr.bf16.vlgmr.msra.gmra.mxu1 %v10626_v45  ;;  %v7756_v45 = vld [vmem:[#allocation5 + $0x4c] ss:$16 sps:$4 sm:$0xff]  }
 0xcf9   :  { %5410 = vmatprep.mubr.bf16.mxu0 %v12457_v58  ;;  %5451 = vmatprep.mubr.bf16.mxu1 %v12457_v58 }
 0xcfa   :  { %5379 = vmatpush1.bf16.msra.mxu0 %v7721_v39  ;;  %5420 = vmatpush1.bf16.msra.mxu1 %v7724_v0 }
 0xcfb   :  { %5380 = vmatprep.subr.bf16.mxu0 %v7729_v19  ;;  %5421 = vmatprep.subr.bf16.mxu1 %v7732_v15 }
 0xcfe   :  { %5381 = vmatpush1.bf16.msra.mxu0 %v7727_v3  ;;  %5422 = vmatpush1.bf16.msra.mxu1 %v7730_v18 }
 0xcff   :  { %5382 = vmatprep.subr.bf16.mxu0 %v7735_v44  ;;  %5423 = vmatprep.subr.bf16.mxu1 %v7738_v56 }
 0xd02   :  { %5383 = vmatpush1.bf16.msra.mxu0 %v7733_v11  ;;  %5424 = vmatpush1.bf16.msra.mxu1 %v7736_v4 }
 0xd03   :  { %5384 = vmatprep.subr.bf16.mxu0 %v7741_v20  ;;  %5425 = vmatprep.subr.bf16.mxu1 %v7744_v61 }
 0xd06   :  { %5385 = vmatpush1.bf16.msra.mxu0 %v7739_v24  ;;  %5426 = vmatpush1.bf16.msra.mxu1 %v7742_v27 }
 0xd07   :  { %5386 = vmatprep.subr.bf16.mxu0 %v7747_v40  ;;  %5427 = vmatprep.subr.bf16.mxu1 %v7750_v28 }
 0xd0a   :  { %5387 = vmatpush1.bf16.msra.mxu0 %v7745_v59  ;;  %5428 = vmatpush1.bf16.msra.mxu1 %v7748_v62 }
 0xd0b   :  { %5388 = vmatprep.subr.bf16.mxu0 %v7753_v54  ;;  %5429 = vmatprep.subr.bf16.mxu1 %v7756_v45 }
 0xd0e   :  { %5389 = vmatpush1.bf16.msra.mxu0 %v7751_v30  ;;  %5430 = vmatpush1.bf16.msra.mxu1 %v7754_v35  ;;  %v12460_v30 = vrot.slane %v9605_v1, 1 }
 0xd0f   :  { %5390 = vmatprep.subr.bf16.mxu0 %v7759_v57  ;;  %5431 = vmatprep.subr.bf16.mxu1 %v7762_v10  ;;  %v12461_v57 = vrot.slane %v9617_v8, 1  ;;  %v5111_v8 = vrot.slane %v10615_v38, 7 }
 0xd12   :  { %5391 = vmatpush1.bf16.msra.mxu0 %v7757_v42  ;;  %5432 = vmatpush1.bf16.msra.mxu1 %v7760_v50 }
 0xd13   :  { %5392 = vmatprep.subr.bf16.mxu0 %v7765_v16  ;;  %5433 = vmatprep.subr.bf16.mxu1 %v7768_v34 }
 0xd16   :  { %5393 = vmatpush1.bf16.msra.mxu0 %v7763_v47  ;;  %5434 = vmatpush1.bf16.msra.mxu1 %v7766_v12  ;;  %v5110_v47 = vrot.slane %v10612_v5, 7 }
 0xd17   :  { %5720 = vmatprep.subr.bf16.mxu0 %v10696_v21  ;;  %5761 = vmatprep.subr.bf16.mxu1 %v10698_v55 }
 0xd78   :  { %v4908_v33 = vpop.f32.mrf.mxu0  ;;  %v4949_v43 = vpop.f32.mrf.mxu1 }
 0xd79   :  { %v5046_v60 = vrot.slane %v4908_v33, 1  ;;  %v5048_v46 = vrot.slane %v4949_v43, 1 }
 0xd7a   :  { %v4910_v36 = vpop.f32.mrf.mxu0  ;;  %v4951_v9 = vpop.f32.mrf.mxu1 }
 0xd7b   :  { %v5047_v29 = vrot.slane %v4910_v36, 1  ;;  %v5062_v7 = vadd.f32 %v5046_v60, %v9586_v63  ;;  %v5064_v23 = vadd.f32 %v5048_v46, %v9592_v2  ;;  %v5049_v52 = vrot.slane %v4951_v9, 1 }
 0xd7c   :  { %v4912_v32 = vpop.f32.mrf.mxu0  ;;  %v4953_v48 = vpop.f32.mrf.mxu1 }
 0xd7d   :  { %v5063_v13 = vadd.f32 %v5047_v29, %v12458_v26  ;;  %v7198_v25 = vmul.f32 -1.442695, %v5062_v7  ;;  %v7200_v41 = vmul.f32 -1.442695, %v5064_v23  ;;  %v5065_v39 = vadd.f32 %v5049_v52, %v12459_v17  ;;  %v12462_v17 = vld [vmem:[#allocation69_spill] sm:$0xff] }
 0xd7e   :  { %v4913_v6 = vpop.f32.mrf.mxu0  ;;  %v4954_v22 = vpop.f32.mrf.mxu1 }
 0xd7f   :  { %v7199_v0 = vmul.f32 -1.442695, %v5063_v13  ;;  %8045 = vpow2.f32 %v7198_v25  ;;  %v7201_v19 = vmul.f32 -1.442695, %v5065_v39  ;;  %v5135_v25 = vrot.slane %v10618_v37, 5  ;;  %v12467_v37 = vld [vmem:[#allocation144_spill] sm:$0xff] }
 0xd80   :  { %8047 = vpow2.f32 %v7200_v41  ;;  %v5138_v39 = vrot.slane %v12462_v17, 3 }
 0xd81   :  { %8049 = vpow2.f32 %v7199_v0  ;;  %v12463_v0 = vld [vmem:[#allocation99_spill] sm:$0xff] }
 0xd82   :  { %8051 = vpow2.f32 %v7201_v19  ;;  %v5141_v19 = vrot.slane %v12463_v0, 1 }
 0xd8c   :  { %v8046_v15 = vpop.eup %8045 }
 0xd8d   :  { %v8048_v3 = vpop.eup %8047  ;;  %v5076_v18 = vadd.f32 1.0, %v8046_v15 }
 0xd8e   :  { %v8050_v63 = vpop.eup %8049  ;;  %v5088_v2 = vadd.f32 1.0, %v8048_v3  ;;  %v12464_v3 = vld [vmem:[#allocation67_spill] sm:$0xff] }
 0xd8f   :  { %v8052_v44 = vpop.eup %8051  ;;  %v5077_v56 = vadd.f32 1.0, %v8050_v63  ;;  %8053 = vrcp.f32 %v5076_v18  ;;  %v5144_v63 = vrot.slane %v12464_v3, 7 }
 0xd90   :  { %8055 = vrcp.f32 %v5088_v2  ;;  %v5089_v49 = vadd.f32 1.0, %v8052_v44  ;;  %v12465_v2 = vld [vmem:[#allocation97_spill] sm:$0xff] }
 0xd91   :  { %8057 = vrcp.f32 %v5077_v56  ;;  %v5147_v44 = vrot.slane %v12465_v2, 5 }
 0xdb8   :  { %v4990_v53 = vpop.f32.mrf.mxu0  ;;  %v5031_v11 = vpop.f32.mrf.mxu1 }
 0xdb9   :  { %v5050_v4 = vrot.slane %v4990_v53, 1  ;;  %v5052_v20 = vrot.slane %v5031_v11, 1  ;;  %v12466_v53 = vld [vmem:[#allocation65_spill] sm:$0xff] }
 0xdba   :  { %v4992_v61 = vpop.f32.mrf.mxu0  ;;  %v5033_v24 = vpop.f32.mrf.mxu1  ;;  %v5150_v11 = vrot.slane %v12466_v53, 3 }
 0xdbb   :  { %v5066_v27 = vadd.f32 %v5050_v4, %v9609_v14  ;;  %v5068_v40 = vadd.f32 %v5052_v20, %v9620_v51  ;;  %v5051_v28 = vrot.slane %v4992_v61, 1  ;;  %v5053_v59 = vrot.slane %v5033_v24, 1  ;;  %v8054_v51 = vpop.eup %8053 }
 0xdbc   :  { %v4994_v62 = vpop.f32.mrf.mxu0  ;;  %v5035_v54 = vpop.f32.mrf.mxu1  ;;  %v5153_v4 = vrot.slane %v12467_v37, 1 }
 0xdbd   :  { %8059 = vtanh.f32 %v5066_v27  ;;  %v7202_v45 = vmul.f32 -1.442695, %v5068_v40  ;;  %v5067_v35 = vadd.f32 %v5051_v28, %v12460_v30  ;;  %v5069_v42 = vadd.f32 %v5053_v59, %v12461_v57  ;;  %v8056_v16 = vpop.eup %8055  ;;  %v10732_v27 = vld [vmem:[#allocation7 + $0xe0] ss:$16 sps:$4 sm:$0xff]   ;;  %v10734_v40 = vld [vmem:[#allocation7 + $0xe8] ss:$16 sps:$4 sm:$0xff]  }
 0xdbe   :  { %8061 = vrcp.f32 %v5089_v49  ;;  %v4995_v50 = vpop.f32.mrf.mxu0  ;;  %v5036_v10 = vpop.f32.mrf.mxu1  ;;  %v5114_v43 = vmul.f32 %v8056_v16, %v5110_v47  ;;  %v10736_v59 = vld [vmem:[#allocation7 + $0xc4] ss:$16 sps:$4 sm:$0xff]   ;;  %v10738_v62 = vld [vmem:[#allocation7 + $0xcc] ss:$16 sps:$4 sm:$0xff]   ;;  %v10742_v54 = vld [vmem:[#allocation7 + $0xc0] ss:$16 sps:$4 sm:$0xff]  }
 0xdbf   :  { %8063 = vpow2.f32 %v7202_v45  ;;  %v7203_v14 = vmul.f32 -1.442695, %v5069_v42  ;;  %v8058_v34 = vpop.eup %8057  ;;  %v10744_v45 = vld [vmem:[#allocation7 + $0xc8] ss:$16 sps:$4 sm:$0xff]   ;;  %v10748_v30 = vld [vmem:[#allocation7 + $0xa4] ss:$16 sps:$4 sm:$0xff]  }
 0xdc0   :  { %8065 = vtanh.f32 %v5067_v35  ;;  %v10750_v35 = vld [vmem:[#allocation7 + $0xac] ss:$16 sps:$4 sm:$0xff]   ;;  %v10756_v57 = vld [vmem:[#allocation7 + $0xa0] ss:$16 sps:$4 sm:$0xff]   ;;  %v10758_v42 = vld [vmem:[#allocation7 + $0xa8] ss:$16 sps:$4 sm:$0xff]  }
 0xdc1   :  { %8067 = vpow2.f32 %v7203_v14  ;;  %v10762_v50 = vld [vmem:[#allocation7 + $0x84] ss:$16 sps:$4 sm:$0xff]   ;;  %v10764_v10 = vld [vmem:[#allocation7 + $0x8c] ss:$16 sps:$4 sm:$0xff]   ;;  %v10768_v14 = vld [vmem:[#allocation7 + $0x80] ss:$16 sps:$4 sm:$0xff]  }
 0xdc2   :  { %v10774_v16 = vld [vmem:[#allocation7 + $0x64] ss:$16 sps:$4 sm:$0xff]   ;;  %v10780_v47 = vld [vmem:[#allocation7 + $0x60] ss:$16 sps:$4 sm:$0xff]  }
 0xdca   :  { %v8060_v12 = vpop.eup %8059 }
 0xdcb   :  { %v8062_v33 = vpop.eup %8061  ;;  %v5116_v1 = vmul.f32 %v8060_v12, %v8054_v51  ;;  %v10770_v51 = vld [vmem:[#allocation7 + $0x88] ss:$16 sps:$4 sm:$0xff]  }
 0xdcc   :  { %v8064_v36 = vpop.eup %8063  ;;  %v5115_v22 = vmul.f32 %v8062_v33, %v5111_v8  ;;  %v10782_v12 = vld [vmem:[#allocation7 + $0x68] ss:$16 sps:$4 sm:$0xff]   ;;  %v10786_v33 = vld [vmem:[#allocation7 + $0x44] ss:$16 sps:$4 sm:$0xff]  }
 0xdcd   :  { %v8066_v9 = vpop.eup %8065  ;;  %v5118_v32 = vadd.f32 %v5116_v1, %v5114_v43  ;;  %v5102_v48 = vadd.f32 1.0, %v8064_v36  ;;  %v10788_v43 = vld [vmem:[#allocation7 + $0x4c] ss:$16 sps:$4 sm:$0xff]   ;;  %v10792_v1 = vld [vmem:[#allocation7 + $0x40] ss:$16 sps:$4 sm:$0xff]  }
 0xdce   :  { %v8068_v6 = vpop.eup %8067  ;;  %v5117_v60 = vmul.f32 %v8066_v9, %v8058_v34  ;;  %v10776_v34 = vld [vmem:[#allocation7 + $0x6c] ss:$16 sps:$4 sm:$0xff]   ;;  %v10794_v36 = vld [vmem:[#allocation7 + $0x48] ss:$16 sps:$4 sm:$0xff]   ;;  %v10798_v8 = vld [vmem:[#allocation7 + $0x24] ss:$16 sps:$4 sm:$0xff]  }
 0xdcf   :  { %8069 = vtanh.f32 %v5118_v32  ;;  %v5103_v46 = vadd.f32 1.0, %v8068_v6  ;;  %v10800_v9 = vld [vmem:[#allocation7 + $0x2c] ss:$16 sps:$4 sm:$0xff]   ;;  %v10804_v32 = vld [vmem:[#allocation7 + $0x20] ss:$16 sps:$4 sm:$0xff]  }
 0xdd0   :  { %8071 = vrcp.f32 %v5102_v48  ;;  %v5119_v29 = vadd.f32 %v5117_v60, %v5115_v22  ;;  %v10806_v48 = vld [vmem:[#allocation7 + $0x28] ss:$16 sps:$4 sm:$0xff]   ;;  %v10810_v6 = vld [vmem:[#allocation7 + $0x4] ss:$16 sps:$4 sm:$0xff]   ;;  %v10812_v22 = vld [vmem:[#allocation7 + $0xc] ss:$16 sps:$4 sm:$0xff]  }
 0xdd1   :  { %8073 = vrcp.f32 %v5103_v46  ;;  %v10816_v60 = vld [vmem:[#allocation7] ss:$16 sps:$4 sm:$0xff]   ;;  %v10818_v46 = vld [vmem:[#allocation7 + $0x8] ss:$16 sps:$4 sm:$0xff]  }
 0xdd2   :  { %8075 = vtanh.f32 %v5119_v29  ;;  %v5196_v29 = vld [vmem:[%s11362_s13] sm:$0xf] }
 0xddc   :  { %v8070_v5 = vpop.eup %8069 }
 0xddd   :  { %v8072_v7 = vpop.eup %8071 }
 0xdde   :  { %v8074_v23 = vpop.eup %8073  ;;  %v5122_v52 = vmul.f32 %v8072_v7, %v8070_v5  ;;  %v12468_v5 = vld [vmem:[#allocation13_spill] sm:$0xff] }
 0xddf   :  { %v8076_v26 = vpop.eup %8075  ;;  %v2112_v7 = vadd.s32 256, %v12468_v5  ;;  %vm5508_vm0 = vcmp.lt.s32.totalorder %v12468_v5, 64 }
 0xde0   :  { %v5123_v13 = vmul.f32 %v8076_v26, %v8074_v23  ;;  %v5130_v38 = vsel %vm260_vm10, %v10622_v31, %v5122_v52  ;;  %v12469_v23 = vld [vmem:[#allocation12_spill] sm:$0xff] }
 0xde1   :  { %v12470_v52 = vsub.s32 0, %v12469_v23  ;;  %v12472_v17 = vsub.s32 1, %v12469_v23  ;;  %v12473_v0 = vsub.s32 3, %v12469_v23 }
 0xde2   :  { %v5132_v41 = vrot.slane %v5123_v13, 7  ;;  %v12471_v13 = vsub.s32 2, %v12469_v23 }
 0xde3   :  { %v5201_v26 = vrot.slane %v5196_v29, %v12470_v52 }
 0xde4   :  { %v5155_v15 = vsel %vm248_vm4, %v5132_v41, %v5135_v25  ;;  %v2111_v25 = vadd.s32 128, %v12468_v5  ;;  %v2113_v41 = vadd.s32 384, %v12468_v5 }
 0xde5   :  { %v5156_v18 = vsel %vm250_vm5, %v5155_v15, %v5138_v39  ;;  %v5205_v39 = vrot.slane %v5196_v29, %v12472_v17  ;;  %v5478_v15 = vand.u32 127, %v2112_v7 }
 0xde6   :  { %v5157_v56 = vsel %vm252_vm6, %v5156_v18, %v5141_v19  ;;  %v5213_v19 = vrot.slane %v5196_v29, %v12473_v0 }
 0xde7   :  { %v5158_v31 = vsel %vm254_vm7, %v5157_v56, %v5144_v63  ;;  %v5485_v56 = vand.u32 127, %v2113_v41  ;;  %vm10879_vm1 = vcmp.lt.s32.totalorder %v5478_v15, 64 }
 0xde8   :  { %v5159_v20 = vsel %vm256_vm8, %v5158_v31, %v5147_v44  ;;  %v5471_v44 = vand.u32 127, %v2111_v25 }
 0xde9   :  { %v5160_v49 = vsel %vm258_vm9, %v5159_v20, %v5150_v11  ;;  %vm10889_vm3 = vcmp.lt.s32.totalorder %v5485_v56, 64 }
 0xdea   :  { %v5161_v61 = vsel %vm260_vm10, %v5160_v49, %v5153_v4  ;;  %vm10885_vm2 = vcmp.lt.s32.totalorder %v5471_v44, 64 }
 0xdeb   :  { %v5162_v24 = vadd.f32 %v5161_v61, %v5130_v38  ;;  %v5209_v38 = vrot.slane %v5196_v29, %v12471_v13 }
 0xded   :  { %v5163_v28 = vpack.c.bf16 %v5162_v24, %v5162_v24 }
 0xdef   :  { %5411 = vmatmul.mubr.bf16.vlgmr.msra.gmra.mxu0 %v5163_v28  ;;  %5452 = vmatmul.mubr.bf16.vlgmr.msra.gmra.mxu1 %v5163_v28 }
 0xdf0   :  { %5721 = vmatpush1.bf16.msra.mxu0 %v10732_v27  ;;  %5762 = vmatpush1.bf16.msra.mxu1 %v10734_v40 }
 0xdf1   :  { %5722 = vmatprep.subr.bf16.mxu0 %v10736_v59  ;;  %5763 = vmatprep.subr.bf16.mxu1 %v10738_v62 }
 0xdf2   :  { %5752 = vmatprep.mubr.bf16.mxu0 %v12457_v58  ;;  %5793 = vmatprep.mubr.bf16.mxu1 %v12457_v58 }
 0xdf4   :  { %5723 = vmatpush1.bf16.msra.mxu0 %v10742_v54  ;;  %5764 = vmatpush1.bf16.msra.mxu1 %v10744_v45 }
 0xdf5   :  { %5724 = vmatprep.subr.bf16.mxu0 %v10748_v30  ;;  %5765 = vmatprep.subr.bf16.mxu1 %v10750_v35 }
 0xdf8   :  { %5725 = vmatpush1.bf16.msra.mxu0 %v10756_v57  ;;  %5766 = vmatpush1.bf16.msra.mxu1 %v10758_v42 }
 0xdf9   :  { %5726 = vmatprep.subr.bf16.mxu0 %v10762_v50  ;;  %5767 = vmatprep.subr.bf16.mxu1 %v10764_v10 }
 0xdfc   :  { %5727 = vmatpush1.bf16.msra.mxu0 %v10768_v14  ;;  %5768 = vmatpush1.bf16.msra.mxu1 %v10770_v51 }
 0xdfd   :  { %5728 = vmatprep.subr.bf16.mxu0 %v10774_v16  ;;  %5769 = vmatprep.subr.bf16.mxu1 %v10776_v34 }
 0xe00   :  { %5729 = vmatpush1.bf16.msra.mxu0 %v10780_v47  ;;  %5770 = vmatpush1.bf16.msra.mxu1 %v10782_v12 }
 0xe01   :  { %5730 = vmatprep.subr.bf16.mxu0 %v10786_v33  ;;  %5771 = vmatprep.subr.bf16.mxu1 %v10788_v43 }
 0xe04   :  { %5731 = vmatpush1.bf16.msra.mxu0 %v10792_v1  ;;  %5772 = vmatpush1.bf16.msra.mxu1 %v10794_v36 }
 0xe05   :  { %5732 = vmatprep.subr.bf16.mxu0 %v10798_v8  ;;  %5773 = vmatprep.subr.bf16.mxu1 %v10800_v9 }
 0xe08   :  { %5733 = vmatpush1.bf16.msra.mxu0 %v10804_v32  ;;  %5774 = vmatpush1.bf16.msra.mxu1 %v10806_v48 }
 0xe09   :  { %5734 = vmatprep.subr.bf16.mxu0 %v10810_v6  ;;  %5775 = vmatprep.subr.bf16.mxu1 %v10812_v22 }
 0xe0c   :  { %5735 = vmatpush1.bf16.msra.mxu0 %v10816_v60  ;;  %5776 = vmatpush1.bf16.msra.mxu1 %v10818_v46 }
 0xe0d   :  { %5843 = vmatprep.subr.bf16.mxu0 %v10696_v21  ;;  %5884 = vmatprep.subr.bf16.mxu1 %v10698_v55 }
 0xe0f   :  { %5753 = vmatmul.mubr.bf16.vlgmr.msra.gmra.mxu0 %v12457_v58  ;;  %5794 = vmatmul.mubr.bf16.vlgmr.msra.gmra.mxu1 %v12457_v58 }
 0xe10   :  { %5844 = vmatpush1.bf16.msra.mxu0 %v10732_v27  ;;  %5885 = vmatpush1.bf16.msra.mxu1 %v10734_v40 }
 0xe11   :  { %5845 = vmatprep.subr.bf16.mxu0 %v10736_v59  ;;  %5886 = vmatprep.subr.bf16.mxu1 %v10738_v62 }
 0xe12   :  { %5875 = vmatprep.mubr.bf16.mxu0 %v12457_v58  ;;  %5916 = vmatprep.mubr.bf16.mxu1 %v12457_v58 }
 0xe14   :  { %5846 = vmatpush1.bf16.msra.mxu0 %v10742_v54  ;;  %5887 = vmatpush1.bf16.msra.mxu1 %v10744_v45 }
 0xe15   :  { %5847 = vmatprep.subr.bf16.mxu0 %v10748_v30  ;;  %5888 = vmatprep.subr.bf16.mxu1 %v10750_v35 }
 0xe18   :  { %5848 = vmatpush1.bf16.msra.mxu0 %v10756_v57  ;;  %5889 = vmatpush1.bf16.msra.mxu1 %v10758_v42 }
 0xe19   :  { %5849 = vmatprep.subr.bf16.mxu0 %v10762_v50  ;;  %5890 = vmatprep.subr.bf16.mxu1 %v10764_v10 }
 0xe1c   :  { %5850 = vmatpush1.bf16.msra.mxu0 %v10768_v14  ;;  %5891 = vmatpush1.bf16.msra.mxu1 %v10770_v51 }
 0xe1d   :  { %5851 = vmatprep.subr.bf16.mxu0 %v10774_v16  ;;  %5892 = vmatprep.subr.bf16.mxu1 %v10776_v34 }
 0xe20   :  { %5852 = vmatpush1.bf16.msra.mxu0 %v10780_v47  ;;  %5893 = vmatpush1.bf16.msra.mxu1 %v10782_v12 }
 0xe21   :  { %5853 = vmatprep.subr.bf16.mxu0 %v10786_v33  ;;  %5894 = vmatprep.subr.bf16.mxu1 %v10788_v43 }
 0xe24   :  { %5854 = vmatpush1.bf16.msra.mxu0 %v10792_v1  ;;  %5895 = vmatpush1.bf16.msra.mxu1 %v10794_v36 }
 0xe25   :  { %5855 = vmatprep.subr.bf16.mxu0 %v10798_v8  ;;  %5896 = vmatprep.subr.bf16.mxu1 %v10800_v9 }
 0xe28   :  { %5856 = vmatpush1.bf16.msra.mxu0 %v10804_v32  ;;  %5897 = vmatpush1.bf16.msra.mxu1 %v10806_v48 }
 0xe29   :  { %5857 = vmatprep.subr.bf16.mxu0 %v10810_v6  ;;  %5898 = vmatprep.subr.bf16.mxu1 %v10812_v22 }
 0xe2c   :  { %5858 = vmatpush1.bf16.msra.mxu0 %v10816_v60  ;;  %5899 = vmatpush1.bf16.msra.mxu1 %v10818_v46 }
 0xe2d   :  { %5985 = vmatprep.subr.bf16.mxu0 %v10696_v21  ;;  %6026 = vmatprep.subr.bf16.mxu1 %v10698_v55 }
 0xeaf   :  { %v5412_v3 = vpop.f32.mrf.mxu0  ;;  %v5453_v63 = vpop.f32.mrf.mxu1 }
 0xeb0   :  { %v5413_v18 = vadd.f32 %v5412_v3, %v5201_v26  ;;  %v10876_v2 = vadd.f32 %v5453_v63, %v5209_v38 }
 0xeb1   :  { %v5414_v53 = vpop.f32.mrf.mxu0  ;;  %v5455_v11 = vpop.f32.mrf.mxu1 }
 0xeb2   :  { %v5415_v31 = vadd.f32 %v5414_v53, %v5205_v39  ;;  %v5456_v37 = vadd.f32 %v5455_v11, %v5213_v19  ;;  %v5830_v61 = vrot.slane %v5413_v18, 5  ;;  %v5832_v24 = vrot.slane %v10876_v2, 5 }
 0xeb3   :  { %v5416_v20 = vpop.f32.mrf.mxu0  ;;  %v5457_v49 = vpop.f32.mrf.mxu1  ;;  %v5968_v28 = vrot.slane %v5413_v18, 3  ;;  %v5970_v29 = vrot.slane %v10876_v2, 3  ;;  %v6110_v63 = vrot.slane %v5413_v18, 1  ;;  %v6112_v44 = vrot.slane %v10876_v2, 1 }
 0xeb4   :  { %v10895_v13 = vsel %vm5508_vm0, %v5413_v18, %v5830_v61  ;;  %v10900_v38 = vsel %vm10879_vm1, %v10876_v2, %v5832_v24  ;;  %v5831_v25 = vrot.slane %v5415_v31, 5  ;;  %v5833_v41 = vrot.slane %v5456_v37, 5 }
 0xeb5   :  { %v5417_v52 = vpop.f32.mrf.mxu0  ;;  %v5458_v26 = vpop.f32.mrf.mxu1  ;;  %12480 = vst [vmem:[#allocation101_spill] sm:$0xff] %v10900_v38  ;;  %v10904_v17 = vsel %vm5508_vm0, %v5413_v18, %v5968_v28  ;;  %v10909_v39 = vsel %vm10879_vm1, %v10876_v2, %v5970_v29  ;;  %v5969_v15 = vrot.slane %v5415_v31, 3  ;;  %v5971_v3 = vrot.slane %v5456_v37, 3 }
 0xeb6   :  { %v10913_v0 = vsel %vm10885_vm2, %v5415_v31, %v5831_v25  ;;  %v10917_v19 = vsel %vm10889_vm3, %v5456_v37, %v5833_v41  ;;  %v6111_v56 = vrot.slane %v5415_v31, 1  ;;  %v6113_v53 = vrot.slane %v5456_v37, 1 }
 0xeb7   :  { %v10922_v11 = vsel %vm10885_vm2, %v5415_v31, %v5969_v15  ;;  %v10926_v20 = vsel %vm10889_vm3, %v5456_v37, %v5971_v3  ;;  %v10930_v49 = vsel %vm5508_vm0, %v5413_v18, %v6110_v63  ;;  %v10935_v61 = vsel %vm10879_vm1, %v10876_v2, %v6112_v44 }
 0xeb8   :  { %12481 = vst [vmem:[#allocation71_spill] sm:$0xff] %v10935_v61  ;;  %v10939_v24 = vsel %vm10885_vm2, %v5415_v31, %v6111_v56  ;;  %v10943_v28 = vsel %vm10889_vm3, %v5456_v37, %v6113_v53  ;;  %v5516_v29 = vrot.slane %v5413_v18, 7  ;;  %v5517_v52 = vrot.slane %v5415_v31, 7 }
 0xeb9   :  { %12482 = vst [vmem:[#allocation103_spill] sm:$0xff] %v10939_v24  ;;  %12483 = vst [vmem:[#allocation73_spill] sm:$0xff] %v10943_v28  ;;  %v5518_v7 = vrot.slane %v10876_v2, 7 }
 0xeba   :  { %v10947_v26 = vsel %vm5508_vm0, %v5413_v18, %v5516_v29  ;;  %v10952_v3 = vsel %vm10885_vm2, %v5415_v31, %v5517_v52  ;;  %v5519_v29 = vrot.slane %v5456_v37, 7 }
 0xebb   :  { %12484 = vst [vmem:[#allocation105_spill] sm:$0xff] %v10952_v3 }
 0xecf   :  { %v5754_v25 = vpop.f32.mrf.mxu0  ;;  %v5795_v41 = vpop.f32.mrf.mxu1 }
 0xed0   :  { %v5802_v15 = vadd.f32 %v5754_v25, %v10947_v26  ;;  %v10957_v25 = vsel %vm10889_vm3, %v5456_v37, %v5519_v29 }
 0xed1   :  { %v5756_v63 = vpop.f32.mrf.mxu0  ;;  %v5797_v44 = vpop.f32.mrf.mxu1  ;;  %12485 = vst [vmem:[#allocation75_spill] sm:$0xff] %v10957_v25 }
 0xed2   :  { %v7268_v56 = vmul.f32 -1.442695, %v5802_v15  ;;  %v5803_v53 = vadd.f32 %v5756_v63, %v10952_v3  ;;  %v5805_v31 = vadd.f32 %v5797_v44, %v10957_v25 }
 0xed3   :  { %v5758_v61 = vpop.f32.mrf.mxu0  ;;  %v5799_v28 = vpop.f32.mrf.mxu1 }
 0xed4   :  { %8077 = vpow2.f32 %v7268_v56  ;;  %v7269_v24 = vmul.f32 -1.442695, %v5803_v53  ;;  %v7270_v52 = vmul.f32 -1.442695, %v5805_v31  ;;  %v10964_v61 = vsel %vm10879_vm1, %v10876_v2, %v5518_v7 }
 0xed5   :  { %v5759_v5 = vpop.f32.mrf.mxu0  ;;  %v5800_v18 = vpop.f32.mrf.mxu1  ;;  %12486 = vst [vmem:[#allocation77_spill] sm:$0xff] %v10964_v61  ;;  %v5804_v15 = vadd.f32 %v5795_v41, %v10964_v61 }
 0xed6   :  { %8079 = vpow2.f32 %v7269_v24 }
 0xed7   :  { %8081 = vpow2.f32 %v7270_v52 }
 0xee1   :  { %v8078_v28 = vpop.eup %8077 }
 0xee2   :  { %v5809_v63 = vadd.f32 1.0, %v8078_v28 }
 0xee3   :  { %v8080_v24 = vpop.eup %8079 }
 0xee4   :  { %8083 = vrcp.f32 %v5809_v63  ;;  %v5815_v23 = vadd.f32 1.0, %v8080_v24  ;;  %v8082_v37 = vpop.eup %8081 }
 0xee5   :  { %8085 = vtanh.f32 %v5804_v15  ;;  %v5822_v5 = vadd.f32 1.0, %v8082_v37 }
 0xee6   :  { %8087 = vrcp.f32 %v5815_v23 }
 0xee7   :  { %8089 = vrcp.f32 %v5822_v5 }
 0xef1   :  { %v8084_v44 = vpop.eup %8083 }
 0xef2   :  { %v8086_v56 = vpop.eup %8085 }
 0xef3   :  { %v8088_v53 = vpop.eup %8087  ;;  %v5826_v29 = vmul.f32 %v8086_v56, %v8084_v44 }
 0xef4   :  { %v5825_v18 = vmul.f32 0.0, %v8088_v53  ;;  %v8090_v2 = vpop.eup %8089 }
 0xef6   :  { %v10967_v4 = vadd.f32 %v5826_v29, %v5825_v18 }
 0xef8   :  { %8091 = vtanh.f32 %v10967_v4 }
 0xf05   :  { %v8092_v41 = vpop.eup %8091 }
 0xf06   :  { %v10970_v31 = vmul.f32 %v8092_v41, %v8090_v2 }
 0xf08   :  { %12487 = vst [vmem:[#allocation79_spill] sm:$0xff] %v10970_v31  ;;  %v5842_v7 = vpack.c.bf16 %v10970_v31, %v10970_v31 }
 0xf0a   :  { %5876 = vmatmul.mubr.bf16.vlgmr.msra.gmra.mxu0 %v5842_v7  ;;  %5917 = vmatmul.mubr.bf16.vlgmr.msra.gmra.mxu1 %v5842_v7 }
 0xf0b   :  { %5986 = vmatpush1.bf16.msra.mxu0 %v10732_v27  ;;  %6027 = vmatpush1.bf16.msra.mxu1 %v10734_v40 }
 0xf0c   :  { %5987 = vmatprep.subr.bf16.mxu0 %v10736_v59  ;;  %6028 = vmatprep.subr.bf16.mxu1 %v10738_v62 }
 0xf0d   :  { %6017 = vmatprep.mubr.bf16.mxu0 %v12457_v58  ;;  %6058 = vmatprep.mubr.bf16.mxu1 %v12457_v58 }
 0xf0f   :  { %5988 = vmatpush1.bf16.msra.mxu0 %v10742_v54  ;;  %6029 = vmatpush1.bf16.msra.mxu1 %v10744_v45 }
 0xf10   :  { %5989 = vmatprep.subr.bf16.mxu0 %v10748_v30  ;;  %6030 = vmatprep.subr.bf16.mxu1 %v10750_v35 }
 0xf13   :  { %5990 = vmatpush1.bf16.msra.mxu0 %v10756_v57  ;;  %6031 = vmatpush1.bf16.msra.mxu1 %v10758_v42 }
 0xf14   :  { %5991 = vmatprep.subr.bf16.mxu0 %v10762_v50  ;;  %6032 = vmatprep.subr.bf16.mxu1 %v10764_v10 }
 0xf17   :  { %5992 = vmatpush1.bf16.msra.mxu0 %v10768_v14  ;;  %6033 = vmatpush1.bf16.msra.mxu1 %v10770_v51 }
 0xf18   :  { %5993 = vmatprep.subr.bf16.mxu0 %v10774_v16  ;;  %6034 = vmatprep.subr.bf16.mxu1 %v10776_v34 }
 0xf1b   :  { %5994 = vmatpush1.bf16.msra.mxu0 %v10780_v47  ;;  %6035 = vmatpush1.bf16.msra.mxu1 %v10782_v12 }
 0xf1c   :  { %5995 = vmatprep.subr.bf16.mxu0 %v10786_v33  ;;  %6036 = vmatprep.subr.bf16.mxu1 %v10788_v43 }
 0xf1f   :  { %5996 = vmatpush1.bf16.msra.mxu0 %v10792_v1  ;;  %6037 = vmatpush1.bf16.msra.mxu1 %v10794_v36 }
 0xf20   :  { %5997 = vmatprep.subr.bf16.mxu0 %v10798_v8  ;;  %6038 = vmatprep.subr.bf16.mxu1 %v10800_v9 }
 0xf23   :  { %5998 = vmatpush1.bf16.msra.mxu0 %v10804_v32  ;;  %6039 = vmatpush1.bf16.msra.mxu1 %v10806_v48 }
 0xf24   :  { %5999 = vmatprep.subr.bf16.mxu0 %v10810_v6  ;;  %6040 = vmatprep.subr.bf16.mxu1 %v10812_v22 }
 0xf27   :  { %6000 = vmatpush1.bf16.msra.mxu0 %v10816_v60  ;;  %6041 = vmatpush1.bf16.msra.mxu1 %v10818_v46 }
 0xf28   :  { %6126 = vmatprep.subr.bf16.mxu0 %v10696_v21  ;;  %6167 = vmatprep.subr.bf16.mxu1 %v10698_v55 }
 0xfca   :  { %v5877_v52 = vpop.f32.mrf.mxu0  ;;  %v5918_v28 = vpop.f32.mrf.mxu1 }
 0xfcb   :  { %v5929_v15 = vrot.slane %v5877_v52, 7  ;;  %v5931_v61 = vrot.slane %v5918_v28, 7 }
 0xfcc   :  { %v5879_v63 = vpop.f32.mrf.mxu0  ;;  %v5920_v24 = vpop.f32.mrf.mxu1 }
 0xfcd   :  { %v5937_v23 = vadd.f32 %v5929_v15, %v10895_v13  ;;  %v5930_v37 = vrot.slane %v5879_v63, 7  ;;  %v5932_v41 = vrot.slane %v5920_v24, 7  ;;  %v5939_v3 = vadd.f32 %v5931_v61, %v10900_v38 }
 0xfce   :  { %v5881_v44 = vpop.f32.mrf.mxu0  ;;  %v5922_v56 = vpop.f32.mrf.mxu1 }
 0xfcf   :  { %v7271_v53 = vmul.f32 -1.442695, %v5937_v23  ;;  %v5938_v5 = vadd.f32 %v5930_v37, %v10913_v0  ;;  %v5940_v7 = vadd.f32 %v5932_v41, %v10917_v19 }
 0xfd0   :  { %v5882_v18 = vpop.f32.mrf.mxu0  ;;  %v5923_v29 = vpop.f32.mrf.mxu1 }
 0xfd1   :  { %8093 = vpow2.f32 %v7271_v53  ;;  %v7272_v2 = vmul.f32 -1.442695, %v5938_v5  ;;  %v7273_v52 = vmul.f32 -1.442695, %v5940_v7  ;;  %v5961_v53 = vrot.slane %v10967_v4, 7 }
 0xfd3   :  { %8095 = vpow2.f32 %v7272_v2 }
 0xfd4   :  { %8097 = vpow2.f32 %v7273_v52 }
 0xfde   :  { %v8094_v25 = vpop.eup %8093 }
 0xfdf   :  { %v5944_v15 = vadd.f32 1.0, %v8094_v25 }
 0xfe0   :  { %v8096_v63 = vpop.eup %8095 }
 0xfe1   :  { %8099 = vrcp.f32 %v5944_v15  ;;  %v5950_v23 = vadd.f32 1.0, %v8096_v63  ;;  %v8098_v37 = vpop.eup %8097 }
 0xfe2   :  { %8101 = vtanh.f32 %v5939_v3  ;;  %v5957_v5 = vadd.f32 1.0, %v8098_v37 }
 0xfe3   :  { %8103 = vrcp.f32 %v5950_v23 }
 0xfe4   :  { %8105 = vrcp.f32 %v5957_v5 }
 0xfee   :  { %v8100_v44 = vpop.eup %8099 }
 0xfef   :  { %v8102_v56 = vpop.eup %8101 }
 0xff0   :  { %v8104_v24 = vpop.eup %8103  ;;  %v5964_v18 = vmul.f32 %v8102_v56, %v8100_v44 }
 0xff1   :  { %v5963_v28 = vmul.f32 %v8104_v24, %v5961_v53  ;;  %v8106_v25 = vpop.eup %8105 }
 0xff3   :  { %v11013_v29 = vadd.f32 %v5964_v18, %v5963_v28 }
 0xff5   :  { %8107 = vtanh.f32 %v11013_v29 }
0x1002   :  { %v8108_v61 = vpop.eup %8107 }
0x1003   :  { %v11016_v2 = vmul.f32 %v8108_v61, %v8106_v25 }
0x1005   :  { %12488 = vst [vmem:[#allocation81_spill] sm:$0xff] %v11016_v2  ;;  %v5980_v3 = vpack.c.bf16 %v11016_v2, %v11016_v2 }
0x1007   :  { %v5982_v41 = vshrl.u32 %v5980_v3, 16 }
0x1009   :  { %6018 = vmatmul.mubr.bf16.vlgmr.msra.gmra.mxu0 %v5982_v41  ;;  %6059 = vmatmul.mubr.bf16.vlgmr.msra.gmra.mxu1 %v5982_v41 }
0x100a   :  { %6127 = vmatpush1.bf16.msra.mxu0 %v10732_v27  ;;  %6168 = vmatpush1.bf16.msra.mxu1 %v10734_v40 }
0x100b   :  { %6128 = vmatprep.subr.bf16.mxu0 %v10736_v59  ;;  %6169 = vmatprep.subr.bf16.mxu1 %v10738_v62 }
0x100c   :  { %6158 = vmatprep.mubr.bf16.mxu0 %v12457_v58  ;;  %6199 = vmatprep.mubr.bf16.mxu1 %v12457_v58 }
0x100e   :  { %6129 = vmatpush1.bf16.msra.mxu0 %v10742_v54  ;;  %6170 = vmatpush1.bf16.msra.mxu1 %v10744_v45 }
0x100f   :  { %6130 = vmatprep.subr.bf16.mxu0 %v10748_v30  ;;  %6171 = vmatprep.subr.bf16.mxu1 %v10750_v35 }
0x1012   :  { %6131 = vmatpush1.bf16.msra.mxu0 %v10756_v57  ;;  %6172 = vmatpush1.bf16.msra.mxu1 %v10758_v42 }
0x1013   :  { %6132 = vmatprep.subr.bf16.mxu0 %v10762_v50  ;;  %6173 = vmatprep.subr.bf16.mxu1 %v10764_v10 }
0x1016   :  { %6133 = vmatpush1.bf16.msra.mxu0 %v10768_v14  ;;  %6174 = vmatpush1.bf16.msra.mxu1 %v10770_v51 }
0x1017   :  { %6134 = vmatprep.subr.bf16.mxu0 %v10774_v16  ;;  %6175 = vmatprep.subr.bf16.mxu1 %v10776_v34 }
0x101a   :  { %6135 = vmatpush1.bf16.msra.mxu0 %v10780_v47  ;;  %6176 = vmatpush1.bf16.msra.mxu1 %v10782_v12 }
0x101b   :  { %6136 = vmatprep.subr.bf16.mxu0 %v10786_v33  ;;  %6177 = vmatprep.subr.bf16.mxu1 %v10788_v43 }
0x101e   :  { %6137 = vmatpush1.bf16.msra.mxu0 %v10792_v1  ;;  %6178 = vmatpush1.bf16.msra.mxu1 %v10794_v36 }
0x101f   :  { %6138 = vmatprep.subr.bf16.mxu0 %v10798_v8  ;;  %6179 = vmatprep.subr.bf16.mxu1 %v10800_v9 }
0x1022   :  { %6139 = vmatpush1.bf16.msra.mxu0 %v10804_v32  ;;  %6180 = vmatpush1.bf16.msra.mxu1 %v10806_v48 }
0x1023   :  { %6140 = vmatprep.subr.bf16.mxu0 %v10810_v6  ;;  %6181 = vmatprep.subr.bf16.mxu1 %v10812_v22 }
0x1026   :  { %6141 = vmatpush1.bf16.msra.mxu0 %v10816_v60  ;;  %6182 = vmatpush1.bf16.msra.mxu1 %v10818_v46 }
0x1027   :  { %6257 = vmatprep.subr.bf16.mxu0 %v10696_v21  ;;  %6298 = vmatprep.subr.bf16.mxu1 %v10698_v55 }
0x10c9   :  { %v6019_v4 = vpop.f32.mrf.mxu0  ;;  %v6060_v7 = vpop.f32.mrf.mxu1 }
0x10ca   :  { %v6071_v52 = vrot.slane %v6019_v4, 6  ;;  %v6073_v3 = vrot.slane %v6060_v7, 6 }
0x10cb   :  { %v6021_v15 = vpop.f32.mrf.mxu0  ;;  %v6062_v63 = vpop.f32.mrf.mxu1 }
0x10cc   :  { %v6079_v23 = vadd.f32 %v6071_v52, %v10904_v17  ;;  %v6072_v37 = vrot.slane %v6021_v15, 6  ;;  %v6074_v25 = vrot.slane %v6062_v63, 6  ;;  %v6081_v38 = vadd.f32 %v6073_v3, %v10909_v39 }
0x10cd   :  { %v6023_v44 = vpop.f32.mrf.mxu0  ;;  %v6064_v56 = vpop.f32.mrf.mxu1 }
0x10ce   :  { %v7274_v53 = vmul.f32 -1.442695, %v6079_v23  ;;  %v6080_v24 = vadd.f32 %v6072_v37, %v10922_v11  ;;  %v6082_v61 = vadd.f32 %v6074_v25, %v10926_v20 }
0x10cf   :  { %v6024_v5 = vpop.f32.mrf.mxu0  ;;  %v6065_v18 = vpop.f32.mrf.mxu1 }
0x10d0   :  { %8109 = vpow2.f32 %v7274_v53  ;;  %v7275_v28 = vmul.f32 -1.442695, %v6080_v24  ;;  %v7276_v41 = vmul.f32 -1.442695, %v6082_v61  ;;  %v6103_v53 = vrot.slane %v11013_v29, 7 }
0x10d2   :  { %8111 = vpow2.f32 %v7275_v28 }
0x10d3   :  { %8113 = vpow2.f32 %v7276_v41 }
0x10dd   :  { %v8110_v4 = vpop.eup %8109 }
0x10de   :  { %v6086_v52 = vadd.f32 1.0, %v8110_v4 }
0x10df   :  { %v8112_v15 = vpop.eup %8111 }
0x10e0   :  { %8115 = vrcp.f32 %v6086_v52  ;;  %v6092_v23 = vadd.f32 1.0, %v8112_v15  ;;  %v8114_v37 = vpop.eup %8113 }
0x10e1   :  { %8117 = vtanh.f32 %v6081_v38  ;;  %v6099_v24 = vadd.f32 1.0, %v8114_v37  ;;  %v6771_v38 = vsel %vm248_vm4, %v10970_v31, %v11016_v2  ;;  %v12492_v2 = vld [vmem:[#allocation71_spill] sm:$0xff] }
0x10e2   :  { %8119 = vrcp.f32 %v6092_v23 }
0x10e3   :  { %8121 = vrcp.f32 %v6099_v24 }
0x10ed   :  { %v8116_v44 = vpop.eup %8115 }
0x10ee   :  { %v8118_v56 = vpop.eup %8117 }
0x10ef   :  { %v8120_v63 = vpop.eup %8119  ;;  %v6106_v5 = vmul.f32 %v8118_v56, %v8116_v44 }
0x10f0   :  { %v6105_v7 = vmul.f32 %v8120_v63, %v6103_v53  ;;  %v8122_v28 = vpop.eup %8121 }
0x10f2   :  { %v11059_v18 = vadd.f32 %v6106_v5, %v6105_v7  ;;  %v12490_v5 = vld [vmem:[#allocation103_spill] sm:$0xff] }
0x10f4   :  { %8123 = vtanh.f32 %v11059_v18 }
0x1101   :  { %v8124_v25 = vpop.eup %8123 }
0x1102   :  { %v11062_v61 = vmul.f32 %v8124_v25, %v8122_v28 }
0x1104   :  { %12489 = vst [vmem:[#allocation83_spill] sm:$0xff] %v11062_v61  ;;  %v6122_v29 = vpack.c.bf16 %v11062_v61, %v11062_v61  ;;  %v11071_v3 = vsel %vm250_vm5, %v6771_v38, %v11062_v61 }
0x1106   :  { %v6124_v41 = vrot.slane %v6122_v29, 1 }
0x1108   :  { %6159 = vmatmul.mubr.bf16.vlgmr.msra.gmra.mxu0 %v6124_v41  ;;  %6200 = vmatmul.mubr.bf16.vlgmr.msra.gmra.mxu1 %v6124_v41 }
0x1109   :  { %6258 = vmatpush1.bf16.msra.mxu0 %v10732_v27  ;;  %6299 = vmatpush1.bf16.msra.mxu1 %v10734_v40 }
0x110a   :  { %6259 = vmatprep.subr.bf16.mxu0 %v10736_v59  ;;  %6300 = vmatprep.subr.bf16.mxu1 %v10738_v62 }
0x110b   :  { %6289 = vmatprep.mubr.bf16.mxu0 %v12457_v58  ;;  %6330 = vmatprep.mubr.bf16.mxu1 %v12457_v58 }
0x110d   :  { %6260 = vmatpush1.bf16.msra.mxu0 %v10742_v54  ;;  %6301 = vmatpush1.bf16.msra.mxu1 %v10744_v45 }
0x110e   :  { %6261 = vmatprep.subr.bf16.mxu0 %v10748_v30  ;;  %6302 = vmatprep.subr.bf16.mxu1 %v10750_v35 }
0x1111   :  { %6262 = vmatpush1.bf16.msra.mxu0 %v10756_v57  ;;  %6303 = vmatpush1.bf16.msra.mxu1 %v10758_v42 }
0x1112   :  { %6263 = vmatprep.subr.bf16.mxu0 %v10762_v50  ;;  %6304 = vmatprep.subr.bf16.mxu1 %v10764_v10 }
0x1115   :  { %6264 = vmatpush1.bf16.msra.mxu0 %v10768_v14  ;;  %6305 = vmatpush1.bf16.msra.mxu1 %v10770_v51 }
0x1116   :  { %6265 = vmatprep.subr.bf16.mxu0 %v10774_v16  ;;  %6306 = vmatprep.subr.bf16.mxu1 %v10776_v34 }
0x1119   :  { %6266 = vmatpush1.bf16.msra.mxu0 %v10780_v47  ;;  %6307 = vmatpush1.bf16.msra.mxu1 %v10782_v12 }
0x111a   :  { %6267 = vmatprep.subr.bf16.mxu0 %v10786_v33  ;;  %6308 = vmatprep.subr.bf16.mxu1 %v10788_v43 }
0x111d   :  { %6268 = vmatpush1.bf16.msra.mxu0 %v10792_v1  ;;  %6309 = vmatpush1.bf16.msra.mxu1 %v10794_v36 }
0x111e   :  { %6269 = vmatprep.subr.bf16.mxu0 %v10798_v8  ;;  %6310 = vmatprep.subr.bf16.mxu1 %v10800_v9 }
0x1121   :  { %6270 = vmatpush1.bf16.msra.mxu0 %v10804_v32  ;;  %6311 = vmatpush1.bf16.msra.mxu1 %v10806_v48 }
0x1122   :  { %6271 = vmatprep.subr.bf16.mxu0 %v10810_v6  ;;  %6312 = vmatprep.subr.bf16.mxu1 %v10812_v22 }
0x1125   :  { %6272 = vmatpush1.bf16.msra.mxu0 %v10816_v60  ;;  %6313 = vmatpush1.bf16.msra.mxu1 %v10818_v46 }
0x1126   :  { %6386 = vmatprep.subr.bf16.mxu0 %v10696_v21  ;;  %6427 = vmatprep.subr.bf16.mxu1 %v10698_v55  ;;  %v12491_v55 = vld [vmem:[#allocation73_spill] sm:$0xff] }
0x11c8   :  { %v6160_v4 = vpop.f32.mrf.mxu0  ;;  %v6201_v52 = vpop.f32.mrf.mxu1 }
0x11c9   :  { %v6212_v15 = vrot.slane %v6160_v4, 5  ;;  %v6214_v41 = vrot.slane %v6201_v52, 5 }
0x11ca   :  { %v6162_v23 = vpop.f32.mrf.mxu0  ;;  %v6203_v37 = vpop.f32.mrf.mxu1 }
0x11cb   :  { %v6220_v44 = vadd.f32 %v6212_v15, %v10930_v49  ;;  %v6213_v56 = vrot.slane %v6162_v23, 5  ;;  %v6215_v21 = vrot.slane %v6203_v37, 5  ;;  %v6222_v61 = vadd.f32 %v6214_v41, %v12492_v2 }
0x11cc   :  { %v6164_v53 = vpop.f32.mrf.mxu0  ;;  %v6205_v63 = vpop.f32.mrf.mxu1 }
0x11cd   :  { %v7277_v24 = vmul.f32 -1.442695, %v6220_v44  ;;  %v6221_v7 = vadd.f32 %v6213_v56, %v12490_v5  ;;  %v6223_v29 = vadd.f32 %v6215_v21, %v12491_v55 }
0x11ce   :  { %v6165_v28 = vpop.f32.mrf.mxu0  ;;  %v6206_v25 = vpop.f32.mrf.mxu1 }
0x11cf   :  { %8125 = vpow2.f32 %v7277_v24  ;;  %v7278_v38 = vmul.f32 -1.442695, %v6221_v7  ;;  %v7279_v4 = vmul.f32 -1.442695, %v6223_v29  ;;  %v6244_v24 = vrot.slane %v11059_v18, 7 }
0x11d1   :  { %8127 = vpow2.f32 %v7278_v38 }
0x11d2   :  { %8129 = vpow2.f32 %v7279_v4 }
0x11dc   :  { %v8126_v31 = vpop.eup %8125 }
0x11dd   :  { %v6227_v15 = vadd.f32 1.0, %v8126_v31 }
0x11de   :  { %v8128_v23 = vpop.eup %8127 }
0x11df   :  { %8131 = vrcp.f32 %v6227_v15  ;;  %v6233_v44 = vadd.f32 1.0, %v8128_v23  ;;  %v8130_v56 = vpop.eup %8129  ;;  %v12495_v23 = vld [vmem:[#allocation77_spill] sm:$0xff] }
0x11e0   :  { %8133 = vtanh.f32 %v6222_v61  ;;  %v6240_v7 = vadd.f32 1.0, %v8130_v56 }
0x11e1   :  { %8135 = vrcp.f32 %v6233_v44 }
0x11e2   :  { %8137 = vrcp.f32 %v6240_v7 }
0x11ec   :  { %v8132_v53 = vpop.eup %8131 }
0x11ed   :  { %v8134_v63 = vpop.eup %8133 }
0x11ee   :  { %v8136_v37 = vpop.eup %8135  ;;  %v6247_v28 = vmul.f32 %v8134_v63, %v8132_v53 }
0x11ef   :  { %v6246_v52 = vmul.f32 %v8136_v37, %v6244_v24  ;;  %v8138_v31 = vpop.eup %8137 }
0x11f1   :  { %v11112_v25 = vadd.f32 %v6247_v28, %v6246_v52 }
0x11f3   :  { %8139 = vtanh.f32 %v11112_v25  ;;  %v6375_v7 = vrot.slane %v11112_v25, 7 }
0x1200   :  { %v8140_v38 = vpop.eup %8139 }
0x1201   :  { %v11115_v21 = vmul.f32 %v8140_v38, %v8138_v31 }
0x1203   :  { %v6251_v61 = vpack.c.bf16 %v11115_v21, %v11115_v21  ;;  %v11122_v18 = vsel %vm252_vm6, %v11071_v3, %v11115_v21 }
0x1205   :  { %v6253_v29 = vshrl.u32 %v6251_v61, 16 }
0x1207   :  { %v6255_v41 = vrot.slane %v6253_v29, 1 }
0x1209   :  { %6290 = vmatmul.mubr.bf16.vlgmr.msra.gmra.mxu0 %v6255_v41  ;;  %6331 = vmatmul.mubr.bf16.vlgmr.msra.gmra.mxu1 %v6255_v41 }
0x120a   :  { %6387 = vmatpush1.bf16.msra.mxu0 %v10732_v27  ;;  %6428 = vmatpush1.bf16.msra.mxu1 %v10734_v40  ;;  %v11156_v27 = vld [vmem:[#allocation7 + $0xe4] ss:$16 sps:$4 sm:$0xff]   ;;  %v11159_v40 = vld [vmem:[#allocation7 + $0xec] ss:$16 sps:$4 sm:$0xff]  }
0x120b   :  { %6388 = vmatprep.subr.bf16.mxu0 %v10736_v59  ;;  %6429 = vmatprep.subr.bf16.mxu1 %v10738_v62 }
0x120c   :  { %6418 = vmatprep.mubr.bf16.mxu0 %v12457_v58  ;;  %6459 = vmatprep.mubr.bf16.mxu1 %v12457_v58 }
0x120e   :  { %6389 = vmatpush1.bf16.msra.mxu0 %v10742_v54  ;;  %6430 = vmatpush1.bf16.msra.mxu1 %v10744_v45 }
0x120f   :  { %6390 = vmatprep.subr.bf16.mxu0 %v10748_v30  ;;  %6431 = vmatprep.subr.bf16.mxu1 %v10750_v35 }
0x1212   :  { %6391 = vmatpush1.bf16.msra.mxu0 %v10756_v57  ;;  %6432 = vmatpush1.bf16.msra.mxu1 %v10758_v42 }
0x1213   :  { %6392 = vmatprep.subr.bf16.mxu0 %v10762_v50  ;;  %6433 = vmatprep.subr.bf16.mxu1 %v10764_v10 }
0x1216   :  { %6393 = vmatpush1.bf16.msra.mxu0 %v10768_v14  ;;  %6434 = vmatpush1.bf16.msra.mxu1 %v10770_v51  ;;  %v12493_v14 = vld [vmem:[#allocation105_spill] sm:$0xff] }
0x1217   :  { %6394 = vmatprep.subr.bf16.mxu0 %v10774_v16  ;;  %6435 = vmatprep.subr.bf16.mxu1 %v10776_v34 }
0x121a   :  { %6395 = vmatpush1.bf16.msra.mxu0 %v10780_v47  ;;  %6436 = vmatpush1.bf16.msra.mxu1 %v10782_v12 }
0x121b   :  { %6396 = vmatprep.subr.bf16.mxu0 %v10786_v33  ;;  %6437 = vmatprep.subr.bf16.mxu1 %v10788_v43  ;;  %v12494_v33 = vld [vmem:[#allocation75_spill] sm:$0xff] }
0x121e   :  { %6397 = vmatpush1.bf16.msra.mxu0 %v10792_v1  ;;  %6438 = vmatpush1.bf16.msra.mxu1 %v10794_v36 }
0x121f   :  { %6398 = vmatprep.subr.bf16.mxu0 %v10798_v8  ;;  %6439 = vmatprep.subr.bf16.mxu1 %v10800_v9 }
0x1222   :  { %6399 = vmatpush1.bf16.msra.mxu0 %v10804_v32  ;;  %6440 = vmatpush1.bf16.msra.mxu1 %v10806_v48 }
0x1223   :  { %6400 = vmatprep.subr.bf16.mxu0 %v10810_v6  ;;  %6441 = vmatprep.subr.bf16.mxu1 %v10812_v22 }
0x1226   :  { %6401 = vmatpush1.bf16.msra.mxu0 %v10816_v60  ;;  %6442 = vmatpush1.bf16.msra.mxu1 %v10818_v46 }
0x1227   :  { %6517 = vmatprep.subr.bf16.mxu0 %v11156_v27  ;;  %6558 = vmatprep.subr.bf16.mxu1 %v11159_v40 }
0x12c9   :  { %v6291_v59 = vpop.f32.mrf.mxu0  ;;  %v6332_v62 = vpop.f32.mrf.mxu1 }
0x12ca   :  { %v6343_v54 = vrot.slane %v6291_v59, 4  ;;  %v6345_v3 = vrot.slane %v6332_v62, 4 }
0x12cb   :  { %v6293_v45 = vpop.f32.mrf.mxu0  ;;  %v6334_v30 = vpop.f32.mrf.mxu1 }
0x12cc   :  { %v6351_v35 = vadd.f32 %v6343_v54, %v10947_v26  ;;  %v6344_v57 = vrot.slane %v6293_v45, 4  ;;  %v6346_v12 = vrot.slane %v6334_v30, 4  ;;  %v6353_v44 = vadd.f32 %v6345_v3, %v12495_v23  ;;  %v11179_v45 = vld [vmem:[#allocation7 + $0xe0] ss:$16 sps:$4 sm:$0xff]   ;;  %v11182_v30 = vld [vmem:[#allocation7 + $0xe8] ss:$16 sps:$4 sm:$0xff]  }
0x12cd   :  { %v6295_v42 = vpop.f32.mrf.mxu0  ;;  %v6336_v50 = vpop.f32.mrf.mxu1  ;;  %v11229_v3 = vld [vmem:[#allocation7 + $0x60] ss:$16 sps:$4 sm:$0xff]   ;;  %v11238_v23 = vld [vmem:[#allocation7 + $0x4c] ss:$16 sps:$4 sm:$0xff]  }
0x12ce   :  { %v7280_v10 = vmul.f32 -1.442695, %v6351_v35  ;;  %v6352_v51 = vadd.f32 %v6344_v57, %v12493_v14  ;;  %v6354_v43 = vadd.f32 %v6346_v12, %v12494_v33  ;;  %v11185_v35 = vld [vmem:[#allocation7 + $0xc4] ss:$16 sps:$4 sm:$0xff]   ;;  %v11188_v57 = vld [vmem:[#allocation7 + $0xcc] ss:$16 sps:$4 sm:$0xff]  }
0x12cf   :  { %v6296_v16 = vpop.f32.mrf.mxu0  ;;  %v6337_v34 = vpop.f32.mrf.mxu1  ;;  %v11196_v42 = vld [vmem:[#allocation7 + $0xc8] ss:$16 sps:$4 sm:$0xff]   ;;  %v11199_v50 = vld [vmem:[#allocation7 + $0xa4] ss:$16 sps:$4 sm:$0xff]   ;;  %v11205_v14 = vld [vmem:[#allocation7 + $0xa0] ss:$16 sps:$4 sm:$0xff]  }
0x12d0   :  { %8141 = vpow2.f32 %v7280_v10  ;;  %v7281_v47 = vmul.f32 -1.442695, %v6352_v51  ;;  %v7282_v4 = vmul.f32 -1.442695, %v6354_v43  ;;  %v11202_v10 = vld [vmem:[#allocation7 + $0xac] ss:$16 sps:$4 sm:$0xff]  }
0x12d1   :  { %v11208_v51 = vld [vmem:[#allocation7 + $0xa8] ss:$16 sps:$4 sm:$0xff]   ;;  %v11211_v16 = vld [vmem:[#allocation7 + $0x84] ss:$16 sps:$4 sm:$0xff]   ;;  %v11214_v34 = vld [vmem:[#allocation7 + $0x8c] ss:$16 sps:$4 sm:$0xff]  }
0x12d2   :  { %8143 = vpow2.f32 %v7281_v47  ;;  %v11217_v47 = vld [vmem:[#allocation7 + $0x80] ss:$16 sps:$4 sm:$0xff]   ;;  %v11220_v12 = vld [vmem:[#allocation7 + $0x88] ss:$16 sps:$4 sm:$0xff]   ;;  %v11223_v33 = vld [vmem:[#allocation7 + $0x64] ss:$16 sps:$4 sm:$0xff]  }
0x12d3   :  { %8145 = vpow2.f32 %v7282_v4  ;;  %v11226_v43 = vld [vmem:[#allocation7 + $0x6c] ss:$16 sps:$4 sm:$0xff]   ;;  %v11232_v4 = vld [vmem:[#allocation7 + $0x68] ss:$16 sps:$4 sm:$0xff]  }
0x12dd   :  { %v8142_v15 = vpop.eup %8141 }
0x12de   :  { %v6358_v26 = vadd.f32 1.0, %v8142_v15  ;;  %v11235_v15 = vld [vmem:[#allocation7 + $0x44] ss:$16 sps:$4 sm:$0xff]  }
0x12df   :  { %v8144_v56 = vpop.eup %8143 }
0x12e0   :  { %8147 = vrcp.f32 %v6358_v26  ;;  %v6364_v53 = vadd.f32 1.0, %v8144_v56  ;;  %v8146_v63 = vpop.eup %8145 }
0x12e1   :  { %8149 = vtanh.f32 %v6353_v44  ;;  %v6371_v52 = vadd.f32 1.0, %v8146_v63 }
0x12e2   :  { %8151 = vrcp.f32 %v6364_v53 }
0x12e3   :  { %8153 = vrcp.f32 %v6371_v52 }
0x12ed   :  { %v8148_v24 = vpop.eup %8147 }
0x12ee   :  { %v8150_v37 = vpop.eup %8149 }
0x12ef   :  { %v8152_v28 = vpop.eup %8151  ;;  %v6378_v31 = vmul.f32 %v8150_v37, %v8148_v24 }
0x12f0   :  { %v6377_v38 = vmul.f32 %v8152_v28, %v6375_v7  ;;  %v8154_v29 = vpop.eup %8153  ;;  %v12496_v7 = vld [vmem:[#allocation101_spill] sm:$0xff] }
0x12f2   :  { %v11167_v61 = vadd.f32 %v6378_v31, %v6377_v38 }
0x12f4   :  { %8155 = vtanh.f32 %v11167_v61 }
0x1301   :  { %v8156_v41 = vpop.eup %8155 }
0x1302   :  { %v11170_v59 = vmul.f32 %v8156_v41, %v8154_v29  ;;  %v6504_v41 = vrot.slane %v11167_v61, 7 }
0x1304   :  { %v6382_v62 = vpack.c.bf16 %v11170_v59, %v11170_v59  ;;  %v11177_v25 = vsel %vm254_vm7, %v11122_v18, %v11170_v59  ;;  %v11193_v18 = vld [vmem:[#allocation7 + $0xc0] ss:$16 sps:$4 sm:$0xff]  }
0x1306   :  { %v6384_v54 = vrot.slane %v6382_v62, 2 }
0x1308   :  { %6419 = vmatmul.mubr.bf16.vlgmr.msra.gmra.mxu0 %v6384_v54  ;;  %6460 = vmatmul.mubr.bf16.vlgmr.msra.gmra.mxu1 %v6384_v54 }
0x1309   :  { %6518 = vmatpush1.bf16.msra.mxu0 %v11179_v45  ;;  %6559 = vmatpush1.bf16.msra.mxu1 %v11182_v30 }
0x130a   :  { %6519 = vmatprep.subr.bf16.mxu0 %v11185_v35  ;;  %6560 = vmatprep.subr.bf16.mxu1 %v11188_v57 }
0x130b   :  { %6549 = vmatprep.mubr.bf16.mxu0 %v12457_v58  ;;  %6590 = vmatprep.mubr.bf16.mxu1 %v12457_v58 }
0x130d   :  { %6520 = vmatpush1.bf16.msra.mxu0 %v11193_v18  ;;  %6561 = vmatpush1.bf16.msra.mxu1 %v11196_v42 }
0x130e   :  { %6521 = vmatprep.subr.bf16.mxu0 %v11199_v50  ;;  %6562 = vmatprep.subr.bf16.mxu1 %v11202_v10 }
0x1311   :  { %6522 = vmatpush1.bf16.msra.mxu0 %v11205_v14  ;;  %6563 = vmatpush1.bf16.msra.mxu1 %v11208_v51 }
0x1312   :  { %6523 = vmatprep.subr.bf16.mxu0 %v11211_v16  ;;  %6564 = vmatprep.subr.bf16.mxu1 %v11214_v34 }
0x1315   :  { %6524 = vmatpush1.bf16.msra.mxu0 %v11217_v47  ;;  %6565 = vmatpush1.bf16.msra.mxu1 %v11220_v12 }
0x1316   :  { %6525 = vmatprep.subr.bf16.mxu0 %v11223_v33  ;;  %6566 = vmatprep.subr.bf16.mxu1 %v11226_v43 }
0x1319   :  { %6526 = vmatpush1.bf16.msra.mxu0 %v11229_v3  ;;  %6567 = vmatpush1.bf16.msra.mxu1 %v11232_v4 }
0x131a   :  { %6527 = vmatprep.subr.bf16.mxu0 %v11235_v15  ;;  %6568 = vmatprep.subr.bf16.mxu1 %v11238_v23 }
0x131d   :  { %6528 = vmatpush1.bf16.msra.mxu0 %v10792_v1  ;;  %6569 = vmatpush1.bf16.msra.mxu1 %v10794_v36 }
0x131e   :  { %6529 = vmatprep.subr.bf16.mxu0 %v10798_v8  ;;  %6570 = vmatprep.subr.bf16.mxu1 %v10800_v9 }
0x1321   :  { %6530 = vmatpush1.bf16.msra.mxu0 %v10804_v32  ;;  %6571 = vmatpush1.bf16.msra.mxu1 %v10806_v48 }
0x1322   :  { %6531 = vmatprep.subr.bf16.mxu0 %v10810_v6  ;;  %6572 = vmatprep.subr.bf16.mxu1 %v10812_v22 }
0x1325   :  { %6532 = vmatpush1.bf16.msra.mxu0 %v10816_v60  ;;  %6573 = vmatpush1.bf16.msra.mxu1 %v10818_v46 }
0x1326   :  { %6646 = vmatprep.subr.bf16.mxu0 %v11156_v27  ;;  %6687 = vmatprep.subr.bf16.mxu1 %v11159_v40 }
0x13c8   :  { %v6420_v1 = vpop.f32.mrf.mxu0  ;;  %v6461_v36 = vpop.f32.mrf.mxu1 }
0x13c9   :  { %v6472_v8 = vrot.slane %v6420_v1, 3  ;;  %v6474_v63 = vrot.slane %v6461_v36, 3 }
0x13ca   :  { %v6422_v9 = vpop.f32.mrf.mxu0  ;;  %v6463_v44 = vpop.f32.mrf.mxu1 }
0x13cb   :  { %v6480_v32 = vadd.f32 %v6472_v8, %v10895_v13  ;;  %v6473_v48 = vrot.slane %v6422_v9, 3  ;;  %v6475_v27 = vrot.slane %v6463_v44, 3  ;;  %v6482_v28 = vadd.f32 %v6474_v63, %v12496_v7 }
0x13cc   :  { %v6424_v26 = vpop.f32.mrf.mxu0  ;;  %v6465_v6 = vpop.f32.mrf.mxu1 }
0x13cd   :  { %v7283_v56 = vmul.f32 -1.442695, %v6480_v32  ;;  %v6481_v22 = vadd.f32 %v6473_v48, %v10913_v0  ;;  %v6483_v40 = vadd.f32 %v6475_v27, %v10917_v19 }
0x13ce   :  { %v6425_v60 = vpop.f32.mrf.mxu0  ;;  %v6466_v53 = vpop.f32.mrf.mxu1 }
0x13cf   :  { %8157 = vpow2.f32 %v7283_v56  ;;  %v7284_v46 = vmul.f32 -1.442695, %v6481_v22  ;;  %v7285_v24 = vmul.f32 -1.442695, %v6483_v40 }
0x13d1   :  { %8159 = vpow2.f32 %v7284_v46 }
0x13d2   :  { %8161 = vpow2.f32 %v7285_v24 }
0x13dc   :  { %v8158_v37 = vpop.eup %8157 }
0x13dd   :  { %v6487_v13 = vadd.f32 1.0, %v8158_v37 }
0x13de   :  { %v8160_v52 = vpop.eup %8159 }
0x13df   :  { %8163 = vrcp.f32 %v6487_v13  ;;  %v6493_v31 = vadd.f32 1.0, %v8160_v52  ;;  %v8162_v0 = vpop.eup %8161 }
0x13e0   :  { %8165 = vtanh.f32 %v6482_v28  ;;  %v6500_v54 = vadd.f32 1.0, %v8162_v0 }
0x13e1   :  { %8167 = vrcp.f32 %v6493_v31 }
0x13e2   :  { %8169 = vrcp.f32 %v6500_v54 }
0x13ec   :  { %v8164_v38 = vpop.eup %8163 }
0x13ed   :  { %v8166_v29 = vpop.eup %8165 }
0x13ee   :  { %v8168_v62 = vpop.eup %8167  ;;  %v6507_v19 = vmul.f32 %v8166_v29, %v8164_v38 }
0x13ef   :  { %v6506_v1 = vmul.f32 %v8168_v62, %v6504_v41  ;;  %v8170_v8 = vpop.eup %8169 }
0x13f1   :  { %v11258_v36 = vadd.f32 %v6507_v19, %v6506_v1  ;;  %v7817_v1 = vld [vmem:[%s11363_s14 + $0x18] sm:$0xff]  }
0x13f3   :  { %8171 = vtanh.f32 %v11258_v36  ;;  %v6635_v13 = vrot.slane %v11258_v36, 7  ;;  %v7818_v36 = vld [vmem:[%s11363_s14 + $0x10] sm:$0xff]  }
0x1400   :  { %v8172_v9 = vpop.eup %8171 }
0x1401   :  { %v11261_v44 = vmul.f32 %v8172_v9, %v8170_v8  ;;  %v7819_v8 = vld [vmem:[%s11363_s14 + $0x8] sm:$0xff]  }
0x1403   :  { %v6511_v32 = vpack.c.bf16 %v11261_v44, %v11261_v44  ;;  %v11268_v61 = vsel %vm256_vm8, %v11177_v25, %v11261_v44  ;;  %v8232_v25 = vld [vmem:[#allocation7 + $0x48] ss:$16 sps:$4 sm:$0xff]  }
0x1405   :  { %v6513_v48 = vshrl.u32 %v6511_v32, 16 }
0x1407   :  { %v6515_v26 = vrot.slane %v6513_v48, 2 }
0x1409   :  { %6550 = vmatmul.mubr.bf16.vlgmr.msra.gmra.mxu0 %v6515_v26  ;;  %6591 = vmatmul.mubr.bf16.vlgmr.msra.gmra.mxu1 %v6515_v26 }
0x140a   :  { %6647 = vmatpush1.bf16.msra.mxu0 %v11179_v45  ;;  %6688 = vmatpush1.bf16.msra.mxu1 %v11182_v30  ;;  %v8233_v45 = vld [vmem:[#allocation7 + $0x24] ss:$16 sps:$4 sm:$0xff]   ;;  %v8234_v30 = vld [vmem:[#allocation7 + $0x2c] ss:$16 sps:$4 sm:$0xff]  }
0x140b   :  { %6648 = vmatprep.subr.bf16.mxu0 %v11185_v35  ;;  %6689 = vmatprep.subr.bf16.mxu1 %v11188_v57  ;;  %v8235_v35 = vld [vmem:[#allocation7 + $0x20] ss:$16 sps:$4 sm:$0xff]   ;;  %v8236_v57 = vld [vmem:[#allocation7 + $0x28] ss:$16 sps:$4 sm:$0xff]  }
0x140c   :  { %6678 = vmatprep.mubr.bf16.mxu0 %v12457_v58  ;;  %6719 = vmatprep.mubr.bf16.mxu1 %v12457_v58  ;;  %v8231_v58 = vld [vmem:[#allocation7 + $0x40] ss:$16 sps:$4 sm:$0xff]  }
0x140e   :  { %6649 = vmatpush1.bf16.msra.mxu0 %v11193_v18  ;;  %6690 = vmatpush1.bf16.msra.mxu1 %v11196_v42  ;;  %v8237_v18 = vld [vmem:[#allocation7 + $0x4] ss:$16 sps:$4 sm:$0xff]   ;;  %v8238_v42 = vld [vmem:[#allocation7 + $0xc] ss:$16 sps:$4 sm:$0xff]  }
0x140f   :  { %6650 = vmatprep.subr.bf16.mxu0 %v11199_v50  ;;  %6691 = vmatprep.subr.bf16.mxu1 %v11202_v10  ;;  %v8239_v50 = vld [vmem:[#allocation7] ss:$16 sps:$4 sm:$0xff]   ;;  %v8240_v10 = vld [vmem:[#allocation7 + $0x8] ss:$16 sps:$4 sm:$0xff]  }
0x1412   :  { %6651 = vmatpush1.bf16.msra.mxu0 %v11205_v14  ;;  %6692 = vmatpush1.bf16.msra.mxu1 %v11208_v51  ;;  %v12497_v14 = vmov 0.0  }
0x1413   :  { %6652 = vmatprep.subr.bf16.mxu0 %v11211_v16  ;;  %6693 = vmatprep.subr.bf16.mxu1 %v11214_v34 }
0x1416   :  { %6653 = vmatpush1.bf16.msra.mxu0 %v11217_v47  ;;  %6694 = vmatpush1.bf16.msra.mxu1 %v11220_v12 }
0x1417   :  { %6654 = vmatprep.subr.bf16.mxu0 %v11223_v33  ;;  %6695 = vmatprep.subr.bf16.mxu1 %v11226_v43 }
0x141a   :  { %6655 = vmatpush1.bf16.msra.mxu0 %v11229_v3  ;;  %6696 = vmatpush1.bf16.msra.mxu1 %v11232_v4 }
0x141b   :  { %6656 = vmatprep.subr.bf16.mxu0 %v11235_v15  ;;  %6697 = vmatprep.subr.bf16.mxu1 %v11238_v23 }
0x141e   :  { %6657 = vmatpush1.bf16.msra.mxu0 %v8231_v58  ;;  %6698 = vmatpush1.bf16.msra.mxu1 %v8232_v25 }
0x141f   :  { %6658 = vmatprep.subr.bf16.mxu0 %v8233_v45  ;;  %6699 = vmatprep.subr.bf16.mxu1 %v8234_v30 }
0x1422   :  { %6659 = vmatpush1.bf16.msra.mxu0 %v8235_v35  ;;  %6700 = vmatpush1.bf16.msra.mxu1 %v8236_v57 }
0x1423   :  { %6660 = vmatprep.subr.bf16.mxu0 %v8237_v18  ;;  %6701 = vmatprep.subr.bf16.mxu1 %v8238_v42 }
0x1426   :  { %6661 = vmatpush1.bf16.msra.mxu0 %v8239_v50  ;;  %6702 = vmatpush1.bf16.msra.mxu1 %v8240_v10 }
0x1427   :  { %7653 = vmatprep.subr.bf16.mxu0 %v12497_v14 }
0x14c9   :  { %v6551_v51 = vpop.f32.mrf.mxu0  ;;  %v6592_v16 = vpop.f32.mrf.mxu1 }
0x14ca   :  { %v6603_v34 = vrot.slane %v6551_v51, 2  ;;  %v6605_v46 = vrot.slane %v6592_v16, 2 }
0x14cb   :  { %v6553_v47 = vpop.f32.mrf.mxu0  ;;  %v6594_v12 = vpop.f32.mrf.mxu1 }
0x14cc   :  { %v6611_v33 = vadd.f32 %v6603_v34, %v10904_v17  ;;  %v6604_v43 = vrot.slane %v6553_v47, 2  ;;  %v6606_v60 = vrot.slane %v6594_v12, 2  ;;  %v6613_v63 = vadd.f32 %v6605_v46, %v10909_v39 }
0x14cd   :  { %v6555_v3 = vpop.f32.mrf.mxu0  ;;  %v6596_v4 = vpop.f32.mrf.mxu1 }
0x14ce   :  { %v7286_v15 = vmul.f32 -1.442695, %v6611_v33  ;;  %v6612_v23 = vadd.f32 %v6604_v43, %v10922_v11  ;;  %v6614_v53 = vadd.f32 %v6606_v60, %v10926_v20 }
0x14cf   :  { %v6556_v6 = vpop.f32.mrf.mxu0  ;;  %v6597_v56 = vpop.f32.mrf.mxu1 }
0x14d0   :  { %8173 = vpow2.f32 %v7286_v15  ;;  %v7287_v22 = vmul.f32 -1.442695, %v6612_v23  ;;  %v7288_v27 = vmul.f32 -1.442695, %v6614_v53  ;;  %v7820_v53 = vld [vmem:[%s11363_s14] sm:$0xff]  }
0x14d2   :  { %8175 = vpow2.f32 %v7287_v22 }
0x14d3   :  { %8177 = vpow2.f32 %v7288_v27 }
0x14dd   :  { %v8174_v40 = vpop.eup %8173 }
0x14de   :  { %v6618_v17 = vadd.f32 1.0, %v8174_v40 }
0x14df   :  { %v8176_v24 = vpop.eup %8175 }
0x14e0   :  { %8179 = vrcp.f32 %v6618_v17  ;;  %v6624_v37 = vadd.f32 1.0, %v8176_v24  ;;  %v8178_v11 = vpop.eup %8177  ;;  %v6788_v17 = vrot.slane %v11170_v59, 1 }
0x14e1   :  { %8181 = vtanh.f32 %v6613_v63  ;;  %v6631_v31 = vadd.f32 1.0, %v8178_v11  ;;  %v6785_v63 = vrot.slane %v11261_v44, 3 }
0x14e2   :  { %8183 = vrcp.f32 %v6624_v37  ;;  %v6791_v37 = vrot.slane %v11115_v21, 7 }
0x14e3   :  { %8185 = vrcp.f32 %v6631_v31 }
0x14ed   :  { %v8180_v7 = vpop.eup %8179 }
0x14ee   :  { %v8182_v28 = vpop.eup %8181 }
0x14ef   :  { %v8184_v52 = vpop.eup %8183  ;;  %v6638_v20 = vmul.f32 %v8182_v28, %v8180_v7  ;;  %v12498_v7 = vld [vmem:[#allocation83_spill] sm:$0xff] }
0x14f0   :  { %v6637_v0 = vmul.f32 %v8184_v52, %v6635_v13  ;;  %v8186_v39 = vpop.eup %8185  ;;  %v6794_v28 = vrot.slane %v12498_v7, 5  ;;  %v12499_v52 = vld [vmem:[#allocation81_spill] sm:$0xff] }
0x14f1   :  { %v6797_v31 = vrot.slane %v12499_v52, 3 }
0x14f2   :  { %v6639_v38 = vadd.f32 %v6638_v20, %v6637_v0  ;;  %v12500_v0 = vld [vmem:[#allocation79_spill] sm:$0xff] }
0x14f4   :  { %8187 = vtanh.f32 %v6639_v38  ;;  %v6764_v4 = vrot.slane %v6639_v38, 7  ;;  %v6800_v38 = vrot.slane %v12500_v0, 1 }
0x1501   :  { %v8188_v29 = vpop.eup %8187 }
0x1502   :  { %v11298_v41 = vmul.f32 %v8188_v29, %v8186_v39 }
0x1504   :  { %v6642_v62 = vpack.c.bf16 %v11298_v41, %v11298_v41  ;;  %v6776_v54 = vsel %vm258_vm9, %v11268_v61, %v11298_v41  ;;  %v6782_v27 = vrot.slane %v11298_v41, 5 }
0x1506   :  { %v6644_v19 = vrot.slane %v6642_v62, 3  ;;  %v7292_v62 = vld [vmem:[%s11364_s15] ss:$0 sm:$0xff] }
0x1508   :  { %6679 = vmatmul.mubr.bf16.vlgmr.msra.gmra.mxu0 %v6644_v19  ;;  %6720 = vmatmul.mubr.bf16.vlgmr.msra.gmra.mxu1 %v6644_v19 }
0x1509   :  { %7661 = vmatprep.mubr.msk.bf16.mxu0 %vm8342_vm11, %v12497_v14  ;;  %7654 = vmatpush3.bf16.msra.mxu0 %v7817_v1 }
0x150a   :  { %7655 = vmatprep.subr.bf16.mxu0 %v12497_v14 }
0x150d   :  { %7656 = vmatpush3.bf16.msra.mxu0 %v7818_v36 }
0x150e   :  { %7657 = vmatprep.subr.bf16.mxu0 %v12497_v14 }
0x1511   :  { %7658 = vmatpush3.bf16.msra.mxu0 %v7819_v8 }
0x1512   :  { %7659 = vmatprep.subr.bf16.mxu0 %v12497_v14 }
0x1515   :  { %7660 = vmatpush3.bf16.msra.mxu0 %v7820_v53 }
0x15c8   :  { %v6680_v9 = vpop.f32.mrf.mxu0  ;;  %v6721_v32 = vpop.f32.mrf.mxu1 }
0x15c9   :  { %v6732_v61 = vrot.slane %v6680_v9, 1  ;;  %v6734_v51 = vrot.slane %v6721_v32, 1 }
0x15ca   :  { %v6682_v48 = vpop.f32.mrf.mxu0  ;;  %v6723_v26 = vpop.f32.mrf.mxu1 }
0x15cb   :  { %v6740_v58 = vadd.f32 %v6732_v61, %v10930_v49  ;;  %v6733_v25 = vrot.slane %v6682_v48, 1  ;;  %v6735_v10 = vrot.slane %v6723_v26, 1  ;;  %v6742_v47 = vadd.f32 %v6734_v51, %v12492_v2 }
0x15cc   :  { %v6684_v45 = vpop.f32.mrf.mxu0  ;;  %v6725_v30 = vpop.f32.mrf.mxu1 }
0x15cd   :  { %v7289_v35 = vmul.f32 -1.442695, %v6740_v58  ;;  %v6741_v57 = vadd.f32 %v6733_v25, %v12490_v5  ;;  %v6743_v14 = vadd.f32 %v6735_v10, %v12491_v55 }
0x15ce   :  { %v6685_v18 = vpop.f32.mrf.mxu0  ;;  %v6726_v42 = vpop.f32.mrf.mxu1 }
0x15cf   :  { %8189 = vpow2.f32 %v7289_v35  ;;  %v7290_v50 = vmul.f32 -1.442695, %v6741_v57  ;;  %v7291_v16 = vmul.f32 -1.442695, %v6743_v14 }
0x15d1   :  { %8191 = vpow2.f32 %v7290_v50 }
0x15d2   :  { %8193 = vpow2.f32 %v7291_v16 }
0x15dc   :  { %v8190_v34 = vpop.eup %8189 }
0x15dd   :  { %v6747_v49 = vadd.f32 1.0, %v8190_v34 }
0x15de   :  { %v8192_v12 = vpop.eup %8191 }
0x15df   :  { %8195 = vrcp.f32 %v6747_v49  ;;  %v6753_v33 = vadd.f32 1.0, %v8192_v12  ;;  %v8194_v5 = vpop.eup %8193 }
0x15e0   :  { %8197 = vtanh.f32 %v6742_v47  ;;  %v6760_v23 = vadd.f32 1.0, %v8194_v5 }
0x15e1   :  { %8199 = vrcp.f32 %v6753_v33 }
0x15e2   :  { %8201 = vrcp.f32 %v6760_v23 }
0x15ec   :  { %v8196_v43 = vpop.eup %8195 }
0x15ed   :  { %v8198_v3 = vpop.eup %8197 }
0x15ee   :  { %v8200_v15 = vpop.eup %8199  ;;  %v6767_v6 = vmul.f32 %v8198_v3, %v8196_v43 }
0x15ef   :  { %v6766_v55 = vmul.f32 %v8200_v15, %v6764_v4  ;;  %v8202_v22 = vpop.eup %8201 }
0x15f1   :  { %v6768_v56 = vadd.f32 %v6767_v6, %v6766_v55 }
0x15f3   :  { %8203 = vtanh.f32 %v6768_v56 }
0x1600   :  { %v8204_v2 = vpop.eup %8203 }
0x1601   :  { %v6770_v60 = vmul.f32 %v8204_v2, %v8202_v22 }
0x1603   :  { %v6779_v46 = vrot.slane %v6770_v60, 7  ;;  %v6777_v40 = vsel %vm260_vm10, %v6776_v54, %v6770_v60 }
0x1605   :  { %v6802_v24 = vsel %vm248_vm4, %v6779_v46, %v6782_v27 }
0x1606   :  { %v6803_v11 = vsel %vm250_vm5, %v6802_v24, %v6785_v63 }
0x1607   :  { %v6804_v13 = vsel %vm252_vm6, %v6803_v11, %v6788_v17 }
0x1608   :  { %v6805_v20 = vsel %vm254_vm7, %v6804_v13, %v6791_v37 }
0x1609   :  { %v6806_v44 = vsel %vm256_vm8, %v6805_v20, %v6794_v28 }
0x160a   :  { %v6807_v59 = vsel %vm258_vm9, %v6806_v44, %v6797_v31 }
0x160b   :  { %v6808_v39 = vsel %vm260_vm10, %v6807_v59, %v6800_v38 }
0x160c   :  { %6810 = vrot.lane.b32.xlu0 %v6808_v39, %s8344_s30  ;;  %s8345_s30 = smov [#allocation8]  }
0x160d   :  { %s6913_s25 = sshll.u32 %s8345_s30, 4  ;;  %s6914_s25 = int_to_ptr.vmem [resolvable:$true] %s6913_s25 }
0x160e   :  { %s8301_s15 = scalar_lea.vmem %s6914_s25, 128  ;;  %p8306_p2 = scmp.lt.s32.totalorder %s6914_s25, %s6914_s25 }
0x160f   :  { %p8302_p1 = scmp.ne.s32.totalorder %s6914_s25, %s8301_s15  ;;  %p8307_p3 = scmp.lt.s32.totalorder %s8301_s15, %s8301_s15 }
0x1611   :  { %p8308_p4 = por %p8307_p3, %p8306_p2 }
0x1613   :  { %p8309_p5 = pnand %p8308_p4, %p8302_p1 }
0x167e   :  { %v6811_v21 = vpop.permute.xlu0 %6810 }
0x167f   :  { %v6813_v29 = vadd.f32 %v6811_v21, %v6777_v40 }
0x1681   :  { %v6814_v41 = vpack.c.bf16 %v6813_v29, %v6813_v29 }
0x1683   :  { %7662 = vmatmul.mubr.msk.bf16.vlgmr.msra.gmra.mxu0 %vm887_vm14, %v6814_v41 }
0x1743   :  { %v6891_v54 = vpop.f32.mrf.mxu0 }
0x1744   :  { %v6892_v19 = vadd.f32 %v7292_v62, %v6891_v54 }
0x1745   :  { %v7663_v1 = vpop.f32.mrf.mxu0 }
0x1746   :  { %6897 = vmax.xlane.f32.xlu1 %v6892_v19 }
0x1747   :  { %v6894_v36 = vpop.f32.mrf.mxu0 }
0x1749   :  { %v7664_v8 = vpop.f32.mrf.mxu0 }
0x17cf   :  { %v6898_v9 = vpop.xlane.xlu1 %6897 }
0x17d0   :  { %v6899_v32 = vsub.f32 %v6892_v19, %v6898_v9 }
0x17d2   :  { %v6900_v61 = vmul.f32 1.442695, %v6899_v32 }
0x17d4   :  { %8205 = vpow2.f32 %v6900_v61 }
0x17e1   :  { %v8206_v48 = vpop.eup %8205 }
0x17e2   :  { %6902 = vadd.xlane.f32.xlu0 %v8206_v48 }
0x186b   :  { %v6903_v26 = vpop.xlane.xlu0 %6902 }
0x186c   :  { %8207 = vrcp.f32 %v6903_v26 }
0x1879   :  { %v8208_v58 = vpop.eup %8207 }
0x187a   :  { %v6905_v25 = vmul.f32 %v8208_v58, %v8206_v48 }
0x187c   :  { %6906 = vst [vmem:[#allocation8] sm:$0xff] %v6905_v25 }
0x187d   :  { %8312 = shalt.err (!%p8309_p5)
}
0x187e   :  { %6916 = dma.vmem_to_hbm [thread:$0]  %s6914_s25, 128, %s11365_s16, [#allocation4]  }
0x187f   :  { %8325 = dma.done.wait [#allocation4], 128  }
0x1880   :  { %8326 = vsyncadd [#allocation4], 4294967168 }
0x1881   :  { %6920 = vsyncpa [#allocation3], 1 }
0x1882   :  { %6921 = vsyncpa [#allocation6], 1 }
0x1883   :  { %6922 = vsyncpa [#allocation4], 1 }

</bundles_post_ra>
